<compile_context>
chip_gen: v5e
topology: v5e:2x2
jax: 0.10.0
libtpu: 0.0.40
codegen_flags: <defaults>
</compile_context>

<pallas_src>
import math
from functools import partial

import jax
import jax.numpy as jnp
from jax.experimental import pallas as pl
from jax.experimental.pallas import tpu as pltpu


# ----------------------------- in-kernel helpers -----------------------------

_GELU_C = math.sqrt(2.0 / math.pi)


def _bf16(x):
    return x.astype(jnp.bfloat16)


def _gelu(x):
    # TODO(synk): PyTorch nn.GELU() is erf-exact; tanh approximation used here
    # (EUP-friendly, ~1e-3 relative difference).
    return 0.5 * x * (1.0 + jnp.tanh(_GELU_C * (x + 0.044715 * x * x * x)))


def _layernorm(x, ln, eps=1e-5):
    # ln: (2, D) = [gamma; beta], f32
    mu = jnp.mean(x, axis=-1, keepdims=True)
    var = jnp.mean(jnp.square(x - mu), axis=-1, keepdims=True)
    return (x - mu) * jax.lax.rsqrt(var + eps) * ln[0:1, :] + ln[1:2, :]


def _split_heads(x3, nh, hd):
    # x3: (Bt, L, nh*hd) bf16 -> (nh*Bt, L, hd) bf16, head-major ([h][b]) order.
    # Static lane slices + leading-dim concat: no in-kernel transpose.
    return jnp.concatenate([x3[:, :, h * hd:(h + 1) * hd] for h in range(nh)], axis=0)


def _mha(qz, kz, vz, key_bias, Bt, nh):
    # qz: (nh*Bt, Lq, hd) bf16 ; kz/vz: (nh*Bt, Lk, hd) bf16
    # key_bias: (Bt, 1, Lk) f32 additive mask (0 valid / -1e9 masked) or None.
    Z, Lq, _ = qz.shape
    Lk = kz.shape[1]
    s = jnp.einsum('zqe,zke->zqk', qz, kz, preferred_element_type=jnp.float32)
    if key_bias is not None:
        s = (s.reshape(nh, Bt, Lq, Lk) + key_bias[None, :, :, :]).reshape(Z, Lq, Lk)
    m = jnp.max(s, axis=-1, keepdims=True)
    p = jnp.exp(s - m)
    p = p * pl.reciprocal(jnp.sum(p, axis=-1, keepdims=True), approx=True)
    return jnp.einsum('zqk,zke->zqe', _bf16(p), vz,
                      preferred_element_type=jnp.float32)          # (nh*Bt, Lq, hd) f32


def _heads_out_proj(o, wo, bo, nh):
    # o: (nh*Bt, Lq, hd) f32 (head-major) ; wo: (nh, hd, Dout) bf16 ; bo: (1, Dout) f32
    # Head axis contracted inside the matmuls (accumulated) -> no (nh, rows, Dout) temp.
    Z, Lq, hd = o.shape
    o_r = o.reshape(nh, (Z // nh) * Lq, hd)
    acc = None
    for h in range(nh):
        t = jnp.dot(_bf16(o_r[h]), wo[h], preferred_element_type=jnp.float32)
        acc = t if acc is None else acc + t
    return acc + bo


def _guided_branch(fv2, src2, Bt, S, Lk, nh, hd, key_bias, row_mask,
                   wq, wkv, wo, w1, w2, bq, bkv, bo, ln1, b1, b2, ln2):
    # TextGuidedVideoAttention / PresentGuidedVideoAttention (dropout = identity).
    # fv2: (Bt*S, Dv) f32 ; src2: (Bt*Lk, Ds) f32 ; row_mask: (Bt*S, 1) f32
    H = nh * hd
    q = jnp.dot(_bf16(fv2), wq, preferred_element_type=jnp.float32) + bq       # (Bt*S, H)
    kv = jnp.dot(_bf16(src2), wkv, preferred_element_type=jnp.float32) + bkv   # (Bt*Lk, 2H)
    qz = _split_heads(_bf16(q).reshape(Bt, S, H), nh, hd)
    kz = _split_heads(_bf16(kv[:, :H]).reshape(Bt, Lk, H), nh, hd)
    vz = _split_heads(_bf16(kv[:, H:]).reshape(Bt, Lk, H), nh, hd)
    o = _mha(qz, kz, vz, key_bias, Bt, nh)                                      # (nh*Bt, S, hd)
    attn = _heads_out_proj(o, wo, bo, nh)                                       # (Bt*S, Dv)
    x = _layernorm(fv2 + attn, ln1)
    h1 = jnp.maximum(jnp.dot(_bf16(x), w1, preferred_element_type=jnp.float32) + b1, 0.0)
    ff = jnp.dot(_bf16(h1), w2, preferred_element_type=jnp.float32) + b2
    y = _layernorm(x + ff, ln2)
    return y * row_mask                                   # Fv_enhanced * vid_mask[..., None]


def _compressor_branch(src2, Bt, S, L, nh, hd, key_bias, q_pre, query,
                       wkv, wo, w1, w2, bkv, bo, ln1, b1, b2, ln2):
    # SimpleCompressor (dropout = identity).  q_pre = q_proj(query) hoisted wrapper-side,
    # scale folded, head-split: (nh, L, hd) f32.  query: (L, D) f32.
    D = src2.shape[-1]
    H = nh * hd
    kv = jnp.dot(_bf16(src2), wkv, preferred_element_type=jnp.float32) + bkv    # (Bt*S, 2D)
    kz = _split_heads(_bf16(kv[:, :H]).reshape(Bt, S, H), nh, hd)
    vz = _split_heads(_bf16(kv[:, H:]).reshape(Bt, S, H), nh, hd)
    qz = jnp.broadcast_to(_bf16(q_pre)[:, None], (nh, Bt, L, hd)).reshape(nh * Bt, L, hd)
    o = _mha(qz, kz, vz, key_bias, Bt, nh)                                       # (nh*Bt, L, hd)
    attn = _heads_out_proj(o, wo, bo, nh)                                        # (Bt*L, D)
    qb = jnp.broadcast_to(query[None], (Bt, L, D)).reshape(Bt * L, D)
    x = _layernorm(qb + attn, ln1)
    h1 = jnp.maximum(jnp.dot(_bf16(x), w1, preferred_element_type=jnp.float32) + b1, 0.0)
    ff = jnp.dot(_bf16(h1), w2, preferred_element_type=jnp.float32) + b2
    return _layernorm(x + ff, ln2)                                               # (Bt*L, D)


def _gate_branch(fc, Bt, L, w1, b1, w2_row, b2):
    # Sequential(Linear, GELU, Linear(->1), Tanh, GELU); the 1-wide Linear is stored as a
    # row so it becomes a lane reduce instead of a 1-lane matmul.
    D = fc.shape[-1]
    m = jnp.mean(fc.reshape(Bt, L, D), axis=1)                                   # (Bt, D)
    h = _gelu(jnp.dot(_bf16(m), w1, preferred_element_type=jnp.float32) + b1)    # (Bt, 2*hidden)
    s = jnp.sum(h * w2_row, axis=-1, keepdims=True) + b2                         # (Bt, 1)
    return _gelu(jnp.tanh(s))


# ----------------------------- fused kernel ----------------------------------

def _fused_kernel(nh, offs, *refs):
    (ft_ref, fg_ref, fv_ref, tbias_ref, vbias_ref, vrow_ref,
     t_wq, t_wkv, t_wo, t_w1, t_w2,
     p_wq, p_wkv, p_wo, p_w1, p_w2,
     c_wkv, c_wo, c_w1, c_w2, c_qpre, c_query,
     g_w1, vec_ref,
     out_ref) = refs

    Bt, S, Dv = fv_ref.shape
    T = ft_ref.shape[1]
    G = fg_ref.shape[1]
    L = c_qpre.shape[2]
    hd_g = t_wq.shape[1] // nh       # guided-attention head dim (hidden / nh)
    hd_c = c_qpre.shape[3]           # compressor head dim      (Dv / nh)

    def vec(name):                   # packed small-parameter slab (static offsets)
        r0, nr, w = offs[name]
        return vec_ref[r0:r0 + nr, 0:w]

    # Batch is stacked into the row dimension of every matmul.
    ft2 = ft_ref[...].reshape(Bt * T, ft_ref.shape[2])
    fg2 = fg_ref[...].reshape(Bt * G, fg_ref.shape[2])
    fv2 = fv_ref[...].reshape(Bt * S, Dv)
    tbias = tbias_ref[...]                       # (Bt, 1, T) additive
    vbias = vbias_ref[...]                       # (Bt, 1, S) additive
    vrow = vrow_ref[...].reshape(Bt * S, 1)      # (Bt*S, 1)  multiplicative row mask

    # Branch 1: text-guided enhancement; Branch 2: present-guided enhancement.
    fv_text = _guided_branch(
        fv2, ft2, Bt, S, T, nh, hd_g, tbias, vrow,
        t_wq[...], t_wkv[...], t_wo[...], t_w1[...], t_w2[...],
        vec("t_bq"), vec("t_bkv"), vec("t_bo"), vec("t_ln1"),
        vec("t_b1"), vec("t_b2"), vec("t_ln2"))
    fv_pres = _guided_branch(
        fv2, fg2, Bt, S, G, nh, hd_g, None, vrow,
        p_wq[...], p_wkv[...], p_wo[...], p_w1[...], p_w2[...],
        vec("p_bq"), vec("p_bkv"), vec("p_bo"), vec("p_ln1"),
        vec("p_b1"), vec("p_b2"), vec("p_ln2"))

    # Learned-query compressors (index 0 = text branch, 1 = present branch).
    fc_text = _compressor_branch(
        fv_text, Bt, S, L, nh, hd_c, vbias, c_qpre[0], c_query[0],
        c_wkv[0], c_wo[0], c_w1[0], c_w2[0],
        vec("ct_bkv"), vec("ct_bo"), vec("ct_ln1"),
        vec("ct_b1"), vec("ct_b2"), vec("ct_ln2"))
    fc_pres = _compressor_branch(
        fv_pres, Bt, S, L, nh, hd_c, vbias, c_qpre[1], c_query[1],
        c_wkv[1], c_wo[1], c_w1[1], c_w2[1],
        vec("cp_bkv"), vec("cp_bo"), vec("cp_ln1"),
        vec("cp_b1"), vec("cp_b2"), vec("cp_ln2"))

    # Gated fusion + final LayerNorm (no affine).
    g_b2 = vec("g_b2")                           # (1, 2): [text, present] bias scalars
    g_text = _gate_branch(fc_text, Bt, L, g_w1[0], vec("gt_b1"), vec("gt_w2"), g_b2[:, 0:1])
    g_pres = _gate_branch(fc_pres, Bt, L, g_w1[1], vec("gp_b1"), vec("gp_w2"), g_b2[:, 1:2])

    fct3 = fc_text.reshape(Bt, L, Dv)
    fcp3 = fc_pres.reshape(Bt, L, Dv)
    feat = g_text[:, None, :] * fct3 + g_pres[:, None, :] * fcp3     # (Bt, L, Dv)
    mu = jnp.mean(feat, axis=-1, keepdims=True)
    var = jnp.mean(jnp.square(feat - mu), axis=-1, keepdims=True)
    out = (feat - mu) * jax.lax.rsqrt(var + 1e-5)
    out_ref[...] = out.reshape(Bt, L * Dv)       # lane-dense store (L*Dv multiple of 128)


# ----------------------------- wrapper ----------------------------------------

def _pack_vectors(items):
    """Pack small f32 vectors into one (rows, PADW) slab; returns (slab, {name: (row, nrows, width)})."""
    width = max(int(a.shape[-1]) for _, a in items)
    width = ((width + 127) // 128) * 128
    rows, offs, r = [], {}, 0
    for name, a in items:
        a2 = a.astype(jnp.float32).reshape(-1, a.shape[-1])
        nr, w = int(a2.shape[0]), int(a2.shape[1])
        rows.append(jnp.pad(a2, ((0, 0), (0, width - w))))
        offs[name] = (r, nr, w)
        r += nr
    return jnp.concatenate(rows, axis=0), offs


@partial(jax.jit, static_argnames=("num_heads",))
def text_present_guided_compressor(Ft, Fg, Fv, vid_mask, text_mask, params, *, num_heads):
    B, S, Dv = Fv.shape
    T = Ft.shape[1]
    nh = num_heads
    tga, pga, comp, gate = params["tga"], params["pga"], params["comp"], params["gate"]
    L = comp["query"].shape[1]
    hd_c = Dv // nh

    # Masks: additive key bias (0 valid / -1e9 masked) + multiplicative row mask.
    vmask_f = vid_mask.astype(jnp.float32)
    tmask_f = text_mask.astype(jnp.float32)
    vid_bias = ((vmask_f - 1.0) * 1e9).reshape(B, 1, S)
    text_bias = ((tmask_f - 1.0) * 1e9).reshape(B, 1, T)
    vid_rowmask = vmask_f.reshape(B, S, 1)

    # Hoisted batch-invariant learned-query projection (scale folded), head-split wrapper-side.
    qpre = jnp.einsum('cld,cde->cle', comp["query"], comp["wq"]) + comp["bq"]   # (2, L, D)
    qpre = qpre.reshape(2, L, nh, hd_c).transpose(0, 2, 1, 3)                   # (2, nh, L, hd)

    # Pack all tiny bias / LN / gate params into one slab (single DMA).
    slab_items = []
    for pref, blk in (("t", tga), ("p", pga)):
        slab_items += [(f"{pref}_bq", blk["bq"]), (f"{pref}_bkv", blk["bkv"]),
                       (f"{pref}_bo", blk["bo"]), (f"{pref}_ln1", blk["ln1"]),
                       (f"{pref}_b1", blk["b1"]), (f"{pref}_b2", blk["b2"]),
                       (f"{pref}_ln2", blk["ln2"])]
    for pref, idx in (("ct", 0), ("cp", 1)):
        slab_items += [(f"{pref}_bkv", comp["bkv"][idx]), (f"{pref}_bo", comp["bo"][idx]),
                       (f"{pref}_ln1", comp["ln1"][idx]), (f"{pref}_b1", comp["b1"][idx]),
                       (f"{pref}_b2", comp["b2"][idx]), (f"{pref}_ln2", comp["ln2"][idx])]
    slab_items += [("gt_b1", gate["b1"][0]), ("gt_w2", gate["w2row"][0]),
                   ("gp_b1", gate["b1"][1]), ("gp_w2", gate["w2row"][1]),
                   ("g_b2", gate["b2"])]
    slab, offs = _pack_vectors(slab_items)

    data_inputs = [Ft, Fg, Fv, text_bias, vid_bias, vid_rowmask]
    weight_inputs = [
        tga["wq"], tga["wkv"], tga["wo"], tga["w1"], tga["w2"],
        pga["wq"], pga["wkv"], pga["wo"], pga["w1"], pga["w2"],
        comp["wkv"], comp["wo"], comp["w1"], comp["w2"], qpre, comp["query"],
        gate["w1"], slab,
    ]

    # Whole batch per grid step when B is small; otherwise tiles of 8.
    if B <= 8:
        B_TILE = B
    elif B % 8 == 0:
        B_TILE = 8
    else:
        B_TILE = B
    assert B % B_TILE == 0
    grid = (B // B_TILE,)

    def bat(a):   # per-batch-tile block (only the batch dim is tiled)
        nd = a.ndim
        return pl.BlockSpec((B_TILE,) + a.shape[1:],
                            lambda i, nd=nd: (i,) + (0,) * (nd - 1))

    def rep(a):   # resident weight block, fetched once (constant index map)
        nd = a.ndim
        return pl.BlockSpec(a.shape, lambda i, nd=nd: (0,) * nd)

    io_bytes = sum(int(a.size) * a.dtype.itemsize for a in data_inputs + weight_inputs)
    io_bytes += B * L * Dv * 4
    vmem_limit = int(min(100 * 1024 * 1024, max(32 * 1024 * 1024, 8 * io_bytes)))

    out_flat = pl.pallas_call(
        partial(_fused_kernel, nh, offs),
        out_shape=jax.ShapeDtypeStruct((B, L * Dv), jnp.float32),
        grid=grid,
        in_specs=[bat(a) for a in data_inputs] + [rep(a) for a in weight_inputs],
        out_specs=pl.BlockSpec((B_TILE, L * Dv), lambda i: (i, 0)),
        compiler_params=pltpu.CompilerParams(
            dimension_semantics=("parallel",) if grid[0] > 1 else ("arbitrary",),
            vmem_limit_bytes=vmem_limit),
    )(*data_inputs, *weight_inputs)

    feat = out_flat.reshape(B, L, Dv)
    compress_mask = jnp.ones((B, L), dtype=bool)     # mask_text from SimpleCompressor
    return feat, compress_mask


# ----------------------------- parameter init ---------------------------------

def init_params(key, *, t_dim, v_dim, hidden_dim, num_heads, compress_len):
    nh = num_heads
    hd = hidden_dim // nh
    kit = iter(jax.random.split(key, 64))

    def linear(fan_in, fan_out):
        k1, k2 = jax.random.split(next(kit))
        bound = 1.0 / math.sqrt(fan_in)
        w = jax.random.uniform(k1, (fan_in, fan_out), jnp.float32, -bound, bound)
        b = jax.random.uniform(k2, (1, fan_out), jnp.float32, -bound, bound)
        return w, b

    def ln(dim):
        return jnp.stack([jnp.ones((dim,), jnp.float32), jnp.zeros((dim,), jnp.float32)])

    def guided(src_dim):
        scale = 1.0 / math.sqrt(hd)
        wq, bq = linear(v_dim, hidden_dim)
        wk, bk = linear(src_dim, hidden_dim)
        wv, bv = linear(src_dim, hidden_dim)
        wo, bo = linear(hidden_dim, v_dim)
        w1, b1 = linear(v_dim, 4 * v_dim)
        w2, b2 = linear(4 * v_dim, v_dim)
        return dict(
            wq=(wq * scale).astype(jnp.bfloat16), bq=bq * scale,   # score scale folded in
            wkv=jnp.concatenate([wk, wv], axis=1).astype(jnp.bfloat16),
            bkv=jnp.concatenate([bk, bv], axis=1),
            wo=wo.reshape(nh, hd, v_dim).astype(jnp.bfloat16), bo=bo,
            ln1=ln(v_dim), w1=w1.astype(jnp.bfloat16), b1=b1,
            w2=w2.astype(jnp.bfloat16), b2=b2, ln2=ln(v_dim))

    def compressor():
        D, L = v_dim, compress_len
        c_hd = D // nh
        scale = 1.0 / math.sqrt(c_hd)
        xav = math.sqrt(6.0 / (L + D))
        query = jax.random.uniform(next(kit), (L, D), jnp.float32, -xav, xav)
        wq, bq = linear(D, D)
        wk, bk = linear(D, D)
        wv, bv = linear(D, D)
        wo, bo = linear(D, D)
        w1, b1 = linear(D, 4 * D)
        w2, b2 = linear(4 * D, D)
        return dict(
            query=query, wq=wq * scale, bq=bq * scale,
            wkv=jnp.concatenate([wk, wv], axis=1), bkv=jnp.concatenate([bk, bv], axis=1),
            wo=wo.reshape(nh, c_hd, D), bo=bo,
            ln1=ln(D), w1=w1, b1=b1, w2=w2, b2=b2, ln2=ln(D))

    c_t, c_p = compressor(), compressor()
    comp = {k: jnp.stack([c_t[k], c_p[k]]) for k in c_t}
    for name in ("wkv", "wo", "w1", "w2"):
        comp[name] = comp[name].astype(jnp.bfloat16)

    def gate():
        gh = hidden_dim * 2
        w1, b1 = linear(v_dim, gh)
        w2, b2 = linear(gh, 1)
        return w1, b1, w2.reshape(1, gh), b2.reshape(1, 1)

    gt = gate()
    gp = gate()
    gate_p = dict(
        w1=jnp.stack([gt[0], gp[0]]).astype(jnp.bfloat16),   # (2, v_dim, 2*hidden)
        b1=jnp.stack([gt[1], gp[1]]),                        # (2, 1, 2*hidden)
        w2row=jnp.stack([gt[2], gp[2]]),                     # (2, 1, 2*hidden)
        b2=jnp.concatenate([gt[3], gp[3]], axis=1))          # (1, 2)

    return dict(tga=guided(t_dim), pga=guided(v_dim), comp=comp, gate=gate_p)


# ----------------------------- main --------------------------------------------

if __name__ == "__main__":
    B, T, G, S = 2, 8, 8, 16                 # batch, num_token, guide_vid_len, vid_len
    t_dim, v_dim, hidden_dim = 32, 32, 64
    num_heads, compress_len = 4, 8

    key = jax.random.PRNGKey(0)
    k_ft, k_fg, k_fv, k_par = jax.random.split(key, 4)
    Ft = jax.random.normal(k_ft, (B, T, t_dim), jnp.float32)
    Fg = jax.random.normal(k_fg, (B, G, v_dim), jnp.float32)
    Fv = jax.random.normal(k_fv, (B, S, v_dim), jnp.float32)
    # batch 0: everything valid; batch 1: partially masked video and text
    vid_mask = jnp.stack([jnp.ones((S,), dtype=bool), jnp.arange(S) < 11])
    text_mask = jnp.stack([jnp.ones((T,), dtype=bool), jnp.arange(T) < 5])

    params = init_params(k_par, t_dim=t_dim, v_dim=v_dim, hidden_dim=hidden_dim,
                         num_heads=num_heads, compress_len=compress_len)

    feat, cmask = text_present_guided_compressor(
        Ft, Fg, Fv, vid_mask, text_mask, params, num_heads=num_heads)
    jax.block_until_ready((feat, cmask))

    assert feat.shape == (B, compress_len, v_dim)
    assert cmask.shape == (B, compress_len)
    assert bool(jnp.all(jnp.isfinite(feat)))
    print("KERNEL_OK")
</pallas_src>

<mosaic_0001>
module attributes {stable_mosaic.version = 11 : i64} {
  func.func @_fused_kernel(%arg0: i32, %arg1: memref<2x8x32xf32, #tpu.memory_space<vmem>>, %arg2: memref<2x8x32xf32, #tpu.memory_space<vmem>>, %arg3: memref<2x16x32xf32, #tpu.memory_space<vmem>>, %arg4: memref<2x1x8xf32, #tpu.memory_space<vmem>>, %arg5: memref<2x1x16xf32, #tpu.memory_space<vmem>>, %arg6: memref<2x16x1xf32, #tpu.memory_space<vmem>>, %arg7: memref<32x64xbf16, #tpu.memory_space<vmem>>, %arg8: memref<32x128xbf16, #tpu.memory_space<vmem>>, %arg9: memref<4x16x32xbf16, #tpu.memory_space<vmem>>, %arg10: memref<32x128xbf16, #tpu.memory_space<vmem>>, %arg11: memref<128x32xbf16, #tpu.memory_space<vmem>>, %arg12: memref<32x64xbf16, #tpu.memory_space<vmem>>, %arg13: memref<32x128xbf16, #tpu.memory_space<vmem>>, %arg14: memref<4x16x32xbf16, #tpu.memory_space<vmem>>, %arg15: memref<32x128xbf16, #tpu.memory_space<vmem>>, %arg16: memref<128x32xbf16, #tpu.memory_space<vmem>>, %arg17: memref<2x32x64xbf16, #tpu.memory_space<vmem>>, %arg18: memref<2x4x8x32xbf16, #tpu.memory_space<vmem>>, %arg19: memref<2x32x128xbf16, #tpu.memory_space<vmem>>, %arg20: memref<2x128x32xbf16, #tpu.memory_space<vmem>>, %arg21: memref<2x4x8x8xf32, #tpu.memory_space<vmem>>, %arg22: memref<2x8x32xf32, #tpu.memory_space<vmem>>, %arg23: memref<2x32x128xbf16, #tpu.memory_space<vmem>>, %arg24: memref<39x128xf32, #tpu.memory_space<vmem>>, %arg25: memref<2x256xf32, #tpu.memory_space<vmem>>) attributes {dimension_semantics = [#tpu.dimension_semantics<arbitrary>], iteration_bounds = array<i64: 1>, scalar_prefetch = 0 : i64, scratch_operands = 0 : i64, tpu.core_type = #tpu.core_type<tc>, window_params = [{transform_indices = @transform_0, window_bounds = array<i64: 2, 8, 32>}, {transform_indices = @transform_1, window_bounds = array<i64: 2, 8, 32>}, {transform_indices = @transform_2, window_bounds = array<i64: 2, 16, 32>}, {transform_indices = @transform_3, window_bounds = array<i64: 2, 1, 8>}, {transform_indices = @transform_4, window_bounds = array<i64: 2, 1, 16>}, {transform_indices = @transform_5, window_bounds = array<i64: 2, 16, 1>}, {pipeline_mode = #tpu.pipeline_mode<synchronous>, transform_indices = @transform_6, window_bounds = array<i64: 32, 64>}, {pipeline_mode = #tpu.pipeline_mode<synchronous>, transform_indices = @transform_7, window_bounds = array<i64: 32, 128>}, {pipeline_mode = #tpu.pipeline_mode<synchronous>, transform_indices = @transform_8, window_bounds = array<i64: 4, 16, 32>}, {pipeline_mode = #tpu.pipeline_mode<synchronous>, transform_indices = @transform_9, window_bounds = array<i64: 32, 128>}, {pipeline_mode = #tpu.pipeline_mode<synchronous>, transform_indices = @transform_10, window_bounds = array<i64: 128, 32>}, {pipeline_mode = #tpu.pipeline_mode<synchronous>, transform_indices = @transform_11, window_bounds = array<i64: 32, 64>}, {pipeline_mode = #tpu.pipeline_mode<synchronous>, transform_indices = @transform_12, window_bounds = array<i64: 32, 128>}, {pipeline_mode = #tpu.pipeline_mode<synchronous>, transform_indices = @transform_13, window_bounds = array<i64: 4, 16, 32>}, {pipeline_mode = #tpu.pipeline_mode<synchronous>, transform_indices = @transform_14, window_bounds = array<i64: 32, 128>}, {pipeline_mode = #tpu.pipeline_mode<synchronous>, transform_indices = @transform_15, window_bounds = array<i64: 128, 32>}, {pipeline_mode = #tpu.pipeline_mode<synchronous>, transform_indices = @transform_16, window_bounds = array<i64: 2, 32, 64>}, {pipeline_mode = #tpu.pipeline_mode<synchronous>, transform_indices = @transform_17, window_bounds = array<i64: 2, 4, 8, 32>}, {pipeline_mode = #tpu.pipeline_mode<synchronous>, transform_indices = @transform_18, window_bounds = array<i64: 2, 32, 128>}, {pipeline_mode = #tpu.pipeline_mode<synchronous>, transform_indices = @transform_19, window_bounds = array<i64: 2, 128, 32>}, {pipeline_mode = #tpu.pipeline_mode<synchronous>, transform_indices = @transform_20, window_bounds = array<i64: 2, 4, 8, 8>}, {pipeline_mode = #tpu.pipeline_mode<synchronous>, transform_indices = @transform_21, window_bounds = array<i64: 2, 8, 32>}, {pipeline_mode = #tpu.pipeline_mode<synchronous>, transform_indices = @transform_22, window_bounds = array<i64: 2, 32, 128>}, {pipeline_mode = #tpu.pipeline_mode<synchronous>, transform_indices = @transform_23, window_bounds = array<i64: 39, 128>}, {transform_indices = @transform_24, window_bounds = array<i64: 2, 256>}]} {
    %c0 = arith.constant 0 : index
    %c0_0 = arith.constant 0 : index
    %c0_1 = arith.constant 0 : index
    %0 = vector.load %arg1[%c0, %c0_0, %c0_1] : memref<2x8x32xf32, #tpu.memory_space<vmem>>, vector<2x8x32xf32>
    %1 = vector.shape_cast %0 : vector<2x8x32xf32> to vector<16x32xf32>
    %c0_2 = arith.constant 0 : index
    %c0_3 = arith.constant 0 : index
    %c0_4 = arith.constant 0 : index
    %2 = vector.load %arg2[%c0_2, %c0_3, %c0_4] : memref<2x8x32xf32, #tpu.memory_space<vmem>>, vector<2x8x32xf32>
    %3 = vector.shape_cast %2 : vector<2x8x32xf32> to vector<16x32xf32>
    %c0_5 = arith.constant 0 : index
    %c0_6 = arith.constant 0 : index
    %c0_7 = arith.constant 0 : index
    %4 = vector.load %arg3[%c0_5, %c0_6, %c0_7] : memref<2x16x32xf32, #tpu.memory_space<vmem>>, vector<2x16x32xf32>
    %5 = vector.shape_cast %4 : vector<2x16x32xf32> to vector<32x32xf32>
    %c0_8 = arith.constant 0 : index
    %c0_9 = arith.constant 0 : index
    %c0_10 = arith.constant 0 : index
    %6 = vector.load %arg4[%c0_8, %c0_9, %c0_10] : memref<2x1x8xf32, #tpu.memory_space<vmem>>, vector<2x1x8xf32>
    %c0_11 = arith.constant 0 : index
    %c0_12 = arith.constant 0 : index
    %c0_13 = arith.constant 0 : index
    %7 = vector.load %arg5[%c0_11, %c0_12, %c0_13] : memref<2x1x16xf32, #tpu.memory_space<vmem>>, vector<2x1x16xf32>
    %c0_14 = arith.constant 0 : index
    %c0_15 = arith.constant 0 : index
    %c0_16 = arith.constant 0 : index
    %8 = vector.load %arg6[%c0_14, %c0_15, %c0_16] : memref<2x16x1xf32, #tpu.memory_space<vmem>>, vector<2x16x1xf32>
    %9 = vector.shape_cast %8 : vector<2x16x1xf32> to vector<32x1xf32>
    %c0_17 = arith.constant 0 : index
    %c0_18 = arith.constant 0 : index
    %10 = vector.load %arg7[%c0_17, %c0_18] : memref<32x64xbf16, #tpu.memory_space<vmem>>, vector<32x64xbf16>
    %c0_19 = arith.constant 0 : index
    %c0_20 = arith.constant 0 : index
    %11 = vector.load %arg8[%c0_19, %c0_20] : memref<32x128xbf16, #tpu.memory_space<vmem>>, vector<32x128xbf16>
    %c0_21 = arith.constant 0 : index
    %c0_22 = arith.constant 0 : index
    %c0_23 = arith.constant 0 : index
    %12 = vector.load %arg9[%c0_21, %c0_22, %c0_23] : memref<4x16x32xbf16, #tpu.memory_space<vmem>>, vector<4x16x32xbf16>
    %c0_24 = arith.constant 0 : index
    %c0_25 = arith.constant 0 : index
    %13 = vector.load %arg10[%c0_24, %c0_25] : memref<32x128xbf16, #tpu.memory_space<vmem>>, vector<32x128xbf16>
    %c0_26 = arith.constant 0 : index
    %c0_27 = arith.constant 0 : index
    %14 = vector.load %arg11[%c0_26, %c0_27] : memref<128x32xbf16, #tpu.memory_space<vmem>>, vector<128x32xbf16>
    %c0_28 = arith.constant 0 : index
    %c0_29 = arith.constant 0 : index
    %15 = vector.load %arg24[%c0_28, %c0_29] : memref<39x128xf32, #tpu.memory_space<vmem>>, vector<1x64xf32>
    %c1 = arith.constant 1 : index
    %c0_30 = arith.constant 0 : index
    %16 = vector.load %arg24[%c1, %c0_30] : memref<39x128xf32, #tpu.memory_space<vmem>>, vector<1x128xf32>
    %c2 = arith.constant 2 : index
    %c0_31 = arith.constant 0 : index
    %17 = vector.load %arg24[%c2, %c0_31] : memref<39x128xf32, #tpu.memory_space<vmem>>, vector<1x32xf32>
    %c3 = arith.constant 3 : index
    %c0_32 = arith.constant 0 : index
    %18 = vector.load %arg24[%c3, %c0_32] : memref<39x128xf32, #tpu.memory_space<vmem>>, vector<2x32xf32>
    %c5 = arith.constant 5 : index
    %c0_33 = arith.constant 0 : index
    %19 = vector.load %arg24[%c5, %c0_33] : memref<39x128xf32, #tpu.memory_space<vmem>>, vector<1x128xf32>
    %c6 = arith.constant 6 : index
    %c0_34 = arith.constant 0 : index
    %20 = vector.load %arg24[%c6, %c0_34] : memref<39x128xf32, #tpu.memory_space<vmem>>, vector<1x32xf32>
    %c7 = arith.constant 7 : index
    %c0_35 = arith.constant 0 : index
    %21 = vector.load %arg24[%c7, %c0_35] : memref<39x128xf32, #tpu.memory_space<vmem>>, vector<2x32xf32>
    %22 = arith.truncf %5 : vector<32x32xf32> to vector<32x32xbf16>
    %cst = arith.constant dense<0.000000e+00> : vector<32x64xf32>
    %23 = tpu.matmul %22, %10, %cst {dimension_numbers = #tpu.dot_dimension_numbers<[1], [0], [0], [1], [0, 0, 1, 1], [], []>} : vector<32x32xbf16>, vector<32x64xbf16>, vector<32x64xf32> -> vector<32x64xf32>
    %24 = vector.broadcast %15 : vector<1x64xf32> to vector<32x64xf32>
    %25 = arith.addf %23, %24 : vector<32x64xf32>
    %26 = arith.truncf %1 : vector<16x32xf32> to vector<16x32xbf16>
    %cst_36 = arith.constant dense<0.000000e+00> : vector<16x128xf32>
    %27 = tpu.matmul %26, %11, %cst_36 {dimension_numbers = #tpu.dot_dimension_numbers<[1], [0], [0], [1], [0, 0, 1, 1], [], []>} : vector<16x32xbf16>, vector<32x128xbf16>, vector<16x128xf32> -> vector<16x128xf32>
    %28 = vector.broadcast %16 : vector<1x128xf32> to vector<16x128xf32>
    %29 = arith.addf %27, %28 : vector<16x128xf32>
    %30 = arith.truncf %25 : vector<32x64xf32> to vector<32x64xbf16>
    %31 = vector.shape_cast %30 : vector<32x64xbf16> to vector<2x16x64xbf16>
    %32 = vector.extract_strided_slice %31 {offsets = [0, 0, 0], sizes = [2, 16, 16], strides = [1, 1, 1]} : vector<2x16x64xbf16> to vector<2x16x16xbf16>
    %33 = vector.extract_strided_slice %31 {offsets = [0, 0, 16], sizes = [2, 16, 16], strides = [1, 1, 1]} : vector<2x16x64xbf16> to vector<2x16x16xbf16>
    %34 = vector.extract_strided_slice %31 {offsets = [0, 0, 32], sizes = [2, 16, 16], strides = [1, 1, 1]} : vector<2x16x64xbf16> to vector<2x16x16xbf16>
    %35 = vector.extract_strided_slice %31 {offsets = [0, 0, 48], sizes = [2, 16, 16], strides = [1, 1, 1]} : vector<2x16x64xbf16> to vector<2x16x16xbf16>
    %36 = tpu.concatenate %32, %33, %34, %35 in 0 : vector<2x16x16xbf16>, vector<2x16x16xbf16>, vector<2x16x16xbf16>, vector<2x16x16xbf16> -> vector<8x16x16xbf16>
    %37 = vector.extract_strided_slice %29 {offsets = [0, 0], sizes = [16, 64], strides = [1, 1]} : vector<16x128xf32> to vector<16x64xf32>
    %38 = arith.truncf %37 : vector<16x64xf32> to vector<16x64xbf16>
    %39 = vector.shape_cast %38 : vector<16x64xbf16> to vector<2x8x64xbf16>
    %40 = vector.extract_strided_slice %39 {offsets = [0, 0, 0], sizes = [2, 8, 16], strides = [1, 1, 1]} : vector<2x8x64xbf16> to vector<2x8x16xbf16>
    %41 = vector.extract_strided_slice %39 {offsets = [0, 0, 16], sizes = [2, 8, 16], strides = [1, 1, 1]} : vector<2x8x64xbf16> to vector<2x8x16xbf16>
    %42 = vector.extract_strided_slice %39 {offsets = [0, 0, 32], sizes = [2, 8, 16], strides = [1, 1, 1]} : vector<2x8x64xbf16> to vector<2x8x16xbf16>
    %43 = vector.extract_strided_slice %39 {offsets = [0, 0, 48], sizes = [2, 8, 16], strides = [1, 1, 1]} : vector<2x8x64xbf16> to vector<2x8x16xbf16>
    %44 = tpu.concatenate %40, %41, %42, %43 in 0 : vector<2x8x16xbf16>, vector<2x8x16xbf16>, vector<2x8x16xbf16>, vector<2x8x16xbf16> -> vector<8x8x16xbf16>
    %45 = vector.extract_strided_slice %29 {offsets = [0, 64], sizes = [16, 64], strides = [1, 1]} : vector<16x128xf32> to vector<16x64xf32>
    %46 = arith.truncf %45 : vector<16x64xf32> to vector<16x64xbf16>
    %47 = vector.shape_cast %46 : vector<16x64xbf16> to vector<2x8x64xbf16>
    %48 = vector.extract_strided_slice %47 {offsets = [0, 0, 0], sizes = [2, 8, 16], strides = [1, 1, 1]} : vector<2x8x64xbf16> to vector<2x8x16xbf16>
    %49 = vector.extract_strided_slice %47 {offsets = [0, 0, 16], sizes = [2, 8, 16], strides = [1, 1, 1]} : vector<2x8x64xbf16> to vector<2x8x16xbf16>
    %50 = vector.extract_strided_slice %47 {offsets = [0, 0, 32], sizes = [2, 8, 16], strides = [1, 1, 1]} : vector<2x8x64xbf16> to vector<2x8x16xbf16>
    %51 = vector.extract_strided_slice %47 {offsets = [0, 0, 48], sizes = [2, 8, 16], strides = [1, 1, 1]} : vector<2x8x64xbf16> to vector<2x8x16xbf16>
    %52 = tpu.concatenate %48, %49, %50, %51 in 0 : vector<2x8x16xbf16>, vector<2x8x16xbf16>, vector<2x8x16xbf16>, vector<2x8x16xbf16> -> vector<8x8x16xbf16>
    "tpu.trace_start"() <{level = 10 : i32, message = "zqe,zke->zqk"}> : () -> ()
    %cst_37 = arith.constant dense<0.000000e+00> : vector<8x16x8xf32>
    %53 = tpu.matmul %36, %44, %cst_37 {dimension_numbers = #tpu.dot_dimension_numbers<[2], [2], [1], [1], [0, 0, 0, 1, 1, 1], [0], [0]>} : vector<8x16x16xbf16>, vector<8x8x16xbf16>, vector<8x16x8xf32> -> vector<8x16x8xf32>
    "tpu.trace_stop"() : () -> ()
    %54 = vector.shape_cast %53 : vector<8x16x8xf32> to vector<4x2x16x8xf32>
    %55 = vector.shape_cast %6 : vector<2x1x8xf32> to vector<1x2x1x8xf32>
    %56 = vector.broadcast %55 : vector<1x2x1x8xf32> to vector<4x2x16x8xf32>
    %57 = arith.addf %54, %56 : vector<4x2x16x8xf32>
    %58 = vector.shape_cast %57 : vector<4x2x16x8xf32> to vector<8x16x8xf32>
    %cst_38 = arith.constant dense<0xFF800000> : vector<8x16xf32>
    %59 = vector.multi_reduction <maximumf>, %58, %cst_38 [2] : vector<8x16x8xf32> to vector<8x16xf32>
    %60 = vector.shape_cast %59 : vector<8x16xf32> to vector<8x16x1xf32>
    %61 = vector.broadcast %60 : vector<8x16x1xf32> to vector<8x16x8xf32>
    %62 = arith.subf %58, %61 : vector<8x16x8xf32>
    %63 = math.exp %62 : vector<8x16x8xf32>
    %cst_39 = arith.constant dense<0.000000e+00> : vector<8x16xf32>
    %64 = vector.multi_reduction <add>, %63, %cst_39 [2] : vector<8x16x8xf32> to vector<8x16xf32>
    %65 = vector.shape_cast %64 : vector<8x16xf32> to vector<8x16x1xf32>
    %66 = tpu.reciprocal %65 {approx = true} : vector<8x16x1xf32> -> vector<8x16x1xf32>
    %67 = vector.broadcast %66 : vector<8x16x1xf32> to vector<8x16x8xf32>
    %68 = arith.mulf %63, %67 : vector<8x16x8xf32>
    %69 = arith.truncf %68 : vector<8x16x8xf32> to vector<8x16x8xbf16>
    "tpu.trace_start"() <{level = 10 : i32, message = "zqk,zke->zqe"}> : () -> ()
    %cst_40 = arith.constant dense<0.000000e+00> : vector<8x16x16xf32>
    %70 = tpu.matmul %69, %52, %cst_40 {dimension_numbers = #tpu.dot_dimension_numbers<[2], [1], [1], [2], [0, 0, 0, 1, 1, 2], [0], [0]>} : vector<8x16x8xbf16>, vector<8x8x16xbf16>, vector<8x16x16xf32> -> vector<8x16x16xf32>
    "tpu.trace_stop"() : () -> ()
    %71 = vector.shape_cast %70 : vector<8x16x16xf32> to vector<4x32x16xf32>
    %72 = vector.extract_strided_slice %71 {offsets = [0, 0, 0], sizes = [1, 32, 16], strides = [1, 1, 1]} : vector<4x32x16xf32> to vector<1x32x16xf32>
    %73 = vector.shape_cast %72 : vector<1x32x16xf32> to vector<32x16xf32>
    %74 = arith.truncf %73 : vector<32x16xf32> to vector<32x16xbf16>
    %75 = vector.extract_strided_slice %12 {offsets = [0, 0, 0], sizes = [1, 16, 32], strides = [1, 1, 1]} : vector<4x16x32xbf16> to vector<1x16x32xbf16>
    %76 = vector.shape_cast %75 : vector<1x16x32xbf16> to vector<16x32xbf16>
    %cst_41 = arith.constant dense<0.000000e+00> : vector<32x32xf32>
    %77 = tpu.matmul %74, %76, %cst_41 {dimension_numbers = #tpu.dot_dimension_numbers<[1], [0], [0], [1], [0, 0, 1, 1], [], []>} : vector<32x16xbf16>, vector<16x32xbf16>, vector<32x32xf32> -> vector<32x32xf32>
    %78 = vector.extract_strided_slice %71 {offsets = [1, 0, 0], sizes = [1, 32, 16], strides = [1, 1, 1]} : vector<4x32x16xf32> to vector<1x32x16xf32>
    %79 = vector.shape_cast %78 : vector<1x32x16xf32> to vector<32x16xf32>
    %80 = arith.truncf %79 : vector<32x16xf32> to vector<32x16xbf16>
    %81 = vector.extract_strided_slice %12 {offsets = [1, 0, 0], sizes = [1, 16, 32], strides = [1, 1, 1]} : vector<4x16x32xbf16> to vector<1x16x32xbf16>
    %82 = vector.shape_cast %81 : vector<1x16x32xbf16> to vector<16x32xbf16>
    %cst_42 = arith.constant dense<0.000000e+00> : vector<32x32xf32>
    %83 = tpu.matmul %80, %82, %cst_42 {dimension_numbers = #tpu.dot_dimension_numbers<[1], [0], [0], [1], [0, 0, 1, 1], [], []>} : vector<32x16xbf16>, vector<16x32xbf16>, vector<32x32xf32> -> vector<32x32xf32>
    %84 = arith.addf %77, %83 : vector<32x32xf32>
    %85 = vector.extract_strided_slice %71 {offsets = [2, 0, 0], sizes = [1, 32, 16], strides = [1, 1, 1]} : vector<4x32x16xf32> to vector<1x32x16xf32>
    %86 = vector.shape_cast %85 : vector<1x32x16xf32> to vector<32x16xf32>
    %87 = arith.truncf %86 : vector<32x16xf32> to vector<32x16xbf16>
    %88 = vector.extract_strided_slice %12 {offsets = [2, 0, 0], sizes = [1, 16, 32], strides = [1, 1, 1]} : vector<4x16x32xbf16> to vector<1x16x32xbf16>
    %89 = vector.shape_cast %88 : vector<1x16x32xbf16> to vector<16x32xbf16>
    %cst_43 = arith.constant dense<0.000000e+00> : vector<32x32xf32>
    %90 = tpu.matmul %87, %89, %cst_43 {dimension_numbers = #tpu.dot_dimension_numbers<[1], [0], [0], [1], [0, 0, 1, 1], [], []>} : vector<32x16xbf16>, vector<16x32xbf16>, vector<32x32xf32> -> vector<32x32xf32>
    %91 = arith.addf %84, %90 : vector<32x32xf32>
    %92 = vector.extract_strided_slice %71 {offsets = [3, 0, 0], sizes = [1, 32, 16], strides = [1, 1, 1]} : vector<4x32x16xf32> to vector<1x32x16xf32>
    %93 = vector.shape_cast %92 : vector<1x32x16xf32> to vector<32x16xf32>
    %94 = arith.truncf %93 : vector<32x16xf32> to vector<32x16xbf16>
    %95 = vector.extract_strided_slice %12 {offsets = [3, 0, 0], sizes = [1, 16, 32], strides = [1, 1, 1]} : vector<4x16x32xbf16> to vector<1x16x32xbf16>
    %96 = vector.shape_cast %95 : vector<1x16x32xbf16> to vector<16x32xbf16>
    %cst_44 = arith.constant dense<0.000000e+00> : vector<32x32xf32>
    %97 = tpu.matmul %94, %96, %cst_44 {dimension_numbers = #tpu.dot_dimension_numbers<[1], [0], [0], [1], [0, 0, 1, 1], [], []>} : vector<32x16xbf16>, vector<16x32xbf16>, vector<32x32xf32> -> vector<32x32xf32>
    %98 = arith.addf %91, %97 : vector<32x32xf32>
    %99 = vector.broadcast %17 : vector<1x32xf32> to vector<32x32xf32>
    %100 = arith.addf %98, %99 : vector<32x32xf32>
    %101 = arith.addf %5, %100 : vector<32x32xf32>
    %cst_45 = arith.constant dense<0.000000e+00> : vector<32xf32>
    %102 = vector.multi_reduction <add>, %101, %cst_45 [1] : vector<32x32xf32> to vector<32xf32>
    %103 = vector.shape_cast %102 : vector<32xf32> to vector<32x1xf32>
    %cst_46 = arith.constant 3.200000e+01 : f32
    %104 = vector.broadcast %cst_46 : f32 to vector<32x1xf32>
    %105 = arith.divf %103, %104 : vector<32x1xf32>
    %106 = vector.broadcast %105 : vector<32x1xf32> to vector<32x32xf32>
    %107 = arith.subf %101, %106 : vector<32x32xf32>
    %108 = arith.mulf %107, %107 : vector<32x32xf32>
    %cst_47 = arith.constant dense<0.000000e+00> : vector<32xf32>
    %109 = vector.multi_reduction <add>, %108, %cst_47 [1] : vector<32x32xf32> to vector<32xf32>
    %110 = vector.shape_cast %109 : vector<32xf32> to vector<32x1xf32>
    %cst_48 = arith.constant 3.200000e+01 : f32
    %111 = vector.broadcast %cst_48 : f32 to vector<32x1xf32>
    %112 = arith.divf %110, %111 : vector<32x1xf32>
    %113 = vector.broadcast %105 : vector<32x1xf32> to vector<32x32xf32>
    %114 = arith.subf %101, %113 : vector<32x32xf32>
    %cst_49 = arith.constant 9.99999974E-6 : f32
    %115 = vector.broadcast %cst_49 : f32 to vector<32x1xf32>
    %116 = arith.addf %112, %115 : vector<32x1xf32>
    %117 = math.rsqrt %116 : vector<32x1xf32>
    %118 = vector.broadcast %117 : vector<32x1xf32> to vector<32x32xf32>
    %119 = arith.mulf %114, %118 : vector<32x32xf32>
    %120 = vector.extract_strided_slice %18 {offsets = [0, 0], sizes = [1, 32], strides = [1, 1]} : vector<2x32xf32> to vector<1x32xf32>
    %121 = vector.broadcast %120 : vector<1x32xf32> to vector<32x32xf32>
    %122 = arith.mulf %119, %121 : vector<32x32xf32>
    %123 = vector.extract_strided_slice %18 {offsets = [1, 0], sizes = [1, 32], strides = [1, 1]} : vector<2x32xf32> to vector<1x32xf32>
    %124 = vector.broadcast %123 : vector<1x32xf32> to vector<32x32xf32>
    %125 = arith.addf %122, %124 : vector<32x32xf32>
    %126 = arith.truncf %125 : vector<32x32xf32> to vector<32x32xbf16>
    %cst_50 = arith.constant dense<0.000000e+00> : vector<32x128xf32>
    %127 = tpu.matmul %126, %13, %cst_50 {dimension_numbers = #tpu.dot_dimension_numbers<[1], [0], [0], [1], [0, 0, 1, 1], [], []>} : vector<32x32xbf16>, vector<32x128xbf16>, vector<32x128xf32> -> vector<32x128xf32>
    %128 = vector.broadcast %19 : vector<1x128xf32> to vector<32x128xf32>
    %129 = arith.addf %127, %128 : vector<32x128xf32>
    %cst_51 = arith.constant 0.000000e+00 : f32
    %130 = vector.broadcast %cst_51 : f32 to vector<32x128xf32>
    %131 = arith.maximumf %129, %130 : vector<32x128xf32>
    %132 = arith.truncf %131 : vector<32x128xf32> to vector<32x128xbf16>
    %cst_52 = arith.constant dense<0.000000e+00> : vector<32x32xf32>
    %133 = tpu.matmul %132, %14, %cst_52 {dimension_numbers = #tpu.dot_dimension_numbers<[1], [0], [0], [1], [0, 0, 1, 1], [], []>} : vector<32x128xbf16>, vector<128x32xbf16>, vector<32x32xf32> -> vector<32x32xf32>
    %134 = vector.broadcast %20 : vector<1x32xf32> to vector<32x32xf32>
    %135 = arith.addf %133, %134 : vector<32x32xf32>
    %136 = arith.addf %125, %135 : vector<32x32xf32>
    %cst_53 = arith.constant dense<0.000000e+00> : vector<32xf32>
    %137 = vector.multi_reduction <add>, %136, %cst_53 [1] : vector<32x32xf32> to vector<32xf32>
    %138 = vector.shape_cast %137 : vector<32xf32> to vector<32x1xf32>
    %cst_54 = arith.constant 3.200000e+01 : f32
    %139 = vector.broadcast %cst_54 : f32 to vector<32x1xf32>
    %140 = arith.divf %138, %139 : vector<32x1xf32>
    %141 = vector.broadcast %140 : vector<32x1xf32> to vector<32x32xf32>
    %142 = arith.subf %136, %141 : vector<32x32xf32>
    %143 = arith.mulf %142, %142 : vector<32x32xf32>
    %cst_55 = arith.constant dense<0.000000e+00> : vector<32xf32>
    %144 = vector.multi_reduction <add>, %143, %cst_55 [1] : vector<32x32xf32> to vector<32xf32>
    %145 = vector.shape_cast %144 : vector<32xf32> to vector<32x1xf32>
    %cst_56 = arith.constant 3.200000e+01 : f32
    %146 = vector.broadcast %cst_56 : f32 to vector<32x1xf32>
    %147 = arith.divf %145, %146 : vector<32x1xf32>
    %148 = vector.broadcast %140 : vector<32x1xf32> to vector<32x32xf32>
    %149 = arith.subf %136, %148 : vector<32x32xf32>
    %cst_57 = arith.constant 9.99999974E-6 : f32
    %150 = vector.broadcast %cst_57 : f32 to vector<32x1xf32>
    %151 = arith.addf %147, %150 : vector<32x1xf32>
    %152 = math.rsqrt %151 : vector<32x1xf32>
    %153 = vector.broadcast %152 : vector<32x1xf32> to vector<32x32xf32>
    %154 = arith.mulf %149, %153 : vector<32x32xf32>
    %155 = vector.extract_strided_slice %21 {offsets = [0, 0], sizes = [1, 32], strides = [1, 1]} : vector<2x32xf32> to vector<1x32xf32>
    %156 = vector.broadcast %155 : vector<1x32xf32> to vector<32x32xf32>
    %157 = arith.mulf %154, %156 : vector<32x32xf32>
    %158 = vector.extract_strided_slice %21 {offsets = [1, 0], sizes = [1, 32], strides = [1, 1]} : vector<2x32xf32> to vector<1x32xf32>
    %159 = vector.broadcast %158 : vector<1x32xf32> to vector<32x32xf32>
    %160 = arith.addf %157, %159 : vector<32x32xf32>
    %161 = vector.broadcast %9 : vector<32x1xf32> to vector<32x32xf32>
    %162 = arith.mulf %160, %161 : vector<32x32xf32>
    %c0_58 = arith.constant 0 : index
    %c0_59 = arith.constant 0 : index
    %163 = vector.load %arg12[%c0_58, %c0_59] : memref<32x64xbf16, #tpu.memory_space<vmem>>, vector<32x64xbf16>
    %c0_60 = arith.constant 0 : index
    %c0_61 = arith.constant 0 : index
    %164 = vector.load %arg13[%c0_60, %c0_61] : memref<32x128xbf16, #tpu.memory_space<vmem>>, vector<32x128xbf16>
    %c0_62 = arith.constant 0 : index
    %c0_63 = arith.constant 0 : index
    %c0_64 = arith.constant 0 : index
    %165 = vector.load %arg14[%c0_62, %c0_63, %c0_64] : memref<4x16x32xbf16, #tpu.memory_space<vmem>>, vector<4x16x32xbf16>
    %c0_65 = arith.constant 0 : index
    %c0_66 = arith.constant 0 : index
    %166 = vector.load %arg15[%c0_65, %c0_66] : memref<32x128xbf16, #tpu.memory_space<vmem>>, vector<32x128xbf16>
    %c0_67 = arith.constant 0 : index
    %c0_68 = arith.constant 0 : index
    %167 = vector.load %arg16[%c0_67, %c0_68] : memref<128x32xbf16, #tpu.memory_space<vmem>>, vector<128x32xbf16>
    %c9 = arith.constant 9 : index
    %c0_69 = arith.constant 0 : index
    %168 = vector.load %arg24[%c9, %c0_69] : memref<39x128xf32, #tpu.memory_space<vmem>>, vector<1x64xf32>
    %c10 = arith.constant 10 : index
    %c0_70 = arith.constant 0 : index
    %169 = vector.load %arg24[%c10, %c0_70] : memref<39x128xf32, #tpu.memory_space<vmem>>, vector<1x128xf32>
    %c11 = arith.constant 11 : index
    %c0_71 = arith.constant 0 : index
    %170 = vector.load %arg24[%c11, %c0_71] : memref<39x128xf32, #tpu.memory_space<vmem>>, vector<1x32xf32>
    %c12 = arith.constant 12 : index
    %c0_72 = arith.constant 0 : index
    %171 = vector.load %arg24[%c12, %c0_72] : memref<39x128xf32, #tpu.memory_space<vmem>>, vector<2x32xf32>
    %c14 = arith.constant 14 : index
    %c0_73 = arith.constant 0 : index
    %172 = vector.load %arg24[%c14, %c0_73] : memref<39x128xf32, #tpu.memory_space<vmem>>, vector<1x128xf32>
    %c15 = arith.constant 15 : index
    %c0_74 = arith.constant 0 : index
    %173 = vector.load %arg24[%c15, %c0_74] : memref<39x128xf32, #tpu.memory_space<vmem>>, vector<1x32xf32>
    %c16 = arith.constant 16 : index
    %c0_75 = arith.constant 0 : index
    %174 = vector.load %arg24[%c16, %c0_75] : memref<39x128xf32, #tpu.memory_space<vmem>>, vector<2x32xf32>
    %175 = arith.truncf %5 : vector<32x32xf32> to vector<32x32xbf16>
    %cst_76 = arith.constant dense<0.000000e+00> : vector<32x64xf32>
    %176 = tpu.matmul %175, %163, %cst_76 {dimension_numbers = #tpu.dot_dimension_numbers<[1], [0], [0], [1], [0, 0, 1, 1], [], []>} : vector<32x32xbf16>, vector<32x64xbf16>, vector<32x64xf32> -> vector<32x64xf32>
    %177 = vector.broadcast %168 : vector<1x64xf32> to vector<32x64xf32>
    %178 = arith.addf %176, %177 : vector<32x64xf32>
    %179 = arith.truncf %3 : vector<16x32xf32> to vector<16x32xbf16>
    %cst_77 = arith.constant dense<0.000000e+00> : vector<16x128xf32>
    %180 = tpu.matmul %179, %164, %cst_77 {dimension_numbers = #tpu.dot_dimension_numbers<[1], [0], [0], [1], [0, 0, 1, 1], [], []>} : vector<16x32xbf16>, vector<32x128xbf16>, vector<16x128xf32> -> vector<16x128xf32>
    %181 = vector.broadcast %169 : vector<1x128xf32> to vector<16x128xf32>
    %182 = arith.addf %180, %181 : vector<16x128xf32>
    %183 = arith.truncf %178 : vector<32x64xf32> to vector<32x64xbf16>
    %184 = vector.shape_cast %183 : vector<32x64xbf16> to vector<2x16x64xbf16>
    %185 = vector.extract_strided_slice %184 {offsets = [0, 0, 0], sizes = [2, 16, 16], strides = [1, 1, 1]} : vector<2x16x64xbf16> to vector<2x16x16xbf16>
    %186 = vector.extract_strided_slice %184 {offsets = [0, 0, 16], sizes = [2, 16, 16], strides = [1, 1, 1]} : vector<2x16x64xbf16> to vector<2x16x16xbf16>
    %187 = vector.extract_strided_slice %184 {offsets = [0, 0, 32], sizes = [2, 16, 16], strides = [1, 1, 1]} : vector<2x16x64xbf16> to vector<2x16x16xbf16>
    %188 = vector.extract_strided_slice %184 {offsets = [0, 0, 48], sizes = [2, 16, 16], strides = [1, 1, 1]} : vector<2x16x64xbf16> to vector<2x16x16xbf16>
    %189 = tpu.concatenate %185, %186, %187, %188 in 0 : vector<2x16x16xbf16>, vector<2x16x16xbf16>, vector<2x16x16xbf16>, vector<2x16x16xbf16> -> vector<8x16x16xbf16>
    %190 = vector.extract_strided_slice %182 {offsets = [0, 0], sizes = [16, 64], strides = [1, 1]} : vector<16x128xf32> to vector<16x64xf32>
    %191 = arith.truncf %190 : vector<16x64xf32> to vector<16x64xbf16>
    %192 = vector.shape_cast %191 : vector<16x64xbf16> to vector<2x8x64xbf16>
    %193 = vector.extract_strided_slice %192 {offsets = [0, 0, 0], sizes = [2, 8, 16], strides = [1, 1, 1]} : vector<2x8x64xbf16> to vector<2x8x16xbf16>
    %194 = vector.extract_strided_slice %192 {offsets = [0, 0, 16], sizes = [2, 8, 16], strides = [1, 1, 1]} : vector<2x8x64xbf16> to vector<2x8x16xbf16>
    %195 = vector.extract_strided_slice %192 {offsets = [0, 0, 32], sizes = [2, 8, 16], strides = [1, 1, 1]} : vector<2x8x64xbf16> to vector<2x8x16xbf16>
    %196 = vector.extract_strided_slice %192 {offsets = [0, 0, 48], sizes = [2, 8, 16], strides = [1, 1, 1]} : vector<2x8x64xbf16> to vector<2x8x16xbf16>
    %197 = tpu.concatenate %193, %194, %195, %196 in 0 : vector<2x8x16xbf16>, vector<2x8x16xbf16>, vector<2x8x16xbf16>, vector<2x8x16xbf16> -> vector<8x8x16xbf16>
    %198 = vector.extract_strided_slice %182 {offsets = [0, 64], sizes = [16, 64], strides = [1, 1]} : vector<16x128xf32> to vector<16x64xf32>
    %199 = arith.truncf %198 : vector<16x64xf32> to vector<16x64xbf16>
    %200 = vector.shape_cast %199 : vector<16x64xbf16> to vector<2x8x64xbf16>
    %201 = vector.extract_strided_slice %200 {offsets = [0, 0, 0], sizes = [2, 8, 16], strides = [1, 1, 1]} : vector<2x8x64xbf16> to vector<2x8x16xbf16>
    %202 = vector.extract_strided_slice %200 {offsets = [0, 0, 16], sizes = [2, 8, 16], strides = [1, 1, 1]} : vector<2x8x64xbf16> to vector<2x8x16xbf16>
    %203 = vector.extract_strided_slice %200 {offsets = [0, 0, 32], sizes = [2, 8, 16], strides = [1, 1, 1]} : vector<2x8x64xbf16> to vector<2x8x16xbf16>
    %204 = vector.extract_strided_slice %200 {offsets = [0, 0, 48], sizes = [2, 8, 16], strides = [1, 1, 1]} : vector<2x8x64xbf16> to vector<2x8x16xbf16>
    %205 = tpu.concatenate %201, %202, %203, %204 in 0 : vector<2x8x16xbf16>, vector<2x8x16xbf16>, vector<2x8x16xbf16>, vector<2x8x16xbf16> -> vector<8x8x16xbf16>
    "tpu.trace_start"() <{level = 10 : i32, message = "zqe,zke->zqk"}> : () -> ()
    %cst_78 = arith.constant dense<0.000000e+00> : vector<8x16x8xf32>
    %206 = tpu.matmul %189, %197, %cst_78 {dimension_numbers = #tpu.dot_dimension_numbers<[2], [2], [1], [1], [0, 0, 0, 1, 1, 1], [0], [0]>} : vector<8x16x16xbf16>, vector<8x8x16xbf16>, vector<8x16x8xf32> -> vector<8x16x8xf32>
    "tpu.trace_stop"() : () -> ()
    %cst_79 = arith.constant dense<0xFF800000> : vector<8x16xf32>
    %207 = vector.multi_reduction <maximumf>, %206, %cst_79 [2] : vector<8x16x8xf32> to vector<8x16xf32>
    %208 = vector.shape_cast %207 : vector<8x16xf32> to vector<8x16x1xf32>
    %209 = vector.broadcast %208 : vector<8x16x1xf32> to vector<8x16x8xf32>
    %210 = arith.subf %206, %209 : vector<8x16x8xf32>
    %211 = math.exp %210 : vector<8x16x8xf32>
    %cst_80 = arith.constant dense<0.000000e+00> : vector<8x16xf32>
    %212 = vector.multi_reduction <add>, %211, %cst_80 [2] : vector<8x16x8xf32> to vector<8x16xf32>
    %213 = vector.shape_cast %212 : vector<8x16xf32> to vector<8x16x1xf32>
    %214 = tpu.reciprocal %213 {approx = true} : vector<8x16x1xf32> -> vector<8x16x1xf32>
    %215 = vector.broadcast %214 : vector<8x16x1xf32> to vector<8x16x8xf32>
    %216 = arith.mulf %211, %215 : vector<8x16x8xf32>
    %217 = arith.truncf %216 : vector<8x16x8xf32> to vector<8x16x8xbf16>
    "tpu.trace_start"() <{level = 10 : i32, message = "zqk,zke->zqe"}> : () -> ()
    %cst_81 = arith.constant dense<0.000000e+00> : vector<8x16x16xf32>
    %218 = tpu.matmul %217, %205, %cst_81 {dimension_numbers = #tpu.dot_dimension_numbers<[2], [1], [1], [2], [0, 0, 0, 1, 1, 2], [0], [0]>} : vector<8x16x8xbf16>, vector<8x8x16xbf16>, vector<8x16x16xf32> -> vector<8x16x16xf32>
    "tpu.trace_stop"() : () -> ()
    %219 = vector.shape_cast %218 : vector<8x16x16xf32> to vector<4x32x16xf32>
    %220 = vector.extract_strided_slice %219 {offsets = [0, 0, 0], sizes = [1, 32, 16], strides = [1, 1, 1]} : vector<4x32x16xf32> to vector<1x32x16xf32>
    %221 = vector.shape_cast %220 : vector<1x32x16xf32> to vector<32x16xf32>
    %222 = arith.truncf %221 : vector<32x16xf32> to vector<32x16xbf16>
    %223 = vector.extract_strided_slice %165 {offsets = [0, 0, 0], sizes = [1, 16, 32], strides = [1, 1, 1]} : vector<4x16x32xbf16> to vector<1x16x32xbf16>
    %224 = vector.shape_cast %223 : vector<1x16x32xbf16> to vector<16x32xbf16>
    %cst_82 = arith.constant dense<0.000000e+00> : vector<32x32xf32>
    %225 = tpu.matmul %222, %224, %cst_82 {dimension_numbers = #tpu.dot_dimension_numbers<[1], [0], [0], [1], [0, 0, 1, 1], [], []>} : vector<32x16xbf16>, vector<16x32xbf16>, vector<32x32xf32> -> vector<32x32xf32>
    %226 = vector.extract_strided_slice %219 {offsets = [1, 0, 0], sizes = [1, 32, 16], strides = [1, 1, 1]} : vector<4x32x16xf32> to vector<1x32x16xf32>
    %227 = vector.shape_cast %226 : vector<1x32x16xf32> to vector<32x16xf32>
    %228 = arith.truncf %227 : vector<32x16xf32> to vector<32x16xbf16>
    %229 = vector.extract_strided_slice %165 {offsets = [1, 0, 0], sizes = [1, 16, 32], strides = [1, 1, 1]} : vector<4x16x32xbf16> to vector<1x16x32xbf16>
    %230 = vector.shape_cast %229 : vector<1x16x32xbf16> to vector<16x32xbf16>
    %cst_83 = arith.constant dense<0.000000e+00> : vector<32x32xf32>
    %231 = tpu.matmul %228, %230, %cst_83 {dimension_numbers = #tpu.dot_dimension_numbers<[1], [0], [0], [1], [0, 0, 1, 1], [], []>} : vector<32x16xbf16>, vector<16x32xbf16>, vector<32x32xf32> -> vector<32x32xf32>
    %232 = arith.addf %225, %231 : vector<32x32xf32>
    %233 = vector.extract_strided_slice %219 {offsets = [2, 0, 0], sizes = [1, 32, 16], strides = [1, 1, 1]} : vector<4x32x16xf32> to vector<1x32x16xf32>
    %234 = vector.shape_cast %233 : vector<1x32x16xf32> to vector<32x16xf32>
    %235 = arith.truncf %234 : vector<32x16xf32> to vector<32x16xbf16>
    %236 = vector.extract_strided_slice %165 {offsets = [2, 0, 0], sizes = [1, 16, 32], strides = [1, 1, 1]} : vector<4x16x32xbf16> to vector<1x16x32xbf16>
    %237 = vector.shape_cast %236 : vector<1x16x32xbf16> to vector<16x32xbf16>
    %cst_84 = arith.constant dense<0.000000e+00> : vector<32x32xf32>
    %238 = tpu.matmul %235, %237, %cst_84 {dimension_numbers = #tpu.dot_dimension_numbers<[1], [0], [0], [1], [0, 0, 1, 1], [], []>} : vector<32x16xbf16>, vector<16x32xbf16>, vector<32x32xf32> -> vector<32x32xf32>
    %239 = arith.addf %232, %238 : vector<32x32xf32>
    %240 = vector.extract_strided_slice %219 {offsets = [3, 0, 0], sizes = [1, 32, 16], strides = [1, 1, 1]} : vector<4x32x16xf32> to vector<1x32x16xf32>
    %241 = vector.shape_cast %240 : vector<1x32x16xf32> to vector<32x16xf32>
    %242 = arith.truncf %241 : vector<32x16xf32> to vector<32x16xbf16>
    %243 = vector.extract_strided_slice %165 {offsets = [3, 0, 0], sizes = [1, 16, 32], strides = [1, 1, 1]} : vector<4x16x32xbf16> to vector<1x16x32xbf16>
    %244 = vector.shape_cast %243 : vector<1x16x32xbf16> to vector<16x32xbf16>
    %cst_85 = arith.constant dense<0.000000e+00> : vector<32x32xf32>
    %245 = tpu.matmul %242, %244, %cst_85 {dimension_numbers = #tpu.dot_dimension_numbers<[1], [0], [0], [1], [0, 0, 1, 1], [], []>} : vector<32x16xbf16>, vector<16x32xbf16>, vector<32x32xf32> -> vector<32x32xf32>
    %246 = arith.addf %239, %245 : vector<32x32xf32>
    %247 = vector.broadcast %170 : vector<1x32xf32> to vector<32x32xf32>
    %248 = arith.addf %246, %247 : vector<32x32xf32>
    %249 = arith.addf %5, %248 : vector<32x32xf32>
    %cst_86 = arith.constant dense<0.000000e+00> : vector<32xf32>
    %250 = vector.multi_reduction <add>, %249, %cst_86 [1] : vector<32x32xf32> to vector<32xf32>
    %251 = vector.shape_cast %250 : vector<32xf32> to vector<32x1xf32>
    %cst_87 = arith.constant 3.200000e+01 : f32
    %252 = vector.broadcast %cst_87 : f32 to vector<32x1xf32>
    %253 = arith.divf %251, %252 : vector<32x1xf32>
    %254 = vector.broadcast %253 : vector<32x1xf32> to vector<32x32xf32>
    %255 = arith.subf %249, %254 : vector<32x32xf32>
    %256 = arith.mulf %255, %255 : vector<32x32xf32>
    %cst_88 = arith.constant dense<0.000000e+00> : vector<32xf32>
    %257 = vector.multi_reduction <add>, %256, %cst_88 [1] : vector<32x32xf32> to vector<32xf32>
    %258 = vector.shape_cast %257 : vector<32xf32> to vector<32x1xf32>
    %cst_89 = arith.constant 3.200000e+01 : f32
    %259 = vector.broadcast %cst_89 : f32 to vector<32x1xf32>
    %260 = arith.divf %258, %259 : vector<32x1xf32>
    %261 = vector.broadcast %253 : vector<32x1xf32> to vector<32x32xf32>
    %262 = arith.subf %249, %261 : vector<32x32xf32>
    %cst_90 = arith.constant 9.99999974E-6 : f32
    %263 = vector.broadcast %cst_90 : f32 to vector<32x1xf32>
    %264 = arith.addf %260, %263 : vector<32x1xf32>
    %265 = math.rsqrt %264 : vector<32x1xf32>
    %266 = vector.broadcast %265 : vector<32x1xf32> to vector<32x32xf32>
    %267 = arith.mulf %262, %266 : vector<32x32xf32>
    %268 = vector.extract_strided_slice %171 {offsets = [0, 0], sizes = [1, 32], strides = [1, 1]} : vector<2x32xf32> to vector<1x32xf32>
    %269 = vector.broadcast %268 : vector<1x32xf32> to vector<32x32xf32>
    %270 = arith.mulf %267, %269 : vector<32x32xf32>
    %271 = vector.extract_strided_slice %171 {offsets = [1, 0], sizes = [1, 32], strides = [1, 1]} : vector<2x32xf32> to vector<1x32xf32>
    %272 = vector.broadcast %271 : vector<1x32xf32> to vector<32x32xf32>
    %273 = arith.addf %270, %272 : vector<32x32xf32>
    %274 = arith.truncf %273 : vector<32x32xf32> to vector<32x32xbf16>
    %cst_91 = arith.constant dense<0.000000e+00> : vector<32x128xf32>
    %275 = tpu.matmul %274, %166, %cst_91 {dimension_numbers = #tpu.dot_dimension_numbers<[1], [0], [0], [1], [0, 0, 1, 1], [], []>} : vector<32x32xbf16>, vector<32x128xbf16>, vector<32x128xf32> -> vector<32x128xf32>
    %276 = vector.broadcast %172 : vector<1x128xf32> to vector<32x128xf32>
    %277 = arith.addf %275, %276 : vector<32x128xf32>
    %cst_92 = arith.constant 0.000000e+00 : f32
    %278 = vector.broadcast %cst_92 : f32 to vector<32x128xf32>
    %279 = arith.maximumf %277, %278 : vector<32x128xf32>
    %280 = arith.truncf %279 : vector<32x128xf32> to vector<32x128xbf16>
    %cst_93 = arith.constant dense<0.000000e+00> : vector<32x32xf32>
    %281 = tpu.matmul %280, %167, %cst_93 {dimension_numbers = #tpu.dot_dimension_numbers<[1], [0], [0], [1], [0, 0, 1, 1], [], []>} : vector<32x128xbf16>, vector<128x32xbf16>, vector<32x32xf32> -> vector<32x32xf32>
    %282 = vector.broadcast %173 : vector<1x32xf32> to vector<32x32xf32>
    %283 = arith.addf %281, %282 : vector<32x32xf32>
    %284 = arith.addf %273, %283 : vector<32x32xf32>
    %cst_94 = arith.constant dense<0.000000e+00> : vector<32xf32>
    %285 = vector.multi_reduction <add>, %284, %cst_94 [1] : vector<32x32xf32> to vector<32xf32>
    %286 = vector.shape_cast %285 : vector<32xf32> to vector<32x1xf32>
    %cst_95 = arith.constant 3.200000e+01 : f32
    %287 = vector.broadcast %cst_95 : f32 to vector<32x1xf32>
    %288 = arith.divf %286, %287 : vector<32x1xf32>
    %289 = vector.broadcast %288 : vector<32x1xf32> to vector<32x32xf32>
    %290 = arith.subf %284, %289 : vector<32x32xf32>
    %291 = arith.mulf %290, %290 : vector<32x32xf32>
    %cst_96 = arith.constant dense<0.000000e+00> : vector<32xf32>
    %292 = vector.multi_reduction <add>, %291, %cst_96 [1] : vector<32x32xf32> to vector<32xf32>
    %293 = vector.shape_cast %292 : vector<32xf32> to vector<32x1xf32>
    %cst_97 = arith.constant 3.200000e+01 : f32
    %294 = vector.broadcast %cst_97 : f32 to vector<32x1xf32>
    %295 = arith.divf %293, %294 : vector<32x1xf32>
    %296 = vector.broadcast %288 : vector<32x1xf32> to vector<32x32xf32>
    %297 = arith.subf %284, %296 : vector<32x32xf32>
    %cst_98 = arith.constant 9.99999974E-6 : f32
    %298 = vector.broadcast %cst_98 : f32 to vector<32x1xf32>
    %299 = arith.addf %295, %298 : vector<32x1xf32>
    %300 = math.rsqrt %299 : vector<32x1xf32>
    %301 = vector.broadcast %300 : vector<32x1xf32> to vector<32x32xf32>
    %302 = arith.mulf %297, %301 : vector<32x32xf32>
    %303 = vector.extract_strided_slice %174 {offsets = [0, 0], sizes = [1, 32], strides = [1, 1]} : vector<2x32xf32> to vector<1x32xf32>
    %304 = vector.broadcast %303 : vector<1x32xf32> to vector<32x32xf32>
    %305 = arith.mulf %302, %304 : vector<32x32xf32>
    %306 = vector.extract_strided_slice %174 {offsets = [1, 0], sizes = [1, 32], strides = [1, 1]} : vector<2x32xf32> to vector<1x32xf32>
    %307 = vector.broadcast %306 : vector<1x32xf32> to vector<32x32xf32>
    %308 = arith.addf %305, %307 : vector<32x32xf32>
    %309 = vector.broadcast %9 : vector<32x1xf32> to vector<32x32xf32>
    %310 = arith.mulf %308, %309 : vector<32x32xf32>
    %c0_99 = arith.constant 0 : index
    %c0_100 = arith.constant 0 : index
    %c0_101 = arith.constant 0 : index
    %c0_102 = arith.constant 0 : index
    %311 = vector.load %arg21[%c0_99, %c0_100, %c0_101, %c0_102] : memref<2x4x8x8xf32, #tpu.memory_space<vmem>>, vector<1x4x8x8xf32>
    %312 = vector.shape_cast %311 : vector<1x4x8x8xf32> to vector<4x8x8xf32>
    %c0_103 = arith.constant 0 : index
    %c0_104 = arith.constant 0 : index
    %c0_105 = arith.constant 0 : index
    %313 = vector.load %arg22[%c0_103, %c0_104, %c0_105] : memref<2x8x32xf32, #tpu.memory_space<vmem>>, vector<1x8x32xf32>
    %314 = vector.shape_cast %313 : vector<1x8x32xf32> to vector<8x32xf32>
    %c0_106 = arith.constant 0 : index
    %c0_107 = arith.constant 0 : index
    %c0_108 = arith.constant 0 : index
    %315 = vector.load %arg17[%c0_106, %c0_107, %c0_108] : memref<2x32x64xbf16, #tpu.memory_space<vmem>>, vector<1x32x64xbf16>
    %316 = vector.shape_cast %315 : vector<1x32x64xbf16> to vector<32x64xbf16>
    %c0_109 = arith.constant 0 : index
    %c0_110 = arith.constant 0 : index
    %c0_111 = arith.constant 0 : index
    %c0_112 = arith.constant 0 : index
    %317 = vector.load %arg18[%c0_109, %c0_110, %c0_111, %c0_112] : memref<2x4x8x32xbf16, #tpu.memory_space<vmem>>, vector<1x4x8x32xbf16>
    %318 = vector.shape_cast %317 : vector<1x4x8x32xbf16> to vector<4x8x32xbf16>
    %c0_113 = arith.constant 0 : index
    %c0_114 = arith.constant 0 : index
    %c0_115 = arith.constant 0 : index
    %319 = vector.load %arg19[%c0_113, %c0_114, %c0_115] : memref<2x32x128xbf16, #tpu.memory_space<vmem>>, vector<1x32x128xbf16>
    %320 = vector.shape_cast %319 : vector<1x32x128xbf16> to vector<32x128xbf16>
    %c0_116 = arith.constant 0 : index
    %c0_117 = arith.constant 0 : index
    %c0_118 = arith.constant 0 : index
    %321 = vector.load %arg20[%c0_116, %c0_117, %c0_118] : memref<2x128x32xbf16, #tpu.memory_space<vmem>>, vector<1x128x32xbf16>
    %322 = vector.shape_cast %321 : vector<1x128x32xbf16> to vector<128x32xbf16>
    %c18 = arith.constant 18 : index
    %c0_119 = arith.constant 0 : index
    %323 = vector.load %arg24[%c18, %c0_119] : memref<39x128xf32, #tpu.memory_space<vmem>>, vector<1x64xf32>
    %c19 = arith.constant 19 : index
    %c0_120 = arith.constant 0 : index
    %324 = vector.load %arg24[%c19, %c0_120] : memref<39x128xf32, #tpu.memory_space<vmem>>, vector<1x32xf32>
    %c20 = arith.constant 20 : index
    %c0_121 = arith.constant 0 : index
    %325 = vector.load %arg24[%c20, %c0_121] : memref<39x128xf32, #tpu.memory_space<vmem>>, vector<2x32xf32>
    %c22 = arith.constant 22 : index
    %c0_122 = arith.constant 0 : index
    %326 = vector.load %arg24[%c22, %c0_122] : memref<39x128xf32, #tpu.memory_space<vmem>>, vector<1x128xf32>
    %c23 = arith.constant 23 : index
    %c0_123 = arith.constant 0 : index
    %327 = vector.load %arg24[%c23, %c0_123] : memref<39x128xf32, #tpu.memory_space<vmem>>, vector<1x32xf32>
    %c24 = arith.constant 24 : index
    %c0_124 = arith.constant 0 : index
    %328 = vector.load %arg24[%c24, %c0_124] : memref<39x128xf32, #tpu.memory_space<vmem>>, vector<2x32xf32>
    %329 = arith.truncf %162 : vector<32x32xf32> to vector<32x32xbf16>
    %cst_125 = arith.constant dense<0.000000e+00> : vector<32x64xf32>
    %330 = tpu.matmul %329, %316, %cst_125 {dimension_numbers = #tpu.dot_dimension_numbers<[1], [0], [0], [1], [0, 0, 1, 1], [], []>} : vector<32x32xbf16>, vector<32x64xbf16>, vector<32x64xf32> -> vector<32x64xf32>
    %331 = vector.broadcast %323 : vector<1x64xf32> to vector<32x64xf32>
    %332 = arith.addf %330, %331 : vector<32x64xf32>
    %333 = vector.extract_strided_slice %332 {offsets = [0, 0], sizes = [32, 32], strides = [1, 1]} : vector<32x64xf32> to vector<32x32xf32>
    %334 = arith.truncf %333 : vector<32x32xf32> to vector<32x32xbf16>
    %335 = vector.shape_cast %334 : vector<32x32xbf16> to vector<2x16x32xbf16>
    %336 = vector.extract_strided_slice %335 {offsets = [0, 0, 0], sizes = [2, 16, 8], strides = [1, 1, 1]} : vector<2x16x32xbf16> to vector<2x16x8xbf16>
    %337 = vector.extract_strided_slice %335 {offsets = [0, 0, 8], sizes = [2, 16, 8], strides = [1, 1, 1]} : vector<2x16x32xbf16> to vector<2x16x8xbf16>
    %338 = vector.extract_strided_slice %335 {offsets = [0, 0, 16], sizes = [2, 16, 8], strides = [1, 1, 1]} : vector<2x16x32xbf16> to vector<2x16x8xbf16>
    %339 = vector.extract_strided_slice %335 {offsets = [0, 0, 24], sizes = [2, 16, 8], strides = [1, 1, 1]} : vector<2x16x32xbf16> to vector<2x16x8xbf16>
    %340 = tpu.concatenate %336, %337, %338, %339 in 0 : vector<2x16x8xbf16>, vector<2x16x8xbf16>, vector<2x16x8xbf16>, vector<2x16x8xbf16> -> vector<8x16x8xbf16>
    %341 = vector.extract_strided_slice %332 {offsets = [0, 32], sizes = [32, 32], strides = [1, 1]} : vector<32x64xf32> to vector<32x32xf32>
    %342 = arith.truncf %341 : vector<32x32xf32> to vector<32x32xbf16>
    %343 = vector.shape_cast %342 : vector<32x32xbf16> to vector<2x16x32xbf16>
    %344 = vector.extract_strided_slice %343 {offsets = [0, 0, 0], sizes = [2, 16, 8], strides = [1, 1, 1]} : vector<2x16x32xbf16> to vector<2x16x8xbf16>
    %345 = vector.extract_strided_slice %343 {offsets = [0, 0, 8], sizes = [2, 16, 8], strides = [1, 1, 1]} : vector<2x16x32xbf16> to vector<2x16x8xbf16>
    %346 = vector.extract_strided_slice %343 {offsets = [0, 0, 16], sizes = [2, 16, 8], strides = [1, 1, 1]} : vector<2x16x32xbf16> to vector<2x16x8xbf16>
    %347 = vector.extract_strided_slice %343 {offsets = [0, 0, 24], sizes = [2, 16, 8], strides = [1, 1, 1]} : vector<2x16x32xbf16> to vector<2x16x8xbf16>
    %348 = tpu.concatenate %344, %345, %346, %347 in 0 : vector<2x16x8xbf16>, vector<2x16x8xbf16>, vector<2x16x8xbf16>, vector<2x16x8xbf16> -> vector<8x16x8xbf16>
    %349 = arith.truncf %312 : vector<4x8x8xf32> to vector<4x8x8xbf16>
    %350 = vector.shape_cast %349 : vector<4x8x8xbf16> to vector<4x1x8x8xbf16>
    %351 = vector.shape_cast %350 : vector<4x1x8x8xbf16> to vector<4x1x8x8xbf16>
    %352 = vector.broadcast %351 : vector<4x1x8x8xbf16> to vector<4x2x8x8xbf16>
    %353 = vector.shape_cast %352 : vector<4x2x8x8xbf16> to vector<8x8x8xbf16>
    "tpu.trace_start"() <{level = 10 : i32, message = "zqe,zke->zqk"}> : () -> ()
    %cst_126 = arith.constant dense<0.000000e+00> : vector<8x8x16xf32>
    %354 = tpu.matmul %353, %340, %cst_126 {dimension_numbers = #tpu.dot_dimension_numbers<[2], [2], [1], [1], [0, 0, 0, 1, 1, 1], [0], [0]>} : vector<8x8x8xbf16>, vector<8x16x8xbf16>, vector<8x8x16xf32> -> vector<8x8x16xf32>
    "tpu.trace_stop"() : () -> ()
    %355 = vector.shape_cast %354 : vector<8x8x16xf32> to vector<4x2x8x16xf32>
    %356 = vector.shape_cast %7 : vector<2x1x16xf32> to vector<1x2x1x16xf32>
    %357 = vector.broadcast %356 : vector<1x2x1x16xf32> to vector<4x2x8x16xf32>
    %358 = arith.addf %355, %357 : vector<4x2x8x16xf32>
    %359 = vector.shape_cast %358 : vector<4x2x8x16xf32> to vector<8x8x16xf32>
    %cst_127 = arith.constant dense<0xFF800000> : vector<8x8xf32>
    %360 = vector.multi_reduction <maximumf>, %359, %cst_127 [2] : vector<8x8x16xf32> to vector<8x8xf32>
    %361 = vector.shape_cast %360 : vector<8x8xf32> to vector<8x8x1xf32>
    %362 = vector.broadcast %361 : vector<8x8x1xf32> to vector<8x8x16xf32>
    %363 = arith.subf %359, %362 : vector<8x8x16xf32>
    %364 = math.exp %363 : vector<8x8x16xf32>
    %cst_128 = arith.constant dense<0.000000e+00> : vector<8x8xf32>
    %365 = vector.multi_reduction <add>, %364, %cst_128 [2] : vector<8x8x16xf32> to vector<8x8xf32>
    %366 = vector.shape_cast %365 : vector<8x8xf32> to vector<8x8x1xf32>
    %367 = tpu.reciprocal %366 {approx = true} : vector<8x8x1xf32> -> vector<8x8x1xf32>
    %368 = vector.broadcast %367 : vector<8x8x1xf32> to vector<8x8x16xf32>
    %369 = arith.mulf %364, %368 : vector<8x8x16xf32>
    %370 = arith.truncf %369 : vector<8x8x16xf32> to vector<8x8x16xbf16>
    "tpu.trace_start"() <{level = 10 : i32, message = "zqk,zke->zqe"}> : () -> ()
    %cst_129 = arith.constant dense<0.000000e+00> : vector<8x8x8xf32>
    %371 = tpu.matmul %370, %348, %cst_129 {dimension_numbers = #tpu.dot_dimension_numbers<[2], [1], [1], [2], [0, 0, 0, 1, 1, 2], [0], [0]>} : vector<8x8x16xbf16>, vector<8x16x8xbf16>, vector<8x8x8xf32> -> vector<8x8x8xf32>
    "tpu.trace_stop"() : () -> ()
    %372 = vector.shape_cast %371 : vector<8x8x8xf32> to vector<4x16x8xf32>
    %373 = vector.extract_strided_slice %372 {offsets = [0, 0, 0], sizes = [1, 16, 8], strides = [1, 1, 1]} : vector<4x16x8xf32> to vector<1x16x8xf32>
    %374 = vector.shape_cast %373 : vector<1x16x8xf32> to vector<16x8xf32>
    %375 = arith.truncf %374 : vector<16x8xf32> to vector<16x8xbf16>
    %376 = vector.extract_strided_slice %318 {offsets = [0, 0, 0], sizes = [1, 8, 32], strides = [1, 1, 1]} : vector<4x8x32xbf16> to vector<1x8x32xbf16>
    %377 = vector.shape_cast %376 : vector<1x8x32xbf16> to vector<8x32xbf16>
    %cst_130 = arith.constant dense<0.000000e+00> : vector<16x32xf32>
    %378 = tpu.matmul %375, %377, %cst_130 {dimension_numbers = #tpu.dot_dimension_numbers<[1], [0], [0], [1], [0, 0, 1, 1], [], []>} : vector<16x8xbf16>, vector<8x32xbf16>, vector<16x32xf32> -> vector<16x32xf32>
    %379 = vector.extract_strided_slice %372 {offsets = [1, 0, 0], sizes = [1, 16, 8], strides = [1, 1, 1]} : vector<4x16x8xf32> to vector<1x16x8xf32>
    %380 = vector.shape_cast %379 : vector<1x16x8xf32> to vector<16x8xf32>
    %381 = arith.truncf %380 : vector<16x8xf32> to vector<16x8xbf16>
    %382 = vector.extract_strided_slice %318 {offsets = [1, 0, 0], sizes = [1, 8, 32], strides = [1, 1, 1]} : vector<4x8x32xbf16> to vector<1x8x32xbf16>
    %383 = vector.shape_cast %382 : vector<1x8x32xbf16> to vector<8x32xbf16>
    %cst_131 = arith.constant dense<0.000000e+00> : vector<16x32xf32>
    %384 = tpu.matmul %381, %383, %cst_131 {dimension_numbers = #tpu.dot_dimension_numbers<[1], [0], [0], [1], [0, 0, 1, 1], [], []>} : vector<16x8xbf16>, vector<8x32xbf16>, vector<16x32xf32> -> vector<16x32xf32>
    %385 = arith.addf %378, %384 : vector<16x32xf32>
    %386 = vector.extract_strided_slice %372 {offsets = [2, 0, 0], sizes = [1, 16, 8], strides = [1, 1, 1]} : vector<4x16x8xf32> to vector<1x16x8xf32>
    %387 = vector.shape_cast %386 : vector<1x16x8xf32> to vector<16x8xf32>
    %388 = arith.truncf %387 : vector<16x8xf32> to vector<16x8xbf16>
    %389 = vector.extract_strided_slice %318 {offsets = [2, 0, 0], sizes = [1, 8, 32], strides = [1, 1, 1]} : vector<4x8x32xbf16> to vector<1x8x32xbf16>
    %390 = vector.shape_cast %389 : vector<1x8x32xbf16> to vector<8x32xbf16>
    %cst_132 = arith.constant dense<0.000000e+00> : vector<16x32xf32>
    %391 = tpu.matmul %388, %390, %cst_132 {dimension_numbers = #tpu.dot_dimension_numbers<[1], [0], [0], [1], [0, 0, 1, 1], [], []>} : vector<16x8xbf16>, vector<8x32xbf16>, vector<16x32xf32> -> vector<16x32xf32>
    %392 = arith.addf %385, %391 : vector<16x32xf32>
    %393 = vector.extract_strided_slice %372 {offsets = [3, 0, 0], sizes = [1, 16, 8], strides = [1, 1, 1]} : vector<4x16x8xf32> to vector<1x16x8xf32>
    %394 = vector.shape_cast %393 : vector<1x16x8xf32> to vector<16x8xf32>
    %395 = arith.truncf %394 : vector<16x8xf32> to vector<16x8xbf16>
    %396 = vector.extract_strided_slice %318 {offsets = [3, 0, 0], sizes = [1, 8, 32], strides = [1, 1, 1]} : vector<4x8x32xbf16> to vector<1x8x32xbf16>
    %397 = vector.shape_cast %396 : vector<1x8x32xbf16> to vector<8x32xbf16>
    %cst_133 = arith.constant dense<0.000000e+00> : vector<16x32xf32>
    %398 = tpu.matmul %395, %397, %cst_133 {dimension_numbers = #tpu.dot_dimension_numbers<[1], [0], [0], [1], [0, 0, 1, 1], [], []>} : vector<16x8xbf16>, vector<8x32xbf16>, vector<16x32xf32> -> vector<16x32xf32>
    %399 = arith.addf %392, %398 : vector<16x32xf32>
    %400 = vector.broadcast %324 : vector<1x32xf32> to vector<16x32xf32>
    %401 = arith.addf %399, %400 : vector<16x32xf32>
    %402 = vector.shape_cast %314 : vector<8x32xf32> to vector<1x8x32xf32>
    %403 = vector.shape_cast %402 : vector<1x8x32xf32> to vector<1x8x32xf32>
    %404 = vector.broadcast %403 : vector<1x8x32xf32> to vector<2x8x32xf32>
    %405 = vector.shape_cast %404 : vector<2x8x32xf32> to vector<16x32xf32>
    %406 = arith.addf %405, %401 : vector<16x32xf32>
    %cst_134 = arith.constant dense<0.000000e+00> : vector<16xf32>
    %407 = vector.multi_reduction <add>, %406, %cst_134 [1] : vector<16x32xf32> to vector<16xf32>
    %408 = vector.shape_cast %407 : vector<16xf32> to vector<16x1xf32>
    %cst_135 = arith.constant 3.200000e+01 : f32
    %409 = vector.broadcast %cst_135 : f32 to vector<16x1xf32>
    %410 = arith.divf %408, %409 : vector<16x1xf32>
    %411 = vector.broadcast %410 : vector<16x1xf32> to vector<16x32xf32>
    %412 = arith.subf %406, %411 : vector<16x32xf32>
    %413 = arith.mulf %412, %412 : vector<16x32xf32>
    %cst_136 = arith.constant dense<0.000000e+00> : vector<16xf32>
    %414 = vector.multi_reduction <add>, %413, %cst_136 [1] : vector<16x32xf32> to vector<16xf32>
    %415 = vector.shape_cast %414 : vector<16xf32> to vector<16x1xf32>
    %cst_137 = arith.constant 3.200000e+01 : f32
    %416 = vector.broadcast %cst_137 : f32 to vector<16x1xf32>
    %417 = arith.divf %415, %416 : vector<16x1xf32>
    %418 = vector.broadcast %410 : vector<16x1xf32> to vector<16x32xf32>
    %419 = arith.subf %406, %418 : vector<16x32xf32>
    %cst_138 = arith.constant 9.99999974E-6 : f32
    %420 = vector.broadcast %cst_138 : f32 to vector<16x1xf32>
    %421 = arith.addf %417, %420 : vector<16x1xf32>
    %422 = math.rsqrt %421 : vector<16x1xf32>
    %423 = vector.broadcast %422 : vector<16x1xf32> to vector<16x32xf32>
    %424 = arith.mulf %419, %423 : vector<16x32xf32>
    %425 = vector.extract_strided_slice %325 {offsets = [0, 0], sizes = [1, 32], strides = [1, 1]} : vector<2x32xf32> to vector<1x32xf32>
    %426 = vector.broadcast %425 : vector<1x32xf32> to vector<16x32xf32>
    %427 = arith.mulf %424, %426 : vector<16x32xf32>
    %428 = vector.extract_strided_slice %325 {offsets = [1, 0], sizes = [1, 32], strides = [1, 1]} : vector<2x32xf32> to vector<1x32xf32>
    %429 = vector.broadcast %428 : vector<1x32xf32> to vector<16x32xf32>
    %430 = arith.addf %427, %429 : vector<16x32xf32>
    %431 = arith.truncf %430 : vector<16x32xf32> to vector<16x32xbf16>
    %cst_139 = arith.constant dense<0.000000e+00> : vector<16x128xf32>
    %432 = tpu.matmul %431, %320, %cst_139 {dimension_numbers = #tpu.dot_dimension_numbers<[1], [0], [0], [1], [0, 0, 1, 1], [], []>} : vector<16x32xbf16>, vector<32x128xbf16>, vector<16x128xf32> -> vector<16x128xf32>
    %433 = vector.broadcast %326 : vector<1x128xf32> to vector<16x128xf32>
    %434 = arith.addf %432, %433 : vector<16x128xf32>
    %cst_140 = arith.constant 0.000000e+00 : f32
    %435 = vector.broadcast %cst_140 : f32 to vector<16x128xf32>
    %436 = arith.maximumf %434, %435 : vector<16x128xf32>
    %437 = arith.truncf %436 : vector<16x128xf32> to vector<16x128xbf16>
    %cst_141 = arith.constant dense<0.000000e+00> : vector<16x32xf32>
    %438 = tpu.matmul %437, %322, %cst_141 {dimension_numbers = #tpu.dot_dimension_numbers<[1], [0], [0], [1], [0, 0, 1, 1], [], []>} : vector<16x128xbf16>, vector<128x32xbf16>, vector<16x32xf32> -> vector<16x32xf32>
    %439 = vector.broadcast %327 : vector<1x32xf32> to vector<16x32xf32>
    %440 = arith.addf %438, %439 : vector<16x32xf32>
    %441 = arith.addf %430, %440 : vector<16x32xf32>
    %cst_142 = arith.constant dense<0.000000e+00> : vector<16xf32>
    %442 = vector.multi_reduction <add>, %441, %cst_142 [1] : vector<16x32xf32> to vector<16xf32>
    %443 = vector.shape_cast %442 : vector<16xf32> to vector<16x1xf32>
    %cst_143 = arith.constant 3.200000e+01 : f32
    %444 = vector.broadcast %cst_143 : f32 to vector<16x1xf32>
    %445 = arith.divf %443, %444 : vector<16x1xf32>
    %446 = vector.broadcast %445 : vector<16x1xf32> to vector<16x32xf32>
    %447 = arith.subf %441, %446 : vector<16x32xf32>
    %448 = arith.mulf %447, %447 : vector<16x32xf32>
    %cst_144 = arith.constant dense<0.000000e+00> : vector<16xf32>
    %449 = vector.multi_reduction <add>, %448, %cst_144 [1] : vector<16x32xf32> to vector<16xf32>
    %450 = vector.shape_cast %449 : vector<16xf32> to vector<16x1xf32>
    %cst_145 = arith.constant 3.200000e+01 : f32
    %451 = vector.broadcast %cst_145 : f32 to vector<16x1xf32>
    %452 = arith.divf %450, %451 : vector<16x1xf32>
    %453 = vector.broadcast %445 : vector<16x1xf32> to vector<16x32xf32>
    %454 = arith.subf %441, %453 : vector<16x32xf32>
    %cst_146 = arith.constant 9.99999974E-6 : f32
    %455 = vector.broadcast %cst_146 : f32 to vector<16x1xf32>
    %456 = arith.addf %452, %455 : vector<16x1xf32>
    %457 = math.rsqrt %456 : vector<16x1xf32>
    %458 = vector.broadcast %457 : vector<16x1xf32> to vector<16x32xf32>
    %459 = arith.mulf %454, %458 : vector<16x32xf32>
    %460 = vector.extract_strided_slice %328 {offsets = [0, 0], sizes = [1, 32], strides = [1, 1]} : vector<2x32xf32> to vector<1x32xf32>
    %461 = vector.broadcast %460 : vector<1x32xf32> to vector<16x32xf32>
    %462 = arith.mulf %459, %461 : vector<16x32xf32>
    %463 = vector.extract_strided_slice %328 {offsets = [1, 0], sizes = [1, 32], strides = [1, 1]} : vector<2x32xf32> to vector<1x32xf32>
    %464 = vector.broadcast %463 : vector<1x32xf32> to vector<16x32xf32>
    %465 = arith.addf %462, %464 : vector<16x32xf32>
    %c1_147 = arith.constant 1 : index
    %c0_148 = arith.constant 0 : index
    %c0_149 = arith.constant 0 : index
    %c0_150 = arith.constant 0 : index
    %466 = vector.load %arg21[%c1_147, %c0_148, %c0_149, %c0_150] : memref<2x4x8x8xf32, #tpu.memory_space<vmem>>, vector<1x4x8x8xf32>
    %467 = vector.shape_cast %466 : vector<1x4x8x8xf32> to vector<4x8x8xf32>
    %c1_151 = arith.constant 1 : index
    %c0_152 = arith.constant 0 : index
    %c0_153 = arith.constant 0 : index
    %468 = vector.load %arg22[%c1_151, %c0_152, %c0_153] : memref<2x8x32xf32, #tpu.memory_space<vmem>>, vector<1x8x32xf32>
    %469 = vector.shape_cast %468 : vector<1x8x32xf32> to vector<8x32xf32>
    %c1_154 = arith.constant 1 : index
    %c0_155 = arith.constant 0 : index
    %c0_156 = arith.constant 0 : index
    %470 = vector.load %arg17[%c1_154, %c0_155, %c0_156] : memref<2x32x64xbf16, #tpu.memory_space<vmem>>, vector<1x32x64xbf16>
    %471 = vector.shape_cast %470 : vector<1x32x64xbf16> to vector<32x64xbf16>
    %c1_157 = arith.constant 1 : index
    %c0_158 = arith.constant 0 : index
    %c0_159 = arith.constant 0 : index
    %c0_160 = arith.constant 0 : index
    %472 = vector.load %arg18[%c1_157, %c0_158, %c0_159, %c0_160] : memref<2x4x8x32xbf16, #tpu.memory_space<vmem>>, vector<1x4x8x32xbf16>
    %473 = vector.shape_cast %472 : vector<1x4x8x32xbf16> to vector<4x8x32xbf16>
    %c1_161 = arith.constant 1 : index
    %c0_162 = arith.constant 0 : index
    %c0_163 = arith.constant 0 : index
    %474 = vector.load %arg19[%c1_161, %c0_162, %c0_163] : memref<2x32x128xbf16, #tpu.memory_space<vmem>>, vector<1x32x128xbf16>
    %475 = vector.shape_cast %474 : vector<1x32x128xbf16> to vector<32x128xbf16>
    %c1_164 = arith.constant 1 : index
    %c0_165 = arith.constant 0 : index
    %c0_166 = arith.constant 0 : index
    %476 = vector.load %arg20[%c1_164, %c0_165, %c0_166] : memref<2x128x32xbf16, #tpu.memory_space<vmem>>, vector<1x128x32xbf16>
    %477 = vector.shape_cast %476 : vector<1x128x32xbf16> to vector<128x32xbf16>
    %c26 = arith.constant 26 : index
    %c0_167 = arith.constant 0 : index
    %478 = vector.load %arg24[%c26, %c0_167] : memref<39x128xf32, #tpu.memory_space<vmem>>, vector<1x64xf32>
    %c27 = arith.constant 27 : index
    %c0_168 = arith.constant 0 : index
    %479 = vector.load %arg24[%c27, %c0_168] : memref<39x128xf32, #tpu.memory_space<vmem>>, vector<1x32xf32>
    %c28 = arith.constant 28 : index
    %c0_169 = arith.constant 0 : index
    %480 = vector.load %arg24[%c28, %c0_169] : memref<39x128xf32, #tpu.memory_space<vmem>>, vector<2x32xf32>
    %c30 = arith.constant 30 : index
    %c0_170 = arith.constant 0 : index
    %481 = vector.load %arg24[%c30, %c0_170] : memref<39x128xf32, #tpu.memory_space<vmem>>, vector<1x128xf32>
    %c31 = arith.constant 31 : index
    %c0_171 = arith.constant 0 : index
    %482 = vector.load %arg24[%c31, %c0_171] : memref<39x128xf32, #tpu.memory_space<vmem>>, vector<1x32xf32>
    %c32 = arith.constant 32 : index
    %c0_172 = arith.constant 0 : index
    %483 = vector.load %arg24[%c32, %c0_172] : memref<39x128xf32, #tpu.memory_space<vmem>>, vector<2x32xf32>
    %484 = arith.truncf %310 : vector<32x32xf32> to vector<32x32xbf16>
    %cst_173 = arith.constant dense<0.000000e+00> : vector<32x64xf32>
    %485 = tpu.matmul %484, %471, %cst_173 {dimension_numbers = #tpu.dot_dimension_numbers<[1], [0], [0], [1], [0, 0, 1, 1], [], []>} : vector<32x32xbf16>, vector<32x64xbf16>, vector<32x64xf32> -> vector<32x64xf32>
    %486 = vector.broadcast %478 : vector<1x64xf32> to vector<32x64xf32>
    %487 = arith.addf %485, %486 : vector<32x64xf32>
    %488 = vector.extract_strided_slice %487 {offsets = [0, 0], sizes = [32, 32], strides = [1, 1]} : vector<32x64xf32> to vector<32x32xf32>
    %489 = arith.truncf %488 : vector<32x32xf32> to vector<32x32xbf16>
    %490 = vector.shape_cast %489 : vector<32x32xbf16> to vector<2x16x32xbf16>
    %491 = vector.extract_strided_slice %490 {offsets = [0, 0, 0], sizes = [2, 16, 8], strides = [1, 1, 1]} : vector<2x16x32xbf16> to vector<2x16x8xbf16>
    %492 = vector.extract_strided_slice %490 {offsets = [0, 0, 8], sizes = [2, 16, 8], strides = [1, 1, 1]} : vector<2x16x32xbf16> to vector<2x16x8xbf16>
    %493 = vector.extract_strided_slice %490 {offsets = [0, 0, 16], sizes = [2, 16, 8], strides = [1, 1, 1]} : vector<2x16x32xbf16> to vector<2x16x8xbf16>
    %494 = vector.extract_strided_slice %490 {offsets = [0, 0, 24], sizes = [2, 16, 8], strides = [1, 1, 1]} : vector<2x16x32xbf16> to vector<2x16x8xbf16>
    %495 = tpu.concatenate %491, %492, %493, %494 in 0 : vector<2x16x8xbf16>, vector<2x16x8xbf16>, vector<2x16x8xbf16>, vector<2x16x8xbf16> -> vector<8x16x8xbf16>
    %496 = vector.extract_strided_slice %487 {offsets = [0, 32], sizes = [32, 32], strides = [1, 1]} : vector<32x64xf32> to vector<32x32xf32>
    %497 = arith.truncf %496 : vector<32x32xf32> to vector<32x32xbf16>
    %498 = vector.shape_cast %497 : vector<32x32xbf16> to vector<2x16x32xbf16>
    %499 = vector.extract_strided_slice %498 {offsets = [0, 0, 0], sizes = [2, 16, 8], strides = [1, 1, 1]} : vector<2x16x32xbf16> to vector<2x16x8xbf16>
    %500 = vector.extract_strided_slice %498 {offsets = [0, 0, 8], sizes = [2, 16, 8], strides = [1, 1, 1]} : vector<2x16x32xbf16> to vector<2x16x8xbf16>
    %501 = vector.extract_strided_slice %498 {offsets = [0, 0, 16], sizes = [2, 16, 8], strides = [1, 1, 1]} : vector<2x16x32xbf16> to vector<2x16x8xbf16>
    %502 = vector.extract_strided_slice %498 {offsets = [0, 0, 24], sizes = [2, 16, 8], strides = [1, 1, 1]} : vector<2x16x32xbf16> to vector<2x16x8xbf16>
    %503 = tpu.concatenate %499, %500, %501, %502 in 0 : vector<2x16x8xbf16>, vector<2x16x8xbf16>, vector<2x16x8xbf16>, vector<2x16x8xbf16> -> vector<8x16x8xbf16>
    %504 = arith.truncf %467 : vector<4x8x8xf32> to vector<4x8x8xbf16>
    %505 = vector.shape_cast %504 : vector<4x8x8xbf16> to vector<4x1x8x8xbf16>
    %506 = vector.shape_cast %505 : vector<4x1x8x8xbf16> to vector<4x1x8x8xbf16>
    %507 = vector.broadcast %506 : vector<4x1x8x8xbf16> to vector<4x2x8x8xbf16>
    %508 = vector.shape_cast %507 : vector<4x2x8x8xbf16> to vector<8x8x8xbf16>
    "tpu.trace_start"() <{level = 10 : i32, message = "zqe,zke->zqk"}> : () -> ()
    %cst_174 = arith.constant dense<0.000000e+00> : vector<8x8x16xf32>
    %509 = tpu.matmul %508, %495, %cst_174 {dimension_numbers = #tpu.dot_dimension_numbers<[2], [2], [1], [1], [0, 0, 0, 1, 1, 1], [0], [0]>} : vector<8x8x8xbf16>, vector<8x16x8xbf16>, vector<8x8x16xf32> -> vector<8x8x16xf32>
    "tpu.trace_stop"() : () -> ()
    %510 = vector.shape_cast %509 : vector<8x8x16xf32> to vector<4x2x8x16xf32>
    %511 = vector.shape_cast %7 : vector<2x1x16xf32> to vector<1x2x1x16xf32>
    %512 = vector.broadcast %511 : vector<1x2x1x16xf32> to vector<4x2x8x16xf32>
    %513 = arith.addf %510, %512 : vector<4x2x8x16xf32>
    %514 = vector.shape_cast %513 : vector<4x2x8x16xf32> to vector<8x8x16xf32>
    %cst_175 = arith.constant dense<0xFF800000> : vector<8x8xf32>
    %515 = vector.multi_reduction <maximumf>, %514, %cst_175 [2] : vector<8x8x16xf32> to vector<8x8xf32>
    %516 = vector.shape_cast %515 : vector<8x8xf32> to vector<8x8x1xf32>
    %517 = vector.broadcast %516 : vector<8x8x1xf32> to vector<8x8x16xf32>
    %518 = arith.subf %514, %517 : vector<8x8x16xf32>
    %519 = math.exp %518 : vector<8x8x16xf32>
    %cst_176 = arith.constant dense<0.000000e+00> : vector<8x8xf32>
    %520 = vector.multi_reduction <add>, %519, %cst_176 [2] : vector<8x8x16xf32> to vector<8x8xf32>
    %521 = vector.shape_cast %520 : vector<8x8xf32> to vector<8x8x1xf32>
    %522 = tpu.reciprocal %521 {approx = true} : vector<8x8x1xf32> -> vector<8x8x1xf32>
    %523 = vector.broadcast %522 : vector<8x8x1xf32> to vector<8x8x16xf32>
    %524 = arith.mulf %519, %523 : vector<8x8x16xf32>
    %525 = arith.truncf %524 : vector<8x8x16xf32> to vector<8x8x16xbf16>
    "tpu.trace_start"() <{level = 10 : i32, message = "zqk,zke->zqe"}> : () -> ()
    %cst_177 = arith.constant dense<0.000000e+00> : vector<8x8x8xf32>
    %526 = tpu.matmul %525, %503, %cst_177 {dimension_numbers = #tpu.dot_dimension_numbers<[2], [1], [1], [2], [0, 0, 0, 1, 1, 2], [0], [0]>} : vector<8x8x16xbf16>, vector<8x16x8xbf16>, vector<8x8x8xf32> -> vector<8x8x8xf32>
    "tpu.trace_stop"() : () -> ()
    %527 = vector.shape_cast %526 : vector<8x8x8xf32> to vector<4x16x8xf32>
    %528 = vector.extract_strided_slice %527 {offsets = [0, 0, 0], sizes = [1, 16, 8], strides = [1, 1, 1]} : vector<4x16x8xf32> to vector<1x16x8xf32>
    %529 = vector.shape_cast %528 : vector<1x16x8xf32> to vector<16x8xf32>
    %530 = arith.truncf %529 : vector<16x8xf32> to vector<16x8xbf16>
    %531 = vector.extract_strided_slice %473 {offsets = [0, 0, 0], sizes = [1, 8, 32], strides = [1, 1, 1]} : vector<4x8x32xbf16> to vector<1x8x32xbf16>
    %532 = vector.shape_cast %531 : vector<1x8x32xbf16> to vector<8x32xbf16>
    %cst_178 = arith.constant dense<0.000000e+00> : vector<16x32xf32>
    %533 = tpu.matmul %530, %532, %cst_178 {dimension_numbers = #tpu.dot_dimension_numbers<[1], [0], [0], [1], [0, 0, 1, 1], [], []>} : vector<16x8xbf16>, vector<8x32xbf16>, vector<16x32xf32> -> vector<16x32xf32>
    %534 = vector.extract_strided_slice %527 {offsets = [1, 0, 0], sizes = [1, 16, 8], strides = [1, 1, 1]} : vector<4x16x8xf32> to vector<1x16x8xf32>
    %535 = vector.shape_cast %534 : vector<1x16x8xf32> to vector<16x8xf32>
    %536 = arith.truncf %535 : vector<16x8xf32> to vector<16x8xbf16>
    %537 = vector.extract_strided_slice %473 {offsets = [1, 0, 0], sizes = [1, 8, 32], strides = [1, 1, 1]} : vector<4x8x32xbf16> to vector<1x8x32xbf16>
    %538 = vector.shape_cast %537 : vector<1x8x32xbf16> to vector<8x32xbf16>
    %cst_179 = arith.constant dense<0.000000e+00> : vector<16x32xf32>
    %539 = tpu.matmul %536, %538, %cst_179 {dimension_numbers = #tpu.dot_dimension_numbers<[1], [0], [0], [1], [0, 0, 1, 1], [], []>} : vector<16x8xbf16>, vector<8x32xbf16>, vector<16x32xf32> -> vector<16x32xf32>
    %540 = arith.addf %533, %539 : vector<16x32xf32>
    %541 = vector.extract_strided_slice %527 {offsets = [2, 0, 0], sizes = [1, 16, 8], strides = [1, 1, 1]} : vector<4x16x8xf32> to vector<1x16x8xf32>
    %542 = vector.shape_cast %541 : vector<1x16x8xf32> to vector<16x8xf32>
    %543 = arith.truncf %542 : vector<16x8xf32> to vector<16x8xbf16>
    %544 = vector.extract_strided_slice %473 {offsets = [2, 0, 0], sizes = [1, 8, 32], strides = [1, 1, 1]} : vector<4x8x32xbf16> to vector<1x8x32xbf16>
    %545 = vector.shape_cast %544 : vector<1x8x32xbf16> to vector<8x32xbf16>
    %cst_180 = arith.constant dense<0.000000e+00> : vector<16x32xf32>
    %546 = tpu.matmul %543, %545, %cst_180 {dimension_numbers = #tpu.dot_dimension_numbers<[1], [0], [0], [1], [0, 0, 1, 1], [], []>} : vector<16x8xbf16>, vector<8x32xbf16>, vector<16x32xf32> -> vector<16x32xf32>
    %547 = arith.addf %540, %546 : vector<16x32xf32>
    %548 = vector.extract_strided_slice %527 {offsets = [3, 0, 0], sizes = [1, 16, 8], strides = [1, 1, 1]} : vector<4x16x8xf32> to vector<1x16x8xf32>
    %549 = vector.shape_cast %548 : vector<1x16x8xf32> to vector<16x8xf32>
    %550 = arith.truncf %549 : vector<16x8xf32> to vector<16x8xbf16>
    %551 = vector.extract_strided_slice %473 {offsets = [3, 0, 0], sizes = [1, 8, 32], strides = [1, 1, 1]} : vector<4x8x32xbf16> to vector<1x8x32xbf16>
    %552 = vector.shape_cast %551 : vector<1x8x32xbf16> to vector<8x32xbf16>
    %cst_181 = arith.constant dense<0.000000e+00> : vector<16x32xf32>
    %553 = tpu.matmul %550, %552, %cst_181 {dimension_numbers = #tpu.dot_dimension_numbers<[1], [0], [0], [1], [0, 0, 1, 1], [], []>} : vector<16x8xbf16>, vector<8x32xbf16>, vector<16x32xf32> -> vector<16x32xf32>
    %554 = arith.addf %547, %553 : vector<16x32xf32>
    %555 = vector.broadcast %479 : vector<1x32xf32> to vector<16x32xf32>
    %556 = arith.addf %554, %555 : vector<16x32xf32>
    %557 = vector.shape_cast %469 : vector<8x32xf32> to vector<1x8x32xf32>
    %558 = vector.shape_cast %557 : vector<1x8x32xf32> to vector<1x8x32xf32>
    %559 = vector.broadcast %558 : vector<1x8x32xf32> to vector<2x8x32xf32>
    %560 = vector.shape_cast %559 : vector<2x8x32xf32> to vector<16x32xf32>
    %561 = arith.addf %560, %556 : vector<16x32xf32>
    %cst_182 = arith.constant dense<0.000000e+00> : vector<16xf32>
    %562 = vector.multi_reduction <add>, %561, %cst_182 [1] : vector<16x32xf32> to vector<16xf32>
    %563 = vector.shape_cast %562 : vector<16xf32> to vector<16x1xf32>
    %cst_183 = arith.constant 3.200000e+01 : f32
    %564 = vector.broadcast %cst_183 : f32 to vector<16x1xf32>
    %565 = arith.divf %563, %564 : vector<16x1xf32>
    %566 = vector.broadcast %565 : vector<16x1xf32> to vector<16x32xf32>
    %567 = arith.subf %561, %566 : vector<16x32xf32>
    %568 = arith.mulf %567, %567 : vector<16x32xf32>
    %cst_184 = arith.constant dense<0.000000e+00> : vector<16xf32>
    %569 = vector.multi_reduction <add>, %568, %cst_184 [1] : vector<16x32xf32> to vector<16xf32>
    %570 = vector.shape_cast %569 : vector<16xf32> to vector<16x1xf32>
    %cst_185 = arith.constant 3.200000e+01 : f32
    %571 = vector.broadcast %cst_185 : f32 to vector<16x1xf32>
    %572 = arith.divf %570, %571 : vector<16x1xf32>
    %573 = vector.broadcast %565 : vector<16x1xf32> to vector<16x32xf32>
    %574 = arith.subf %561, %573 : vector<16x32xf32>
    %cst_186 = arith.constant 9.99999974E-6 : f32
    %575 = vector.broadcast %cst_186 : f32 to vector<16x1xf32>
    %576 = arith.addf %572, %575 : vector<16x1xf32>
    %577 = math.rsqrt %576 : vector<16x1xf32>
    %578 = vector.broadcast %577 : vector<16x1xf32> to vector<16x32xf32>
    %579 = arith.mulf %574, %578 : vector<16x32xf32>
    %580 = vector.extract_strided_slice %480 {offsets = [0, 0], sizes = [1, 32], strides = [1, 1]} : vector<2x32xf32> to vector<1x32xf32>
    %581 = vector.broadcast %580 : vector<1x32xf32> to vector<16x32xf32>
    %582 = arith.mulf %579, %581 : vector<16x32xf32>
    %583 = vector.extract_strided_slice %480 {offsets = [1, 0], sizes = [1, 32], strides = [1, 1]} : vector<2x32xf32> to vector<1x32xf32>
    %584 = vector.broadcast %583 : vector<1x32xf32> to vector<16x32xf32>
    %585 = arith.addf %582, %584 : vector<16x32xf32>
    %586 = arith.truncf %585 : vector<16x32xf32> to vector<16x32xbf16>
    %cst_187 = arith.constant dense<0.000000e+00> : vector<16x128xf32>
    %587 = tpu.matmul %586, %475, %cst_187 {dimension_numbers = #tpu.dot_dimension_numbers<[1], [0], [0], [1], [0, 0, 1, 1], [], []>} : vector<16x32xbf16>, vector<32x128xbf16>, vector<16x128xf32> -> vector<16x128xf32>
    %588 = vector.broadcast %481 : vector<1x128xf32> to vector<16x128xf32>
    %589 = arith.addf %587, %588 : vector<16x128xf32>
    %cst_188 = arith.constant 0.000000e+00 : f32
    %590 = vector.broadcast %cst_188 : f32 to vector<16x128xf32>
    %591 = arith.maximumf %589, %590 : vector<16x128xf32>
    %592 = arith.truncf %591 : vector<16x128xf32> to vector<16x128xbf16>
    %cst_189 = arith.constant dense<0.000000e+00> : vector<16x32xf32>
    %593 = tpu.matmul %592, %477, %cst_189 {dimension_numbers = #tpu.dot_dimension_numbers<[1], [0], [0], [1], [0, 0, 1, 1], [], []>} : vector<16x128xbf16>, vector<128x32xbf16>, vector<16x32xf32> -> vector<16x32xf32>
    %594 = vector.broadcast %482 : vector<1x32xf32> to vector<16x32xf32>
    %595 = arith.addf %593, %594 : vector<16x32xf32>
    %596 = arith.addf %585, %595 : vector<16x32xf32>
    %cst_190 = arith.constant dense<0.000000e+00> : vector<16xf32>
    %597 = vector.multi_reduction <add>, %596, %cst_190 [1] : vector<16x32xf32> to vector<16xf32>
    %598 = vector.shape_cast %597 : vector<16xf32> to vector<16x1xf32>
    %cst_191 = arith.constant 3.200000e+01 : f32
    %599 = vector.broadcast %cst_191 : f32 to vector<16x1xf32>
    %600 = arith.divf %598, %599 : vector<16x1xf32>
    %601 = vector.broadcast %600 : vector<16x1xf32> to vector<16x32xf32>
    %602 = arith.subf %596, %601 : vector<16x32xf32>
    %603 = arith.mulf %602, %602 : vector<16x32xf32>
    %cst_192 = arith.constant dense<0.000000e+00> : vector<16xf32>
    %604 = vector.multi_reduction <add>, %603, %cst_192 [1] : vector<16x32xf32> to vector<16xf32>
    %605 = vector.shape_cast %604 : vector<16xf32> to vector<16x1xf32>
    %cst_193 = arith.constant 3.200000e+01 : f32
    %606 = vector.broadcast %cst_193 : f32 to vector<16x1xf32>
    %607 = arith.divf %605, %606 : vector<16x1xf32>
    %608 = vector.broadcast %600 : vector<16x1xf32> to vector<16x32xf32>
    %609 = arith.subf %596, %608 : vector<16x32xf32>
    %cst_194 = arith.constant 9.99999974E-6 : f32
    %610 = vector.broadcast %cst_194 : f32 to vector<16x1xf32>
    %611 = arith.addf %607, %610 : vector<16x1xf32>
    %612 = math.rsqrt %611 : vector<16x1xf32>
    %613 = vector.broadcast %612 : vector<16x1xf32> to vector<16x32xf32>
    %614 = arith.mulf %609, %613 : vector<16x32xf32>
    %615 = vector.extract_strided_slice %483 {offsets = [0, 0], sizes = [1, 32], strides = [1, 1]} : vector<2x32xf32> to vector<1x32xf32>
    %616 = vector.broadcast %615 : vector<1x32xf32> to vector<16x32xf32>
    %617 = arith.mulf %614, %616 : vector<16x32xf32>
    %618 = vector.extract_strided_slice %483 {offsets = [1, 0], sizes = [1, 32], strides = [1, 1]} : vector<2x32xf32> to vector<1x32xf32>
    %619 = vector.broadcast %618 : vector<1x32xf32> to vector<16x32xf32>
    %620 = arith.addf %617, %619 : vector<16x32xf32>
    %c38 = arith.constant 38 : index
    %c0_195 = arith.constant 0 : index
    %621 = vector.load %arg24[%c38, %c0_195] : memref<39x128xf32, #tpu.memory_space<vmem>>, vector<1x2xf32>
    %c0_196 = arith.constant 0 : index
    %c0_197 = arith.constant 0 : index
    %c0_198 = arith.constant 0 : index
    %622 = vector.load %arg23[%c0_196, %c0_197, %c0_198] : memref<2x32x128xbf16, #tpu.memory_space<vmem>>, vector<1x32x128xbf16>
    %623 = vector.shape_cast %622 : vector<1x32x128xbf16> to vector<32x128xbf16>
    %c34 = arith.constant 34 : index
    %c0_199 = arith.constant 0 : index
    %624 = vector.load %arg24[%c34, %c0_199] : memref<39x128xf32, #tpu.memory_space<vmem>>, vector<1x128xf32>
    %c35 = arith.constant 35 : index
    %c0_200 = arith.constant 0 : index
    %625 = vector.load %arg24[%c35, %c0_200] : memref<39x128xf32, #tpu.memory_space<vmem>>, vector<1x128xf32>
    %626 = vector.extract_strided_slice %621 {offsets = [0, 0], sizes = [1, 1], strides = [1, 1]} : vector<1x2xf32> to vector<1x1xf32>
    %627 = vector.shape_cast %465 : vector<16x32xf32> to vector<2x8x32xf32>
    %cst_201 = arith.constant dense<0.000000e+00> : vector<2x32xf32>
    %628 = vector.multi_reduction <add>, %627, %cst_201 [1] : vector<2x8x32xf32> to vector<2x32xf32>
    %cst_202 = arith.constant 8.000000e+00 : f32
    %629 = vector.broadcast %cst_202 : f32 to vector<2x32xf32>
    %630 = arith.divf %628, %629 : vector<2x32xf32>
    %631 = arith.truncf %630 : vector<2x32xf32> to vector<2x32xbf16>
    %cst_203 = arith.constant dense<0.000000e+00> : vector<2x128xf32>
    %632 = tpu.matmul %631, %623, %cst_203 {dimension_numbers = #tpu.dot_dimension_numbers<[1], [0], [0], [1], [0, 0, 1, 1], [], []>} : vector<2x32xbf16>, vector<32x128xbf16>, vector<2x128xf32> -> vector<2x128xf32>
    %633 = vector.broadcast %624 : vector<1x128xf32> to vector<2x128xf32>
    %634 = arith.addf %632, %633 : vector<2x128xf32>
    %cst_204 = arith.constant 5.000000e-01 : f32
    %635 = vector.broadcast %cst_204 : f32 to vector<2x128xf32>
    %636 = arith.mulf %635, %634 : vector<2x128xf32>
    %cst_205 = arith.constant 4.471500e-02 : f32
    %637 = vector.broadcast %cst_205 : f32 to vector<2x128xf32>
    %638 = arith.mulf %637, %634 : vector<2x128xf32>
    %639 = arith.mulf %638, %634 : vector<2x128xf32>
    %640 = arith.mulf %639, %634 : vector<2x128xf32>
    %641 = arith.addf %634, %640 : vector<2x128xf32>
    %cst_206 = arith.constant 0.797884583 : f32
    %642 = vector.broadcast %cst_206 : f32 to vector<2x128xf32>
    %643 = arith.mulf %642, %641 : vector<2x128xf32>
    %644 = math.tanh %643 : vector<2x128xf32>
    %cst_207 = arith.constant 1.000000e+00 : f32
    %645 = vector.broadcast %cst_207 : f32 to vector<2x128xf32>
    %646 = arith.addf %645, %644 : vector<2x128xf32>
    %647 = arith.mulf %636, %646 : vector<2x128xf32>
    %648 = vector.broadcast %625 : vector<1x128xf32> to vector<2x128xf32>
    %649 = arith.mulf %647, %648 : vector<2x128xf32>
    %cst_208 = arith.constant dense<0.000000e+00> : vector<2xf32>
    %650 = vector.multi_reduction <add>, %649, %cst_208 [1] : vector<2x128xf32> to vector<2xf32>
    %651 = vector.shape_cast %650 : vector<2xf32> to vector<2x1xf32>
    %652 = vector.broadcast %626 : vector<1x1xf32> to vector<2x1xf32>
    %653 = arith.addf %651, %652 : vector<2x1xf32>
    %654 = math.tanh %653 : vector<2x1xf32>
    %cst_209 = arith.constant 5.000000e-01 : f32
    %655 = vector.broadcast %cst_209 : f32 to vector<2x1xf32>
    %656 = arith.mulf %655, %654 : vector<2x1xf32>
    %cst_210 = arith.constant 4.471500e-02 : f32
    %657 = vector.broadcast %cst_210 : f32 to vector<2x1xf32>
    %658 = arith.mulf %657, %654 : vector<2x1xf32>
    %659 = arith.mulf %658, %654 : vector<2x1xf32>
    %660 = arith.mulf %659, %654 : vector<2x1xf32>
    %661 = arith.addf %654, %660 : vector<2x1xf32>
    %cst_211 = arith.constant 0.797884583 : f32
    %662 = vector.broadcast %cst_211 : f32 to vector<2x1xf32>
    %663 = arith.mulf %662, %661 : vector<2x1xf32>
    %664 = math.tanh %663 : vector<2x1xf32>
    %cst_212 = arith.constant 1.000000e+00 : f32
    %665 = vector.broadcast %cst_212 : f32 to vector<2x1xf32>
    %666 = arith.addf %665, %664 : vector<2x1xf32>
    %667 = arith.mulf %656, %666 : vector<2x1xf32>
    %c1_213 = arith.constant 1 : index
    %c0_214 = arith.constant 0 : index
    %c0_215 = arith.constant 0 : index
    %668 = vector.load %arg23[%c1_213, %c0_214, %c0_215] : memref<2x32x128xbf16, #tpu.memory_space<vmem>>, vector<1x32x128xbf16>
    %669 = vector.shape_cast %668 : vector<1x32x128xbf16> to vector<32x128xbf16>
    %c36 = arith.constant 36 : index
    %c0_216 = arith.constant 0 : index
    %670 = vector.load %arg24[%c36, %c0_216] : memref<39x128xf32, #tpu.memory_space<vmem>>, vector<1x128xf32>
    %c37 = arith.constant 37 : index
    %c0_217 = arith.constant 0 : index
    %671 = vector.load %arg24[%c37, %c0_217] : memref<39x128xf32, #tpu.memory_space<vmem>>, vector<1x128xf32>
    %672 = vector.extract_strided_slice %621 {offsets = [0, 1], sizes = [1, 1], strides = [1, 1]} : vector<1x2xf32> to vector<1x1xf32>
    %673 = vector.shape_cast %620 : vector<16x32xf32> to vector<2x8x32xf32>
    %cst_218 = arith.constant dense<0.000000e+00> : vector<2x32xf32>
    %674 = vector.multi_reduction <add>, %673, %cst_218 [1] : vector<2x8x32xf32> to vector<2x32xf32>
    %cst_219 = arith.constant 8.000000e+00 : f32
    %675 = vector.broadcast %cst_219 : f32 to vector<2x32xf32>
    %676 = arith.divf %674, %675 : vector<2x32xf32>
    %677 = arith.truncf %676 : vector<2x32xf32> to vector<2x32xbf16>
    %cst_220 = arith.constant dense<0.000000e+00> : vector<2x128xf32>
    %678 = tpu.matmul %677, %669, %cst_220 {dimension_numbers = #tpu.dot_dimension_numbers<[1], [0], [0], [1], [0, 0, 1, 1], [], []>} : vector<2x32xbf16>, vector<32x128xbf16>, vector<2x128xf32> -> vector<2x128xf32>
    %679 = vector.broadcast %670 : vector<1x128xf32> to vector<2x128xf32>
    %680 = arith.addf %678, %679 : vector<2x128xf32>
    %cst_221 = arith.constant 5.000000e-01 : f32
    %681 = vector.broadcast %cst_221 : f32 to vector<2x128xf32>
    %682 = arith.mulf %681, %680 : vector<2x128xf32>
    %cst_222 = arith.constant 4.471500e-02 : f32
    %683 = vector.broadcast %cst_222 : f32 to vector<2x128xf32>
    %684 = arith.mulf %683, %680 : vector<2x128xf32>
    %685 = arith.mulf %684, %680 : vector<2x128xf32>
    %686 = arith.mulf %685, %680 : vector<2x128xf32>
    %687 = arith.addf %680, %686 : vector<2x128xf32>
    %cst_223 = arith.constant 0.797884583 : f32
    %688 = vector.broadcast %cst_223 : f32 to vector<2x128xf32>
    %689 = arith.mulf %688, %687 : vector<2x128xf32>
    %690 = math.tanh %689 : vector<2x128xf32>
    %cst_224 = arith.constant 1.000000e+00 : f32
    %691 = vector.broadcast %cst_224 : f32 to vector<2x128xf32>
    %692 = arith.addf %691, %690 : vector<2x128xf32>
    %693 = arith.mulf %682, %692 : vector<2x128xf32>
    %694 = vector.broadcast %671 : vector<1x128xf32> to vector<2x128xf32>
    %695 = arith.mulf %693, %694 : vector<2x128xf32>
    %cst_225 = arith.constant dense<0.000000e+00> : vector<2xf32>
    %696 = vector.multi_reduction <add>, %695, %cst_225 [1] : vector<2x128xf32> to vector<2xf32>
    %697 = vector.shape_cast %696 : vector<2xf32> to vector<2x1xf32>
    %698 = vector.broadcast %672 : vector<1x1xf32> to vector<2x1xf32>
    %699 = arith.addf %697, %698 : vector<2x1xf32>
    %700 = math.tanh %699 : vector<2x1xf32>
    %cst_226 = arith.constant 5.000000e-01 : f32
    %701 = vector.broadcast %cst_226 : f32 to vector<2x1xf32>
    %702 = arith.mulf %701, %700 : vector<2x1xf32>
    %cst_227 = arith.constant 4.471500e-02 : f32
    %703 = vector.broadcast %cst_227 : f32 to vector<2x1xf32>
    %704 = arith.mulf %703, %700 : vector<2x1xf32>
    %705 = arith.mulf %704, %700 : vector<2x1xf32>
    %706 = arith.mulf %705, %700 : vector<2x1xf32>
    %707 = arith.addf %700, %706 : vector<2x1xf32>
    %cst_228 = arith.constant 0.797884583 : f32
    %708 = vector.broadcast %cst_228 : f32 to vector<2x1xf32>
    %709 = arith.mulf %708, %707 : vector<2x1xf32>
    %710 = math.tanh %709 : vector<2x1xf32>
    %cst_229 = arith.constant 1.000000e+00 : f32
    %711 = vector.broadcast %cst_229 : f32 to vector<2x1xf32>
    %712 = arith.addf %711, %710 : vector<2x1xf32>
    %713 = arith.mulf %702, %712 : vector<2x1xf32>
    %714 = vector.shape_cast %465 : vector<16x32xf32> to vector<2x8x32xf32>
    %715 = vector.shape_cast %620 : vector<16x32xf32> to vector<2x8x32xf32>
    %716 = vector.shape_cast %667 : vector<2x1xf32> to vector<2x1x1xf32>
    %717 = vector.broadcast %716 : vector<2x1x1xf32> to vector<2x8x32xf32>
    %718 = arith.mulf %717, %714 : vector<2x8x32xf32>
    %719 = vector.shape_cast %713 : vector<2x1xf32> to vector<2x1x1xf32>
    %720 = vector.broadcast %719 : vector<2x1x1xf32> to vector<2x8x32xf32>
    %721 = arith.mulf %720, %715 : vector<2x8x32xf32>
    %722 = arith.addf %718, %721 : vector<2x8x32xf32>
    %cst_230 = arith.constant dense<0.000000e+00> : vector<2x8xf32>
    %723 = vector.multi_reduction <add>, %722, %cst_230 [2] : vector<2x8x32xf32> to vector<2x8xf32>
    %724 = vector.shape_cast %723 : vector<2x8xf32> to vector<2x8x1xf32>
    %cst_231 = arith.constant 3.200000e+01 : f32
    %725 = vector.broadcast %cst_231 : f32 to vector<2x8x1xf32>
    %726 = arith.divf %724, %725 : vector<2x8x1xf32>
    %727 = vector.broadcast %726 : vector<2x8x1xf32> to vector<2x8x32xf32>
    %728 = arith.subf %722, %727 : vector<2x8x32xf32>
    %729 = arith.mulf %728, %728 : vector<2x8x32xf32>
    %cst_232 = arith.constant dense<0.000000e+00> : vector<2x8xf32>
    %730 = vector.multi_reduction <add>, %729, %cst_232 [2] : vector<2x8x32xf32> to vector<2x8xf32>
    %731 = vector.shape_cast %730 : vector<2x8xf32> to vector<2x8x1xf32>
    %cst_233 = arith.constant 3.200000e+01 : f32
    %732 = vector.broadcast %cst_233 : f32 to vector<2x8x1xf32>
    %733 = arith.divf %731, %732 : vector<2x8x1xf32>
    %734 = vector.broadcast %726 : vector<2x8x1xf32> to vector<2x8x32xf32>
    %735 = arith.subf %722, %734 : vector<2x8x32xf32>
    %cst_234 = arith.constant 9.99999974E-6 : f32
    %736 = vector.broadcast %cst_234 : f32 to vector<2x8x1xf32>
    %737 = arith.addf %733, %736 : vector<2x8x1xf32>
    %738 = math.rsqrt %737 : vector<2x8x1xf32>
    %739 = vector.broadcast %738 : vector<2x8x1xf32> to vector<2x8x32xf32>
    %740 = arith.mulf %735, %739 : vector<2x8x32xf32>
    %741 = vector.shape_cast %740 : vector<2x8x32xf32> to vector<2x256xf32>
    %c0_235 = arith.constant 0 : index
    %c0_236 = arith.constant 0 : index
    %742 = vector.load %arg25[%c0_235, %c0_236] : memref<2x256xf32, #tpu.memory_space<vmem>>, vector<2x256xf32>
    tpu.vector_store %arg25[%c0_235, %c0_236], %741 {strides = array<i32>} : memref<2x256xf32, #tpu.memory_space<vmem>>, vector<2x256xf32>,
    return
  }
  func.func @transform_0(%arg0: i32) -> (i32, i32, i32) {
    %c0_i32 = arith.constant 0 : i32
    %c0_i32_0 = arith.constant 0 : i32
    %c0_i32_1 = arith.constant 0 : i32
    return %arg0, %c0_i32, %c0_i32_0 : i32, i32, i32
  }
  func.func @transform_1(%arg0: i32) -> (i32, i32, i32) {
    %c0_i32 = arith.constant 0 : i32
    %c0_i32_0 = arith.constant 0 : i32
    %c0_i32_1 = arith.constant 0 : i32
    return %arg0, %c0_i32, %c0_i32_0 : i32, i32, i32
  }
  func.func @transform_2(%arg0: i32) -> (i32, i32, i32) {
    %c0_i32 = arith.constant 0 : i32
    %c0_i32_0 = arith.constant 0 : i32
    %c0_i32_1 = arith.constant 0 : i32
    return %arg0, %c0_i32, %c0_i32_0 : i32, i32, i32
  }
  func.func @transform_3(%arg0: i32) -> (i32, i32, i32) {
    %c0_i32 = arith.constant 0 : i32
    %c0_i32_0 = arith.constant 0 : i32
    %c0_i32_1 = arith.constant 0 : i32
    return %arg0, %c0_i32, %c0_i32_0 : i32, i32, i32
  }
  func.func @transform_4(%arg0: i32) -> (i32, i32, i32) {
    %c0_i32 = arith.constant 0 : i32
    %c0_i32_0 = arith.constant 0 : i32
    %c0_i32_1 = arith.constant 0 : i32
    return %arg0, %c0_i32, %c0_i32_0 : i32, i32, i32
  }
  func.func @transform_5(%arg0: i32) -> (i32, i32, i32) {
    %c0_i32 = arith.constant 0 : i32
    %c0_i32_0 = arith.constant 0 : i32
    %c0_i32_1 = arith.constant 0 : i32
    return %arg0, %c0_i32, %c0_i32_0 : i32, i32, i32
  }
  func.func @transform_6(%arg0: i32) -> (i32, i32) {
    %c0_i32 = arith.constant 0 : i32
    %c0_i32_0 = arith.constant 0 : i32
    %c0_i32_1 = arith.constant 0 : i32
    return %c0_i32, %c0_i32_0 : i32, i32
  }
  func.func @transform_7(%arg0: i32) -> (i32, i32) {
    %c0_i32 = arith.constant 0 : i32
    %c0_i32_0 = arith.constant 0 : i32
    %c0_i32_1 = arith.constant 0 : i32
    return %c0_i32, %c0_i32_0 : i32, i32
  }
  func.func @transform_8(%arg0: i32) -> (i32, i32, i32) {
    %c0_i32 = arith.constant 0 : i32
    %c0_i32_0 = arith.constant 0 : i32
    %c0_i32_1 = arith.constant 0 : i32
    %c0_i32_2 = arith.constant 0 : i32
    return %c0_i32, %c0_i32_0, %c0_i32_1 : i32, i32, i32
  }
  func.func @transform_9(%arg0: i32) -> (i32, i32) {
    %c0_i32 = arith.constant 0 : i32
    %c0_i32_0 = arith.constant 0 : i32
    %c0_i32_1 = arith.constant 0 : i32
    return %c0_i32, %c0_i32_0 : i32, i32
  }
  func.func @transform_10(%arg0: i32) -> (i32, i32) {
    %c0_i32 = arith.constant 0 : i32
    %c0_i32_0 = arith.constant 0 : i32
    %c0_i32_1 = arith.constant 0 : i32
    return %c0_i32, %c0_i32_0 : i32, i32
  }
  func.func @transform_11(%arg0: i32) -> (i32, i32) {
    %c0_i32 = arith.constant 0 : i32
    %c0_i32_0 = arith.constant 0 : i32
    %c0_i32_1 = arith.constant 0 : i32
    return %c0_i32, %c0_i32_0 : i32, i32
  }
  func.func @transform_12(%arg0: i32) -> (i32, i32) {
    %c0_i32 = arith.constant 0 : i32
    %c0_i32_0 = arith.constant 0 : i32
    %c0_i32_1 = arith.constant 0 : i32
    return %c0_i32, %c0_i32_0 : i32, i32
  }
  func.func @transform_13(%arg0: i32) -> (i32, i32, i32) {
    %c0_i32 = arith.constant 0 : i32
    %c0_i32_0 = arith.constant 0 : i32
    %c0_i32_1 = arith.constant 0 : i32
    %c0_i32_2 = arith.constant 0 : i32
    return %c0_i32, %c0_i32_0, %c0_i32_1 : i32, i32, i32
  }
  func.func @transform_14(%arg0: i32) -> (i32, i32) {
    %c0_i32 = arith.constant 0 : i32
    %c0_i32_0 = arith.constant 0 : i32
    %c0_i32_1 = arith.constant 0 : i32
    return %c0_i32, %c0_i32_0 : i32, i32
  }
  func.func @transform_15(%arg0: i32) -> (i32, i32) {
    %c0_i32 = arith.constant 0 : i32
    %c0_i32_0 = arith.constant 0 : i32
    %c0_i32_1 = arith.constant 0 : i32
    return %c0_i32, %c0_i32_0 : i32, i32
  }
  func.func @transform_16(%arg0: i32) -> (i32, i32, i32) {
    %c0_i32 = arith.constant 0 : i32
    %c0_i32_0 = arith.constant 0 : i32
    %c0_i32_1 = arith.constant 0 : i32
    %c0_i32_2 = arith.constant 0 : i32
    return %c0_i32, %c0_i32_0, %c0_i32_1 : i32, i32, i32
  }
  func.func @transform_17(%arg0: i32) -> (i32, i32, i32, i32) {
    %c0_i32 = arith.constant 0 : i32
    %c0_i32_0 = arith.constant 0 : i32
    %c0_i32_1 = arith.constant 0 : i32
    %c0_i32_2 = arith.constant 0 : i32
    %c0_i32_3 = arith.constant 0 : i32
    return %c0_i32, %c0_i32_0, %c0_i32_1, %c0_i32_2 : i32, i32, i32, i32
  }
  func.func @transform_18(%arg0: i32) -> (i32, i32, i32) {
    %c0_i32 = arith.constant 0 : i32
    %c0_i32_0 = arith.constant 0 : i32
    %c0_i32_1 = arith.constant 0 : i32
    %c0_i32_2 = arith.constant 0 : i32
    return %c0_i32, %c0_i32_0, %c0_i32_1 : i32, i32, i32
  }
  func.func @transform_19(%arg0: i32) -> (i32, i32, i32) {
    %c0_i32 = arith.constant 0 : i32
    %c0_i32_0 = arith.constant 0 : i32
    %c0_i32_1 = arith.constant 0 : i32
    %c0_i32_2 = arith.constant 0 : i32
    return %c0_i32, %c0_i32_0, %c0_i32_1 : i32, i32, i32
  }
  func.func @transform_20(%arg0: i32) -> (i32, i32, i32, i32) {
    %c0_i32 = arith.constant 0 : i32
    %c0_i32_0 = arith.constant 0 : i32
    %c0_i32_1 = arith.constant 0 : i32
    %c0_i32_2 = arith.constant 0 : i32
    %c0_i32_3 = arith.constant 0 : i32
    return %c0_i32, %c0_i32_0, %c0_i32_1, %c0_i32_2 : i32, i32, i32, i32
  }
  func.func @transform_21(%arg0: i32) -> (i32, i32, i32) {
    %c0_i32 = arith.constant 0 : i32
    %c0_i32_0 = arith.constant 0 : i32
    %c0_i32_1 = arith.constant 0 : i32
    %c0_i32_2 = arith.constant 0 : i32
    return %c0_i32, %c0_i32_0, %c0_i32_1 : i32, i32, i32
  }
  func.func @transform_22(%arg0: i32) -> (i32, i32, i32) {
    %c0_i32 = arith.constant 0 : i32
    %c0_i32_0 = arith.constant 0 : i32
    %c0_i32_1 = arith.constant 0 : i32
    %c0_i32_2 = arith.constant 0 : i32
    return %c0_i32, %c0_i32_0, %c0_i32_1 : i32, i32, i32
  }
  func.func @transform_23(%arg0: i32) -> (i32, i32) {
    %c0_i32 = arith.constant 0 : i32
    %c0_i32_0 = arith.constant 0 : i32
    %c0_i32_1 = arith.constant 0 : i32
    return %c0_i32, %c0_i32_0 : i32, i32
  }
  func.func @transform_24(%arg0: i32) -> (i32, i32) {
    %c0_i32 = arith.constant 0 : i32
    %c0_i32_0 = arith.constant 0 : i32
    return %arg0, %c0_i32 : i32, i32
  }
}

</mosaic_0001>

<bundles_post_ra>
// kernel: text_present_guided_compressor.1
= control target key start
LH: loop header
LB: loop body
LE: loop exit
PB: predicated region body
PF: predicated region fallthrough
CT: control target
= control target key end

     0   :  { %vm152_vm0 = vcmask 261120   ;;  %vm260_vm1 = vcmask 130048   ;;  %vm464_vm2 = vcmask 64512   ;;  %vm669_vm3 = vcmask 1043456   ;;  %s7273_s6 = inlined_call_operand.vmem [shape: bf16[32,64], index: 6, kind: input, shape index: {}]   ;;  %s7274_s7 = inlined_call_operand.vmem [shape: bf16[32,128], index: 7, kind: input, shape index: {}]   ;;  %s7275_s2 = inlined_call_operand.vmem [shape: f32[2,16,32], index: 2, kind: input, shape index: {}]   ;;  %s7276_s0 = inlined_call_operand.vmem [shape: f32[2,8,32], index: 0, kind: input, shape index: {}]   ;;  %s7277_s23 = inlined_call_operand.vmem [shape: f32[39,128], index: 23, kind: input, shape index: {}]   ;;  %s7278_s3 = inlined_call_operand.vmem [shape: f32[2,1,8], index: 3, kind: input, shape index: {}]   ;;  %s7279_s8 = inlined_call_operand.vmem [shape: bf16[4,16,32], index: 8, kind: input, shape index: {}]   ;;  %s7280_s12 = inlined_call_operand.vmem [shape: bf16[32,128], index: 12, kind: input, shape index: {}]   ;;  %s7281_s11 = inlined_call_operand.vmem [shape: bf16[32,64], index: 11, kind: input, shape index: {}]   ;;  %s7282_s1 = inlined_call_operand.vmem [shape: f32[2,8,32], index: 1, kind: input, shape index: {}]   ;;  %s7283_s9 = inlined_call_operand.vmem [shape: bf16[32,128], index: 9, kind: input, shape index: {}]   ;;  %s7284_s10 = inlined_call_operand.vmem [shape: bf16[128,32], index: 10, kind: input, shape index: {}]   ;;  %s7285_s13 = inlined_call_operand.vmem [shape: bf16[4,16,32], index: 13, kind: input, shape index: {}]   ;;  %s7286_s5 = inlined_call_operand.vmem [shape: f32[2,16,1], index: 5, kind: input, shape index: {}]   ;;  %s7287_s16 = inlined_call_operand.vmem [shape: bf16[2,32,64], index: 16, kind: input, shape index: {}]   ;;  %s7288_s14 = inlined_call_operand.vmem [shape: bf16[32,128], index: 14, kind: input, shape index: {}]   ;;  %s7289_s20 = inlined_call_operand.vmem [shape: f32[2,4,8,8], index: 20, kind: input, shape index: {}]   ;;  %s7290_s15 = inlined_call_operand.vmem [shape: bf16[128,32], index: 15, kind: input, shape index: {}]   ;;  %s7291_s4 = inlined_call_operand.vmem [shape: f32[2,1,16], index: 4, kind: input, shape index: {}]   ;;  %s7292_s17 = inlined_call_operand.vmem [shape: bf16[2,4,8,32], index: 17, kind: input, shape index: {}]   ;;  %s7293_s21 = inlined_call_operand.vmem [shape: f32[2,8,32], index: 21, kind: input, shape index: {}]   ;;  %s7294_s18 = inlined_call_operand.vmem [shape: bf16[2,32,128], index: 18, kind: input, shape index: {}]   ;;  %s7295_s19 = inlined_call_operand.vmem [shape: bf16[2,128,32], index: 19, kind: input, shape index: {}]   ;;  %s7296_s22 = inlined_call_operand.vmem [shape: bf16[2,32,128], index: 22, kind: input, shape index: {}]   ;;  %s7297_s24 = inlined_call_operand.vmem [shape: f32[2,256], index: 24, kind: output, shape index: {}]  }
   0x1   :  { %7312 = sst [smem:[#allocation2_spill]] %s7273_s6 }
   0x2   :  { %7313 = sst [smem:[#allocation3_spill]] %s7274_s7  ;;  %s5407_s7 = smov 96  }
   0x3   :  { %7314 = sst [smem:[#allocation4_spill]] %s7275_s2 }
   0x4   :  { %7315 = sst [smem:[#allocation5_spill]] %s7276_s0 }
   0x5   :  { %7316 = sst [smem:[#allocation6_spill]] %s7277_s23  ;;  %s5406_s23 = smov 112  }
   0x6   :  { %7317 = sst [smem:[#allocation7_spill]] %s7278_s3  ;;  %s7310_s3 = smov 80  }
   0x7   :  { %7318 = sst [smem:[#allocation8_spill]] %s7279_s8 }
   0x8   :  { %7319 = sst [smem:[#allocation9_spill]] %s7280_s12 }
   0x9   :  { %7320 = sst [smem:[#allocation10_spill]] %s7281_s11 }
   0xa   :  { %7321 = sst [smem:[#allocation11_spill]] %s7292_s17 }
   0xb   :  { %s7322_s27 = sld [smem:[#allocation2_spill]] }
   0xc   :  { %s7323_s17 = sld [smem:[#allocation3_spill]] }
   0xd   :  { %s7324_s25 = sld [smem:[#allocation4_spill]] }
   0xe   :  { %s7325_s26 = sld [smem:[#allocation5_spill]] }
   0xf   :  { %s7326_s30 = sld [smem:[#allocation6_spill]] }
  0x10   :  { %s7328_s12 = sld [smem:[#allocation8_spill]] }
  0x11   :  { %v5028_v0 = vld [vmem:[%s7322_s27 + $0x8] sm:$0xff]  ;;  %v5027_v2 = vld [vmem:[%s7322_s27] sm:$0xff]  ;;  %s7329_s28 = sld [smem:[#allocation9_spill]]  ;;  %s5412_s27 = smov 104  }
  0x12   :  { %v5030_v1 = vld [vmem:[%s7323_s17 + $0x8] sm:$0xff]  ;;  %v5029_v3 = vld [vmem:[%s7323_s17] sm:$0xff]  ;;  %165 = vmatpush.bf16.msra.mxu0 %v5028_v0  ;;  %s7327_s17 = sld [smem:[#allocation7_spill]] }
  0x13   :  { %v82_v4 = vld [vmem:[%s7324_s25] sm:$0xff]  ;;  %201 = vmatpush.bf16.msra.mxu1 %v5030_v1  ;;  %v83_v5 = vld [vmem:[%s7324_s25 + $0x8] sm:$0xff]  ;;  %v84_v10 = vld [vmem:[%s7324_s25 + $0x10] sm:$0xff]  ;;  %s7330_s8 = sld [smem:[#allocation10_spill]] }
  0x14   :  { %v78_v6 = vld [vmem:[%s7325_s26] sm:$0xff]  ;;  %v79_v7 = vld [vmem:[%s7325_s26 + $0x8] sm:$0xff]  ;;  %v5568_v8 = vpack.c.bf16 %v83_v5, %v82_v4  ;;  %v85_v11 = vld [vmem:[%s7324_s25 + $0x18] sm:$0xff]  ;;  %s7308_s26 = smov 64  }
  0x15   :  { %v178_v9 = vpack.c.bf16 %v79_v7, %v78_v6  ;;  %v5579_v12 = vpack.c.bf16 %v85_v11, %v84_v10  ;;  %v5110_v13 = vld [vmem:[%s7326_s30 + $0x1] ss:$0 sm:$0xff]  ;;  %v5109_v16 = vld [vmem:[%s7326_s30] ss:$0 sm:$0xff] }
  0x16   :  { %166 = vmatpush.bf16.msra.mxu0 %v5027_v2 }
  0x17   :  { %202 = vmatpush.bf16.msra.mxu1 %v5029_v3 }
  0x18   :  { %v5635_v5 = vld [vmem:[%s7327_s17] ss:$0 sm:$0xff] }
  0x19   :  { %4636 = vmatmul.msk.bf16.vlgmr.msra.gmra.mxu0 %vm152_vm0, %v5568_v8 }
  0x1a   :  { %4646 = vmatmul.msk.bf16.vlgmr.msra.gmra.mxu1 %vm152_vm0, %v178_v9 }
  0x29   :  { %4637 = vmatmul.msk.bf16.gmra.mxu0 %vm152_vm0, %v5579_v12 }
  0x96   :  { %v168_v14 = vpop.f32.mrf.mxu0 }
  0x97   :  { %v204_v15 = vpop.f32.mrf.mxu1  ;;  %v169_v19 = vadd.f32 %v5109_v16, %v168_v14 }
  0x98   :  { %v205_v17 = vadd.f32 %v5110_v13, %v204_v15 }
  0x99   :  { %v209_v23 = vpack.c.bf16 %v169_v19, %v169_v19 }
  0x9a   :  { %v241_v18 = vpack.c.bf16 %v205_v17, %v205_v17 }
  0x9b   :  { %v257_v29 = vunpack.c.l.b16 %v209_v23 }
  0x9c   :  { %245 = vrot.lane.b32.xlu0 %v241_v18, %s5406_s23  ;;  %v265_v20 = vsel %vm260_vm1, %v241_v18, 0  ;;  %v662_v41 = vunpack.c.l.b16 %v241_v18 }
  0x9d   :  { %274 = vmatpush.bf16.xpose.msra.mxu2 %v265_v20 }
  0x9e   :  { %v170_v21 = vpop.f32.mrf.mxu0  ;;  %v663_v42 = vpack.c.b16 %v662_v41, %v662_v41 }
  0x9f   :  { %v206_v22 = vpop.f32.mrf.mxu1  ;;  %v171_v24 = vadd.f32 %v5109_v16, %v170_v21 }
  0xa0   :  { %v207_v25 = vadd.f32 %v5110_v13, %v206_v22 }
  0xa1   :  { %v210_v26 = vpack.c.bf16 %v171_v24, %v171_v24 }
  0xa2   :  { %v5591_v27 = vpack.c.bf16 %v207_v25, %v207_v25 }
  0xa3   :  { %227 = vrot.lane.b32.xlu2 %v210_v26, %s5407_s7  ;;  %219 = vrot.lane.b32.xlu1 %v210_v26, %s5406_s23  ;;  %v258_v30 = vunpack.c.l.b16 %v210_v26 }
  0xa4   :  { %v288_v28 = vsel %vm260_vm1, %v5591_v27, 0  ;;  %217 = vrot.lane.b32.xlu0 %v209_v23, %s5406_s23 }
  0xa5   :  { %297 = vmatpush.bf16.xpose.msra.mxu3 %v288_v28  ;;  %v259_v31 = vpack.c.b16 %v258_v30, %v257_v29  ;;  %v5658_v28 = vld [vmem:[%s7327_s17 + $0x1] ss:$0 sm:$0xff]  ;;  %s5413_s17 = smov 120  }
  0xa6   :  { %v173_v32 = vpop.f32.mrf.mxu0 }
  0xa7   :  { %v174_v33 = vadd.f32 %v5109_v16, %v173_v32  ;;  %4647 = vmatmul.msk.bf16.vlgmr.msra.gmra.mxu2 %vm260_vm1, %v259_v31 }
  0xa9   :  { %v211_v34 = vpack.c.bf16 %v174_v33, %v174_v33 }
  0xab   :  { %221 = vrot.lane.b32.xlu2 %v211_v34, %s5406_s23  ;;  %247 = vrot.lane.b32.xlu1 %v5591_v27, %s5406_s23  ;;  %v281_v38 = vunpack.c.l.b16 %v211_v34 }
  0xac   :  { %249 = vrot.lane.b32.xlu0 %v241_v18, %s5407_s7 }
  0xae   :  { %v175_v35 = vpop.f32.mrf.mxu0 }
  0xaf   :  { %v176_v36 = vadd.f32 %v5109_v16, %v175_v35 }
  0xb1   :  { %v212_v37 = vpack.c.bf16 %v176_v36, %v176_v36 }
  0xb3   :  { %223 = vrot.lane.b32.xlu2 %v212_v37, %s5406_s23  ;;  %225 = vrot.lane.b32.xlu1 %v209_v23, %s5407_s7  ;;  %v282_v39 = vunpack.c.l.b16 %v212_v37 }
  0xb4   :  { %253 = vrot.lane.b32.xlu0 %v241_v18, %s7310_s3 }
  0xb5   :  { %v283_v40 = vpack.c.b16 %v282_v39, %v281_v38 }
  0xb7   :  { %4648 = vmatmul.msk.bf16.vlgmr.msra.gmra.mxu3 %vm260_vm1, %v283_v40 }
  0xbb   :  { %235 = vrot.lane.b32.xlu2 %v210_v26, %s7310_s3  ;;  %233 = vrot.lane.b32.xlu1 %v209_v23, %s7310_s3 }
  0xbc   :  { %255 = vrot.lane.b32.xlu0 %v5591_v27, %s7310_s3 }
  0xc3   :  { %237 = vrot.lane.b32.xlu1 %v211_v34, %s7310_s3  ;;  %239 = vrot.lane.b32.xlu2 %v212_v37, %s7310_s3 }
  0xc4   :  { %251 = vrot.lane.b32.xlu0 %v5591_v27, %s5407_s7 }
  0xcb   :  { %229 = vrot.lane.b32.xlu1 %v211_v34, %s5407_s7  ;;  %231 = vrot.lane.b32.xlu2 %v212_v37, %s5407_s7 }
  0xcc   :  { %664 = vrot.lane.b32.xlu0 %v663_v42, %s7308_s26 }
  0xfd   :  { %v228_v43 = vpop.permute.xlu2 %227 }
  0xfe   :  { %v351_v1 = vunpack.c.l.b16 %v228_v43 }
 0x105   :  { %v222_v48 = vpop.permute.xlu2 %221 }
 0x106   :  { %v327_v56 = vunpack.c.l.b16 %v222_v48 }
 0x10d   :  { %v224_v54 = vpop.permute.xlu2 %223 }
 0x10e   :  { %v246_v44 = vpop.permute.xlu0 %245  ;;  %v328_v57 = vunpack.c.l.b16 %v224_v54 }
 0x10f   :  { %v721_v45 = vunpack.c.l.b16 %v246_v44  ;;  %v311_v46 = vsel %vm260_vm1, %v246_v44, 0 }
 0x110   :  { %320 = vmatpush.bf16.xpose.msrb.mxu1 %v311_v46  ;;  %v329_v63 = vpack.c.b16 %v328_v57, %v327_v56 }
 0x111   :  { %v722_v47 = vpack.c.b16 %v721_v45, %v721_v45 }
 0x113   :  { %723 = vrot.lane.b32.xlu1 %v722_v47, %s7308_s26 }
 0x115   :  { %v220_v49 = vpop.permute.xlu1 %219  ;;  %v236_v7 = vpop.permute.xlu2 %235 }
 0x116   :  { %v305_v50 = vunpack.c.l.b16 %v220_v49  ;;  %v218_v51 = vpop.permute.xlu0 %217  ;;  %v397_v14 = vunpack.c.l.b16 %v236_v7 }
 0x117   :  { %v304_v52 = vunpack.c.l.b16 %v218_v51 }
 0x119   :  { %v306_v53 = vpack.c.b16 %v305_v50, %v304_v52 }
 0x11b   :  { %4649 = vmatmul.msk.bf16.vlgmr.msrb.gmra.mxu1 %vm260_vm1, %v306_v53 }
 0x11d   :  { %v248_v55 = vpop.permute.xlu1 %247  ;;  %v240_v19 = vpop.permute.xlu2 %239 }
 0x11e   :  { %v750_v58 = vunpack.c.l.b16 %v248_v55  ;;  %v5621_v59 = vpop.permute.xlu0 %249  ;;  %v334_v60 = vsel %vm260_vm1, %v248_v55, 0  ;;  %v420_v22 = vunpack.c.l.b16 %v240_v19 }
 0x11f   :  { %343 = vmatpush.bf16.xpose.msrb.mxu2 %v334_v60  ;;  %v357_v61 = vsel %vm260_vm1, %v5621_v59, 0 }
 0x120   :  { %366 = vmatpush.bf16.xpose.msrb.mxu3 %v357_v61  ;;  %v751_v62 = vpack.c.b16 %v750_v58, %v750_v58 }
 0x122   :  { %752 = vrot.lane.b32.xlu2 %v751_v62, %s7308_s26 }
 0x125   :  { %v226_v0 = vpop.permute.xlu1 %225  ;;  %v232_v31 = vpop.permute.xlu2 %231 }
 0x126   :  { %v350_v2 = vunpack.c.l.b16 %v226_v0  ;;  %v5627_v3 = vpop.permute.xlu0 %253  ;;  %4650 = vmatmul.msk.bf16.vlgmr.msrb.gmra.mxu2 %vm260_vm1, %v329_v63  ;;  %v374_v36 = vunpack.c.l.b16 %v232_v31 }
 0x127   :  { %v403_v4 = vsel %vm260_vm1, %v5627_v3, 0 }
 0x128   :  { %v352_v6 = vpack.c.b16 %v351_v1, %v350_v2  ;;  %412 = vmatpush.bf16.xpose.msra.mxu1 %v403_v4 }
 0x12a   :  { %v276_v9 = vpop.f32.mrf.mxu2  ;;  %4651 = vmatmul.msk.bf16.vlgmr.msrb.gmra.mxu3 %vm260_vm1, %v352_v6 }
 0x12b   :  { %v5639_v10 = vadd.f32 %v5635_v5, %v276_v9 }
 0x12d   :  { %v234_v11 = vpop.permute.xlu1 %233  ;;  %v465_v13 = vsel %vm464_vm2, %v5639_v10, -inf }
 0x12e   :  { %v396_v15 = vunpack.c.l.b16 %v234_v11  ;;  %v5643_v16 = vpop.permute.xlu0 %255  ;;  %466 = vmax.xlane.f32.xlu0 %v465_v13 }
 0x12f   :  { %v426_v17 = vsel %vm260_vm1, %v5643_v16, 0 }
 0x130   :  { %v398_v18 = vpack.c.b16 %v397_v14, %v396_v15  ;;  %435 = vmatpush.bf16.xpose.msra.mxu2 %v426_v17 }
 0x132   :  { %4653 = vmatmul.msk.bf16.vlgmr.msra.gmra.mxu1 %vm260_vm1, %v398_v18  ;;  %v278_v20 = vpop.f32.mrf.mxu2 }
 0x133   :  { %v5651_v25 = vadd.f32 %v5635_v5, %v278_v20 }
 0x135   :  { %v238_v21 = vpop.permute.xlu1 %237  ;;  %v468_v33 = vsel %vm464_vm2, %v5651_v25, -inf }
 0x136   :  { %v419_v23 = vunpack.c.l.b16 %v238_v21  ;;  %v5648_v24 = vpop.permute.xlu0 %251 }
 0x137   :  { %v380_v26 = vsel %vm260_vm1, %v5648_v24, 0 }
 0x138   :  { %v421_v29 = vpack.c.b16 %v420_v22, %v419_v23  ;;  %389 = vmatpush.bf16.xpose.msrb.mxu0 %v380_v26 }
 0x13a   :  { %v299_v30 = vpop.f32.mrf.mxu3  ;;  %4654 = vmatmul.msk.bf16.vlgmr.msra.gmra.mxu2 %vm260_vm1, %v421_v29 }
 0x13b   :  { %v5662_v32 = vadd.f32 %v5658_v28, %v299_v30 }
 0x13d   :  { %469 = vmax.xlane.f32.xlu1 %v468_v33  ;;  %v230_v34 = vpop.permute.xlu1 %229  ;;  %v471_v35 = vsel %vm464_vm2, %v5662_v32, -inf }
 0x13e   :  { %v373_v37 = vunpack.c.l.b16 %v230_v34  ;;  %v665_v38 = vpop.permute.xlu0 %664  ;;  %472 = vmax.xlane.f32.xlu0 %v471_v35 }
 0x13f   :  { %v671_v39 = vsel %vm669_vm3, %v665_v38, 0 }
 0x140   :  { %v375_v40 = vpack.c.b16 %v374_v36, %v373_v37  ;;  %680 = vmatpush.bf16.msra.mxu3 %v671_v39 }
 0x142   :  { %v301_v41 = vpop.f32.mrf.mxu3  ;;  %4652 = vmatmul.msk.bf16.vlgmr.msrb.gmra.mxu0 %vm260_vm1, %v375_v40 }
 0x143   :  { %v5671_v42 = vadd.f32 %v5658_v28, %v301_v41 }
 0x145   :  { %v474_v43 = vsel %vm464_vm2, %v5671_v42, -inf }
 0x146   :  { %475 = vmax.xlane.f32.xlu1 %v474_v43 }
 0x17c   :  { %v753_v44 = vpop.permute.xlu2 %752 }
 0x17d   :  { %v758_v45 = vsel %vm669_vm3, %v753_v44, 0 }
 0x17e   :  { %767 = vmatpush.bf16.msrb.mxu2 %v758_v45 }
 0x185   :  { %v724_v46 = vpop.permute.xlu1 %723 }
 0x186   :  { %v729_v47 = vsel %vm669_vm3, %v724_v46, 0 }
 0x187   :  { %738 = vmatpush.bf16.msrb.mxu1 %v729_v47 }
 0x198   :  { %v322_v48 = vpop.f32.mrf.mxu1 }
 0x199   :  { %v5678_v49 = vadd.f32 %v5635_v5, %v322_v48 }
 0x19b   :  { %v477_v50 = vsel %vm464_vm2, %v5678_v49, -inf }
 0x19c   :  { %478 = vmax.xlane.f32.xlu2 %v477_v50 }
 0x1a0   :  { %v324_v51 = vpop.f32.mrf.mxu1 }
 0x1a1   :  { %v467_v52 = vpop.xlane.xlu0 %466  ;;  %v5694_v63 = vadd.f32 %v5635_v5, %v324_v51 }
 0x1a2   :  { %v513_v56 = vsub.f32 %v5639_v10, %v467_v52 }
 0x1a3   :  { %v480_v6 = vsel %vm464_vm2, %v5694_v63, -inf }
 0x1a4   :  { %v529_v62 = vmul.f32 1.442695, %v513_v56 }
 0x1a6   :  { %5136 = vpow2.f32 %v529_v62 }
 0x1a9   :  { %v345_v53 = vpop.f32.mrf.mxu2 }
 0x1aa   :  { %v5719_v21 = vadd.f32 %v5658_v28, %v345_v53 }
 0x1ac   :  { %v5707_v13 = vpop.eup %5136  ;;  %v483_v31 = vsel %vm464_vm2, %v5719_v21, -inf }
 0x1ad   :  { %v368_v54 = vpop.f32.mrf.mxu3  ;;  %v561_v20 = vsel %vm464_vm2, %v5707_v13, 0.0 }
 0x1ae   :  { %v5683_v55 = vadd.f32 %v5635_v5, %v368_v54 }
 0x1af   :  { %v414_v57 = vpop.f32.mrf.mxu1 }
 0x1b0   :  { %v5687_v58 = vadd.f32 %v5635_v5, %v414_v57  ;;  %v489_v60 = vsel %vm464_vm2, %v5683_v55, -inf  ;;  %v470_v1 = vpop.xlane.xlu1 %469 }
 0x1b1   :  { %490 = vmax.xlane.f32.xlu2 %v489_v60  ;;  %v347_v4 = vpop.f32.mrf.mxu2  ;;  %v514_v9 = vsub.f32 %v5651_v25, %v470_v1  ;;  %v473_v22 = vpop.xlane.xlu0 %472 }
 0x1b2   :  { %v501_v61 = vsel %vm464_vm2, %v5687_v58, -inf  ;;  %v515_v29 = vsub.f32 %v5662_v32, %v473_v22  ;;  %v5738_v39 = vadd.f32 %v5658_v28, %v347_v4 }
 0x1b3   :  { %502 = vmax.xlane.f32.xlu1 %v501_v61  ;;  %v531_v14 = vmul.f32 1.442695, %v514_v9 }
 0x1b4   :  { %v533_v37 = vmul.f32 1.442695, %v515_v29 }
 0x1b5   :  { %v370_v0 = vpop.f32.mrf.mxu3  ;;  %5138 = vpow2.f32 %v531_v14 }
 0x1b6   :  { %v5697_v2 = vadd.f32 %v5635_v5, %v370_v0  ;;  %5140 = vpow2.f32 %v533_v37 }
 0x1b7   :  { %v416_v10 = vpop.f32.mrf.mxu1 }
 0x1b8   :  { %v492_v7 = vsel %vm464_vm2, %v5697_v2, -inf  ;;  %v5705_v11 = vadd.f32 %v5635_v5, %v416_v10 }
 0x1b9   :  { %481 = vmax.xlane.f32.xlu2 %v480_v6  ;;  %493 = vmax.xlane.f32.xlu0 %v492_v7  ;;  %v476_v23 = vpop.xlane.xlu1 %475 }
 0x1ba   :  { %v504_v19 = vsel %vm464_vm2, %v5705_v11, -inf  ;;  %v516_v33 = vsub.f32 %v5671_v42, %v476_v23  ;;  %v486_v42 = vsel %vm464_vm2, %v5738_v39, -inf }
 0x1bb   :  { %v5721_v25 = vpop.eup %5138 }
 0x1bc   :  { %v564_v36 = vsel %vm464_vm2, %v5721_v25, 0.0  ;;  %v535_v38 = vmul.f32 1.442695, %v516_v33  ;;  %v5749_v44 = vpop.eup %5140 }
 0x1bd   :  { %v437_v15 = vpop.f32.mrf.mxu2 }
 0x1be   :  { %v5741_v40 = vadd.f32 %v5658_v28, %v437_v15  ;;  %5142 = vpow2.f32 %v535_v38 }
 0x1bf   :  { %v391_v17 = vpop.f32.mrf.mxu0 }
 0x1c0   :  { %v5710_v18 = vadd.f32 %v5658_v28, %v391_v17  ;;  %v507_v43 = vsel %vm464_vm2, %v5741_v40, -inf }
 0x1c1   :  { %505 = vmax.xlane.f32.xlu2 %v504_v19  ;;  %562 = vadd.xlane.f32.xlu0 %v561_v20 }
 0x1c2   :  { %v495_v5 = vsel %vm464_vm2, %v5710_v18, -inf }
 0x1c3   :  { %496 = vmax.xlane.f32.xlu1 %v495_v5 }
 0x1c4   :  { %v5751_v45 = vpop.eup %5142 }
 0x1c5   :  { %v439_v34 = vpop.f32.mrf.mxu2  ;;  %v570_v46 = vsel %vm464_vm2, %v5751_v45, 0.0 }
 0x1c6   :  { %v5735_v32 = vadd.f32 %v5658_v28, %v439_v34 }
 0x1c7   :  { %v393_v26 = vpop.f32.mrf.mxu0 }
 0x1c8   :  { %v5725_v30 = vadd.f32 %v5658_v28, %v393_v26  ;;  %v510_v41 = vsel %vm464_vm2, %v5735_v32, -inf  ;;  %v567_v28 = vsel %vm464_vm2, %v5749_v44, 0.0 }
 0x1c9   :  { %484 = vmax.xlane.f32.xlu0 %v483_v31 }
 0x1ca   :  { %v498_v35 = vsel %vm464_vm2, %v5725_v30, -inf }
 0x1cb   :  { %499 = vmax.xlane.f32.xlu2 %v498_v35  ;;  %565 = vadd.xlane.f32.xlu1 %v564_v36 }
 0x1d1   :  { %511 = vmax.xlane.f32.xlu0 %v510_v41 }
 0x1d3   :  { %487 = vmax.xlane.f32.xlu1 %v486_v42  ;;  %508 = vmax.xlane.f32.xlu2 %v507_v43 }
 0x1db   :  { %568 = vadd.xlane.f32.xlu1 %v567_v28  ;;  %571 = vadd.xlane.f32.xlu2 %v570_v46 }
 0x20f   :  { %v479_v47 = vpop.xlane.xlu2 %478 }
 0x210   :  { %v517_v48 = vsub.f32 %v5678_v49, %v479_v47 }
 0x212   :  { %v537_v50 = vmul.f32 1.442695, %v517_v48  ;;  %v837_v48 = vunpack.c.l.b16 %v5627_v3 }
 0x214   :  { %5144 = vpow2.f32 %v537_v50 }
 0x21a   :  { %v5758_v51 = vpop.eup %5144 }
 0x21b   :  { %v573_v52 = vsel %vm464_vm2, %v5758_v51, 0.0 }
 0x21c   :  { %574 = vadd.xlane.f32.xlu2 %v573_v52  ;;  %v779_v52 = vunpack.c.l.b16 %v5621_v59 }
 0x224   :  { %v491_v53 = vpop.xlane.xlu2 %490 }
 0x225   :  { %v521_v54 = vsub.f32 %v5683_v55, %v491_v53 }
 0x226   :  { %v503_v57 = vpop.xlane.xlu1 %502 }
 0x227   :  { %v545_v56 = vmul.f32 1.442695, %v521_v54  ;;  %v525_v1 = vsub.f32 %v5687_v58, %v503_v57  ;;  %v780_v54 = vpack.c.b16 %v779_v52, %v779_v52 }
 0x229   :  { %5146 = vpow2.f32 %v545_v56  ;;  %v553_v55 = vmul.f32 1.442695, %v525_v1  ;;  %v866_v56 = vunpack.c.l.b16 %v5643_v16 }
 0x22b   :  { %v867_v57 = vpack.c.b16 %v866_v56, %v866_v56 }
 0x22c   :  { %v482_v60 = vpop.xlane.xlu2 %481  ;;  %v494_v61 = vpop.xlane.xlu0 %493 }
 0x22d   :  { %v518_v62 = vsub.f32 %v5694_v63, %v482_v60  ;;  %v522_v49 = vsub.f32 %v5697_v2, %v494_v61 }
 0x22f   :  { %v5765_v0 = vpop.eup %5146  ;;  %v539_v4 = vmul.f32 1.442695, %v518_v62  ;;  %v547_v6 = vmul.f32 1.442695, %v522_v49 }
 0x230   :  { %v585_v7 = vsel %vm464_vm2, %v5765_v0, 0.0 }
 0x231   :  { %5148 = vpow2.f32 %v539_v4  ;;  %586 = vadd.xlane.f32.xlu2 %v585_v7 }
 0x232   :  { %5150 = vpow2.f32 %v547_v6 }
 0x233   :  { %5152 = vpow2.f32 %v553_v55 }
 0x234   :  { %v506_v9 = vpop.xlane.xlu2 %505  ;;  %v563_v10 = vpop.xlane.xlu0 %562 }
 0x235   :  { %v526_v14 = vsub.f32 %v5705_v11, %v506_v9  ;;  %5154 = vrcp.f32 %v563_v10 }
 0x236   :  { %v497_v63 = vpop.xlane.xlu1 %496 }
 0x237   :  { %v5771_v15 = vpop.eup %5148  ;;  %v555_v2 = vmul.f32 1.442695, %v526_v14  ;;  %v523_v62 = vsub.f32 %v5710_v18, %v497_v63  ;;  %v692_v18 = vunpack.c.l.b16 %v5591_v27 }
 0x238   :  { %v5773_v17 = vpop.eup %5150  ;;  %v576_v58 = vsel %vm464_vm2, %v5771_v15, 0.0 }
 0x239   :  { %5156 = vpow2.f32 %v555_v2  ;;  %v588_v19 = vsel %vm464_vm2, %v5773_v17, 0.0  ;;  %577 = vadd.xlane.f32.xlu0 %v576_v58  ;;  %v5779_v5 = vpop.eup %5152  ;;  %v549_v1 = vmul.f32 1.442695, %v523_v62  ;;  %v693_v9 = vpack.c.b16 %v692_v18, %v692_v18 }
 0x23a   :  { %589 = vadd.xlane.f32.xlu2 %v588_v19  ;;  %v597_v33 = vsel %vm464_vm2, %v5779_v5, 0.0  ;;  %v808_v2 = vunpack.c.l.b16 %v5648_v24 }
 0x23b   :  { %v5155_v22 = vpop.eup %5154 }
 0x23c   :  { %v485_v20 = vpop.xlane.xlu0 %484  ;;  %v625_v34 = vmul.f32 %v5155_v22, %v5707_v13  ;;  %v809_v58 = vpack.c.b16 %v808_v2, %v808_v2 }
 0x23d   :  { %v519_v11 = vsub.f32 %v5719_v21, %v485_v20 }
 0x23e   :  { %v566_v23 = vpop.xlane.xlu1 %565  ;;  %v641_v36 = vpack.c.bf16 %v625_v34, %v625_v34  ;;  %v500_v53 = vpop.xlane.xlu2 %499 }
 0x23f   :  { %v5782_v26 = vpop.eup %5156  ;;  %v541_v29 = vmul.f32 1.442695, %v519_v11  ;;  %5158 = vrcp.f32 %v566_v23  ;;  %v524_v19 = vsub.f32 %v5725_v30, %v500_v53 }
 0x240   :  { %v600_v31 = vsel %vm464_vm2, %v5782_v26, 0.0  ;;  %v659_v46 = vunpack.c.l.b16 %v641_v36 }
 0x241   :  { %5160 = vpow2.f32 %v541_v29  ;;  %598 = vadd.xlane.f32.xlu0 %v597_v33  ;;  %v551_v22 = vmul.f32 1.442695, %v524_v19 }
 0x242   :  { %601 = vadd.xlane.f32.xlu2 %v600_v31 }
 0x244   :  { %v512_v4 = vpop.xlane.xlu0 %511 }
 0x245   :  { %v5159_v35 = vpop.eup %5158  ;;  %v528_v16 = vsub.f32 %v5735_v32, %v512_v4 }
 0x246   :  { %v626_v21 = vmul.f32 %v5159_v35, %v5721_v25  ;;  %v488_v37 = vpop.xlane.xlu1 %487  ;;  %v509_v60 = vpop.xlane.xlu2 %508 }
 0x247   :  { %v5790_v38 = vpop.eup %5160  ;;  %v520_v41 = vsub.f32 %v5738_v39, %v488_v37  ;;  %v838_v39 = vpack.c.b16 %v837_v48, %v837_v48  ;;  %v527_v3 = vsub.f32 %v5741_v40, %v509_v60  ;;  %v559_v6 = vmul.f32 1.442695, %v528_v16 }
 0x248   :  { %v642_v42 = vpack.c.bf16 %v626_v21, %v626_v21  ;;  %v579_v43 = vsel %vm464_vm2, %v5790_v38, 0.0 }
 0x249   :  { %v543_v28 = vmul.f32 1.442695, %v520_v41  ;;  %580 = vadd.xlane.f32.xlu1 %v579_v43  ;;  %v557_v61 = vmul.f32 1.442695, %v527_v3 }
 0x24a   :  { %v660_v47 = vunpack.c.l.b16 %v642_v42 }
 0x24b   :  { %5162 = vpow2.f32 %v543_v28 }
 0x24c   :  { %v661_v13 = vpack.c.b16 %v660_v47, %v659_v46  ;;  %5164 = vpow2.f32 %v557_v61 }
 0x24d   :  { %5166 = vpow2.f32 %v549_v1 }
 0x24e   :  { %4655 = vmatmul.msk.bf16.vlgmr.msra.gmra.mxu3 %vm464_vm2, %v661_v13  ;;  %5168 = vpow2.f32 %v559_v6  ;;  %v5823_v14 = vpop.xlane.xlu2 %571  ;;  %v569_v35 = vpop.xlane.xlu1 %568 }
 0x251   :  { %v5797_v25 = vpop.eup %5162 }
 0x252   :  { %v582_v50 = vsel %vm464_vm2, %v5797_v25, 0.0  ;;  %v5808_v49 = vpop.eup %5164 }
 0x253   :  { %583 = vadd.xlane.f32.xlu2 %v582_v50  ;;  %v603_v59 = vsel %vm464_vm2, %v5808_v49, 0.0  ;;  %v5813_v7 = vpop.eup %5166 }
 0x254   :  { %v591_v40 = vsel %vm464_vm2, %v5813_v7, 0.0  ;;  %v5818_v55 = vpop.eup %5168 }
 0x255   :  { %839 = vrot.lane.b32.xlu0 %v838_v39, %s7308_s26  ;;  %v606_v10 = vsel %vm464_vm2, %v5818_v55, 0.0 }
 0x262   :  { %781 = vrot.lane.b32.xlu1 %v780_v54, %s7308_s26 }
 0x26b   :  { %868 = vrot.lane.b32.xlu2 %v867_v57, %s7308_s26 }
 0x27f   :  { %604 = vadd.xlane.f32.xlu0 %v603_v59 }
 0x28c   :  { %592 = vadd.xlane.f32.xlu1 %v591_v40 }
 0x28f   :  { %v575_v32 = vpop.xlane.xlu2 %574 }
 0x290   :  { %5170 = vrcp.f32 %v575_v32 }
 0x293   :  { %694 = vrot.lane.b32.xlu0 %v693_v9, %s7308_s26 }
 0x294   :  { %607 = vadd.xlane.f32.xlu2 %v606_v10 }
 0x296   :  { %v5171_v20 = vpop.eup %5170 }
 0x297   :  { %v629_v23 = vmul.f32 %v5171_v20, %v5758_v51 }
 0x299   :  { %v645_v31 = vpack.c.bf16 %v629_v23, %v629_v23 }
 0x29b   :  { %v718_v30 = vunpack.c.l.b16 %v645_v31 }
 0x2a4   :  { %v587_v63 = vpop.xlane.xlu2 %586 }
 0x2ac   :  { %810 = vrot.lane.b32.xlu2 %v809_v58, %s7308_s26  ;;  %v578_v27 = vpop.xlane.xlu0 %577 }
 0x2ad   :  { %v590_v11 = vpop.xlane.xlu2 %589  ;;  %5172 = vrcp.f32 %v578_v27 }
 0x2ae   :  { %5174 = vpow2.f32 %v551_v22 }
 0x2b3   :  { %v5173_v29 = vpop.eup %5172 }
 0x2b4   :  { %v630_v33 = vmul.f32 %v5173_v29, %v5771_v15  ;;  %v599_v34 = vpop.xlane.xlu0 %598  ;;  %v5830_v37 = vpop.eup %5174 }
 0x2b5   :  { %v602_v24 = vpop.xlane.xlu2 %601  ;;  %5176 = vrcp.f32 %v599_v34  ;;  %v594_v51 = vsel %vm464_vm2, %v5830_v37, 0.0 }
 0x2b6   :  { %v646_v36 = vpack.c.bf16 %v630_v33, %v630_v33  ;;  %5178 = vrcp.f32 %v602_v24 }
 0x2b8   :  { %v719_v21 = vunpack.c.l.b16 %v646_v36 }
 0x2ba   :  { %v720_v41 = vpack.c.b16 %v719_v21, %v718_v30 }
 0x2bb   :  { %v5177_v42 = vpop.eup %5176 }
 0x2bc   :  { %v5179_v43 = vpop.eup %5178  ;;  %4657 = vmatmul.msk.bf16.vlgmr.msrb.gmra.mxu1 %vm464_vm2, %v720_v41  ;;  %v637_v28 = vmul.f32 %v5177_v42, %v5779_v5  ;;  %v581_v46 = vpop.xlane.xlu1 %580 }
 0x2bd   :  { %595 = vadd.xlane.f32.xlu0 %v594_v51  ;;  %v638_v15 = vmul.f32 %v5179_v43, %v5782_v26  ;;  %5180 = vrcp.f32 %v581_v46  ;;  %v5032_v51 = vld [vmem:[%s7328_s12 + $0x8] sm:$0xff] }
 0x2be   :  { %5182 = vrcp.f32 %v590_v11  ;;  %v653_v13 = vpack.c.bf16 %v637_v28, %v637_v28  ;;  %v5034_v28 = vld [vmem:[%s7328_s12 + $0x18] sm:$0xff] }
 0x2bf   :  { %v654_v47 = vpack.c.bf16 %v638_v15, %v638_v15  ;;  %5184 = vrcp.f32 %v587_v63 }
 0x2c0   :  { %v834_v50 = vunpack.c.l.b16 %v653_v13 }
 0x2c1   :  { %v835_v48 = vunpack.c.l.b16 %v654_v47 }
 0x2c3   :  { %v5181_v52 = vpop.eup %5180  ;;  %v836_v26 = vpack.c.b16 %v835_v48, %v834_v50 }
 0x2c4   :  { %v5183_v54 = vpop.eup %5182  ;;  %v631_v5 = vmul.f32 %v5181_v52, %v5790_v38 }
 0x2c5   :  { %v5185_v57 = vpop.eup %5184  ;;  %v634_v60 = vmul.f32 %v5183_v54, %v5773_v17 }
 0x2c6   :  { %v584_v39 = vpop.xlane.xlu2 %583  ;;  %v633_v61 = vmul.f32 %v5185_v57, %v5765_v0  ;;  %v647_v62 = vpack.c.bf16 %v631_v5, %v631_v5 }
 0x2c7   :  { %5186 = vrcp.f32 %v584_v39  ;;  %v840_v53 = vpop.permute.xlu0 %839  ;;  %v650_v4 = vpack.c.bf16 %v634_v60, %v634_v60  ;;  %v5033_v60 = vld [vmem:[%s7328_s12 + $0x10] sm:$0xff] }
 0x2c8   :  { %v845_v56 = vsel %vm669_vm3, %v840_v53, 0  ;;  %v649_v40 = vpack.c.bf16 %v633_v61, %v633_v61  ;;  %v747_v18 = vunpack.c.l.b16 %v647_v62  ;;  %5188 = vrcp.f32 %v569_v35 }
 0x2c9   :  { %854 = vmatpush.bf16.msra.mxu1 %v845_v56  ;;  %v777_v38 = vunpack.c.l.b16 %v650_v4  ;;  %5190 = vrcp.f32 %v5823_v14 }
 0x2ca   :  { %v776_v32 = vunpack.c.l.b16 %v649_v40 }
 0x2cc   :  { %4661 = vmatmul.msk.bf16.vlgmr.msra.gmra.mxu1 %vm464_vm2, %v836_v26  ;;  %v778_v0 = vpack.c.b16 %v777_v38, %v776_v32 }
 0x2cd   :  { %v5187_v3 = vpop.eup %5186  ;;  %977 = vmatpush.bf16.msrb.mxu1 %v5033_v60 }
 0x2ce   :  { %v632_v1 = vmul.f32 %v5187_v3, %v5797_v25  ;;  %v869_v59 = vpop.permute.xlu2 %868  ;;  %v5189_v25 = vpop.eup %5188 }
 0x2cf   :  { %v874_v16 = vsel %vm669_vm3, %v869_v59, 0  ;;  %v5191_v2 = vpop.eup %5190  ;;  %v627_v58 = vmul.f32 %v5189_v25, %v5749_v44 }
 0x2d0   :  { %v648_v6 = vpack.c.bf16 %v632_v1, %v632_v1  ;;  %883 = vmatpush.bf16.msra.mxu2 %v874_v16  ;;  %v628_v19 = vmul.f32 %v5191_v2, %v5751_v45 }
 0x2d1   :  { %v643_v20 = vpack.c.bf16 %v627_v58, %v627_v58  ;;  %v682_v57 = vpop.f32.mrf.mxu3 }
 0x2d2   :  { %v748_v9 = vunpack.c.l.b16 %v648_v6  ;;  %v644_v11 = vpack.c.bf16 %v628_v19, %v628_v19 }
 0x2d3   :  { %v689_v22 = vunpack.c.l.b16 %v643_v20 }
 0x2d4   :  { %v749_v10 = vpack.c.b16 %v748_v9, %v747_v18  ;;  %v782_v17 = vpop.permute.xlu1 %781  ;;  %v690_v23 = vunpack.c.l.b16 %v644_v11 }
 0x2d5   :  { %v787_v63 = vsel %vm669_vm3, %v782_v17, 0 }
 0x2d6   :  { %4658 = vmatmul.msk.bf16.vlgmr.msrb.gmra.mxu2 %vm464_vm2, %v749_v10  ;;  %796 = vmatpush.bf16.msrb.mxu3 %v787_v63  ;;  %v691_v24 = vpack.c.b16 %v690_v23, %v689_v22  ;;  %v5113_v22 = vld [vmem:[%s7326_s30 + $0x2] ss:$0 sm:$0xff] }
 0x2d7   :  { %1014 = vmatpush.bf16.msrb.mxu2 %v5034_v28  ;;  %v80_v28 = vld [vmem:[%s7282_s1] sm:$0xff] }
 0x2d9   :  { %4659 = vmatmul.msk.bf16.vlgmr.msrb.gmra.mxu3 %vm464_vm2, %v778_v0  ;;  %v684_v3 = vpop.f32.mrf.mxu3 }
 0x2da   :  { %913 = vmatpush.bf16.msra.mxu3 %v5032_v51 }
 0x2f2   :  { %v605_v27 = vpop.xlane.xlu0 %604 }
 0x2f3   :  { %5192 = vrcp.f32 %v605_v27 }
 0x2f9   :  { %v5193_v34 = vpop.eup %5192 }
 0x2fa   :  { %v639_v44 = vmul.f32 %v5193_v34, %v5808_v49 }
 0x2fc   :  { %v655_v45 = vpack.c.bf16 %v639_v44, %v639_v44 }
 0x2fe   :  { %v863_v41 = vunpack.c.l.b16 %v655_v45 }
 0x2ff   :  { %v593_v49 = vpop.xlane.xlu1 %592 }
 0x305   :  { %v695_v29 = vpop.permute.xlu0 %694 }
 0x306   :  { %v700_v31 = vsel %vm669_vm3, %v695_v29, 0 }
 0x307   :  { %v608_v33 = vpop.xlane.xlu2 %607  ;;  %709 = vmatpush.bf16.msra.mxu0 %v700_v31 }
 0x308   :  { %5194 = vrcp.f32 %v608_v33 }
 0x309   :  { %5196 = vrcp.f32 %v593_v49 }
 0x30a   :  { %4656 = vmatmul.msk.bf16.vlgmr.msra.gmra.mxu0 %vm464_vm2, %v691_v24  ;;  %v5396_v24 = vld [vmem:[%s7324_s25] sm:$0xff] }
 0x30e   :  { %v5195_v14 = vpop.eup %5194 }
 0x30f   :  { %v640_v35 = vmul.f32 %v5195_v14, %v5818_v55  ;;  %v811_v36 = vpop.permute.xlu2 %810  ;;  %v5031_v55 = vld [vmem:[%s7328_s12] sm:$0xff]  ;;  %v5197_v46 = vpop.eup %5196  ;;  %s7331_s12 = smov 80  }
 0x310   :  { %v816_v30 = vsel %vm669_vm3, %v811_v36, 0  ;;  %v635_v47 = vmul.f32 %v5197_v46, %v5813_v7  ;;  %v81_v46 = vld [vmem:[%s7282_s1 + $0x8] sm:$0xff]  ;;  %s7332_s1 = smov 64  }
 0x311   :  { %v656_v21 = vpack.c.bf16 %v640_v35, %v640_v35  ;;  %825 = vmatpush.bf16.msrb.mxu0 %v816_v30 }
 0x312   :  { %v651_v48 = vpack.c.bf16 %v635_v47, %v635_v47  ;;  %v1459_v47 = vpack.c.bf16 %v81_v46, %v80_v28  ;;  %v5036_v46 = vld [vmem:[%s7283_s9 + $0x8] sm:$0xff] }
 0x313   :  { %v864_v42 = vunpack.c.l.b16 %v656_v21  ;;  %v5048_v21 = vld [vmem:[%s7329_s28 + $0x8] sm:$0xff]  ;;  %1171 = vmatpush.bf16.msrb.mxu3 %v5036_v46 }
 0x314   :  { %v805_v53 = vunpack.c.l.b16 %v651_v48 }
 0x315   :  { %v865_v43 = vpack.c.b16 %v864_v42, %v863_v41  ;;  %944 = vmatpush.bf16.msra.mxu0 %v5031_v55  ;;  %v5046_v41 = vld [vmem:[%s7330_s8 + $0x8] sm:$0xff]  ;;  %v5047_v55 = vld [vmem:[%s7329_s28] sm:$0xff] }
 0x316   :  { %1446 = vmatpush.bf16.msra.mxu1 %v5046_v41 }
 0x317   :  { %4662 = vmatmul.msk.bf16.vlgmr.msra.gmra.mxu2 %vm464_vm2, %v865_v43  ;;  %v5397_v43 = vld [vmem:[%s7324_s25 + $0x8] sm:$0xff] }
 0x318   :  { %1482 = vmatpush.bf16.msra.mxu2 %v5048_v21 }
 0x31c   :  { %1483 = vmatpush.bf16.msra.mxu2 %v5047_v55 }
 0x330   :  { %v596_v15 = vpop.xlane.xlu0 %595 }
 0x331   :  { %5198 = vrcp.f32 %v596_v15  ;;  %v5045_v15 = vld [vmem:[%s7330_s8] sm:$0xff] }
 0x332   :  { %1447 = vmatpush.bf16.msra.mxu1 %v5045_v15 }
 0x337   :  { %v5199_v13 = vpop.eup %5198 }
 0x338   :  { %v636_v50 = vmul.f32 %v5199_v13, %v5830_v37  ;;  %v890_v37 = vpack.c.bf16 %v684_v3, %v682_v57 }
 0x339   :  { %v740_v39 = vpop.f32.mrf.mxu1 }
 0x33a   :  { %v652_v52 = vpack.c.bf16 %v636_v50, %v636_v50 }
 0x33c   :  { %v806_v54 = vunpack.c.l.b16 %v652_v52 }
 0x33e   :  { %v807_v56 = vpack.c.b16 %v806_v54, %v805_v53  ;;  %v5410_v54 = vmov 32.0  }
 0x33f   :  { %5200 = vrcp.f32 %v5410_v54 }
 0x340   :  { %4660 = vmatmul.msk.bf16.vlgmr.msrb.gmra.mxu0 %vm464_vm2, %v807_v56 }
 0x341   :  { %v742_v26 = vpop.f32.mrf.mxu1 }
 0x342   :  { %v892_v5 = vpack.c.bf16 %v742_v26, %v740_v39 }
 0x344   :  { %4667 = vmatmul.msk.bf16.vlgmr.msra.gmra.mxu3 %vm260_vm1, %v892_v5 }
 0x345   :  { %v5201_v60 = vpop.eup %5200 }
 0x346   :  { %vm1056_vm4 = vweird.f32 %v5201_v60 }
 0x349   :  { %v856_v7 = vpop.f32.mrf.mxu1 }
 0x350   :  { %4673 = vmatmul.msk.bf16.vlgmr.msra.gmra.mxu0 %vm260_vm1, %v890_v37 }
 0x351   :  { %v858_v61 = vpop.f32.mrf.mxu1 }
 0x352   :  { %v993_v62 = vpack.c.bf16 %v858_v61, %v856_v7 }
 0x354   :  { %4685 = vmatmul.msk.bf16.vlgmr.msrb.gmra.mxu2 %vm260_vm1, %v993_v62 }
 0x359   :  { %v769_v1 = vpop.f32.mrf.mxu2 }
 0x35c   :  { %v798_v59 = vpop.f32.mrf.mxu3 }
 0x361   :  { %v771_v4 = vpop.f32.mrf.mxu2 }
 0x362   :  { %v893_v16 = vpack.c.bf16 %v771_v4, %v769_v1  ;;  %v1052_v1 = vmul.f32 32.0, %v5201_v60 }
 0x364   :  { %v800_v6 = vpop.f32.mrf.mxu3  ;;  %4668 = vmatmul.msk.bf16.gmra.mxu3 %vm260_vm1, %v893_v16  ;;  %v1053_v16 = vsub.f32 1.0, %v1052_v1 }
 0x365   :  { %v956_v40 = vpack.c.bf16 %v800_v6, %v798_v59  ;;  %v5399_v6 = vld [vmem:[%s7324_s25 + $0x18] sm:$0xff] }
 0x367   :  { %4679 = vmatmul.msk.bf16.vlgmr.msrb.gmra.mxu1 %vm260_vm1, %v956_v40 }
 0x387   :  { %v711_v18 = vpop.f32.mrf.mxu0 }
 0x38f   :  { %v713_v9 = vpop.f32.mrf.mxu0 }
 0x390   :  { %v891_v38 = vpack.c.bf16 %v713_v9, %v711_v18  ;;  %v1054_v9 = vmul.f32 %v5201_v60, %v1053_v16 }
 0x392   :  { %4674 = vmatmul.msk.bf16.gmra.mxu0 %vm260_vm1, %v891_v38  ;;  %v1055_v38 = vadd.f32 %v5201_v60, %v1054_v9 }
 0x39a   :  { %v885_v10 = vpop.f32.mrf.mxu2 }
 0x3a2   :  { %v887_v17 = vpop.f32.mrf.mxu2 }
 0x3a3   :  { %v994_v32 = vpack.c.bf16 %v887_v17, %v885_v10  ;;  %v5930_v10 = vsel %vm1056_vm4, %v5201_v60, %v1055_v38 }
 0x3a5   :  { %4686 = vmatmul.msk.bf16.gmra.mxu2 %vm260_vm1, %v994_v32 }
 0x3b5   :  { %4747 = vmatmul.msk.bf16.vlgmr.msra.gmra.mxu2 %vm152_vm0, %v1459_v47 }
 0x3bd   :  { %v827_v63 = vpop.f32.mrf.mxu0 }
 0x3c5   :  { %v829_v0 = vpop.f32.mrf.mxu0 }
 0x3c6   :  { %v957_v25 = vpack.c.bf16 %v829_v0, %v827_v63 }
 0x3c7   :  { %v915_v58 = vpop.f32.mrf.mxu3 }
 0x3c8   :  { %4680 = vmatmul.msk.bf16.gmra.mxu1 %vm260_vm1, %v957_v25 }
 0x3cd   :  { %v946_v2 = vpop.f32.mrf.mxu0 }
 0x3ce   :  { %v947_v19 = vadd.f32 %v946_v2, %v915_v58 }
 0x3cf   :  { %v917_v33 = vpop.f32.mrf.mxu3 }
 0x3d5   :  { %v948_v29 = vpop.f32.mrf.mxu0 }
 0x3d6   :  { %v949_v34 = vadd.f32 %v948_v29, %v917_v33  ;;  %v5115_v29 = vld [vmem:[%s7326_s30 + $0xa] ss:$0 sm:$0xff] }
 0x3d7   :  { %v1016_v27 = vpop.f32.mrf.mxu2 }
 0x3d8   :  { %4737 = vmatmul.msk.bf16.vlgmr.msra.gmra.mxu1 %vm152_vm0, %v5568_v8  ;;  %v5398_v8 = vld [vmem:[%s7324_s25 + $0x10] sm:$0xff] }
 0x3df   :  { %v1018_v36 = vpop.f32.mrf.mxu2 }
 0x3e4   :  { %v979_v20 = vpop.f32.mrf.mxu1 }
 0x3e5   :  { %v989_v11 = vadd.f32 %v979_v20, %v947_v19 }
 0x3e7   :  { %v1026_v23 = vadd.f32 %v1016_v27, %v989_v11  ;;  %v920_v48 = vpop.f32.mrf.mxu3  ;;  %v5114_v11 = vld [vmem:[%s7326_s30 + $0x9] ss:$0 sm:$0xff] }
 0x3e8   :  { %4738 = vmatmul.msk.bf16.gmra.mxu1 %vm152_vm0, %v5579_v12 }
 0x3e9   :  { %v1031_v31 = vadd.f32 %v5113_v22, %v1026_v23 }
 0x3eb   :  { %v5885_v44 = vadd.f32 %v5396_v24, %v1031_v31 }
 0x3ec   :  { %v981_v14 = vpop.f32.mrf.mxu1 }
 0x3ed   :  { %v990_v45 = vadd.f32 %v981_v14, %v949_v34  ;;  %v1039_v35 = vsel %vm152_vm0, %v5885_v44, 0.0 }
 0x3ee   :  { %1040 = vadd.xlane.f32.xlu1 %v1039_v35 }
 0x3ef   :  { %v1027_v30 = vadd.f32 %v1018_v36, %v990_v45  ;;  %v922_v5 = vpop.f32.mrf.mxu3 }
 0x3f1   :  { %v1032_v42 = vadd.f32 %v5113_v22, %v1027_v30 }
 0x3f3   :  { %v1036_v51 = vadd.f32 %v5397_v43, %v1032_v42 }
 0x3f5   :  { %v1042_v49 = vsel %vm152_vm0, %v1036_v51, 0.0 }
 0x3f6   :  { %1043 = vadd.xlane.f32.xlu2 %v1042_v49 }
 0x40f   :  { %v951_v13 = vpop.f32.mrf.mxu0 }
 0x410   :  { %v952_v50 = vadd.f32 %v951_v13, %v920_v48  ;;  %v5035_v13 = vld [vmem:[%s7283_s9] sm:$0xff] }
 0x411   :  { %1172 = vmatpush.bf16.msrb.mxu3 %v5035_v13 }
 0x417   :  { %v953_v57 = vpop.f32.mrf.mxu0 }
 0x418   :  { %v954_v7 = vadd.f32 %v953_v57, %v922_v5 }
 0x428   :  { %v1021_v39 = vpop.f32.mrf.mxu2 }
 0x430   :  { %v1023_v62 = vpop.f32.mrf.mxu2 }
 0x438   :  { %v1485_v33 = vpop.f32.mrf.mxu2 }
 0x439   :  { %v1486_v34 = vadd.f32 %v5115_v29, %v1485_v33 }
 0x43b   :  { %v5955_v24 = vpack.c.bf16 %v1486_v34, %v1486_v34 }
 0x43d   :  { %v1545_v45 = vsel %vm260_vm1, %v5955_v24, 0 }
 0x43e   :  { %1554 = vmatpush.bf16.xpose.msrb.mxu2 %v1545_v45 }
 0x440   :  { %v1487_v21 = vpop.f32.mrf.mxu2 }
 0x441   :  { %v1488_v41 = vadd.f32 %v5115_v29, %v1487_v21  ;;  %v5040_v21 = vld [vmem:[%s7284_s10 + $0x18] sm:$0xff] }
 0x443   :  { %v5963_v43 = vpack.c.bf16 %v1488_v41, %v1488_v41  ;;  %v5039_v41 = vld [vmem:[%s7284_s10 + $0x10] sm:$0xff] }
 0x445   :  { %v984_v52 = vpop.f32.mrf.mxu1 }
 0x446   :  { %v991_v53 = vadd.f32 %v984_v52, %v952_v50  ;;  %v1568_v50 = vsel %vm260_vm1, %v5963_v43, 0 }
 0x447   :  { %1577 = vmatpush.bf16.xpose.msra.mxu3 %v1568_v50 }
 0x448   :  { %v1028_v56 = vadd.f32 %v1021_v39, %v991_v53  ;;  %v1919_v39 = vunpack.c.l.b16 %v5955_v24 }
 0x44a   :  { %v1033_v26 = vadd.f32 %v5113_v22, %v1028_v56  ;;  %v1920_v53 = vpack.c.b16 %v1919_v39, %v1919_v39 }
 0x44c   :  { %v5919_v3 = vadd.f32 %v5398_v8, %v1033_v26 }
 0x44d   :  { %v986_v12 = vpop.f32.mrf.mxu1 }
 0x44e   :  { %v992_v37 = vadd.f32 %v986_v12, %v954_v7  ;;  %v1045_v61 = vsel %vm152_vm0, %v5919_v3, 0.0 }
 0x44f   :  { %1046 = vadd.xlane.f32.xlu0 %v1045_v61 }
 0x450   :  { %v1029_v59 = vadd.f32 %v1023_v62, %v992_v37 }
 0x452   :  { %v1034_v4 = vadd.f32 %v5113_v22, %v1029_v59 }
 0x454   :  { %v5926_v40 = vadd.f32 %v5399_v6, %v1034_v4 }
 0x455   :  { %v1449_v22 = vpop.f32.mrf.mxu1 }
 0x456   :  { %v1048_v18 = vsel %vm152_vm0, %v5926_v40, 0.0  ;;  %v1450_v23 = vadd.f32 %v5114_v11, %v1449_v22 }
 0x457   :  { %1049 = vadd.xlane.f32.xlu1 %v1048_v18 }
 0x458   :  { %v5951_v31 = vpack.c.bf16 %v1450_v23, %v1450_v23 }
 0x45a   :  { %1498 = vrot.lane.b32.xlu2 %v5951_v31, %s5406_s23  ;;  %v1538_v35 = vunpack.c.l.b16 %v5951_v31 }
 0x461   :  { %v1041_v17 = vpop.xlane.xlu1 %1040 }
 0x462   :  { %v1058_v32 = vmul.f32 %v5930_v10, %v1041_v17  ;;  %1532 = vrot.lane.b32.xlu2 %v5963_v43, %s5407_s7  ;;  %v133_v17 = vld [vmem:[%s7326_s30 + $0x3] sm:$0x3] }
 0x463   :  { %v6026_v23 = vperm.slane %v133_v17, 1 }
 0x464   :  { %v5934_v63 = vsub.f32 %v5885_v44, %v1058_v32  ;;  %v1451_v44 = vpop.f32.mrf.mxu1 }
 0x465   :  { %v1452_v14 = vadd.f32 %v5114_v11, %v1451_v44  ;;  %v5043_v44 = vld [vmem:[%s7284_s10 + $0x30] sm:$0xff] }
 0x466   :  { %v1066_v0 = vmul.f32 %v5934_v63, %v5934_v63 }
 0x467   :  { %v5960_v36 = vpack.c.bf16 %v1452_v14, %v1452_v14 }
 0x468   :  { %v1070_v25 = vsel %vm152_vm0, %v1066_v0, 0.0 }
 0x469   :  { %v1044_v2 = vpop.xlane.xlu2 %1043  ;;  %1071 = vadd.xlane.f32.xlu0 %v1070_v25  ;;  %v1539_v30 = vunpack.c.l.b16 %v5960_v36 }
 0x46a   :  { %v1059_v58 = vmul.f32 %v5930_v10, %v1044_v2  ;;  %1514 = vrot.lane.b32.xlu2 %v5951_v31, %s7331_s12  ;;  %v6019_v2 = vperm.slane %v133_v17, 0 }
 0x46b   :  { %v1540_v42 = vpack.c.b16 %v1539_v30, %v1538_v35  ;;  %v5042_v35 = vld [vmem:[%s7284_s10 + $0x28] sm:$0xff] }
 0x46c   :  { %v5940_v19 = vsub.f32 %v1036_v51, %v1059_v58  ;;  %v1454_v51 = vpop.f32.mrf.mxu1 }
 0x46d   :  { %4748 = vmatmul.msk.bf16.vlgmr.msrb.gmra.mxu2 %vm260_vm1, %v1540_v42  ;;  %v5970_v49 = vadd.f32 %v5114_v11, %v1454_v51  ;;  %v5038_v42 = vld [vmem:[%s7284_s10 + $0x8] sm:$0xff] }
 0x46e   :  { %v1067_v27 = vmul.f32 %v5940_v19, %v5940_v19 }
 0x46f   :  { %v6039_v33 = vpack.c.bf16 %v5970_v49, %v5970_v49 }
 0x470   :  { %v1073_v20 = vsel %vm152_vm0, %v1067_v27, 0.0 }
 0x471   :  { %1074 = vadd.xlane.f32.xlu1 %v1073_v20 }
 0x474   :  { %v1456_v55 = vpop.f32.mrf.mxu1 }
 0x475   :  { %v1457_v15 = vadd.f32 %v5114_v11, %v1456_v55  ;;  %v5037_v55 = vld [vmem:[%s7284_s10] sm:$0xff] }
 0x477   :  { %v5972_v28 = vpack.c.bf16 %v1457_v15, %v1457_v15 }
 0x479   :  { %1512 = vrot.lane.b32.xlu2 %v5972_v28, %s5407_s7 }
 0x481   :  { %1520 = vrot.lane.b32.xlu2 %v5972_v28, %s7331_s12 }
 0x489   :  { %1921 = vrot.lane.b32.xlu2 %v1920_v53, %s7332_s1 }
 0x4b4   :  { %v6054_v34 = vpop.permute.xlu2 %1498 }
 0x4bc   :  { %v6062_v14 = vpop.permute.xlu2 %1532 }
 0x4bd   :  { %v1660_v45 = vsel %vm260_vm1, %v6062_v14, 0 }
 0x4c2   :  { %v1047_v47 = vpop.xlane.xlu0 %1046 }
 0x4c3   :  { %v1060_v48 = vmul.f32 %v5930_v10, %v1047_v47 }
 0x4c4   :  { %v6090_v46 = vpop.permute.xlu2 %1514 }
 0x4c5   :  { %v5989_v52 = vsub.f32 %v5919_v3, %v1060_v48 }
 0x4c7   :  { %v1068_v54 = vmul.f32 %v5989_v52, %v5989_v52 }
 0x4c9   :  { %v1076_v56 = vsel %vm152_vm0, %v1068_v54, 0.0 }
 0x4ca   :  { %1077 = vadd.xlane.f32.xlu0 %v1076_v56  ;;  %v1050_v57 = vpop.xlane.xlu1 %1049 }
 0x4cb   :  { %v1061_v26 = vmul.f32 %v5930_v10, %v1050_v57 }
 0x4cd   :  { %v5997_v5 = vsub.f32 %v5926_v40, %v1061_v26 }
 0x4cf   :  { %v1069_v60 = vmul.f32 %v5997_v5, %v5997_v5 }
 0x4d1   :  { %v1079_v7 = vsel %vm152_vm0, %v1069_v60, 0.0 }
 0x4d2   :  { %1080 = vadd.xlane.f32.xlu1 %v1079_v7 }
 0x4d3   :  { %v6094_v53 = vpop.permute.xlu2 %1512 }
 0x4dc   :  { %v1072_v8 = vpop.xlane.xlu0 %1071 }
 0x4dd   :  { %v1082_v3 = vmul.f32 %v1072_v8, %v5930_v10 }
 0x4de   :  { %1526 = vrot.lane.b32.xlu0 %v5955_v24, %s5406_s23 }
 0x4df   :  { %v1086_v12 = vadd.f32 1e-05, %v1082_v3 }
 0x4e1   :  { %5202 = vrsqrt.f32 %v1086_v12  ;;  %vm1096_vm6 = vweird.f32 %v1086_v12 }
 0x4e4   :  { %v1075_v37 = vpop.xlane.xlu1 %1074 }
 0x4e5   :  { %v1083_v61 = vmul.f32 %v1075_v37, %v5930_v10 }
 0x4e6   :  { %1500 = vrot.lane.b32.xlu0 %v5960_v36, %s5406_s23 }
 0x4e7   :  { %v5203_v62 = vpop.eup %5202  ;;  %v1087_v1 = vadd.f32 1e-05, %v1083_v61  ;;  %v6096_v61 = vpop.permute.xlu2 %1520 }
 0x4e8   :  { %v1091_v59 = vmul.f32 %v5203_v62, %v1086_v12  ;;  %vm1097_vm5 = vweird.f32 %v5203_v62 }
 0x4e9   :  { %5204 = vrsqrt.f32 %v1087_v1  ;;  %vm1098_vm7 = vmor %vm1096_vm6, %vm1097_vm5  ;;  %vm1106_vm9 = vweird.f32 %v1087_v1 }
 0x4ea   :  { %v1092_v4 = vmul.f32 %v5203_v62, %v1091_v59 }
 0x4eb   :  { %1530 = vrot.lane.b32.xlu1 %v5955_v24, %s5407_s7 }
 0x4ec   :  { %v1093_v16 = vmul.f32 0.5, %v1092_v4 }
 0x4ee   :  { %v1094_v6 = vsub.f32 1.5, %v1093_v16  ;;  %1508 = vrot.lane.b32.xlu0 %v5960_v36, %s5407_s7 }
 0x4ef   :  { %v5205_v40 = vpop.eup %5204  ;;  %v1922_v17 = vpop.permute.xlu2 %1921 }
 0x4f0   :  { %v1095_v18 = vmul.f32 %v5203_v62, %v1094_v6  ;;  %v1101_v9 = vmul.f32 %v5205_v40, %v1087_v1  ;;  %vm1107_vm8 = vweird.f32 %v5205_v40  ;;  %v6072_v30 = vpop.f32.mrf.mxu2 }
 0x4f1   :  { %vm1108_vm10 = vmor %vm1106_vm9, %vm1107_vm8 }
 0x4f2   :  { %v1102_v38 = vmul.f32 %v5205_v40, %v1101_v9  ;;  %v1099_v32 = vsel %vm1098_vm7, %v5203_v62, %v1095_v18 }
 0x4f3   :  { %1506 = vrot.lane.b32.xlu1 %v5951_v31, %s5407_s7  ;;  %v1130_v58 = vmul.f32 %v1099_v32, %v5934_v63 }
 0x4f4   :  { %v1103_v0 = vmul.f32 0.5, %v1102_v38 }
 0x4f5   :  { %v1135_v11 = vmul.f32 %v6019_v2, %v1130_v58 }
 0x4f6   :  { %v1104_v25 = vsub.f32 1.5, %v1103_v0  ;;  %1534 = vrot.lane.b32.xlu0 %v5955_v24, %s7331_s12  ;;  %v5044_v24 = vld [vmem:[%s7284_s10 + $0x38] sm:$0xff] }
 0x4f7   :  { %v6032_v63 = vadd.f32 %v6026_v23, %v1135_v11  ;;  %1239 = vmatpush.bf16.msrb.mxu0 %v5044_v24 }
 0x4f8   :  { %v1105_v27 = vmul.f32 %v5205_v40, %v1104_v25  ;;  %v6083_v51 = vpop.f32.mrf.mxu2 }
 0x4f9   :  { %v1725_v49 = vsel %vm464_vm2, %v6083_v51, -inf }
 0x4fa   :  { %v1109_v20 = vsel %vm1108_vm10, %v5205_v40, %v1105_v27 }
 0x4fb   :  { %v1131_v22 = vmul.f32 %v1109_v20, %v5940_v19  ;;  %1528 = vrot.lane.b32.xlu1 %v5963_v43, %s5406_s23  ;;  %1240 = vmatpush.bf16.msrb.mxu0 %v5043_v44  ;;  %v1927_v20 = vsel %vm669_vm3, %v1922_v17, 0 }
 0x4fd   :  { %v1136_v29 = vmul.f32 %v6019_v2, %v1131_v22 }
 0x4fe   :  { %1504 = vrot.lane.b32.xlu0 %v5972_v28, %s5406_s23 }
 0x4ff   :  { %v6035_v31 = vadd.f32 %v6026_v23, %v1136_v29  ;;  %1241 = vmatpush.bf16.msrb.mxu0 %v5042_v35  ;;  %v1561_v35 = vunpack.c.l.b16 %v6039_v33 }
 0x501   :  { %v1144_v19 = vpack.c.bf16 %v6035_v31, %v6032_v63 }
 0x503   :  { %1502 = vrot.lane.b32.xlu1 %v6039_v33, %s5406_s23  ;;  %4695 = vmatmul.msk.bf16.vlgmr.msrb.gmra.mxu3 %vm152_vm0, %v1144_v19 }
 0x504   :  { %1669 = vmatpush.bf16.xpose.msrb.mxu3 %v1660_v45 }
 0x506   :  { %1510 = vrot.lane.b32.xlu0 %v6039_v33, %s5407_s7 }
 0x50b   :  { %1516 = vrot.lane.b32.xlu1 %v5960_v36, %s7331_s12  ;;  %v5041_v36 = vld [vmem:[%s7284_s10 + $0x20] sm:$0xff]  ;;  %s7337_s10 = sld [smem:[#allocation11_spill]] }
 0x50c   :  { %1242 = vmatpush.bf16.msrb.mxu0 %v5041_v36 }
 0x50e   :  { %1518 = vrot.lane.b32.xlu0 %v6039_v33, %s7331_s12 }
 0x510   :  { %1243 = vmatpush.bf16.msrb.mxu0 %v5040_v21 }
 0x513   :  { %1536 = vrot.lane.b32.xlu1 %v5963_v43, %s7331_s12 }
 0x514   :  { %1244 = vmatpush.bf16.msrb.mxu0 %v5039_v41 }
 0x518   :  { %1245 = vmatpush.bf16.msrb.mxu0 %v5038_v42 }
 0x51c   :  { %1246 = vmatpush.bf16.msrb.mxu0 %v5037_v55 }
 0x538   :  { %1726 = vmax.xlane.f32.xlu0 %v1725_v49 }
 0x53d   :  { %v1078_v15 = vpop.xlane.xlu0 %1077 }
 0x53e   :  { %v1084_v47 = vmul.f32 %v1078_v15, %v5930_v10 }
 0x540   :  { %v1088_v13 = vadd.f32 1e-05, %v1084_v47 }
 0x542   :  { %5206 = vrsqrt.f32 %v1088_v13  ;;  %vm1116_vm12 = vweird.f32 %v1088_v13 }
 0x545   :  { %v1081_v48 = vpop.xlane.xlu1 %1080 }
 0x546   :  { %v1085_v50 = vmul.f32 %v1081_v48, %v5930_v10  ;;  %v1654_v48 = vunpack.c.l.b16 %v6094_v53 }
 0x548   :  { %v5207_v39 = vpop.eup %5206  ;;  %v1089_v54 = vadd.f32 1e-05, %v1085_v50 }
 0x549   :  { %v1111_v56 = vmul.f32 %v5207_v39, %v1088_v13  ;;  %vm1117_vm11 = vweird.f32 %v5207_v39 }
 0x54a   :  { %5208 = vrsqrt.f32 %v1089_v54  ;;  %vm1118_vm13 = vmor %vm1116_vm12, %vm1117_vm11  ;;  %vm1126_vm15 = vweird.f32 %v1089_v54 }
 0x54b   :  { %v1112_v57 = vmul.f32 %v5207_v39, %v1111_v56 }
 0x54d   :  { %v1113_v26 = vmul.f32 0.5, %v1112_v57 }
 0x54f   :  { %v1114_v60 = vsub.f32 1.5, %v1113_v26 }
 0x550   :  { %v5209_v7 = vpop.eup %5208  ;;  %v1527_v8 = vpop.permute.xlu0 %1526 }
 0x551   :  { %v1115_v3 = vmul.f32 %v5207_v39, %v1114_v60  ;;  %v1121_v12 = vmul.f32 %v5209_v7, %v1089_v54  ;;  %v1977_v37 = vunpack.c.l.b16 %v1527_v8  ;;  %v1591_v62 = vsel %vm260_vm1, %v1527_v8, 0  ;;  %v5116_v60 = vld [vmem:[%s7326_s30 + $0x5] ss:$0 sm:$0xff] }
 0x552   :  { %1600 = vmatpush.bf16.xpose.msra.mxu0 %v1591_v62  ;;  %vm1127_vm14 = vweird.f32 %v5209_v7 }
 0x553   :  { %v1122_v1 = vmul.f32 %v5209_v7, %v1121_v12  ;;  %v1978_v59 = vpack.c.b16 %v1977_v37, %v1977_v37  ;;  %v1119_v4 = vsel %vm1118_vm13, %v5207_v39, %v1115_v3  ;;  %vm1128_vm4 = vmor %vm1126_vm15, %vm1127_vm14 }
 0x554   :  { %v1132_v18 = vmul.f32 %v1119_v4, %v5989_v52 }
 0x555   :  { %v1123_v16 = vmul.f32 0.5, %v1122_v1  ;;  %1979 = vrot.lane.b32.xlu1 %v1978_v59, %s7332_s1 }
 0x556   :  { %v1137_v0 = vmul.f32 %v6019_v2, %v1132_v18 }
 0x557   :  { %v1124_v6 = vsub.f32 1.5, %v1123_v16 }
 0x558   :  { %v6100_v40 = vpop.permute.xlu0 %1500  ;;  %v6112_v11 = vadd.f32 %v6026_v23, %v1137_v0 }
 0x559   :  { %v1125_v9 = vmul.f32 %v5209_v7, %v1124_v6 }
 0x55b   :  { %v1129_v38 = vsel %vm1128_vm4, %v5209_v7, %v1125_v9  ;;  %v1700_v7 = vunpack.c.l.b16 %v6096_v61 }
 0x55c   :  { %v1133_v32 = vmul.f32 %v1129_v38, %v5997_v5 }
 0x55d   :  { %v6105_v25 = vpop.permute.xlu1 %1530 }
 0x55e   :  { %v1637_v58 = vsel %vm260_vm1, %v6105_v25, 0  ;;  %v1138_v27 = vmul.f32 %v6019_v2, %v1133_v32 }
 0x55f   :  { %1646 = vmatpush.bf16.xpose.msra.mxu2 %v1637_v58 }
 0x560   :  { %v1509_v52 = vpop.permute.xlu0 %1508  ;;  %v6115_v22 = vadd.f32 %v6026_v23, %v1138_v27  ;;  %v1562_v23 = vunpack.c.l.b16 %v5972_v28  ;;  %v1722_v28 = vsel %vm464_vm2, %v6072_v30, -inf }
 0x561   :  { %v1631_v19 = vunpack.c.l.b16 %v1509_v52 }
 0x562   :  { %v1145_v5 = vpack.c.bf16 %v6115_v22, %v6112_v11  ;;  %v1563_v41 = vpack.c.b16 %v1562_v23, %v1561_v35 }
 0x564   :  { %4696 = vmatmul.msk.bf16.gmra.mxu3 %vm152_vm0, %v1145_v5 }
 0x565   :  { %v1507_v29 = vpop.permute.xlu1 %1506 }
 0x566   :  { %v1630_v24 = vunpack.c.l.b16 %v1507_v29 }
 0x567   :  { %1936 = vmatpush.bf16.msrb.mxu2 %v1927_v20 }
 0x568   :  { %v1632_v2 = vpack.c.b16 %v1631_v19, %v1630_v24  ;;  %v6120_v44 = vpop.permute.xlu0 %1534 }
 0x569   :  { %v1683_v59 = vsel %vm260_vm1, %v6120_v44, 0 }
 0x56a   :  { %4752 = vmatmul.msk.bf16.vlgmr.msra.gmra.mxu2 %vm260_vm1, %v1632_v2 }
 0x56d   :  { %v6123_v45 = vpop.permute.xlu1 %1528 }
 0x56e   :  { %v1614_v36 = vsel %vm260_vm1, %v6123_v45, 0 }
 0x56f   :  { %1623 = vmatpush.bf16.xpose.msrb.mxu1 %v1614_v36 }
 0x570   :  { %v1505_v21 = vpop.permute.xlu0 %1504 }
 0x571   :  { %v1608_v49 = vunpack.c.l.b16 %v1505_v21  ;;  %v1584_v21 = vunpack.c.l.b16 %v6054_v34 }
 0x574   :  { %4749 = vmatmul.msk.bf16.vlgmr.msra.gmra.mxu3 %vm260_vm1, %v1563_v41 }
 0x575   :  { %v1503_v42 = vpop.permute.xlu1 %1502 }
 0x576   :  { %v1607_v55 = vunpack.c.l.b16 %v1503_v42 }
 0x578   :  { %v1609_v15 = vpack.c.b16 %v1608_v49, %v1607_v55  ;;  %v1511_v47 = vpop.permute.xlu0 %1510 }
 0x579   :  { %v1653_v33 = vunpack.c.l.b16 %v1511_v47 }
 0x57a   :  { %4751 = vmatmul.msk.bf16.vlgmr.msrb.gmra.mxu1 %vm260_vm1, %v1609_v15 }
 0x57b   :  { %v1655_v50 = vpack.c.b16 %v1654_v48, %v1653_v33 }
 0x57d   :  { %v6131_v13 = vpop.permute.xlu1 %1516 }
 0x57e   :  { %v1677_v34 = vunpack.c.l.b16 %v6131_v13 }
 0x57f   :  { %1723 = vmax.xlane.f32.xlu1 %v1722_v28 }
 0x580   :  { %v1519_v39 = vpop.permute.xlu0 %1518 }
 0x581   :  { %v1699_v26 = vunpack.c.l.b16 %v1519_v39 }
 0x583   :  { %v1701_v8 = vpack.c.b16 %v1700_v7, %v1699_v26 }
 0x584   :  { %4753 = vmatmul.msk.bf16.vlgmr.msrb.gmra.mxu3 %vm260_vm1, %v1655_v50 }
 0x585   :  { %v6137_v54 = vpop.permute.xlu1 %1536 }
 0x586   :  { %v1174_v56 = vpop.f32.mrf.mxu3  ;;  %v1706_v57 = vsel %vm260_vm1, %v6137_v54, 0 }
 0x587   :  { %1715 = vmatpush.bf16.xpose.msra.mxu1 %v1706_v57  ;;  %v1175_v53 = vadd.f32 %v5116_v60, %v1174_v56 }
 0x589   :  { %v1184_v37 = vmax.f32 %v1175_v53, 0.0 }
 0x58e   :  { %v1176_v3 = vpop.f32.mrf.mxu3  ;;  %4755 = vmatmul.msk.bf16.vlgmr.msra.gmra.mxu1 %vm260_vm1, %v1701_v8 }
 0x58f   :  { %v1177_v12 = vadd.f32 %v5116_v60, %v1176_v3 }
 0x591   :  { %v1185_v62 = vmax.f32 %v1177_v12, 0.0 }
 0x593   :  { %v1188_v1 = vpack.c.bf16 %v1185_v62, %v1184_v37 }
 0x595   :  { %1247 = vmatmul.bf16.vlgmr.msrb.gmra.mxu0 %v1188_v1 }
 0x596   :  { %1692 = vmatpush.bf16.xpose.msrb.mxu0 %v1683_v59 }
 0x5ab   :  { %v1727_v23 = vpop.xlane.xlu0 %1726 }
 0x5ac   :  { %v1771_v41 = vsub.f32 %v6083_v51, %v1727_v23  ;;  %v1676_v51 = vunpack.c.l.b16 %v6090_v46 }
 0x5ae   :  { %v1788_v55 = vmul.f32 1.442695, %v1771_v41  ;;  %v1678_v48 = vpack.c.b16 %v1677_v34, %v1676_v51 }
 0x5c7   :  { %v1980_v16 = vpop.permute.xlu1 %1979 }
 0x5c8   :  { %v1985_v49 = vsel %vm669_vm3, %v1980_v16, 0 }
 0x5e7   :  { %v1179_v4 = vpop.f32.mrf.mxu3 }
 0x5e8   :  { %v1180_v18 = vadd.f32 %v5116_v60, %v1179_v4 }
 0x5ea   :  { %v1186_v17 = vmax.f32 %v1180_v18, 0.0 }
 0x5ed   :  { %v1648_v6 = vpop.f32.mrf.mxu2 }
 0x5ee   :  { %v1746_v61 = vsel %vm464_vm2, %v1648_v6, -inf }
 0x5ef   :  { %v1181_v9 = vpop.f32.mrf.mxu3  ;;  %1747 = vmax.xlane.f32.xlu1 %v1746_v61 }
 0x5f0   :  { %v1182_v38 = vadd.f32 %v5116_v60, %v1181_v9 }
 0x5f2   :  { %v1187_v32 = vmax.f32 %v1182_v38, 0.0  ;;  %v1724_v0 = vpop.xlane.xlu1 %1723 }
 0x5f3   :  { %v1770_v58 = vsub.f32 %v6072_v30, %v1724_v0  ;;  %v1585_v30 = vunpack.c.l.b16 %v6100_v40 }
 0x5f4   :  { %v1189_v27 = vpack.c.bf16 %v1187_v32, %v1186_v17 }
 0x5f5   :  { %v1786_v20 = vmul.f32 1.442695, %v1770_v58  ;;  %v1650_v52 = vpop.f32.mrf.mxu2  ;;  %v1586_v42 = vpack.c.b16 %v1585_v30, %v1584_v21 }
 0x5f6   :  { %1252 = vmatmul.bf16.gmra.mxu0 %v1189_v27  ;;  %v1749_v5 = vsel %vm464_vm2, %v1650_v52, -inf }
 0x5f7   :  { %5210 = vpow2.f32 %v1786_v20  ;;  %1750 = vmax.xlane.f32.xlu0 %v1749_v5  ;;  %v1625_v29 = vpop.f32.mrf.mxu1  ;;  %v6166_v47 = vpop.f32.mrf.mxu3 }
 0x5f8   :  { %v1740_v19 = vsel %vm464_vm2, %v1625_v29, -inf  ;;  %5212 = vpow2.f32 %v1788_v55 }
 0x5f9   :  { %1741 = vmax.xlane.f32.xlu2 %v1740_v19 }
 0x5fd   :  { %v6152_v24 = vpop.eup %5210 }
 0x5fe   :  { %v1818_v2 = vsel %vm464_vm2, %v6152_v24, 0.0  ;;  %v6169_v33 = vpop.eup %5212 }
 0x5ff   :  { %v1627_v35 = vpop.f32.mrf.mxu1  ;;  %1819 = vadd.xlane.f32.xlu0 %v1818_v2  ;;  %v1821_v50 = vsel %vm464_vm2, %v6169_v33, 0.0  ;;  %v1581_v56 = vpop.f32.mrf.mxu3  ;;  %v1728_v2 = vsel %vm464_vm2, %v6166_v47, -inf }
 0x600   :  { %v1743_v36 = vsel %vm464_vm2, %v1627_v35, -inf  ;;  %v1731_v13 = vsel %vm464_vm2, %v1581_v56, -inf }
 0x601   :  { %1744 = vmax.xlane.f32.xlu1 %v1743_v36 }
 0x606   :  { %4750 = vmatmul.msk.bf16.vlgmr.msra.gmra.mxu0 %vm260_vm1, %v1586_v42 }
 0x607   :  { %1994 = vmatpush.bf16.msra.mxu0 %v1985_v49  ;;  %v6188_v59 = vpop.f32.mrf.mxu3 }
 0x60b   :  { %v6162_v15 = vpop.f32.mrf.mxu1 }
 0x60c   :  { %v1764_v40 = vsel %vm464_vm2, %v6162_v15, -inf }
 0x60d   :  { %1765 = vmax.xlane.f32.xlu2 %v1764_v40 }
 0x60f   :  { %v1673_v21 = vpop.f32.mrf.mxu3 }
 0x610   :  { %v1755_v40 = vsel %vm464_vm2, %v1673_v21, -inf }
 0x612   :  { %v6180_v57 = vpop.f32.mrf.mxu0 }
 0x613   :  { %v6172_v28 = vpop.f32.mrf.mxu1 }
 0x614   :  { %v1767_v39 = vsel %vm464_vm2, %v6172_v28, -inf }
 0x615   :  { %1822 = vadd.xlane.f32.xlu2 %v1821_v50  ;;  %1768 = vmax.xlane.f32.xlu1 %v1767_v39 }
 0x616   :  { %4754 = vmatmul.msk.bf16.vlgmr.msrb.gmra.mxu0 %vm260_vm1, %v1678_v48 }
 0x61a   :  { %v6182_v7 = vpop.f32.mrf.mxu0 }
 0x61d   :  { %1732 = vmax.xlane.f32.xlu2 %v1731_v13 }
 0x662   :  { %v1748_v46 = vpop.xlane.xlu1 %1747 }
 0x663   :  { %v1778_v26 = vsub.f32 %v1648_v6, %v1748_v46  ;;  %v1752_v6 = vsel %vm464_vm2, %v6188_v59, -inf }
 0x665   :  { %v1802_v60 = vmul.f32 1.442695, %v1778_v26 }
 0x667   :  { %5214 = vpow2.f32 %v1802_v60  ;;  %v1948_v60 = vunpack.c.l.b16 %v5963_v43 }
 0x66a   :  { %v1751_v8 = vpop.xlane.xlu0 %1750 }
 0x66b   :  { %v1779_v62 = vsub.f32 %v1650_v52, %v1751_v8  ;;  %v1949_v8 = vpack.c.b16 %v1948_v60, %v1948_v60 }
 0x66c   :  { %v1742_v53 = vpop.xlane.xlu2 %1741 }
 0x66d   :  { %v6184_v3 = vpop.eup %5214  ;;  %v1776_v12 = vsub.f32 %v1625_v29, %v1742_v53  ;;  %v1804_v4 = vmul.f32 1.442695, %v1779_v62 }
 0x66e   :  { %v1842_v37 = vsel %vm464_vm2, %v6184_v3, 0.0 }
 0x66f   :  { %v1798_v1 = vmul.f32 1.442695, %v1776_v12  ;;  %1843 = vadd.xlane.f32.xlu1 %v1842_v37  ;;  %v2006_v12 = vunpack.c.l.b16 %v6123_v45 }
 0x671   :  { %5216 = vpow2.f32 %v1798_v1  ;;  %v2007_v62 = vpack.c.b16 %v2006_v12, %v2006_v12 }
 0x672   :  { %5218 = vpow2.f32 %v1804_v4  ;;  %v1820_v0 = vpop.xlane.xlu0 %1819 }
 0x673   :  { %v6190_v16 = vpop.f32.mrf.mxu0  ;;  %5220 = vrcp.f32 %v1820_v0 }
 0x674   :  { %v1745_v61 = vpop.xlane.xlu1 %1744 }
 0x675   :  { %v1777_v38 = vsub.f32 %v1627_v35, %v1745_v61 }
 0x677   :  { %v6194_v18 = vpop.eup %5216  ;;  %1753 = vmax.xlane.f32.xlu1 %v1752_v6  ;;  %v1800_v58 = vmul.f32 1.442695, %v1777_v38 }
 0x678   :  { %v1836_v9 = vsel %vm464_vm2, %v6194_v18, 0.0  ;;  %v6200_v32 = vpop.eup %5218 }
 0x679   :  { %1837 = vadd.xlane.f32.xlu0 %v1836_v9  ;;  %v1845_v20 = vsel %vm464_vm2, %v6200_v32, 0.0  ;;  %5222 = vpow2.f32 %v1800_v58  ;;  %v5221_v29 = vpop.eup %5220 }
 0x67a   :  { %v1882_v23 = vmul.f32 %v5221_v29, %v6152_v24 }
 0x67b   :  { %v6198_v17 = vpop.f32.mrf.mxu0 }
 0x67c   :  { %v1898_v42 = vpack.c.bf16 %v1882_v23, %v1882_v23 }
 0x67e   :  { %v1916_v39 = vunpack.c.l.b16 %v1898_v42 }
 0x67f   :  { %v6210_v35 = vpop.eup %5222 }
 0x680   :  { %v1766_v27 = vpop.xlane.xlu2 %1765  ;;  %v1839_v36 = vsel %vm464_vm2, %v6210_v35, 0.0 }
 0x681   :  { %1846 = vadd.xlane.f32.xlu0 %v1845_v20  ;;  %v1784_v0 = vsub.f32 %v6162_v15, %v1766_v27 }
 0x683   :  { %v6204_v52 = vpop.f32.mrf.mxu0  ;;  %v1814_v20 = vmul.f32 1.442695, %v1784_v0 }
 0x684   :  { %v1734_v5 = vsel %vm464_vm2, %v6204_v52, -inf }
 0x685   :  { %1735 = vmax.xlane.f32.xlu2 %v1734_v5 }
 0x688   :  { %v1823_v19 = vpop.xlane.xlu2 %1822 }
 0x689   :  { %5224 = vrcp.f32 %v1823_v19  ;;  %1729 = vmax.xlane.f32.xlu0 %v1728_v2  ;;  %v2093_v2 = vunpack.c.l.b16 %v6120_v44 }
 0x68b   :  { %v6212_v30 = vpop.f32.mrf.mxu0 }
 0x68d   :  { %1840 = vadd.xlane.f32.xlu2 %v1839_v36  ;;  %v2035_v36 = vunpack.c.l.b16 %v6105_v25 }
 0x68f   :  { %v5225_v41 = vpop.eup %5224  ;;  %v2036_v42 = vpack.c.b16 %v2035_v36, %v2035_v36 }
 0x690   :  { %v1883_v49 = vmul.f32 %v5225_v41, %v6169_v33  ;;  %v1733_v55 = vpop.xlane.xlu2 %1732  ;;  %v2094_v41 = vpack.c.b16 %v2093_v2, %v2093_v2 }
 0x691   :  { %v1773_v34 = vsub.f32 %v1581_v56, %v1733_v55  ;;  %1756 = vmax.xlane.f32.xlu0 %v1755_v40 }
 0x692   :  { %v1899_v51 = vpack.c.bf16 %v1883_v49, %v1883_v49  ;;  %v1769_v49 = vpop.xlane.xlu1 %1768 }
 0x693   :  { %v1792_v48 = vmul.f32 1.442695, %v1773_v34  ;;  %v6219_v50 = vpop.f32.mrf.mxu0  ;;  %v1785_v34 = vsub.f32 %v6172_v28, %v1769_v49 }
 0x694   :  { %v1917_v24 = vunpack.c.l.b16 %v1899_v51  ;;  %v1758_v53 = vsel %vm464_vm2, %v6219_v50, -inf }
 0x695   :  { %5226 = vpow2.f32 %v1792_v48  ;;  %v1816_v48 = vmul.f32 1.442695, %v1785_v34 }
 0x696   :  { %v1918_v13 = vpack.c.b16 %v1917_v24, %v1916_v39 }
 0x698   :  { %4756 = vmatmul.msk.bf16.vlgmr.msrb.gmra.mxu2 %vm464_vm2, %v1918_v13 }
 0x69b   :  { %v6222_v46 = vpop.eup %5226  ;;  %v6224_v26 = vpop.f32.mrf.mxu0 }
 0x69c   :  { %v1827_v33 = vsel %vm464_vm2, %v6222_v46, 0.0  ;;  %v1761_v56 = vsel %vm464_vm2, %v6224_v26, -inf }
 0x69d   :  { %1828 = vadd.xlane.f32.xlu0 %v1827_v33  ;;  %1762 = vmax.xlane.f32.xlu2 %v1761_v56  ;;  %v6269_v56 = vld [vmem:[%s7326_s30 + $0x6] ss:$0 sm:$0xff] }
 0x6b1   :  { %1950 = vrot.lane.b32.xlu0 %v1949_v8, %s7332_s1 }
 0x6db   :  { %1759 = vmax.xlane.f32.xlu0 %v1758_v53 }
 0x6e2   :  { %v6259_v55 = vpop.xlane.xlu1 %1843 }
 0x6ea   :  { %v1754_v40 = vpop.xlane.xlu1 %1753 }
 0x6eb   :  { %v1780_v44 = vsub.f32 %v6188_v59, %v1754_v40  ;;  %v1254_v59 = vadd.f32 %v6269_v56, %v6190_v16  ;;  %v1256_v16 = vadd.f32 %v6269_v56, %v6198_v17 }
 0x6ec   :  { %v1838_v37 = vpop.xlane.xlu0 %1837 }
 0x6ed   :  { %v1806_v25 = vmul.f32 1.442695, %v1780_v44  ;;  %v6280_v53 = vadd.f32 %v1254_v59, %v6112_v11 }
 0x6ef   :  { %2008 = vrot.lane.b32.xlu0 %v2007_v62, %s7332_s1 }
 0x6f4   :  { %v6236_v1 = vpop.xlane.xlu0 %1846 }
 0x6f8   :  { %v1736_v51 = vpop.xlane.xlu2 %1735 }
 0x6f9   :  { %v1774_v39 = vsub.f32 %v6204_v52, %v1736_v51 }
 0x6fb   :  { %v1794_v33 = vmul.f32 1.442695, %v1774_v39 }
 0x6fc   :  { %v1730_v4 = vpop.xlane.xlu0 %1729 }
 0x6fd   :  { %v1772_v6 = vsub.f32 %v6166_v47, %v1730_v4  ;;  %v1737_v47 = vsel %vm464_vm2, %v6212_v30, -inf }
 0x6ff   :  { %v1790_v61 = vmul.f32 1.442695, %v1772_v6  ;;  %v1268_v6 = vsel %vm152_vm0, %v6280_v53, 0.0 }
 0x700   :  { %v1841_v24 = vpop.xlane.xlu2 %1840 }
 0x701   :  { %5228 = vpow2.f32 %v1790_v61 }
 0x704   :  { %v1757_v43 = vpop.xlane.xlu0 %1756 }
 0x705   :  { %v1781_v9 = vsub.f32 %v1673_v21, %v1757_v43 }
 0x707   :  { %v6239_v38 = vpop.eup %5228  ;;  %v1808_v58 = vmul.f32 1.442695, %v1781_v9  ;;  %v6293_v9 = vadd.f32 %v1256_v16, %v6115_v22 }
 0x708   :  { %v1824_v45 = vsel %vm464_vm2, %v6239_v38, 0.0 }
 0x709   :  { %5230 = vpow2.f32 %v1808_v58  ;;  %1825 = vadd.xlane.f32.xlu1 %v1824_v45  ;;  %v1271_v17 = vsel %vm152_vm0, %v6293_v9, 0.0 }
 0x70a   :  { %5232 = vpow2.f32 %v1814_v20 }
 0x70b   :  { %5234 = vpow2.f32 %v1816_v48 }
 0x70c   :  { %5236 = vpow2.f32 %v1806_v25 }
 0x70d   :  { %5238 = vrcp.f32 %v1841_v24 }
 0x70e   :  { %5240 = vrcp.f32 %v1838_v37 }
 0x70f   :  { %v6244_v5 = vpop.eup %5230  ;;  %5242 = vpow2.f32 %v1794_v33 }
 0x710   :  { %v1851_v29 = vsel %vm464_vm2, %v6244_v5, 0.0  ;;  %v6250_v19 = vpop.eup %5232  ;;  %v1829_v27 = vpop.xlane.xlu0 %1828 }
 0x711   :  { %1738 = vmax.xlane.f32.xlu1 %v1737_v47  ;;  %1852 = vadd.xlane.f32.xlu2 %v1851_v29  ;;  %v1860_v15 = vsel %vm464_vm2, %v6250_v19, 0.0  ;;  %v6264_v13 = vpop.eup %5234  ;;  %v2064_v47 = vunpack.c.l.b16 %v6062_v14  ;;  %5244 = vrcp.f32 %v1829_v27  ;;  %v1763_v22 = vpop.xlane.xlu2 %1762 }
 0x712   :  { %v6271_v28 = vpop.eup %5236  ;;  %v1863_v60 = vsel %vm464_vm2, %v6264_v13, 0.0 }
 0x713   :  { %v1848_v52 = vsel %vm464_vm2, %v6271_v28, 0.0  ;;  %v5239_v8 = vpop.eup %5238  ;;  %v2065_v29 = vpack.c.b16 %v2064_v47, %v2064_v47 }
 0x714   :  { %v5241_v12 = vpop.eup %5240  ;;  %v1889_v4 = vmul.f32 %v5239_v8, %v6210_v35 }
 0x715   :  { %v6282_v62 = vpop.eup %5242  ;;  %v1888_v61 = vmul.f32 %v5241_v12, %v6194_v18 }
 0x716   :  { %v1830_v43 = vsel %vm464_vm2, %v6282_v62, 0.0  ;;  %v1905_v11 = vpack.c.bf16 %v1889_v4, %v1889_v4 }
 0x717   :  { %v1904_v0 = vpack.c.bf16 %v1888_v61, %v1888_v61  ;;  %v5245_v2 = vpop.eup %5244 }
 0x718   :  { %v2004_v35 = vunpack.c.l.b16 %v1905_v11 }
 0x719   :  { %1861 = vadd.xlane.f32.xlu0 %v1860_v15  ;;  %v2003_v45 = vunpack.c.l.b16 %v1904_v0 }
 0x71b   :  { %v2005_v18 = vpack.c.b16 %v2004_v35, %v2003_v45 }
 0x723   :  { %v1951_v23 = vpop.permute.xlu0 %1950 }
 0x724   :  { %v1956_v21 = vsel %vm669_vm3, %v1951_v23, 0  ;;  %v1885_v23 = vmul.f32 %v5245_v2, %v6222_v46 }
 0x725   :  { %1965 = vmatpush.bf16.msra.mxu3 %v1956_v21 }
 0x726   :  { %v1901_v21 = vpack.c.bf16 %v1885_v23, %v1885_v23 }
 0x728   :  { %v1946_v51 = vunpack.c.l.b16 %v1901_v21 }
 0x729   :  { %2095 = vrot.lane.b32.xlu2 %v2094_v41, %s7332_s1 }
 0x72a   :  { %2037 = vrot.lane.b32.xlu1 %v2036_v42, %s7332_s1 }
 0x74e   :  { %v1760_v37 = vpop.xlane.xlu0 %1759 }
 0x74f   :  { %v1782_v14 = vsub.f32 %v6219_v50, %v1760_v37  ;;  %v1783_v50 = vsub.f32 %v6224_v26, %v1763_v22 }
 0x751   :  { %v1810_v25 = vmul.f32 1.442695, %v1782_v14 }
 0x752   :  { %1864 = vadd.xlane.f32.xlu2 %v1863_v60 }
 0x754   :  { %1849 = vadd.xlane.f32.xlu1 %v1848_v52  ;;  %v1249_v52 = vadd.f32 %v6269_v56, %v6180_v57 }
 0x756   :  { %v6323_v4 = vadd.f32 %v1249_v52, %v6032_v63  ;;  %v2122_v63 = vunpack.c.l.b16 %v6137_v54 }
 0x758   :  { %v1262_v57 = vsel %vm152_vm0, %v6323_v4, 0.0  ;;  %v2123_v11 = vpack.c.b16 %v2122_v63, %v2122_v63 }
 0x75a   :  { %1269 = vadd.xlane.f32.xlu2 %v1268_v6 }
 0x75c   :  { %1831 = vadd.xlane.f32.xlu1 %v1830_v43 }
 0x761   :  { %v2009_v58 = vpop.permute.xlu0 %2008 }
 0x762   :  { %v2014_v20 = vsel %vm669_vm3, %v2009_v58, 0  ;;  %1272 = vadd.xlane.f32.xlu2 %v1271_v17  ;;  %v1251_v58 = vadd.f32 %v6269_v56, %v6182_v7 }
 0x763   :  { %2023 = vmatpush.bf16.msrb.mxu1 %v2014_v20 }
 0x764   :  { %v6339_v20 = vadd.f32 %v1251_v58, %v6035_v31 }
 0x766   :  { %4759 = vmatmul.msk.bf16.vlgmr.msrb.gmra.mxu1 %vm464_vm2, %v2005_v18  ;;  %v1265_v22 = vsel %vm152_vm0, %v6339_v20, 0.0 }
 0x775   :  { %2066 = vrot.lane.b32.xlu1 %v2065_v29, %s7332_s1 }
 0x77c   :  { %v1826_v15 = vpop.xlane.xlu1 %1825 }
 0x77d   :  { %5246 = vrcp.f32 %v1826_v15 }
 0x783   :  { %v5247_v36 = vpop.eup %5246 }
 0x784   :  { %v1884_v41 = vmul.f32 %v5247_v36, %v6239_v38  ;;  %v1853_v42 = vpop.xlane.xlu2 %1852  ;;  %v1739_v49 = vpop.xlane.xlu1 %1738 }
 0x785   :  { %v1775_v40 = vsub.f32 %v6212_v30, %v1739_v49 }
 0x786   :  { %v1900_v34 = vpack.c.bf16 %v1884_v41, %v1884_v41 }
 0x787   :  { %v1796_v44 = vmul.f32 1.442695, %v1775_v40 }
 0x788   :  { %v1945_v27 = vunpack.c.l.b16 %v1900_v34 }
 0x789   :  { %5248 = vpow2.f32 %v1796_v44 }
 0x78a   :  { %5250 = vrcp.f32 %v6236_v1  ;;  %v1947_v48 = vpack.c.b16 %v1946_v51, %v1945_v27 }
 0x78b   :  { %5252 = vrcp.f32 %v6259_v55  ;;  %v1812_v55 = vmul.f32 1.442695, %v1783_v50 }
 0x78c   :  { %v2096_v46 = vpop.permute.xlu2 %2095  ;;  %4757 = vmatmul.msk.bf16.vlgmr.msra.gmra.mxu3 %vm464_vm2, %v1947_v48  ;;  %5254 = vpow2.f32 %v1810_v25  ;;  %v1862_v34 = vpop.xlane.xlu0 %1861 }
 0x78d   :  { %v2101_v38 = vsel %vm669_vm3, %v2096_v46, 0  ;;  %5256 = vpow2.f32 %v1812_v55 }
 0x78e   :  { %2110 = vmatpush.bf16.msrb.mxu0 %v2101_v38 }
 0x78f   :  { %v6309_v30 = vpop.eup %5248 }
 0x790   :  { %v5251_v39 = vpop.eup %5250  ;;  %v1833_v24 = vsel %vm464_vm2, %v6309_v30, 0.0 }
 0x791   :  { %1834 = vadd.xlane.f32.xlu0 %v1833_v24  ;;  %v5253_v1 = vpop.eup %5252  ;;  %v1891_v33 = vmul.f32 %v5251_v39, %v6200_v32 }
 0x792   :  { %v6315_v59 = vpop.eup %5254  ;;  %v1890_v60 = vmul.f32 %v5253_v1, %v6184_v3  ;;  %v5051_v1 = vld [vmem:[%s7285_s13 + $0x10] sm:$0xff] }
 0x793   :  { %v1907_v8 = vpack.c.bf16 %v1891_v33, %v1891_v33  ;;  %v1854_v26 = vsel %vm464_vm2, %v6315_v59, 0.0  ;;  %v6325_v37 = vpop.eup %5256 }
 0x794   :  { %v1906_v12 = vpack.c.bf16 %v1890_v60, %v1890_v60  ;;  %v1857_v43 = vsel %vm464_vm2, %v6325_v37, 0.0 }
 0x795   :  { %v2033_v16 = vunpack.c.l.b16 %v1907_v8 }
 0x796   :  { %v2032_v6 = vunpack.c.l.b16 %v1906_v12 }
 0x798   :  { %v2034_v61 = vpack.c.b16 %v2033_v16, %v2032_v6 }
 0x799   :  { %1855 = vadd.xlane.f32.xlu0 %v1854_v26 }
 0x79c   :  { %v2038_v32 = vpop.permute.xlu1 %2037 }
 0x79d   :  { %v2043_v3 = vsel %vm669_vm3, %v2038_v32, 0 }
 0x79e   :  { %2052 = vmatpush.bf16.msra.mxu2 %v2043_v3 }
 0x79f   :  { %1263 = vadd.xlane.f32.xlu1 %v1262_v57 }
 0x7a1   :  { %1858 = vadd.xlane.f32.xlu0 %v1857_v43  ;;  %4760 = vmatmul.msk.bf16.vlgmr.msra.gmra.mxu2 %vm464_vm2, %v2034_v61 }
 0x7b5   :  { %2124 = vrot.lane.b32.xlu0 %v2123_v11, %s7332_s1 }
 0x7c5   :  { %v1865_v0 = vpop.xlane.xlu2 %1864 }
 0x7c7   :  { %v1850_v35 = vpop.xlane.xlu1 %1849 }
 0x7c8   :  { %5258 = vrcp.f32 %v1850_v35 }
 0x7c9   :  { %5260 = vrcp.f32 %v1853_v42 }
 0x7cd   :  { %v1270_v17 = vpop.xlane.xlu2 %1269 }
 0x7ce   :  { %v1276_v45 = vmul.f32 %v1270_v17, %v5930_v10  ;;  %v5259_v18 = vpop.eup %5258 }
 0x7cf   :  { %v5261_v47 = vpop.eup %5260  ;;  %v1892_v54 = vmul.f32 %v5259_v18, %v6271_v28  ;;  %v1832_v15 = vpop.xlane.xlu1 %1831  ;;  %v5049_v28 = vld [vmem:[%s7285_s13] sm:$0xff] }
 0x7d0   :  { %v6343_v29 = vsub.f32 %v6280_v53, %v1276_v45  ;;  %v1893_v7 = vmul.f32 %v5261_v47, %v6244_v5  ;;  %v1938_v5 = vpop.f32.mrf.mxu2  ;;  %5262 = vrcp.f32 %v1832_v15 }
 0x7d1   :  { %v1908_v56 = vpack.c.bf16 %v1892_v54, %v1892_v54 }
 0x7d2   :  { %v1284_v2 = vmul.f32 %v6343_v29, %v6343_v29  ;;  %v1909_v31 = vpack.c.bf16 %v1893_v7, %v1893_v7 }
 0x7d3   :  { %v2061_v23 = vunpack.c.l.b16 %v1908_v56 }
 0x7d4   :  { %v1292_v36 = vsel %vm152_vm0, %v1284_v2, 0.0  ;;  %v2062_v21 = vunpack.c.l.b16 %v1909_v31  ;;  %v91_v31 = vld [vmem:[%s7286_s5 + $0x8] sm:$0xff] }
 0x7d5   :  { %v1273_v33 = vpop.xlane.xlu2 %1272 }
 0x7d6   :  { %v2063_v42 = vpack.c.b16 %v2062_v21, %v2061_v23  ;;  %v5263_v44 = vpop.eup %5262  ;;  %v1277_v8 = vmul.f32 %v1273_v33, %v5930_v10  ;;  %v5411_v23 = vmov 0  }
 0x7d7   :  { %v1886_v51 = vmul.f32 %v5263_v44, %v6282_v62  ;;  %5105 = vset.pattern.permute.xlu0 %v5411_v23  ;;  %5104 = vset.pattern.permute.xlu2 %v5411_v23 }
 0x7d8   :  { %v1940_v49 = vpop.f32.mrf.mxu2  ;;  %v6372_v3 = vsub.f32 %v6293_v9, %v1277_v8  ;;  %5106 = vset.pattern.permute.xlu1 %v5411_v23  ;;  %v5063_v8 = vld [vmem:[%s7287_s16] sm:$0xff] }
 0x7d9   :  { %v2146_v40 = vpack.c.bf16 %v1940_v49, %v1938_v5  ;;  %v1902_v48 = vpack.c.bf16 %v1886_v51, %v1886_v51  ;;  %v90_v5 = vld [vmem:[%s7286_s5] sm:$0xff] }
 0x7db   :  { %v1974_v39 = vunpack.c.l.b16 %v1902_v48 }
 0x7df   :  { %1266 = vadd.xlane.f32.xlu0 %v1265_v22 }
 0x7e7   :  { %1293 = vadd.xlane.f32.xlu0 %v1292_v36  ;;  %v2067_v53 = vpop.permute.xlu1 %2066 }
 0x7e8   :  { %v2072_v41 = vsel %vm669_vm3, %v2067_v53, 0 }
 0x7e9   :  { %2081 = vmatpush.bf16.msrb.mxu3 %v2072_v41 }
 0x7ec   :  { %4761 = vmatmul.msk.bf16.vlgmr.msrb.gmra.mxu3 %vm464_vm2, %v2063_v42 }
 0x7ed   :  { %2200 = vmatpush.bf16.msra.mxu3 %v5049_v28 }
 0x7fb   :  { %1367 = vperm.xlu0 %5105, %v91_v31  }
 0x7fc   :  { %4774 = vmatmul.msk.bf16.vlgmr.msra.gmra.mxu3 %vm260_vm1, %v2146_v40 }
 0x804   :  { %v1835_v14 = vpop.xlane.xlu0 %1834 }
 0x805   :  { %5264 = vrcp.f32 %v1835_v14 }
 0x80b   :  { %v5265_v27 = vpop.eup %5264 }
 0x80c   :  { %v1887_v25 = vmul.f32 %v5265_v27, %v6309_v30  ;;  %v1856_v46 = vpop.xlane.xlu0 %1855  ;;  %v2025_v27 = vpop.f32.mrf.mxu1 }
 0x80d   :  { %5266 = vrcp.f32 %v1856_v46 }
 0x80e   :  { %v1903_v38 = vpack.c.bf16 %v1887_v25, %v1887_v25  ;;  %5268 = vrcp.f32 %v1865_v0  ;;  %v1285_v0 = vmul.f32 %v6372_v3, %v6372_v3 }
 0x80f   :  { %v1967_v50 = vpop.f32.mrf.mxu3 }
 0x810   :  { %v1975_v24 = vunpack.c.l.b16 %v1903_v38  ;;  %v1295_v45 = vsel %vm152_vm0, %v1285_v0, 0.0 }
 0x812   :  { %v1976_v55 = vpack.c.b16 %v1975_v24, %v1974_v39  ;;  %v1264_v60 = vpop.xlane.xlu1 %1263 }
 0x813   :  { %v1274_v52 = vmul.f32 %v1264_v60, %v5930_v10  ;;  %v5267_v30 = vpop.eup %5266 }
 0x814   :  { %v1859_v62 = vpop.xlane.xlu0 %1858  ;;  %4758 = vmatmul.msk.bf16.vlgmr.msra.gmra.mxu0 %vm464_vm2, %v1976_v55  ;;  %v1894_v32 = vmul.f32 %v5267_v30, %v6315_v59  ;;  %v5269_v61 = vpop.eup %5268 }
 0x815   :  { %v6366_v26 = vsub.f32 %v6323_v4, %v1274_v52  ;;  %5270 = vrcp.f32 %v1859_v62  ;;  %2233 = vmatpush.bf16.msra.mxu0 %v5051_v1  ;;  %v1897_v59 = vmul.f32 %v5269_v61, %v6264_v13  ;;  %v2027_v25 = vpop.f32.mrf.mxu1  ;;  %v5064_v52 = vld [vmem:[%s7287_s16 + $0x8] sm:$0xff] }
 0x816   :  { %5272 = vrcp.f32 %v1862_v34  ;;  %v1910_v43 = vpack.c.bf16 %v1894_v32, %v1894_v32  ;;  %v5050_v34 = vld [vmem:[%s7285_s13 + $0x8] sm:$0xff]  ;;  %v2149_v38 = vpack.c.bf16 %v2027_v25, %v2025_v27 }
 0x817   :  { %v1969_v12 = vpop.f32.mrf.mxu3  ;;  %v1282_v16 = vmul.f32 %v6366_v26, %v6366_v26  ;;  %v1913_v18 = vpack.c.bf16 %v1897_v59, %v1897_v59  ;;  %2169 = vmatpush.bf16.msrb.mxu2 %v5050_v34 }
 0x818   :  { %v2147_v6 = vpack.c.bf16 %v1969_v12, %v1967_v50  ;;  %v2090_v58 = vunpack.c.l.b16 %v1910_v43 }
 0x819   :  { %v1286_v57 = vsel %vm152_vm0, %v1282_v16, 0.0  ;;  %v2120_v22 = vunpack.c.l.b16 %v1913_v18 }
 0x81a   :  { %4775 = vmatmul.msk.bf16.gmra.mxu3 %vm260_vm1, %v2147_v6  ;;  %1287 = vadd.xlane.f32.xlu1 %v1286_v57 }
 0x81b   :  { %v5271_v4 = vpop.eup %5270 }
 0x81c   :  { %v1895_v63 = vmul.f32 %v5271_v4, %v6325_v37  ;;  %v5273_v11 = vpop.eup %5272 }
 0x81d   :  { %v1896_v9 = vmul.f32 %v5273_v11, %v6250_v19 }
 0x81e   :  { %v1911_v35 = vpack.c.bf16 %v1895_v63, %v1895_v63 }
 0x81f   :  { %v1912_v54 = vpack.c.bf16 %v1896_v9, %v1896_v9 }
 0x820   :  { %v2091_v17 = vunpack.c.l.b16 %v1911_v35 }
 0x821   :  { %v2119_v7 = vunpack.c.l.b16 %v1912_v54 }
 0x822   :  { %v2092_v47 = vpack.c.b16 %v2091_v17, %v2090_v58  ;;  %1296 = vadd.xlane.f32.xlu1 %v1295_v45  ;;  %v136_v58 = vld [vmem:[%s7326_s30 + $0x7] sm:$0x3] }
 0x823   :  { %v2121_v13 = vpack.c.b16 %v2120_v22, %v2119_v7  ;;  %v6424_v18 = vperm.slane %v136_v58, 0  ;;  %v6428_v22 = vperm.slane %v136_v58, 1 }
 0x824   :  { %4762 = vmatmul.msk.bf16.vlgmr.msrb.gmra.mxu0 %vm464_vm2, %v2092_v47  ;;  %v2054_v37 = vpop.f32.mrf.mxu2 }
 0x825   :  { %2679 = vmatpush.bf16.msrb.mxu0 %v5064_v52 }
 0x827   :  { %v2125_v15 = vpop.permute.xlu0 %2124 }
 0x828   :  { %v2130_v56 = vsel %vm669_vm3, %v2125_v15, 0 }
 0x829   :  { %2139 = vmatpush.bf16.msra.mxu1 %v2130_v56  ;;  %2680 = vmatpush.bf16.msrb.mxu0 %v5063_v8 }
 0x82c   :  { %4763 = vmatmul.msk.bf16.vlgmr.msra.gmra.mxu1 %vm464_vm2, %v2121_v13  ;;  %v2056_v19 = vpop.f32.mrf.mxu2 }
 0x82d   :  { %v2212_v2 = vpack.c.bf16 %v2056_v19, %v2054_v37 }
 0x834   :  { %4780 = vmatmul.msk.bf16.vlgmr.msra.gmra.mxu0 %vm260_vm1, %v2212_v2 }
 0x852   :  { %v1267_v36 = vpop.xlane.xlu0 %1266 }
 0x853   :  { %v1275_v28 = vmul.f32 %v1267_v36, %v5930_v10 }
 0x855   :  { %v6391_v53 = vsub.f32 %v6339_v20, %v1275_v28  ;;  %v5052_v20 = vld [vmem:[%s7285_s13 + $0x18] sm:$0xff] }
 0x856   :  { %2270 = vmatpush.bf16.msrb.mxu1 %v5052_v20 }
 0x857   :  { %v1283_v21 = vmul.f32 %v6391_v53, %v6391_v53 }
 0x859   :  { %v1289_v41 = vsel %vm152_vm0, %v1283_v21, 0.0 }
 0x85a   :  { %1290 = vadd.xlane.f32.xlu2 %v1289_v41  ;;  %v6418_v35 = vpop.xlane.xlu0 %1293 }
 0x86d   :  { %v6433_v56 = vpop.permute.xlu0 %1367 }
 0x86f   :  { %v2083_v42 = vpop.f32.mrf.mxu3 }
 0x872   :  { %1362 = vperm.xlu2 %5104, %v90_v5  }
 0x877   :  { %v2085_v49 = vpop.f32.mrf.mxu3 }
 0x878   :  { %v2213_v40 = vpack.c.bf16 %v2085_v49, %v2083_v42  ;;  %v5118_v42 = vld [vmem:[%s7326_s30 + $0xb] ss:$0 sm:$0xff] }
 0x87a   :  { %4781 = vmatmul.msk.bf16.gmra.mxu0 %vm260_vm1, %v2213_v40 }
 0x87f   :  { %v2202_v23 = vpop.f32.mrf.mxu3 }
 0x887   :  { %v2204_v5 = vpop.f32.mrf.mxu3 }
 0x88d   :  { %v1288_v24 = vpop.xlane.xlu1 %1287 }
 0x88e   :  { %v1298_v33 = vmul.f32 %v1288_v24, %v5930_v10 }
 0x890   :  { %v1302_v60 = vadd.f32 1e-05, %v1298_v33  ;;  %v5401_v33 = vld [vmem:[%s7324_s25 + $0x8] sm:$0xff] }
 0x891   :  { %v1996_v14 = vpop.f32.mrf.mxu0 }
 0x892   :  { %5274 = vrsqrt.f32 %v1302_v60  ;;  %vm1312_vm6 = vweird.f32 %v1302_v60 }
 0x898   :  { %v5275_v62 = vpop.eup %5274 }
 0x899   :  { %v1998_v44 = vpop.f32.mrf.mxu0  ;;  %v1307_v30 = vmul.f32 %v5275_v62, %v1302_v60  ;;  %vm1313_vm5 = vweird.f32 %v5275_v62 }
 0x89a   :  { %v2148_v51 = vpack.c.bf16 %v1998_v44, %v1996_v14  ;;  %vm1314_vm7 = vmor %vm1312_vm6, %vm1313_vm5  ;;  %v5400_v44 = vld [vmem:[%s7324_s25] sm:$0xff] }
 0x89b   :  { %v1308_v12 = vmul.f32 %v5275_v62, %v1307_v30 }
 0x89c   :  { %4768 = vmatmul.msk.bf16.vlgmr.msrb.gmra.mxu2 %vm260_vm1, %v2148_v51 }
 0x89d   :  { %v1309_v57 = vmul.f32 0.5, %v1308_v12 }
 0x89f   :  { %v1310_v61 = vsub.f32 1.5, %v1309_v57 }
 0x8a1   :  { %v2112_v48 = vpop.f32.mrf.mxu0  ;;  %v1311_v43 = vmul.f32 %v5275_v62, %v1310_v61 }
 0x8a3   :  { %v1315_v59 = vsel %vm1314_vm7, %v5275_v62, %v1311_v43 }
 0x8a4   :  { %v1346_v17 = vmul.f32 %v1315_v59, %v6366_v26  ;;  %v5403_v59 = vld [vmem:[%s7324_s25 + $0x18] sm:$0xff] }
 0x8a6   :  { %v1351_v54 = vmul.f32 %v6424_v18, %v1346_v17  ;;  %v93_v17 = vld [vmem:[%s7286_s5 + $0x18] sm:$0xff] }
 0x8a8   :  { %v1356_v26 = vadd.f32 %v6428_v22, %v1351_v54 }
 0x8a9   :  { %v2114_v46 = vpop.f32.mrf.mxu0  ;;  %v2141_v39 = vpop.f32.mrf.mxu1 }
 0x8aa   :  { %v2249_v50 = vpack.c.bf16 %v2114_v46, %v2112_v48  ;;  %v2207_v46 = vpop.f32.mrf.mxu3 }
 0x8ac   :  { %4769 = vmatmul.msk.bf16.gmra.mxu2 %vm260_vm1, %v2149_v38  ;;  %4786 = vmatmul.msk.bf16.vlgmr.msrb.gmra.mxu1 %vm260_vm1, %v2249_v50 }
 0x8b1   :  { %v2143_v1 = vpop.f32.mrf.mxu1  ;;  %v2235_v28 = vpop.f32.mrf.mxu0 }
 0x8b2   :  { %v2250_v55 = vpack.c.bf16 %v2143_v1, %v2141_v39  ;;  %v2209_v12 = vpop.f32.mrf.mxu3 }
 0x8b9   :  { %v2237_v14 = vpop.f32.mrf.mxu0 }
 0x8bc   :  { %4787 = vmatmul.msk.bf16.gmra.mxu1 %vm260_vm1, %v2250_v55 }
 0x8cd   :  { %v1291_v16 = vpop.xlane.xlu2 %1290 }
 0x8ce   :  { %v1299_v32 = vmul.f32 %v1291_v16, %v5930_v10 }
 0x8d0   :  { %v1303_v6 = vadd.f32 1e-05, %v1299_v32 }
 0x8d2   :  { %5276 = vrsqrt.f32 %v1303_v6  ;;  %vm1322_vm9 = vweird.f32 %v1303_v6 }
 0x8d5   :  { %v6431_v7 = vpop.permute.xlu2 %1362 }
 0x8d6   :  { %v1380_v19 = vmul.f32 %v6431_v7, %v1356_v26 }
 0x8d8   :  { %v5277_v4 = vpop.eup %5276 }
 0x8d9   :  { %v1317_v63 = vmul.f32 %v5277_v4, %v1303_v6  ;;  %vm1323_vm8 = vweird.f32 %v5277_v4  ;;  %v5402_v6 = vld [vmem:[%s7324_s25 + $0x10] sm:$0xff] }
 0x8da   :  { %vm1324_vm10 = vmor %vm1322_vm9, %vm1323_vm8 }
 0x8db   :  { %v1318_v11 = vmul.f32 %v5277_v4, %v1317_v63 }
 0x8dd   :  { %v1319_v0 = vmul.f32 0.5, %v1318_v11 }
 0x8df   :  { %v1320_v9 = vsub.f32 1.5, %v1319_v0 }
 0x8e1   :  { %v1321_v45 = vmul.f32 %v5277_v4, %v1320_v9 }
 0x8e3   :  { %v1325_v47 = vsel %vm1324_vm10, %v5277_v4, %v1321_v45 }
 0x8e4   :  { %v1347_v37 = vmul.f32 %v1325_v47, %v6391_v53  ;;  %v6465_v47 = vld [vmem:[%s7326_s30 + $0x12] ss:$0 sm:$0xff] }
 0x8e6   :  { %v1352_v15 = vmul.f32 %v6424_v18, %v1347_v37 }
 0x8e8   :  { %v1357_v13 = vadd.f32 %v6428_v22, %v1352_v15 }
 0x8ea   :  { %v1381_v2 = vmul.f32 %v6433_v56, %v1357_v13 }
 0x8ec   :  { %v2652_v31 = vpack.c.bf16 %v1381_v2, %v1380_v19 }
 0x8ee   :  { %4838 = vmatmul.msk.bf16.vlgmr.msrb.gmra.mxu0 %vm152_vm0, %v2652_v31 }
 0x8f7   :  { %v2240_v1 = vpop.f32.mrf.mxu0 }
 0x8ff   :  { %v2242_v61 = vpop.f32.mrf.mxu0 }
 0x91f   :  { %v2171_v36 = vpop.f32.mrf.mxu2 }
 0x920   :  { %v2203_v53 = vadd.f32 %v2202_v23, %v2171_v36 }
 0x922   :  { %v2245_v41 = vadd.f32 %v2235_v28, %v2203_v53 }
 0x927   :  { %v2173_v21 = vpop.f32.mrf.mxu2 }
 0x928   :  { %v2205_v34 = vadd.f32 %v2204_v5, %v2173_v21 }
 0x929   :  { %v2272_v49 = vpop.f32.mrf.mxu1 }
 0x92a   :  { %v2282_v40 = vadd.f32 %v2272_v49, %v2245_v41  ;;  %v2246_v48 = vadd.f32 %v2237_v14, %v2205_v34 }
 0x92c   :  { %v2287_v20 = vadd.f32 %v5118_v42, %v2282_v40 }
 0x92e   :  { %v2291_v51 = vadd.f32 %v5400_v44, %v2287_v20 }
 0x92f   :  { %v2176_v27 = vpop.f32.mrf.mxu2 }
 0x930   :  { %v2295_v25 = vsel %vm152_vm0, %v2291_v51, 0.0  ;;  %v2208_v39 = vadd.f32 %v2207_v46, %v2176_v27 }
 0x931   :  { %v2274_v38 = vpop.f32.mrf.mxu1  ;;  %2296 = vadd.xlane.f32.xlu2 %v2295_v25 }
 0x932   :  { %v2283_v50 = vadd.f32 %v2274_v38, %v2246_v48  ;;  %v2247_v60 = vadd.f32 %v2240_v1, %v2208_v39  ;;  %v1300_v1 = vmul.f32 %v6418_v35, %v5930_v10 }
 0x934   :  { %v2288_v24 = vadd.f32 %v5118_v42, %v2283_v50 }
 0x936   :  { %v2292_v55 = vadd.f32 %v5401_v33, %v2288_v24  ;;  %v92_v24 = vld [vmem:[%s7286_s5 + $0x10] sm:$0xff] }
 0x937   :  { %v2178_v62 = vpop.f32.mrf.mxu2 }
 0x938   :  { %v2298_v52 = vsel %vm152_vm0, %v2292_v55, 0.0  ;;  %v2210_v16 = vadd.f32 %v2209_v12, %v2178_v62 }
 0x939   :  { %v2277_v30 = vpop.f32.mrf.mxu1  ;;  %2299 = vadd.xlane.f32.xlu2 %v2298_v52 }
 0x93a   :  { %v2284_v8 = vadd.f32 %v2277_v30, %v2247_v60  ;;  %v2248_v4 = vadd.f32 %v2242_v61, %v2210_v16 }
 0x93c   :  { %v2289_v32 = vadd.f32 %v5118_v42, %v2284_v8  ;;  %v5054_v8 = vld [vmem:[%s7288_s14 + $0x8] sm:$0xff] }
 0x93d   :  { %2420 = vmatpush.bf16.msra.mxu2 %v5054_v8 }
 0x93e   :  { %v2293_v57 = vadd.f32 %v5402_v6, %v2289_v32 }
 0x940   :  { %v2301_v43 = vsel %vm152_vm0, %v2293_v57, 0.0 }
 0x941   :  { %v2279_v63 = vpop.f32.mrf.mxu1  ;;  %2302 = vadd.xlane.f32.xlu1 %v2301_v43 }
 0x942   :  { %v2285_v11 = vadd.f32 %v2279_v63, %v2248_v4 }
 0x944   :  { %v2290_v0 = vadd.f32 %v5118_v42, %v2285_v11  ;;  %v1297_v42 = vpop.xlane.xlu1 %1296 }
 0x945   :  { %v1301_v33 = vmul.f32 %v1297_v42, %v5930_v10 }
 0x946   :  { %v2294_v9 = vadd.f32 %v5403_v59, %v2290_v0 }
 0x947   :  { %v1305_v60 = vadd.f32 1e-05, %v1301_v33 }
 0x948   :  { %v2304_v58 = vsel %vm152_vm0, %v2294_v9, 0.0 }
 0x949   :  { %2305 = vadd.xlane.f32.xlu2 %v2304_v58  ;;  %vm1342_vm15 = vweird.f32 %v1305_v60 }
 0x961   :  { %1377 = vperm.xlu2 %5104, %v93_v17  }
 0x96b   :  { %v2682_v45 = vpop.f32.mrf.mxu0 }
 0x96c   :  { %v2683_v54 = vadd.f32 %v6465_v47, %v2682_v45 }
 0x96e   :  { %v6468_v15 = vpack.c.bf16 %v2683_v54, %v2683_v54 }
 0x970   :  { %v2728_v19 = vunpack.c.l.b16 %v6468_v15 }
 0x973   :  { %v2684_v37 = vpop.f32.mrf.mxu0 }
 0x974   :  { %v2685_v26 = vadd.f32 %v6465_v47, %v2684_v37 }
 0x976   :  { %v6471_v13 = vpack.c.bf16 %v2685_v26, %v2685_v26 }
 0x978   :  { %v2729_v2 = vunpack.c.l.b16 %v6471_v13 }
 0x97a   :  { %v6475_v31 = vpack.c.b16 %v2729_v2, %v2728_v19 }
 0x97c   :  { %v2735_v23 = vsel %vm464_vm2, %v6475_v31, 0 }
 0x97d   :  { %2744 = vmatpush.bf16.xpose.msra.mxu1 %v2735_v23 }
 0x9a4   :  { %v2297_v36 = vpop.xlane.xlu2 %2296 }
 0x9a5   :  { %v2307_v28 = vmul.f32 %v2297_v36, %v5930_v10 }
 0x9a7   :  { %v6480_v53 = vsub.f32 %v2291_v51, %v2307_v28 }
 0x9a9   :  { %v2315_v21 = vmul.f32 %v6480_v53, %v6480_v53 }
 0x9ab   :  { %v2319_v41 = vsel %vm152_vm0, %v2315_v21, 0.0 }
 0x9ac   :  { %v2300_v5 = vpop.xlane.xlu2 %2299  ;;  %2320 = vadd.xlane.f32.xlu1 %v2319_v41 }
 0x9ad   :  { %v2308_v49 = vmul.f32 %v2300_v5, %v5930_v10 }
 0x9af   :  { %v6486_v40 = vsub.f32 %v2292_v55, %v2308_v49  ;;  %v1304_v55 = vadd.f32 1e-05, %v1300_v1  ;;  %v5061_v1 = vld [vmem:[%s7290_s15 + $0x30] sm:$0xff] }
 0x9b1   :  { %v2316_v34 = vmul.f32 %v6486_v40, %v6486_v40  ;;  %5278 = vrsqrt.f32 %v1304_v55  ;;  %vm1332_vm13 = vweird.f32 %v1304_v55 }
 0x9b2   :  { %5280 = vrsqrt.f32 %v1305_v60 }
 0x9b3   :  { %v2322_v20 = vsel %vm152_vm0, %v2316_v34, 0.0 }
 0x9b4   :  { %2323 = vadd.xlane.f32.xlu1 %v2322_v20  ;;  %v2303_v14 = vpop.xlane.xlu1 %2302 }
 0x9b5   :  { %v2309_v44 = vmul.f32 %v2303_v14, %v5930_v10 }
 0x9b7   :  { %v6492_v51 = vsub.f32 %v2293_v57, %v2309_v44  ;;  %v5279_v52 = vpop.eup %5278  ;;  %v5053_v57 = vld [vmem:[%s7288_s14] sm:$0xff] }
 0x9b8   :  { %v5281_v62 = vpop.eup %5280  ;;  %v1327_v30 = vmul.f32 %v5279_v52, %v1304_v55  ;;  %2421 = vmatpush.bf16.msra.mxu2 %v5053_v57  ;;  %vm1333_vm11 = vweird.f32 %v5279_v52 }
 0x9b9   :  { %v2317_v27 = vmul.f32 %v6492_v51, %v6492_v51  ;;  %v1337_v12 = vmul.f32 %v5281_v62, %v1305_v60  ;;  %vm1343_vm12 = vweird.f32 %v5281_v62  ;;  %vm6528_vm14 = vmor %vm1332_vm13, %vm1333_vm11 }
 0x9ba   :  { %v1328_v6 = vmul.f32 %v5279_v52, %v1327_v30  ;;  %vm1344_vm4 = vmor %vm1342_vm15, %vm1343_vm12 }
 0x9bb   :  { %v2325_v48 = vsel %vm152_vm0, %v2317_v27, 0.0  ;;  %v1338_v61 = vmul.f32 %v5281_v62, %v1337_v12 }
 0x9bc   :  { %v2306_v25 = vpop.xlane.xlu2 %2305  ;;  %2326 = vadd.xlane.f32.xlu2 %v2325_v48  ;;  %v1329_v4 = vmul.f32 0.5, %v1328_v6  ;;  %v2613_v48 = vld [vmem:[%s7289_s20] sm:$0xff] }
 0x9bd   :  { %v2310_v46 = vmul.f32 %v2306_v25, %v5930_v10  ;;  %v1339_v43 = vmul.f32 0.5, %v1338_v61  ;;  %v5062_v25 = vld [vmem:[%s7290_s15 + $0x38] sm:$0xff] }
 0x9be   :  { %2488 = vmatpush.bf16.msrb.mxu3 %v5062_v25 }
 0x9bf   :  { %v6498_v38 = vsub.f32 %v2294_v9, %v2310_v46  ;;  %v1330_v9 = vsub.f32 1.5, %v1329_v4  ;;  %v1340_v17 = vsub.f32 1.5, %v1339_v43  ;;  %v1423_v46 = vld [vmem:[%s7326_s30 + $0xc] sm:$0x3] }
 0x9c0   :  { %v2388_v61 = vperm.slane %v1423_v46, 1 }
 0x9c1   :  { %v2318_v50 = vmul.f32 %v6498_v38, %v6498_v38  ;;  %v1331_v37 = vmul.f32 %v5279_v52, %v1330_v9  ;;  %v1341_v26 = vmul.f32 %v5281_v62, %v1340_v17 }
 0x9c2   :  { %2489 = vmatpush.bf16.msrb.mxu3 %v5061_v1 }
 0x9c3   :  { %v2328_v39 = vsel %vm152_vm0, %v2318_v50, 0.0  ;;  %v1335_v42 = vsel %vm6528_vm14, %v5279_v52, %v1331_v37  ;;  %v1345_v5 = vsel %vm1344_vm4, %v5281_v62, %v1341_v26  ;;  %v2383_v62 = vperm.slane %v1423_v46, 0 }
 0x9c4   :  { %2329 = vadd.xlane.f32.xlu0 %v2328_v39  ;;  %v6524_v63 = vpop.permute.xlu2 %1377  ;;  %v1348_v14 = vmul.f32 %v1335_v42, %v6343_v29  ;;  %v1349_v44 = vmul.f32 %v1345_v5, %v6372_v3  ;;  %v6554_v39 = vpack.c.bf16 %v2613_v48, %v2613_v48 }
 0x9c6   :  { %v1353_v55 = vmul.f32 %v6424_v18, %v1348_v14  ;;  %4840 = vmatmul.msk.bf16.vlgmr.msra.gmra.mxu1 %vm464_vm2, %v6554_v39  ;;  %v1354_v52 = vmul.f32 %v6424_v18, %v1349_v44 }
 0x9c8   :  { %v1358_v57 = vadd.f32 %v6428_v22, %v1353_v55  ;;  %v1359_v18 = vadd.f32 %v6428_v22, %v1354_v52 }
 0x9cd   :  { %1372 = vperm.xlu1 %5106, %v92_v24  }
 0x9d4   :  { %2716 = vrot.lane.b32.xlu2 %v6468_v15, %s5412_s27 }
 0x9d5   :  { %2700 = vrot.lane.b32.xlu1 %v6468_v15, %s5413_s17 }
 0x9dc   :  { %2710 = vrot.lane.b32.xlu2 %v6471_v13, %s5406_s23 }
 0x9dd   :  { %2702 = vrot.lane.b32.xlu1 %v6471_v13, %s5413_s17 }
 0xa1f   :  { %v2321_v16 = vpop.xlane.xlu1 %2320 }
 0xa20   :  { %v2331_v32 = vmul.f32 %v2321_v16, %v5930_v10 }
 0xa22   :  { %v2335_v35 = vadd.f32 1e-05, %v2331_v32  ;;  %v5060_v32 = vld [vmem:[%s7290_s15 + $0x28] sm:$0xff] }
 0xa23   :  { %2490 = vmatpush.bf16.msrb.mxu3 %v5060_v32 }
 0xa24   :  { %5282 = vrsqrt.f32 %v2335_v35  ;;  %vm2345_vm6 = vweird.f32 %v2335_v35 }
 0xa27   :  { %v2324_v11 = vpop.xlane.xlu1 %2323 }
 0xa28   :  { %v2332_v0 = vmul.f32 %v2324_v11, %v5930_v10 }
 0xa2a   :  { %v5283_v59 = vpop.eup %5282  ;;  %v2336_v58 = vadd.f32 1e-05, %v2332_v0  ;;  %v1383_v0 = vmul.f32 %v6524_v63, %v1359_v18 }
 0xa2b   :  { %v2340_v45 = vmul.f32 %v5283_v59, %v2335_v35  ;;  %vm2346_vm5 = vweird.f32 %v5283_v59 }
 0xa2c   :  { %5284 = vrsqrt.f32 %v2336_v58  ;;  %vm6539_vm7 = vmor %vm2345_vm6, %vm2346_vm5  ;;  %vm2355_vm9 = vweird.f32 %v2336_v58 }
 0xa2d   :  { %v2341_v54 = vmul.f32 %v5283_v59, %v2340_v45 }
 0xa2f   :  { %v2342_v19 = vmul.f32 0.5, %v2341_v54  ;;  %v2327_v2 = vpop.xlane.xlu2 %2326 }
 0xa30   :  { %v2333_v23 = vmul.f32 %v2327_v2, %v5930_v10 }
 0xa31   :  { %v2343_v28 = vsub.f32 1.5, %v2342_v19 }
 0xa32   :  { %v5285_v21 = vpop.eup %5284  ;;  %v6532_v41 = vadd.f32 1e-05, %v2333_v23 }
 0xa33   :  { %v2344_v49 = vmul.f32 %v5283_v59, %v2343_v28  ;;  %v2350_v34 = vmul.f32 %v5285_v21, %v2336_v58  ;;  %vm2356_vm8 = vweird.f32 %v5285_v21 }
 0xa34   :  { %5286 = vrsqrt.f32 %v6532_v41  ;;  %vm2357_vm10 = vmor %vm2355_vm9, %vm2356_vm8  ;;  %vm2365_vm12 = vweird.f32 %v6532_v41 }
 0xa35   :  { %v2351_v20 = vmul.f32 %v5285_v21, %v2350_v34  ;;  %v2348_v29 = vsel %vm6539_vm7, %v5283_v59, %v2344_v49 }
 0xa36   :  { %v2379_v30 = vmul.f32 %v2348_v29, %v6480_v53  ;;  %v5058_v29 = vld [vmem:[%s7290_s15 + $0x18] sm:$0xff] }
 0xa37   :  { %v2352_v3 = vmul.f32 0.5, %v2351_v20  ;;  %v2330_v50 = vpop.xlane.xlu0 %2329 }
 0xa38   :  { %v2334_v24 = vmul.f32 %v2330_v50, %v5930_v10  ;;  %v2384_v53 = vmul.f32 %v2383_v62, %v2379_v30  ;;  %v5056_v50 = vld [vmem:[%s7290_s15 + $0x8] sm:$0xff] }
 0xa39   :  { %v2353_v33 = vsub.f32 1.5, %v2352_v3  ;;  %v5057_v3 = vld [vmem:[%s7290_s15 + $0x10] sm:$0xff]  ;;  %v5120_v30 = vld [vmem:[%s7326_s30 + $0xe] ss:$0 sm:$0xff] }
 0xa3a   :  { %v5287_v60 = vpop.eup %5286  ;;  %v2338_v8 = vadd.f32 1e-05, %v2334_v24  ;;  %v6576_v45 = vadd.f32 %v2388_v61, %v2384_v53  ;;  %v5055_v24 = vld [vmem:[%s7290_s15] sm:$0xff] }
 0xa3b   :  { %v2354_v12 = vmul.f32 %v5285_v21, %v2353_v33  ;;  %v2360_v16 = vmul.f32 %v5287_v60, %v6532_v41  ;;  %vm2366_vm11 = vweird.f32 %v5287_v60 }
 0xa3c   :  { %5288 = vrsqrt.f32 %v2338_v8  ;;  %vm2367_vm13 = vmor %vm2365_vm12, %vm2366_vm11  ;;  %vm2375_vm15 = vweird.f32 %v2338_v8 }
 0xa3d   :  { %v2358_v6 = vsel %vm2357_vm10, %v5285_v21, %v2354_v12  ;;  %v2361_v35 = vmul.f32 %v5287_v60, %v2360_v16 }
 0xa3e   :  { %v2380_v4 = vmul.f32 %v2358_v6, %v6486_v40 }
 0xa3f   :  { %v2362_v43 = vmul.f32 0.5, %v2361_v35  ;;  %v6572_v11 = vpop.permute.xlu1 %1372 }
 0xa40   :  { %v2385_v59 = vmul.f32 %v2383_v62, %v2380_v4  ;;  %v1382_v9 = vmul.f32 %v6572_v11, %v1358_v57 }
 0xa41   :  { %v2363_v58 = vsub.f32 1.5, %v2362_v43 }
 0xa42   :  { %v5289_v17 = vpop.eup %5288  ;;  %v6578_v54 = vadd.f32 %v2388_v61, %v2385_v59  ;;  %v2653_v22 = vpack.c.bf16 %v1383_v0, %v1382_v9 }
 0xa43   :  { %v2364_v37 = vmul.f32 %v5287_v60, %v2363_v58  ;;  %v2370_v26 = vmul.f32 %v5289_v17, %v2338_v8  ;;  %vm2376_vm14 = vweird.f32 %v5289_v17  ;;  %v2746_v32 = vpop.f32.mrf.mxu1 }
 0xa44   :  { %v2393_v40 = vpack.c.bf16 %v6578_v54, %v6576_v45  ;;  %4839 = vmatmul.msk.bf16.gmra.mxu0 %vm152_vm0, %v2653_v22  ;;  %vm2377_vm4 = vmor %vm2375_vm15, %vm2376_vm14 }
 0xa45   :  { %v2371_v19 = vmul.f32 %v5289_v17, %v2370_v26  ;;  %v2368_v2 = vsel %vm2367_vm13, %v5287_v60, %v2364_v37 }
 0xa46   :  { %4796 = vmatmul.msk.bf16.vlgmr.msra.gmra.mxu2 %vm152_vm0, %v2393_v40  ;;  %v2381_v21 = vmul.f32 %v2368_v2, %v6492_v51 }
 0xa47   :  { %v2372_v23 = vmul.f32 0.5, %v2371_v19  ;;  %v2701_v36 = vpop.permute.xlu1 %2700 }
 0xa48   :  { %v2386_v34 = vmul.f32 %v2383_v62, %v2381_v21  ;;  %v2769_v41 = vunpack.c.l.b16 %v2701_v36 }
 0xa49   :  { %v2373_v28 = vsub.f32 1.5, %v2372_v23 }
 0xa4a   :  { %v6589_v48 = vadd.f32 %v2388_v61, %v2386_v34 }
 0xa4b   :  { %v2374_v42 = vmul.f32 %v5289_v17, %v2373_v28  ;;  %v2748_v43 = vpop.f32.mrf.mxu1 }
 0xa4d   :  { %v2378_v5 = vsel %vm2377_vm4, %v5289_v17, %v2374_v42  ;;  %v2717_v42 = vpop.permute.xlu2 %2716 }
 0xa4e   :  { %v2382_v49 = vmul.f32 %v2378_v5, %v6498_v38  ;;  %v5059_v38 = vld [vmem:[%s7290_s15 + $0x20] sm:$0xff] }
 0xa4f   :  { %v2703_v20 = vpop.permute.xlu1 %2702  ;;  %2491 = vmatpush.bf16.msrb.mxu3 %v5059_v38 }
 0xa50   :  { %v2770_v14 = vunpack.c.l.b16 %v2703_v20  ;;  %v2387_v44 = vmul.f32 %v2383_v62, %v2382_v49  ;;  %v2851_v49 = vunpack.c.l.b16 %v2717_v42 }
 0xa52   :  { %v6587_v27 = vpack.c.b16 %v2770_v14, %v2769_v41  ;;  %v6591_v25 = vadd.f32 %v2388_v61, %v2387_v44  ;;  %v2616_v44 = vld [vmem:[%s7289_s20 + $0x18] sm:$0xff] }
 0xa53   :  { %2492 = vmatpush.bf16.msrb.mxu3 %v5058_v29  ;;  %v2727_v29 = vpack.c.bf16 %v2616_v44, %v2616_v44 }
 0xa54   :  { %v2776_v51 = vsel %vm464_vm2, %v6587_v27, 0  ;;  %v2394_v46 = vpack.c.bf16 %v6591_v25, %v6589_v48 }
 0xa55   :  { %2785 = vmatpush.bf16.xpose.msrb.mxu2 %v2776_v51 }
 0xa56   :  { %4797 = vmatmul.msk.bf16.gmra.mxu2 %vm152_vm0, %v2394_v46 }
 0xa57   :  { %2493 = vmatpush.bf16.msrb.mxu3 %v5057_v3 }
 0xa5b   :  { %2494 = vmatpush.bf16.msrb.mxu3 %v5056_v50  ;;  %v6663_v50 = vld [vmem:[%s7291_s4 + $0x1] ss:$0 sm:$0xff] }
 0xa5f   :  { %2495 = vmatpush.bf16.msrb.mxu3 %v5055_v24 }
 0xac1   :  { %v2687_v1 = vpop.f32.mrf.mxu0 }
 0xac2   :  { %v2688_v33 = vadd.f32 %v6465_v47, %v2687_v1  ;;  %v2711_v1 = vpop.permute.xlu2 %2710 }
 0xac4   :  { %v2694_v55 = vpack.c.bf16 %v2688_v33, %v2688_v33 }
 0xac6   :  { %2720 = vrot.lane.b32.xlu0 %v2694_v55, %s5412_s27  ;;  %2704 = vrot.lane.b32.xlu1 %v2694_v55, %s5413_s17  ;;  %v2750_v12 = vunpack.c.l.b16 %v2694_v55 }
 0xac9   :  { %v2423_v60 = vpop.f32.mrf.mxu2  ;;  %v2689_v52 = vpop.f32.mrf.mxu0 }
 0xaca   :  { %v2690_v62 = vadd.f32 %v6465_v47, %v2689_v52  ;;  %v2424_v6 = vadd.f32 %v5120_v30, %v2423_v60  ;;  %v2811_v52 = vunpack.c.l.b16 %v2711_v1 }
 0xacc   :  { %v2695_v8 = vpack.c.bf16 %v2690_v62, %v2690_v62  ;;  %v2433_v61 = vmax.f32 %v2424_v6, 0.0  ;;  %v2615_v6 = vld [vmem:[%s7289_s20 + $0x10] sm:$0xff] }
 0xace   :  { %2714 = vrot.lane.b32.xlu0 %v2695_v8, %s5406_s23  ;;  %2706 = vrot.lane.b32.xlu1 %v2695_v8, %s5413_s17  ;;  %v2751_v16 = vunpack.c.l.b16 %v2695_v8 }
 0xad0   :  { %v6622_v35 = vpack.c.b16 %v2751_v16, %v2750_v12 }
 0xad1   :  { %v2425_v57 = vpop.f32.mrf.mxu2 }
 0xad2   :  { %v2426_v18 = vadd.f32 %v5120_v30, %v2425_v57  ;;  %v2754_v47 = vsel %vm464_vm2, %v6622_v35, 0 }
 0xad3   :  { %2763 = vmatpush.bf16.xpose.msrb.mxu1 %v2754_v47 }
 0xad4   :  { %v2434_v53 = vmax.f32 %v2426_v18, 0.0 }
 0xad6   :  { %v2437_v4 = vpack.c.bf16 %v2434_v53, %v2433_v61  ;;  %2718 = vrot.lane.b32.xlu1 %v6471_v13, %s5412_s27  ;;  %v6636_v13 = vld [vmem:[%s7291_s4] ss:$0 sm:$0xff]  ;;  %v2726_v53 = vpack.c.bf16 %v2615_v6, %v2615_v6 }
 0xad8   :  { %2496 = vmatmul.bf16.vlgmr.msrb.gmra.mxu3 %v2437_v4 }
 0xad9   :  { %v2428_v0 = vpop.f32.mrf.mxu2 }
 0xada   :  { %4841 = vmatmul.msk.bf16.vlgmr.msrb.gmra.mxu1 %vm464_vm2, %v6554_v39  ;;  %v2429_v59 = vadd.f32 %v5120_v30, %v2428_v0  ;;  %v6640_v39 = vadd.f32 %v6636_v13, %v2746_v32 }
 0xadc   :  { %v2435_v17 = vmax.f32 %v2429_v59, 0.0  ;;  %v2906_v26 = vsel %vm260_vm1, %v6640_v39, -inf  ;;  %v6690_v59 = vld [vmem:[%s7326_s30 + $0xf] ss:$0 sm:$0xff] }
 0xade   :  { %2722 = vrot.lane.b32.xlu1 %v2695_v8, %s5412_s27 }
 0xae1   :  { %v2430_v9 = vpop.f32.mrf.mxu2 }
 0xae2   :  { %v2431_v58 = vadd.f32 %v5120_v30, %v2430_v9 }
 0xae4   :  { %v2436_v22 = vmax.f32 %v2431_v58, 0.0 }
 0xae6   :  { %2708 = vrot.lane.b32.xlu1 %v6468_v15, %s5406_s23  ;;  %v2438_v37 = vpack.c.bf16 %v2436_v22, %v2435_v17  ;;  %v2614_v15 = vld [vmem:[%s7289_s20 + $0x8] sm:$0xff] }
 0xae7   :  { %v2725_v19 = vpack.c.bf16 %v2614_v15, %v2614_v15 }
 0xae8   :  { %2501 = vmatmul.bf16.gmra.mxu3 %v2438_v37 }
 0xae9   :  { %4842 = vmatmul.msk.bf16.vlgmr.msrb.gmra.mxu2 %vm464_vm2, %v2725_v19 }
 0xaee   :  { %2712 = vrot.lane.b32.xlu1 %v2694_v55, %s5406_s23 }
 0xaf8   :  { %2907 = vmax.xlane.f32.xlu0 %v2906_v26 }
 0xb38   :  { %v2705_v40 = vpop.permute.xlu1 %2704  ;;  %v2721_v14 = vpop.permute.xlu0 %2720 }
 0xb39   :  { %v2791_v23 = vunpack.c.l.b16 %v2705_v40  ;;  %v2873_v46 = vunpack.c.l.b16 %v2721_v14 }
 0xb40   :  { %v2707_v2 = vpop.permute.xlu1 %2706  ;;  %v2715_v32 = vpop.permute.xlu0 %2714 }
 0xb41   :  { %v2792_v36 = vunpack.c.l.b16 %v2707_v2  ;;  %v2833_v47 = vunpack.c.l.b16 %v2715_v32 }
 0xb43   :  { %v2793_v28 = vpack.c.b16 %v2792_v36, %v2791_v23 }
 0xb45   :  { %3059 = vrot.lane.b32.xlu1 %v2793_v28, %s5407_s7  ;;  %v2795_v21 = vsel %vm464_vm2, %v2793_v28, 0 }
 0xb46   :  { %2804 = vmatpush.bf16.xpose.msra.mxu3 %v2795_v21 }
 0xb48   :  { %v2719_v5 = vpop.permute.xlu1 %2718 }
 0xb49   :  { %v2852_v34 = vunpack.c.l.b16 %v2719_v5 }
 0xb4b   :  { %v6650_v20 = vpack.c.b16 %v2852_v34, %v2851_v49 }
 0xb4d   :  { %v2858_v41 = vsel %vm464_vm2, %v6650_v20, 0  ;;  %4843 = vmatmul.msk.bf16.vlgmr.msra.gmra.mxu3 %vm464_vm2, %v2725_v19 }
 0xb4e   :  { %2867 = vmatpush.bf16.xpose.msra.mxu2 %v2858_v41 }
 0xb50   :  { %v2723_v51 = vpop.permute.xlu1 %2722 }
 0xb51   :  { %v2874_v38 = vunpack.c.l.b16 %v2723_v51 }
 0xb53   :  { %v6658_v3 = vpack.c.b16 %v2874_v38, %v2873_v46 }
 0xb55   :  { %v2877_v24 = vsel %vm464_vm2, %v6658_v3, 0  ;;  %4846 = vmatmul.msk.bf16.vlgmr.msra.gmra.mxu2 %vm464_vm2, %v2727_v29 }
 0xb56   :  { %2886 = vmatpush.bf16.xpose.msrb.mxu3 %v2877_v24 }
 0xb57   :  { %v2765_v33 = vpop.f32.mrf.mxu1 }
 0xb58   :  { %v2899_v55 = vadd.f32 %v6663_v50, %v2765_v33  ;;  %v2709_v60 = vpop.permute.xlu1 %2708 }
 0xb59   :  { %v2810_v62 = vunpack.c.l.b16 %v2709_v60 }
 0xb5a   :  { %v2909_v30 = vsel %vm260_vm1, %v2899_v55, -inf }
 0xb5b   :  { %v6670_v8 = vpack.c.b16 %v2811_v52, %v2810_v62  ;;  %v6672_v12 = vpop.f32.mrf.mxu3  ;;  %2910 = vmax.xlane.f32.xlu2 %v2909_v30 }
 0xb5d   :  { %v2817_v16 = vsel %vm464_vm2, %v6670_v8, 0  ;;  %4847 = vmatmul.msk.bf16.vlgmr.msrb.gmra.mxu3 %vm464_vm2, %v2727_v29 }
 0xb5e   :  { %2826 = vmatpush.bf16.xpose.msra.mxu0 %v2817_v16 }
 0xb5f   :  { %v2767_v57 = vpop.f32.mrf.mxu1 }
 0xb60   :  { %v2713_v18 = vpop.permute.xlu1 %2712 }
 0xb61   :  { %v2832_v61 = vunpack.c.l.b16 %v2713_v18 }
 0xb63   :  { %v6680_v4 = vpack.c.b16 %v2833_v47, %v2832_v61  ;;  %v6682_v43 = vpop.f32.mrf.mxu3 }
 0xb65   :  { %4844 = vmatmul.msk.bf16.vlgmr.msra.gmra.mxu0 %vm464_vm2, %v2726_v53  ;;  %v2836_v0 = vsel %vm464_vm2, %v6680_v4, 0 }
 0xb66   :  { %2845 = vmatpush.bf16.xpose.msra.mxu1 %v2836_v0 }
 0xb6b   :  { %v2502_v9 = vpop.f32.mrf.mxu3  ;;  %v2908_v58 = vpop.xlane.xlu0 %2907 }
 0xb6c   :  { %v6693_v17 = vadd.f32 %v6690_v59, %v2502_v9  ;;  %v2930_v22 = vsub.f32 %v6640_v39, %v2908_v58  ;;  %v2787_v19 = vpop.f32.mrf.mxu2 }
 0xb6d   :  { %4845 = vmatmul.msk.bf16.vlgmr.msra.gmra.mxu1 %vm464_vm2, %v2726_v53  ;;  %v2900_v46 = vadd.f32 %v6636_v13, %v2787_v19 }
 0xb6e   :  { %v2938_v37 = vmul.f32 1.442695, %v2930_v22 }
 0xb6f   :  { %v2912_v1 = vsel %vm260_vm1, %v2900_v46, -inf }
 0xb70   :  { %5290 = vpow2.f32 %v2938_v37 }
 0xb73   :  { %3040 = vrot.lane.b32.xlu2 %v6587_v27, %s5407_s7  ;;  %v6703_v23 = vpop.f32.mrf.mxu3 }
 0xb74   :  { %v2789_v2 = vpop.f32.mrf.mxu2 }
 0xb76   :  { %v6699_v26 = vpop.eup %5290 }
 0xb77   :  { %v2954_v40 = vsel %vm260_vm1, %v6699_v26, 0.0 }
 0xb78   :  { %2955 = vadd.xlane.f32.xlu1 %v2954_v40 }
 0xbb7   :  { %v3060_v15 = vpop.permute.xlu1 %3059 }
 0xbb8   :  { %3072 = vmatpush.bf16.msra.mxu3 %v3060_v15 }
 0xbce   :  { %v2911_v39 = vpop.xlane.xlu2 %2910 }
 0xbcf   :  { %v2931_v36 = vsub.f32 %v2899_v55, %v2911_v39 }
 0xbd0   :  { %v2806_v42 = vpop.f32.mrf.mxu3 }
 0xbd1   :  { %v2940_v28 = vmul.f32 1.442695, %v2931_v36  ;;  %v2901_v62 = vadd.f32 %v6663_v50, %v2806_v42 }
 0xbd3   :  { %5292 = vpow2.f32 %v2940_v28  ;;  %v2915_v30 = vsel %vm260_vm1, %v2901_v62, -inf }
 0xbd6   :  { %v3041_v21 = vpop.permute.xlu2 %3040 }
 0xbd7   :  { %3053 = vmatpush.bf16.msrb.mxu2 %v3041_v21 }
 0xbd8   :  { %v2869_v27 = vpop.f32.mrf.mxu2  ;;  %v2808_v34 = vpop.f32.mrf.mxu3 }
 0xbd9   :  { %v5293_v5 = vpop.eup %5292  ;;  %v2904_v55 = vadd.f32 %v6636_v13, %v2869_v27 }
 0xbda   :  { %v2957_v49 = vsel %vm260_vm1, %v5293_v5, 0.0 }
 0xbdb   :  { %2958 = vadd.xlane.f32.xlu0 %v2957_v49  ;;  %v2924_v52 = vsel %vm260_vm1, %v2904_v55, -inf }
 0xbe0   :  { %v2871_v41 = vpop.f32.mrf.mxu2  ;;  %v2888_v16 = vpop.f32.mrf.mxu3 }
 0xbe1   :  { %v2905_v36 = vadd.f32 %v6663_v50, %v2888_v16 }
 0xbe2   :  { %v2828_v14 = vpop.f32.mrf.mxu0 }
 0xbe3   :  { %v2902_v44 = vadd.f32 %v6636_v13, %v2828_v14  ;;  %v2927_v42 = vsel %vm260_vm1, %v2905_v36, -inf }
 0xbe5   :  { %v2918_v51 = vsel %vm260_vm1, %v2902_v44, -inf }
 0xbe6   :  { %2919 = vmax.xlane.f32.xlu2 %v2918_v51 }
 0xbe8   :  { %v2890_v32 = vpop.f32.mrf.mxu3 }
 0xbea   :  { %v2830_v38 = vpop.f32.mrf.mxu0  ;;  %v2847_v29 = vpop.f32.mrf.mxu1 }
 0xbeb   :  { %v2903_v24 = vadd.f32 %v6663_v50, %v2847_v29  ;;  %v6720_v6 = vpop.xlane.xlu1 %2955  ;;  %v2498_v38 = vadd.f32 %v6690_v59, %v6672_v12 }
 0xbed   :  { %v2921_v33 = vsel %vm260_vm1, %v2903_v24, -inf }
 0xbee   :  { %2913 = vmax.xlane.f32.xlu2 %v2912_v1  ;;  %2922 = vmax.xlane.f32.xlu1 %v2921_v33 }
 0xbf2   :  { %v2849_v60 = vpop.f32.mrf.mxu1 }
 0xbf6   :  { %2925 = vmax.xlane.f32.xlu1 %v2924_v52 }
 0xbfe   :  { %2916 = vmax.xlane.f32.xlu1 %v2915_v30 }
 0xc06   :  { %3021 = vrot.lane.b32.xlu2 %v6622_v35, %s5407_s7 }
 0xc17   :  { %3116 = vrot.lane.b32.xlu1 %v6650_v20, %s5407_s7 }
 0xc4e   :  { %v2959_v18 = vpop.xlane.xlu0 %2958 }
 0xc4f   :  { %5294 = vrcp.f32 %v2959_v18 }
 0xc55   :  { %v5295_v58 = vpop.eup %5294 }
 0xc56   :  { %v2987_v37 = vmul.f32 %v5295_v58, %v5293_v5 }
 0xc58   :  { %v2995_v19 = vpack.c.bf16 %v2987_v37, %v2987_v37 }
 0xc59   :  { %v2920_v57 = vpop.xlane.xlu2 %2919 }
 0xc5a   :  { %v2934_v47 = vsub.f32 %v2902_v44, %v2920_v57 }
 0xc5c   :  { %v2946_v61 = vmul.f32 1.442695, %v2934_v47 }
 0xc5e   :  { %5296 = vpow2.f32 %v2946_v61 }
 0xc61   :  { %v2914_v53 = vpop.xlane.xlu2 %2913  ;;  %v2923_v0 = vpop.xlane.xlu1 %2922 }
 0xc62   :  { %v2932_v9 = vsub.f32 %v2900_v46, %v2914_v53  ;;  %v2935_v14 = vsub.f32 %v2903_v24, %v2923_v0  ;;  %v2505_v24 = vadd.f32 %v6690_v59, %v6703_v23 }
 0xc64   :  { %v6722_v22 = vpop.eup %5296  ;;  %v2942_v35 = vmul.f32 1.442695, %v2932_v9  ;;  %v2948_v44 = vmul.f32 1.442695, %v2935_v14  ;;  %v2510_v33 = vadd.f32 %v2505_v24, %v6591_v25  ;;  %v2500_v25 = vadd.f32 %v6690_v59, %v6682_v43  ;;  %v2623_v14 = vld [vmem:[%s7337_s10 + $0x4] sm:$0xf] }
 0xc65   :  { %v2966_v20 = vsel %vm260_vm1, %v6722_v22, 0.0 }
 0xc66   :  { %5298 = vpow2.f32 %v2942_v35  ;;  %2967 = vadd.xlane.f32.xlu2 %v2966_v20  ;;  %v2508_v61 = vadd.f32 %v2500_v25, %v6578_v54 }
 0xc68   :  { %v2514_v35 = vsel %vm152_vm0, %v2508_v61, 0.0 }
 0xc69   :  { %v3022_v40 = vpop.permute.xlu2 %3021  ;;  %v2926_v15 = vpop.xlane.xlu1 %2925 }
 0xc6a   :  { %3034 = vmatpush.bf16.msrb.mxu1 %v3022_v40  ;;  %v2936_v50 = vsub.f32 %v2904_v55, %v2926_v15  ;;  %v2520_v55 = vsel %vm152_vm0, %v2510_v33, 0.0 }
 0xc6c   :  { %v5299_v2 = vpop.eup %5298  ;;  %v2950_v41 = vmul.f32 1.442695, %v2936_v50 }
 0xc6d   :  { %4849 = vmatmul.msk.bf16.vlgmr.msrb.gmra.mxu1 %vm260_vm1, %v2995_v19  ;;  %v2960_v39 = vsel %vm260_vm1, %v5299_v2, 0.0 }
 0xc6e   :  { %2961 = vadd.xlane.f32.xlu0 %v2960_v39 }
 0xc71   :  { %v2917_v28 = vpop.xlane.xlu1 %2916 }
 0xc72   :  { %v2933_v21 = vsub.f32 %v2901_v62, %v2917_v28 }
 0xc74   :  { %v2944_v27 = vmul.f32 1.442695, %v2933_v21 }
 0xc76   :  { %5300 = vpow2.f32 %v2944_v27  ;;  %2928 = vmax.xlane.f32.xlu0 %v2927_v42 }
 0xc77   :  { %5302 = vpow2.f32 %v2950_v41 }
 0xc78   :  { %5304 = vpow2.f32 %v2948_v44  ;;  %v3160_v44 = vsel %vm669_vm3, %v2623_v14, 0 }
 0xc7c   :  { %v5301_v5 = vpop.eup %5300 }
 0xc7d   :  { %v2963_v49 = vsel %vm260_vm1, %v5301_v5, 0.0  ;;  %v5303_v51 = vpop.eup %5302 }
 0xc7e   :  { %2964 = vadd.xlane.f32.xlu2 %v2963_v49  ;;  %v2972_v46 = vsel %vm260_vm1, %v5303_v51, 0.0  ;;  %v6738_v29 = vpop.eup %5304 }
 0xc89   :  { %v3117_v34 = vpop.permute.xlu1 %3116 }
 0xc8a   :  { %3002 = vrot.lane.b32.xlu0 %v6475_v31, %s5407_s7  ;;  %3129 = vmatpush.bf16.msra.mxu2 %v3117_v34  ;;  %v2507_v31 = vadd.f32 %v2498_v38, %v6576_v45 }
 0xc8c   :  { %v2511_v1 = vsel %vm152_vm0, %v2507_v31, 0.0 }
 0xc96   :  { %3135 = vrot.lane.b32.xlu2 %v6658_v3, %s5407_s7  ;;  %v2969_v3 = vsel %vm260_vm1, %v6738_v29, 0.0 }
 0xcb4   :  { %2973 = vadd.xlane.f32.xlu0 %v2972_v46 }
 0xcbc   :  { %2970 = vadd.xlane.f32.xlu0 %v2969_v3 }
 0xcbf   :  { %2512 = vadd.xlane.f32.xlu2 %v2511_v1 }
 0xcc7   :  { %2521 = vadd.xlane.f32.xlu2 %v2520_v55 }
 0xcd0   :  { %3078 = vrot.lane.b32.xlu0 %v6670_v8, %s5407_s7 }
 0xcd9   :  { %v2968_v60 = vpop.xlane.xlu2 %2967 }
 0xce1   :  { %v2962_v12 = vpop.xlane.xlu0 %2961 }
 0xce2   :  { %5306 = vrcp.f32 %v2962_v12 }
 0xce8   :  { %v5307_v45 = vpop.eup %5306 }
 0xce9   :  { %v2988_v52 = vmul.f32 %v5307_v45, %v5299_v2  ;;  %v2929_v62 = vpop.xlane.xlu0 %2928  ;;  %v2509_v2 = vadd.f32 %v6693_v17, %v6589_v48 }
 0xcea   :  { %v2937_v30 = vsub.f32 %v2905_v36, %v2929_v62  ;;  %v6750_v16 = vpop.f32.mrf.mxu1 }
 0xceb   :  { %v2996_v23 = vpack.c.bf16 %v2988_v52, %v2988_v52  ;;  %v2622_v52 = vld [vmem:[%s7337_s10] sm:$0xf] }
 0xcec   :  { %v2952_v32 = vmul.f32 1.442695, %v2937_v30 }
 0xced   :  { %4850 = vmatmul.msk.bf16.vlgmr.msrb.gmra.mxu2 %vm260_vm1, %v2996_v23  ;;  %v3180_v23 = vsel %vm669_vm3, %v2622_v52, 0 }
 0xcee   :  { %5308 = vpow2.f32 %v2952_v32 }
 0xcef   :  { %5310 = vrcp.f32 %v6720_v6 }
 0xcf1   :  { %v2965_v8 = vpop.xlane.xlu2 %2964 }
 0xcf2   :  { %5312 = vrcp.f32 %v2965_v8  ;;  %v3038_v57 = vpop.f32.mrf.mxu1 }
 0xcf4   :  { %v5309_v18 = vpop.eup %5308 }
 0xcf5   :  { %v2975_v47 = vsel %vm260_vm1, %v5309_v18, 0.0  ;;  %v5311_v53 = vpop.eup %5310 }
 0xcf6   :  { %2976 = vadd.xlane.f32.xlu1 %v2975_v47  ;;  %v2986_v20 = vmul.f32 %v5311_v53, %v6699_v26 }
 0xcf8   :  { %v5313_v0 = vpop.eup %5312  ;;  %v2994_v6 = vpack.c.bf16 %v2986_v20, %v2986_v20 }
 0xcf9   :  { %v2989_v9 = vmul.f32 %v5313_v0, %v5301_v5  ;;  %v3136_v58 = vpop.permute.xlu2 %3135 }
 0xcfa   :  { %2515 = vadd.xlane.f32.xlu0 %v2514_v35  ;;  %3148 = vmatpush.bf16.msrb.mxu3 %v3136_v58 }
 0xcfb   :  { %v2997_v43 = vpack.c.bf16 %v2989_v9, %v2989_v9 }
 0xcfc   :  { %v3003_v59 = vpop.permute.xlu0 %3002 }
 0xcfd   :  { %3015 = vmatpush.bf16.msrb.mxu0 %v3003_v59  ;;  %4851 = vmatmul.msk.bf16.vlgmr.msra.gmra.mxu3 %vm260_vm1, %v2997_v43 }
 0xd00   :  { %4848 = vmatmul.msk.bf16.vlgmr.msrb.gmra.mxu0 %vm260_vm1, %v2994_v6 }
 0xd0f   :  { %3097 = vrot.lane.b32.xlu1 %v6680_v4, %s5407_s7  ;;  %v2517_v4 = vsel %vm152_vm0, %v2509_v2, 0.0 }
 0xd27   :  { %v2974_v54 = vpop.xlane.xlu0 %2973 }
 0xd28   :  { %5314 = vrcp.f32 %v2974_v54 }
 0xd29   :  { %5316 = vrcp.f32 %v2968_v60 }
 0xd2e   :  { %v5315_v37 = vpop.eup %5314 }
 0xd2f   :  { %v2992_v40 = vmul.f32 %v5315_v37, %v5303_v51  ;;  %v2971_v21 = vpop.xlane.xlu0 %2970  ;;  %v5317_v5 = vpop.eup %5316 }
 0xd30   :  { %v2990_v17 = vmul.f32 %v5317_v5, %v6722_v22 }
 0xd31   :  { %v3000_v15 = vpack.c.bf16 %v2992_v40, %v2992_v40  ;;  %v2624_v40 = vld [vmem:[%s7337_s10 + $0x8] sm:$0xf] }
 0xd32   :  { %v2513_v19 = vpop.xlane.xlu2 %2512  ;;  %v2998_v41 = vpack.c.bf16 %v2990_v17, %v2990_v17 }
 0xd33   :  { %v2523_v26 = vmul.f32 %v2513_v19, %v5930_v10  ;;  %4854 = vmatmul.msk.bf16.vlgmr.msra.gmra.mxu2 %vm260_vm1, %v3000_v15  ;;  %v3201_v15 = vsel %vm669_vm3, %v2624_v40, 0 }
 0xd34   :  { %3210 = vmatpush.bf16.msrb.mxu2 %v3201_v15 }
 0xd35   :  { %v6768_v39 = vsub.f32 %v2507_v31, %v2523_v26 }
 0xd37   :  { %v2531_v36 = vmul.f32 %v6768_v39, %v6768_v39 }
 0xd39   :  { %2518 = vadd.xlane.f32.xlu1 %v2517_v4  ;;  %v2535_v28 = vsel %vm152_vm0, %v2531_v36, 0.0 }
 0xd3a   :  { %2536 = vadd.xlane.f32.xlu0 %v2535_v28  ;;  %v2522_v42 = vpop.xlane.xlu2 %2521 }
 0xd3b   :  { %v2526_v27 = vmul.f32 %v2522_v42, %v5930_v10 }
 0xd3d   :  { %v6775_v49 = vsub.f32 %v2510_v33, %v2526_v27 }
 0xd3f   :  { %v2534_v48 = vmul.f32 %v6775_v49, %v6775_v49 }
 0xd41   :  { %v2544_v34 = vsel %vm152_vm0, %v2534_v48, 0.0 }
 0xd42   :  { %v3079_v50 = vpop.permute.xlu0 %3078  ;;  %2545 = vadd.xlane.f32.xlu0 %v2544_v34 }
 0xd43   :  { %3091 = vmatpush.bf16.msra.mxu0 %v3079_v50 }
 0xd46   :  { %4852 = vmatmul.msk.bf16.vlgmr.msra.gmra.mxu0 %vm260_vm1, %v2998_v41 }
 0xd47   :  { %3169 = vmatpush.bf16.msrb.mxu0 %v3160_v44 }
 0xd69   :  { %v2977_v51 = vpop.xlane.xlu1 %2976 }
 0xd6a   :  { %5318 = vrcp.f32 %v2977_v51 }
 0xd6b   :  { %5320 = vrcp.f32 %v2971_v21  ;;  %v5075_v21 = vld [vmem:[%s7287_s16 + $0x10] sm:$0xff] }
 0xd6d   :  { %v2516_v46 = vpop.xlane.xlu0 %2515 }
 0xd6e   :  { %v2524_v22 = vmul.f32 %v2516_v46, %v5930_v10 }
 0xd70   :  { %v5319_v38 = vpop.eup %5318  ;;  %v6787_v31 = vsub.f32 %v2508_v61, %v2524_v22  ;;  %v3055_v3 = vpop.f32.mrf.mxu2 }
 0xd71   :  { %v2993_v24 = vmul.f32 %v5319_v38, %v5309_v18  ;;  %v5321_v45 = vpop.eup %5320 }
 0xd72   :  { %v2532_v1 = vmul.f32 %v6787_v31, %v6787_v31  ;;  %v2991_v62 = vmul.f32 %v5321_v45, %v6738_v29 }
 0xd73   :  { %v3001_v33 = vpack.c.bf16 %v2993_v24, %v2993_v24 }
 0xd74   :  { %v2538_v55 = vsel %vm152_vm0, %v2532_v1, 0.0  ;;  %v2999_v8 = vpack.c.bf16 %v2991_v62, %v2991_v62 }
 0xd75   :  { %2539 = vadd.xlane.f32.xlu1 %v2538_v55  ;;  %4855 = vmatmul.msk.bf16.vlgmr.msrb.gmra.mxu3 %vm260_vm1, %v3001_v33 }
 0xd78   :  { %v3057_v12 = vpop.f32.mrf.mxu2 }
 0xd7d   :  { %v3017_v60 = vpop.f32.mrf.mxu0 }
 0xd7e   :  { %v3154_v47 = vpack.c.bf16 %v6750_v16, %v3017_v60  ;;  %v2625_v16 = vld [vmem:[%s7337_s10 + $0xc] sm:$0xf] }
 0xd7f   :  { %v3224_v59 = vsel %vm669_vm3, %v2625_v16, 0 }
 0xd80   :  { %v3074_v30 = vpop.f32.mrf.mxu3  ;;  %3233 = vmatpush.bf16.msra.mxu3 %v3224_v59 }
 0xd81   :  { %v3155_v32 = vpack.c.bf16 %v3074_v30, %v3055_v3  ;;  %v3098_v25 = vpop.permute.xlu1 %3097  ;;  %v1426_v3 = vld [vmem:[%s7326_s30 + $0x10] sm:$0x3] }
 0xd82   :  { %3110 = vmatpush.bf16.msra.mxu1 %v3098_v25  ;;  %v2599_v12 = vperm.slane %v1426_v3, 0  ;;  %v2604_v52 = vperm.slane %v1426_v3, 1 }
 0xd83   :  { %4856 = vmatmul.msk.bf16.vlgmr.msrb.gmra.mxu0 %vm464_vm2, %v3155_v32 }
 0xd85   :  { %v3019_v57 = vpop.f32.mrf.mxu0  ;;  %4853 = vmatmul.msk.bf16.vlgmr.msra.gmra.mxu1 %vm260_vm1, %v2999_v8 }
 0xd86   :  { %3189 = vmatpush.bf16.msrb.mxu1 %v3180_v23 }
 0xd88   :  { %v3076_v18 = vpop.f32.mrf.mxu3 }
 0xd95   :  { %4857 = vmatmul.msk.bf16.vlgmr.msrb.gmra.mxu1 %vm464_vm2, %v3154_v47 }
 0xdac   :  { %v2519_v61 = vpop.xlane.xlu1 %2518 }
 0xdad   :  { %v2525_v29 = vmul.f32 %v2519_v61, %v5930_v10  ;;  %v2537_v6 = vpop.xlane.xlu0 %2536 }
 0xdae   :  { %v2547_v54 = vmul.f32 %v2537_v6, %v5930_v10 }
 0xdaf   :  { %v6803_v53 = vsub.f32 %v2509_v2, %v2525_v29  ;;  %v5076_v2 = vld [vmem:[%s7287_s16 + $0x18] sm:$0xff] }
 0xdb0   :  { %v2551_v37 = vadd.f32 1e-05, %v2547_v54  ;;  %3518 = vmatpush.bf16.msra.mxu2 %v5076_v2 }
 0xdb1   :  { %v2533_v0 = vmul.f32 %v6803_v53, %v6803_v53 }
 0xdb2   :  { %5322 = vrsqrt.f32 %v2551_v37  ;;  %vm2561_vm9 = vweird.f32 %v2551_v37 }
 0xdb3   :  { %v2541_v9 = vsel %vm152_vm0, %v2533_v0, 0.0 }
 0xdb4   :  { %2542 = vadd.xlane.f32.xlu2 %v2541_v9  ;;  %3519 = vmatpush.bf16.msra.mxu2 %v5075_v21 }
 0xdb5   :  { %v2546_v25 = vpop.xlane.xlu0 %2545 }
 0xdb6   :  { %v3131_v58 = vpop.f32.mrf.mxu2  ;;  %v2550_v57 = vmul.f32 %v2546_v25, %v5930_v10 }
 0xdb8   :  { %v5323_v36 = vpop.eup %5322  ;;  %v2554_v47 = vadd.f32 1e-05, %v2550_v57 }
 0xdb9   :  { %v2556_v28 = vmul.f32 %v5323_v36, %v2551_v37  ;;  %vm2562_vm6 = vweird.f32 %v5323_v36 }
 0xdba   :  { %vm2563_vm10 = vmor %vm2561_vm9, %vm2562_vm6  ;;  %vm2591_vm12 = vweird.f32 %v2554_v47 }
 0xdbb   :  { %v2557_v42 = vmul.f32 %v5323_v36, %v2556_v28 }
 0xdbd   :  { %v2558_v48 = vmul.f32 0.5, %v2557_v42 }
 0xdbe   :  { %v3133_v35 = vpop.f32.mrf.mxu2 }
 0xdbf   :  { %v2559_v14 = vsub.f32 1.5, %v2558_v48 }
 0xdc1   :  { %v2560_v46 = vmul.f32 %v5323_v36, %v2559_v14 }
 0xdc3   :  { %v3093_v20 = vpop.f32.mrf.mxu0  ;;  %v2564_v24 = vsel %vm2563_vm10, %v5323_v36, %v2560_v46 }
 0xdc4   :  { %v2595_v45 = vmul.f32 %v2564_v24, %v6768_v39 }
 0xdc6   :  { %v2600_v62 = vmul.f32 %v2599_v12, %v2595_v45 }
 0xdc8   :  { %v2605_v32 = vadd.f32 %v2604_v52, %v2600_v62 }
 0xdca   :  { %v2609_v18 = vmul.f32 %v2605_v32, %v6431_v7 }
 0xdcb   :  { %v3095_v43 = vpop.f32.mrf.mxu0 }
 0xde8   :  { %v2540_v19 = vpop.xlane.xlu1 %2539 }
 0xde9   :  { %v2548_v26 = vmul.f32 %v2540_v19, %v5930_v10 }
 0xdeb   :  { %v2552_v4 = vadd.f32 1e-05, %v2548_v26 }
 0xded   :  { %5324 = vrsqrt.f32 %v2552_v4  ;;  %vm2571_vm7 = vweird.f32 %v2552_v4 }
 0xdee   :  { %5326 = vrsqrt.f32 %v2554_v47 }
 0xdf3   :  { %v5325_v27 = vpop.eup %5324 }
 0xdf4   :  { %v2566_v5 = vmul.f32 %v5325_v27, %v2552_v4  ;;  %vm2572_vm5 = vweird.f32 %v5325_v27  ;;  %v5327_v39 = vpop.eup %5326 }
 0xdf5   :  { %vm2573_vm8 = vmor %vm2571_vm7, %vm2572_vm5  ;;  %v2586_v61 = vmul.f32 %v5327_v39, %v2554_v47  ;;  %vm2592_vm11 = vweird.f32 %v5327_v39 }
 0xdf6   :  { %v2567_v17 = vmul.f32 %v5325_v27, %v2566_v5  ;;  %vm2593_vm13 = vmor %vm2591_vm12, %vm2592_vm11 }
 0xdf7   :  { %v2587_v29 = vmul.f32 %v5327_v39, %v2586_v61 }
 0xdf8   :  { %v2568_v34 = vmul.f32 0.5, %v2567_v17  ;;  %v3150_v50 = vpop.f32.mrf.mxu3 }
 0xdf9   :  { %v3219_v41 = vpack.c.bf16 %v3150_v50, %v3131_v58  ;;  %v2588_v58 = vmul.f32 0.5, %v2587_v29 }
 0xdfa   :  { %v2569_v44 = vsub.f32 1.5, %v2568_v34 }
 0xdfb   :  { %4859 = vmatmul.msk.bf16.vlgmr.msra.gmra.mxu3 %vm464_vm2, %v3219_v41 }
 0xdfc   :  { %v2570_v51 = vmul.f32 %v5325_v27, %v2569_v44 }
 0xdfe   :  { %v2574_v22 = vsel %vm2573_vm8, %v5325_v27, %v2570_v51 }
 0xdff   :  { %v2596_v33 = vmul.f32 %v2574_v22, %v6787_v31 }
 0xe00   :  { %v3152_v38 = vpop.f32.mrf.mxu3  ;;  %v3171_v27 = vpop.f32.mrf.mxu0 }
 0xe01   :  { %v2601_v60 = vmul.f32 %v2599_v12, %v2596_v33 }
 0xe02   :  { %v3112_v1 = vpop.f32.mrf.mxu1 }
 0xe03   :  { %v3196_v55 = vpack.c.bf16 %v3112_v1, %v3093_v20  ;;  %v2606_v23 = vadd.f32 %v2604_v52, %v2601_v60  ;;  %v2589_v20 = vsub.f32 1.5, %v2588_v58 }
 0xe05   :  { %4858 = vmatmul.msk.bf16.vlgmr.msrb.gmra.mxu2 %vm464_vm2, %v3196_v55  ;;  %v2610_v8 = vmul.f32 %v2606_v23, %v6433_v56  ;;  %v2590_v56 = vmul.f32 %v5327_v39, %v2589_v20 }
 0xe07   :  { %v3491_v31 = vpack.c.bf16 %v2610_v8, %v2609_v18  ;;  %v2594_v16 = vsel %vm2593_vm13, %v5327_v39, %v2590_v56  ;;  %v5066_v18 = vld [vmem:[%s7294_s18 + $0x8] sm:$0xff] }
 0xe08   :  { %v2598_v54 = vmul.f32 %v2594_v16, %v6775_v49  ;;  %v3173_v14 = vpop.f32.mrf.mxu0  ;;  %3320 = vmatpush.bf16.msra.mxu0 %v5066_v18 }
 0xe0a   :  { %v3114_v30 = vpop.f32.mrf.mxu1  ;;  %v2603_v15 = vmul.f32 %v2599_v12, %v2598_v54 }
 0xe0c   :  { %v2608_v36 = vadd.f32 %v2604_v52, %v2603_v15 }
 0xe0e   :  { %v2612_v21 = vmul.f32 %v2608_v36, %v6524_v63  ;;  %v5074_v36 = vld [vmem:[%s7295_s19 + $0x38] sm:$0xff] }
 0xe0f   :  { %3380 = vmatpush.bf16.msra.mxu1 %v5074_v36 }
 0xe12   :  { %v3191_v49 = vpop.f32.mrf.mxu1 }
 0xe13   :  { %v3192_v5 = vadd.f32 %v3191_v49, %v3171_v27 }
 0xe15   :  { %4942 = vmatmul.msk.bf16.vlgmr.msra.gmra.mxu2 %vm152_vm0, %v3491_v31  ;;  %v5065_v31 = vld [vmem:[%s7294_s18] sm:$0xff] }
 0xe16   :  { %3321 = vmatpush.bf16.msra.mxu0 %v5065_v31 }
 0xe1a   :  { %v3193_v41 = vpop.f32.mrf.mxu1 }
 0xe1b   :  { %v3194_v44 = vadd.f32 %v3193_v41, %v3173_v14  ;;  %v5068_v41 = vld [vmem:[%s7295_s19 + $0x8] sm:$0xff] }
 0xe27   :  { %v2543_v0 = vpop.xlane.xlu2 %2542 }
 0xe28   :  { %v2549_v9 = vmul.f32 %v2543_v0, %v5930_v10 }
 0xe2a   :  { %v2553_v35 = vadd.f32 1e-05, %v2549_v9 }
 0xe2c   :  { %5328 = vrsqrt.f32 %v2553_v35  ;;  %vm2581_vm15 = vweird.f32 %v2553_v35 }
 0xe32   :  { %v5329_v43 = vpop.eup %5328 }
 0xe33   :  { %v2576_v7 = vmul.f32 %v5329_v43, %v2553_v35  ;;  %vm2582_vm14 = vweird.f32 %v5329_v43 }
 0xe34   :  { %vm2583_vm4 = vmor %vm2581_vm15, %vm2582_vm14 }
 0xe35   :  { %v2577_v59 = vmul.f32 %v5329_v43, %v2576_v7 }
 0xe37   :  { %v2578_v6 = vmul.f32 0.5, %v2577_v59 }
 0xe39   :  { %v2579_v37 = vsub.f32 1.5, %v2578_v6 }
 0xe3b   :  { %v2580_v40 = vmul.f32 %v5329_v43, %v2579_v37 }
 0xe3d   :  { %v2584_v19 = vsel %vm2583_vm4, %v5329_v43, %v2580_v40  ;;  %v4901_v40 = vld [vmem:[%s7289_s20 + $0x20] sm:$0xff] }
 0xe3e   :  { %v2597_v26 = vmul.f32 %v2584_v19, %v6803_v53  ;;  %v5124_v53 = vld [vmem:[%s7326_s30 + $0x13] ss:$0 sm:$0xff]  ;;  %v6880_v15 = vpack.c.bf16 %v4901_v40, %v4901_v40 }
 0xe40   :  { %v2602_v2 = vmul.f32 %v2599_v12, %v2597_v26  ;;  %v5125_v12 = vld [vmem:[%s7326_s30 + $0x1a] ss:$0 sm:$0xff] }
 0xe42   :  { %v2607_v4 = vadd.f32 %v2604_v52, %v2602_v2 }
 0xe44   :  { %v2611_v28 = vmul.f32 %v2607_v4, %v6572_v11  ;;  %v2617_v11 = vld [vmem:[%s7293_s21] sm:$0xff]  ;;  %v5073_v4 = vld [vmem:[%s7295_s19 + $0x30] sm:$0xff] }
 0xe45   :  { %3381 = vmatpush.bf16.msra.mxu1 %v5073_v4 }
 0xe46   :  { %v3492_v42 = vpack.c.bf16 %v2612_v21, %v2611_v28  ;;  %v5072_v28 = vld [vmem:[%s7295_s19 + $0x28] sm:$0xff]  ;;  %v5071_v21 = vld [vmem:[%s7295_s19 + $0x20] sm:$0xff] }
 0xe48   :  { %4943 = vmatmul.msk.bf16.gmra.mxu2 %vm152_vm0, %v3492_v42 }
 0xe49   :  { %3382 = vmatpush.bf16.msra.mxu1 %v5072_v28  ;;  %v4903_v28 = vld [vmem:[%s7289_s20 + $0x30] sm:$0xff] }
 0xe4d   :  { %3383 = vmatpush.bf16.msra.mxu1 %v5071_v21 }
 0xe7e   :  { %v3235_v48 = vpop.f32.mrf.mxu3 }
 0xe86   :  { %v3237_v3 = vpop.f32.mrf.mxu3 }
 0xe88   :  { %v3212_v17 = vpop.f32.mrf.mxu2 }
 0xe89   :  { %v3217_v34 = vadd.f32 %v3212_v17, %v3192_v5  ;;  %v5070_v5 = vld [vmem:[%s7295_s19 + $0x18] sm:$0xff] }
 0xe8a   :  { %3384 = vmatpush.bf16.msra.mxu1 %v5070_v5 }
 0xe8b   :  { %v3240_v50 = vadd.f32 %v3235_v48, %v3217_v34  ;;  %v5069_v48 = vld [vmem:[%s7295_s19 + $0x10] sm:$0xff] }
 0xe8d   :  { %v3243_v63 = vadd.f32 %v5124_v53, %v3240_v50 }
 0xe8e   :  { %3385 = vmatpush.bf16.msra.mxu1 %v5069_v48  ;;  %v3565_v48 = vpack.c.bf16 %v4903_v28, %v4903_v28 }
 0xe8f   :  { %v3245_v51 = vadd.f32 %v3243_v63, %v2617_v11 }
 0xe90   :  { %v3214_v46 = vpop.f32.mrf.mxu2 }
 0xe91   :  { %v3218_v22 = vadd.f32 %v3214_v46, %v3194_v44  ;;  %v3247_v38 = vsel %vm152_vm0, %v3245_v51, 0.0  ;;  %v5067_v44 = vld [vmem:[%s7295_s19] sm:$0xff] }
 0xe92   :  { %3248 = vadd.xlane.f32.xlu1 %v3247_v38  ;;  %3386 = vmatpush.bf16.msra.mxu1 %v5068_v41 }
 0xe93   :  { %v3241_v24 = vadd.f32 %v3237_v3, %v3218_v22 }
 0xe95   :  { %v3244_v1 = vadd.f32 %v5124_v53, %v3241_v24 }
 0xe96   :  { %3387 = vmatpush.bf16.msra.mxu1 %v5067_v44 }
 0xe97   :  { %v3246_v33 = vadd.f32 %v3244_v1, %v2617_v11 }
 0xe98   :  { %v3521_v55 = vpop.f32.mrf.mxu2 }
 0xe99   :  { %v3250_v45 = vsel %vm152_vm0, %v3246_v33, 0.0  ;;  %v3522_v60 = vadd.f32 %v5125_v12, %v3521_v55 }
 0xe9a   :  { %3251 = vadd.xlane.f32.xlu2 %v3250_v45 }
 0xe9b   :  { %v3531_v62 = vpack.c.bf16 %v3522_v60, %v3522_v60 }
 0xe9d   :  { %v3567_v32 = vunpack.c.l.b16 %v3531_v62 }
 0xea0   :  { %v3523_v52 = vpop.f32.mrf.mxu2 }
 0xea1   :  { %v3524_v30 = vadd.f32 %v5125_v12, %v3523_v52 }
 0xea3   :  { %v3532_v23 = vpack.c.bf16 %v3524_v30, %v3524_v30  ;;  %v2648_v30 = vld [vmem:[%s7326_s30 + $0x14] sm:$0x3] }
 0xea4   :  { %v3291_v18 = vperm.slane %v2648_v30, 0 }
 0xea5   :  { %v3568_v25 = vunpack.c.l.b16 %v3532_v23 }
 0xea7   :  { %v6852_v8 = vpack.c.b16 %v3568_v25, %v3567_v32 }
 0xea9   :  { %v3574_v57 = vsel %vm464_vm2, %v6852_v8, 0 }
 0xeaa   :  { %3583 = vmatpush.bf16.xpose.msrb.mxu3 %v3574_v57 }
 0xeb1   :  { %4944 = vmatmul.msk.bf16.vlgmr.msrb.gmra.mxu3 %vm464_vm2, %v6880_v15 }
 0xeb2   :  { %3539 = vrot.lane.b32.xlu2 %v3531_v62, %s5413_s17 }
 0xecb   :  { %v3526_v47 = vpop.f32.mrf.mxu2 }
 0xecc   :  { %v3527_v39 = vadd.f32 %v5125_v12, %v3526_v47 }
 0xece   :  { %v3533_v61 = vpack.c.bf16 %v3527_v39, %v3527_v39 }
 0xed0   :  { %3543 = vrot.lane.b32.xlu2 %v3533_v61, %s5413_s17  ;;  %v3589_v58 = vunpack.c.l.b16 %v3533_v61 }
 0xed3   :  { %v3528_v29 = vpop.f32.mrf.mxu2 }
 0xed4   :  { %v3529_v0 = vadd.f32 %v5125_v12, %v3528_v29 }
 0xed6   :  { %v3534_v9 = vpack.c.bf16 %v3529_v0, %v3529_v0 }
 0xed8   :  { %3555 = vrot.lane.b32.xlu2 %v3531_v62, %s5412_s27  ;;  %v3590_v35 = vunpack.c.l.b16 %v3534_v9 }
 0xeda   :  { %v6865_v20 = vpack.c.b16 %v3590_v35, %v3589_v58  ;;  %v3294_v58 = vperm.slane %v2648_v30, 1 }
 0xedc   :  { %v3593_v56 = vsel %vm464_vm2, %v6865_v20, 0 }
 0xedd   :  { %3602 = vmatpush.bf16.xpose.msrb.mxu0 %v3593_v56 }
 0xee0   :  { %3549 = vrot.lane.b32.xlu2 %v3532_v23, %s5406_s23 }
 0xf05   :  { %v3249_v43 = vpop.xlane.xlu1 %3248 }
 0xf06   :  { %v3253_v7 = vmul.f32 %v3249_v43, %v5930_v10 }
 0xf08   :  { %v6871_v16 = vsub.f32 %v3245_v51, %v3253_v7 }
 0xf0a   :  { %v3257_v59 = vmul.f32 %v6871_v16, %v6871_v16 }
 0xf0c   :  { %v3259_v6 = vsel %vm152_vm0, %v3257_v59, 0.0 }
 0xf0d   :  { %v3252_v54 = vpop.xlane.xlu2 %3251  ;;  %3260 = vadd.xlane.f32.xlu0 %v3259_v6 }
 0xf0e   :  { %v3254_v37 = vmul.f32 %v3252_v54, %v5930_v10 }
 0xf10   :  { %v6882_v19 = vsub.f32 %v3246_v33, %v3254_v37 }
 0xf12   :  { %v3258_v26 = vmul.f32 %v6882_v19, %v6882_v19 }
 0xf14   :  { %v3262_v2 = vsel %vm152_vm0, %v3258_v26, 0.0 }
 0xf15   :  { %3263 = vadd.xlane.f32.xlu1 %v3262_v2  ;;  %v3540_v63 = vpop.permute.xlu2 %3539 }
 0xf16   :  { %v3608_v38 = vunpack.c.l.b16 %v3540_v63  ;;  %v4904_v63 = vld [vmem:[%s7289_s20 + $0x38] sm:$0xff] }
 0xf21   :  { %3541 = vrot.lane.b32.xlu0 %v3532_v23, %s5413_s17 }
 0xf29   :  { %3553 = vrot.lane.b32.xlu0 %v3534_v9, %s5406_s23 }
 0xf2a   :  { %v3544_v12 = vpop.permute.xlu2 %3543 }
 0xf2b   :  { %v3630_v26 = vunpack.c.l.b16 %v3544_v12 }
 0xf2e   :  { %3551 = vrot.lane.b32.xlu1 %v3533_v61, %s5406_s23 }
 0xf31   :  { %3545 = vrot.lane.b32.xlu0 %v3534_v9, %s5413_s17 }
 0xf34   :  { %v3585_v55 = vpop.f32.mrf.mxu3 }
 0xf35   :  { %v6924_v45 = vadd.f32 %v6636_v13, %v3585_v55  ;;  %v4902_v13 = vld [vmem:[%s7289_s20 + $0x28] sm:$0xff] }
 0xf36   :  { %3557 = vrot.lane.b32.xlu1 %v3532_v23, %s5412_s27 }
 0xf39   :  { %3547 = vrot.lane.b32.xlu0 %v3531_v62, %s5406_s23  ;;  %v3739_v62 = vsel %vm260_vm1, %v6924_v45, -inf }
 0xf3c   :  { %v3587_v29 = vpop.f32.mrf.mxu3 }
 0xf3e   :  { %3559 = vrot.lane.b32.xlu1 %v3533_v61, %s5412_s27  ;;  %v3564_v61 = vpack.c.bf16 %v4902_v13, %v4902_v13 }
 0xf41   :  { %3561 = vrot.lane.b32.xlu0 %v3534_v9, %s5412_s27  ;;  %v3556_v9 = vpop.permute.xlu2 %3555 }
 0xf68   :  { %3740 = vmax.xlane.f32.xlu1 %v3739_v62 }
 0xf80   :  { %v3261_v42 = vpop.xlane.xlu0 %3260 }
 0xf81   :  { %v3265_v49 = vmul.f32 %v3261_v42, %v5930_v10 }
 0xf83   :  { %v3267_v27 = vadd.f32 1e-05, %v3265_v49  ;;  %v3690_v49 = vunpack.c.l.b16 %v3556_v9 }
 0xf85   :  { %5330 = vrsqrt.f32 %v3267_v27  ;;  %vm3275_vm6 = vweird.f32 %v3267_v27 }
 0xf88   :  { %v3264_v17 = vpop.xlane.xlu1 %3263 }
 0xf89   :  { %v3266_v34 = vmul.f32 %v3264_v17, %v5930_v10 }
 0xf8b   :  { %v5331_v53 = vpop.eup %5330  ;;  %v3268_v50 = vadd.f32 1e-05, %v3266_v34 }
 0xf8c   :  { %v3270_v11 = vmul.f32 %v5331_v53, %v3267_v27  ;;  %vm3276_vm5 = vweird.f32 %v5331_v53  ;;  %v3550_v27 = vpop.permute.xlu2 %3549 }
 0xf8d   :  { %5332 = vrsqrt.f32 %v3268_v50  ;;  %vm3277_vm7 = vmor %vm3275_vm6, %vm3276_vm5  ;;  %vm3285_vm9 = vweird.f32 %v3268_v50 }
 0xf8e   :  { %v3271_v14 = vmul.f32 %v5331_v53, %v3270_v11 }
 0xf90   :  { %v3272_v51 = vmul.f32 0.5, %v3271_v14 }
 0xf92   :  { %v3273_v46 = vsub.f32 1.5, %v3272_v51  ;;  %v3566_v51 = vpack.c.bf16 %v4904_v63, %v4904_v63 }
 0xf93   :  { %v5333_v22 = vpop.eup %5332  ;;  %v3542_v3 = vpop.permute.xlu0 %3541 }
 0xf94   :  { %v3274_v24 = vmul.f32 %v5331_v53, %v3273_v46  ;;  %v3280_v1 = vmul.f32 %v5333_v22, %v3268_v50  ;;  %v3609_v33 = vunpack.c.l.b16 %v3542_v3  ;;  %vm3286_vm8 = vweird.f32 %v5333_v22 }
 0xf95   :  { %vm3287_vm10 = vmor %vm3285_vm9, %vm3286_vm8  ;;  %vm4316_vm9 = vcmask 1041409  }
 0xf96   :  { %v3281_v60 = vmul.f32 %v5333_v22, %v3280_v1  ;;  %v6926_v52 = vpack.c.b16 %v3609_v33, %v3608_v38  ;;  %v3278_v23 = vsel %vm3277_vm7, %v5331_v53, %v3274_v24  ;;  %v3650_v53 = vunpack.c.l.b16 %v3550_v27  ;;  %v6983_v33 = vld [vmem:[%s7291_s4] ss:$0 sm:$0xff] }
 0xf97   :  { %v3289_v31 = vmul.f32 %v3278_v23, %v6871_v16 }
 0xf98   :  { %v3282_v32 = vmul.f32 0.5, %v3281_v60  ;;  %v3615_v25 = vsel %vm464_vm2, %v6926_v52, 0 }
 0xf99   :  { %3624 = vmatpush.bf16.xpose.msra.mxu3 %v3615_v25  ;;  %v3292_v35 = vmul.f32 %v3291_v18, %v3289_v31 }
 0xf9a   :  { %v3283_v57 = vsub.f32 1.5, %v3282_v32 }
 0xf9b   :  { %v3554_v47 = vpop.permute.xlu0 %3553  ;;  %v6941_v54 = vadd.f32 %v3294_v58, %v3292_v35 }
 0xf9c   :  { %v3284_v39 = vmul.f32 %v5333_v22, %v3283_v57  ;;  %v3672_v59 = vunpack.c.l.b16 %v3554_v47  ;;  %v6993_v47 = vld [vmem:[%s7291_s4 + $0x1] ss:$0 sm:$0xff] }
 0xf9e   :  { %v3288_v0 = vsel %vm3287_vm10, %v5333_v22, %v3284_v39 }
 0xf9f   :  { %v3290_v56 = vmul.f32 %v3288_v0, %v6882_v19 }
 0xfa0   :  { %4946 = vmatmul.msk.bf16.vlgmr.msra.gmra.mxu3 %vm464_vm2, %v3564_v61  ;;  %v3552_v43 = vpop.permute.xlu1 %3551 }
 0xfa1   :  { %v3293_v7 = vmul.f32 %v3291_v18, %v3290_v56  ;;  %v3671_v6 = vunpack.c.l.b16 %v3552_v43 }
 0xfa3   :  { %v6943_v16 = vadd.f32 %v3294_v58, %v3293_v7  ;;  %v6945_v37 = vpack.c.b16 %v3672_v59, %v3671_v6  ;;  %v3546_v40 = vpop.permute.xlu0 %3545 }
 0xfa4   :  { %v3631_v2 = vunpack.c.l.b16 %v3546_v40 }
 0xfa5   :  { %v3297_v36 = vpack.c.bf16 %v6943_v16, %v6941_v54  ;;  %v3675_v19 = vsel %vm464_vm2, %v6945_v37, 0 }
 0xfa6   :  { %v6951_v4 = vpack.c.b16 %v3631_v2, %v3630_v26  ;;  %3684 = vmatpush.bf16.xpose.msrb.mxu2 %v3675_v19 }
 0xfa7   :  { %4868 = vmatmul.msk.bf16.vlgmr.msra.gmra.mxu0 %vm152_vm0, %v3297_v36 }
 0xfa8   :  { %v3558_v21 = vpop.permute.xlu1 %3557  ;;  %v3634_v42 = vsel %vm464_vm2, %v6951_v4, 0 }
 0xfa9   :  { %v3691_v5 = vunpack.c.l.b16 %v3558_v21  ;;  %3643 = vmatpush.bf16.xpose.msra.mxu0 %v3634_v42 }
 0xfab   :  { %v6959_v17 = vpack.c.b16 %v3691_v5, %v3690_v49  ;;  %v3548_v34 = vpop.permute.xlu0 %3547 }
 0xfac   :  { %v3649_v50 = vunpack.c.l.b16 %v3548_v34 }
 0xfad   :  { %4949 = vmatmul.msk.bf16.vlgmr.msrb.gmra.mxu2 %vm464_vm2, %v3565_v48  ;;  %v3697_v41 = vsel %vm464_vm2, %v6959_v17, 0 }
 0xfae   :  { %v6964_v11 = vpack.c.b16 %v3650_v53, %v3649_v50  ;;  %3706 = vmatpush.bf16.xpose.msrb.mxu3 %v3697_v41 }
 0xfb0   :  { %v3656_v14 = vsel %vm464_vm2, %v6964_v11, 0  ;;  %v3560_v44 = vpop.permute.xlu1 %3559 }
 0xfb1   :  { %3665 = vmatpush.bf16.xpose.msrb.mxu1 %v3656_v14  ;;  %v3712_v22 = vunpack.c.l.b16 %v3560_v44 }
 0xfb3   :  { %v3562_v46 = vpop.permute.xlu0 %3561 }
 0xfb4   :  { %v3713_v38 = vunpack.c.l.b16 %v3562_v46 }
 0xfb5   :  { %4950 = vmatmul.msk.bf16.vlgmr.msrb.gmra.mxu3 %vm464_vm2, %v3566_v51 }
 0xfb6   :  { %v6972_v3 = vpack.c.b16 %v3713_v38, %v3712_v22 }
 0xfb7   :  { %4945 = vmatmul.msk.bf16.vlgmr.msrb.gmra.mxu0 %vm464_vm2, %v6880_v15  ;;  %v5126_v15 = vld [vmem:[%s7326_s30 + $0x16] ss:$0 sm:$0xff] }
 0xfb8   :  { %v3716_v24 = vsel %vm464_vm2, %v6972_v3, 0 }
 0xfb9   :  { %3725 = vmatpush.bf16.xpose.msrb.mxu0 %v3716_v24 }
 0xfc7   :  { %4947 = vmatmul.msk.bf16.vlgmr.msra.gmra.mxu0 %vm464_vm2, %v3564_v61 }
 0xfd7   :  { %4951 = vmatmul.msk.bf16.vlgmr.msrb.gmra.mxu0 %vm464_vm2, %v3566_v51 }
 0xfdb   :  { %v3741_v57 = vpop.xlane.xlu1 %3740 }
 0xfdc   :  { %v3763_v61 = vsub.f32 %v6924_v45, %v3741_v57 }
 0xfde   :  { %v3771_v9 = vmul.f32 1.442695, %v3763_v61 }
 0xfe0   :  { %5334 = vpow2.f32 %v3771_v9 }
 0xfe6   :  { %v5335_v59 = vpop.eup %5334 }
 0xfe7   :  { %v3787_v6 = vsel %vm260_vm1, %v5335_v59, 0.0 }
0x1023   :  { %v3626_v1 = vpop.f32.mrf.mxu3 }
0x1024   :  { %v3733_v55 = vadd.f32 %v6983_v33, %v3626_v1  ;;  %v3323_v12 = vpop.f32.mrf.mxu0 }
0x1025   :  { %v3324_v62 = vadd.f32 %v5126_v15, %v3323_v12 }
0x1026   :  { %v3745_v60 = vsel %vm260_vm1, %v3733_v55, -inf }
0x1027   :  { %3746 = vmax.xlane.f32.xlu0 %v3745_v60  ;;  %v3328_v25 = vmax.f32 %v3324_v62, 0.0 }
0x102b   :  { %v3628_v30 = vpop.f32.mrf.mxu3 }
0x102c   :  { %v3325_v23 = vpop.f32.mrf.mxu0 }
0x102d   :  { %v3326_v32 = vadd.f32 %v5126_v15, %v3325_v23 }
0x102f   :  { %v3329_v13 = vmax.f32 %v3326_v32, 0.0 }
0x1030   :  { %v3686_v18 = vpop.f32.mrf.mxu2 }
0x1031   :  { %v3330_v31 = vpack.c.bf16 %v3329_v13, %v3328_v25  ;;  %v3736_v39 = vadd.f32 %v6993_v47, %v3686_v18 }
0x1033   :  { %3388 = vmatmul.bf16.vlgmr.msra.gmra.mxu1 %v3330_v31  ;;  %v3754_v29 = vsel %vm260_vm1, %v3736_v39, -inf }
0x1034   :  { %3755 = vmax.xlane.f32.xlu1 %v3754_v29  ;;  %v3604_v0 = vpop.f32.mrf.mxu0 }
0x1035   :  { %v3732_v63 = vadd.f32 %v6993_v47, %v3604_v0 }
0x1037   :  { %v3742_v44 = vsel %vm260_vm1, %v3732_v63, -inf }
0x1038   :  { %v3708_v58 = vpop.f32.mrf.mxu3  ;;  %v3688_v35 = vpop.f32.mrf.mxu2 }
0x1039   :  { %v3737_v56 = vadd.f32 %v6983_v33, %v3708_v58 }
0x103b   :  { %3854 = vrot.lane.b32.xlu0 %v6865_v20, %s5407_s7  ;;  %v3757_v43 = vsel %vm260_vm1, %v3737_v56, -inf }
0x103c   :  { %3758 = vmax.xlane.f32.xlu2 %v3757_v43  ;;  %v3606_v7 = vpop.f32.mrf.mxu0 }
0x1040   :  { %v3710_v45 = vpop.f32.mrf.mxu3 }
0x1043   :  { %4948 = vmatmul.msk.bf16.vlgmr.msrb.gmra.mxu1 %vm464_vm2, %v3565_v48 }
0x1044   :  { %3788 = vadd.xlane.f32.xlu2 %v3787_v6  ;;  %v3645_v40 = vpop.f32.mrf.mxu0 }
0x1045   :  { %v3734_v60 = vadd.f32 %v6993_v47, %v3645_v40 }
0x1047   :  { %v3748_v15 = vsel %vm260_vm1, %v3734_v60, -inf }
0x104c   :  { %v3647_v26 = vpop.f32.mrf.mxu0 }
0x104d   :  { %3835 = vrot.lane.b32.xlu1 %v6852_v8, %s5407_s7 }
0x1054   :  { %v3727_v2 = vpop.f32.mrf.mxu0 }
0x1055   :  { %v7008_v5 = vadd.f32 %v6993_v47, %v3727_v2 }
0x1057   :  { %v3760_v8 = vsel %vm260_vm1, %v7008_v5, -inf }
0x105c   :  { %v3729_v36 = vpop.f32.mrf.mxu0 }
0x109a   :  { %v3747_v19 = vpop.xlane.xlu0 %3746 }
0x109b   :  { %v3765_v20 = vsub.f32 %v3733_v55, %v3747_v19 }
0x109d   :  { %v3775_v28 = vmul.f32 1.442695, %v3765_v20 }
0x109f   :  { %5336 = vpow2.f32 %v3775_v28 }
0x10a5   :  { %v5337_v21 = vpop.eup %5336 }
0x10a6   :  { %v3793_v42 = vsel %vm260_vm1, %v5337_v21, 0.0 }
0x10a7   :  { %3794 = vadd.xlane.f32.xlu1 %v3793_v42  ;;  %v3756_v49 = vpop.xlane.xlu1 %3755 }
0x10a8   :  { %v3768_v27 = vsub.f32 %v3736_v39, %v3756_v49 }
0x10aa   :  { %v3781_v48 = vmul.f32 1.442695, %v3768_v27 }
0x10ac   :  { %5338 = vpow2.f32 %v3781_v48 }
0x10ad   :  { %v3855_v34 = vpop.permute.xlu0 %3854 }
0x10ae   :  { %3867 = vmatpush.bf16.msra.mxu2 %v3855_v34 }
0x10af   :  { %v3759_v53 = vpop.xlane.xlu2 %3758  ;;  %3761 = vmax.xlane.f32.xlu1 %v3760_v8 }
0x10b0   :  { %v3769_v24 = vsub.f32 %v3737_v56, %v3759_v53  ;;  %v7026_v62 = vpop.f32.mrf.mxu1 }
0x10b2   :  { %v7012_v50 = vpop.eup %5338  ;;  %v3783_v1 = vmul.f32 1.442695, %v3769_v24 }
0x10b3   :  { %v3802_v41 = vsel %vm260_vm1, %v7012_v50, 0.0 }
0x10b4   :  { %3803 = vadd.xlane.f32.xlu2 %v3802_v41 }
0x10b7   :  { %v3789_v14 = vpop.xlane.xlu2 %3788 }
0x10b8   :  { %5340 = vrcp.f32 %v3789_v14  ;;  %v7028_v30 = vpop.f32.mrf.mxu1 }
0x10b9   :  { %5342 = vpow2.f32 %v3783_v1 }
0x10bc   :  { %3743 = vmax.xlane.f32.xlu2 %v3742_v44 }
0x10be   :  { %v5341_v51 = vpop.eup %5340 }
0x10bf   :  { %v3819_v46 = vmul.f32 %v5341_v51, %v5335_v59  ;;  %v3836_v22 = vpop.permute.xlu1 %3835  ;;  %v5343_v55 = vpop.eup %5342 }
0x10c0   :  { %3848 = vmatpush.bf16.msra.mxu1 %v3836_v22  ;;  %v3805_v12 = vsel %vm260_vm1, %v5343_v55, 0.0 }
0x10c1   :  { %v3827_v38 = vpack.c.bf16 %v3819_v46, %v3819_v46 }
0x10c3   :  { %4952 = vmatmul.msk.bf16.vlgmr.msra.gmra.mxu1 %vm260_vm1, %v3827_v38 }
0x10c8   :  { %3892 = vrot.lane.b32.xlu1 %v6951_v4, %s5407_s7 }
0x10d4   :  { %3873 = vrot.lane.b32.xlu2 %v6926_v52, %s5407_s7  ;;  %v3667_v52 = vpop.f32.mrf.mxu1 }
0x10d5   :  { %v3735_v9 = vadd.f32 %v6983_v33, %v3667_v52 }
0x10d7   :  { %v3751_v35 = vsel %vm260_vm1, %v3735_v9, -inf }
0x10dc   :  { %v3669_v4 = vpop.f32.mrf.mxu1 }
0x10f2   :  { %3806 = vadd.xlane.f32.xlu1 %v3805_v12 }
0x10fd   :  { %3749 = vmax.xlane.f32.xlu2 %v3748_v15 }
0x110b   :  { %3949 = vrot.lane.b32.xlu1 %v6959_v17, %s5407_s7 }
0x111a   :  { %v3795_v32 = vpop.xlane.xlu1 %3794 }
0x111b   :  { %5344 = vrcp.f32 %v3795_v32 }
0x1121   :  { %v5345_v18 = vpop.eup %5344 }
0x1122   :  { %v3762_v57 = vpop.xlane.xlu1 %3761  ;;  %v3821_v47 = vmul.f32 %v5345_v18, %v5337_v21 }
0x1124   :  { %v3829_v61 = vpack.c.bf16 %v3821_v47, %v3821_v47 }
0x1127   :  { %v7032_v23 = vpop.xlane.xlu2 %3803 }
0x112f   :  { %v3744_v25 = vpop.xlane.xlu2 %3743 }
0x1130   :  { %v3764_v13 = vsub.f32 %v3732_v63, %v3744_v25 }
0x1132   :  { %v3773_v31 = vmul.f32 1.442695, %v3764_v13 }
0x1134   :  { %5346 = vpow2.f32 %v3773_v31 }
0x1137   :  { %v3874_v39 = vpop.permute.xlu2 %3873 }
0x1138   :  { %3886 = vmatpush.bf16.msra.mxu3 %v3874_v39  ;;  %v4911_v39 = vld [vmem:[%s7337_s10 + $0x14] sm:$0xf] }
0x113a   :  { %v5347_v29 = vpop.eup %5346  ;;  %v3893_v0 = vpop.permute.xlu1 %3892 }
0x113b   :  { %4954 = vmatmul.msk.bf16.vlgmr.msra.gmra.mxu3 %vm260_vm1, %v3829_v61  ;;  %3905 = vmatpush.bf16.msra.mxu0 %v3893_v0  ;;  %v3790_v17 = vsel %vm260_vm1, %v5347_v29, 0.0  ;;  %v3993_v61 = vsel %vm669_vm3, %v4911_v39, 0 }
0x113c   :  { %3791 = vadd.xlane.f32.xlu0 %v3790_v17 }
0x1140   :  { %v7037_v58 = vpop.f32.mrf.mxu1 }
0x1144   :  { %3752 = vmax.xlane.f32.xlu0 %v3751_v35  ;;  %v4912_v35 = vld [vmem:[%s7337_s10 + $0x18] sm:$0xf] }
0x1148   :  { %v3852_v56 = vpop.f32.mrf.mxu1 }
0x1149   :  { %v4034_v56 = vsel %vm669_vm3, %v4912_v35, 0 }
0x1158   :  { %3911 = vrot.lane.b32.xlu0 %v6964_v11, %s5407_s7  ;;  %v3770_v11 = vsub.f32 %v7008_v5, %v3762_v57 }
0x115a   :  { %v3785_v20 = vmul.f32 1.442695, %v3770_v11 }
0x1165   :  { %v3807_v43 = vpop.xlane.xlu1 %3806 }
0x1166   :  { %5348 = vrcp.f32 %v3807_v43  ;;  %v4913_v43 = vld [vmem:[%s7337_s10 + $0x1c] sm:$0xf] }
0x116c   :  { %v5349_v6 = vpop.eup %5348 }
0x116d   :  { %v3825_v26 = vmul.f32 %v5349_v6, %v5343_v55 }
0x116f   :  { %v3833_v36 = vpack.c.bf16 %v3825_v26, %v3825_v26 }
0x1170   :  { %v3750_v7 = vpop.xlane.xlu2 %3749 }
0x1171   :  { %v3766_v59 = vsub.f32 %v3734_v60, %v3750_v7  ;;  %v4057_v7 = vsel %vm669_vm3, %v4913_v43, 0 }
0x1173   :  { %v3777_v45 = vmul.f32 1.442695, %v3766_v59 }
0x1175   :  { %5350 = vpow2.f32 %v3777_v45 }
0x117b   :  { %v5351_v40 = vpop.eup %5350 }
0x117c   :  { %v3796_v33 = vsel %vm260_vm1, %v5351_v40, 0.0 }
0x117d   :  { %3797 = vadd.xlane.f32.xlu2 %v3796_v33  ;;  %v3950_v2 = vpop.permute.xlu1 %3949 }
0x117e   :  { %3962 = vmatpush.bf16.msrb.mxu3 %v3950_v2 }
0x1181   :  { %4958 = vmatmul.msk.bf16.vlgmr.msrb.gmra.mxu3 %vm260_vm1, %v3833_v36 }
0x1182   :  { %4043 = vmatpush.bf16.msra.mxu3 %v4034_v56 }
0x1195   :  { %3930 = vrot.lane.b32.xlu2 %v6945_v37, %s5407_s7 }
0x11af   :  { %v3792_v19 = vpop.xlane.xlu0 %3791 }
0x11b0   :  { %5352 = vrcp.f32 %v3792_v19 }
0x11b1   :  { %5354 = vpow2.f32 %v3785_v20 }
0x11b6   :  { %v5353_v28 = vpop.eup %5352 }
0x11b7   :  { %v3820_v21 = vmul.f32 %v5353_v28, %v5347_v29  ;;  %v3753_v42 = vpop.xlane.xlu0 %3752  ;;  %v5355_v48 = vpop.eup %5354  ;;  %v5128_v28 = vld [vmem:[%s7326_s30 + $0x1b] ss:$0 sm:$0xff] }
0x11b8   :  { %v3767_v49 = vsub.f32 %v3735_v9, %v3753_v42  ;;  %v3808_v34 = vsel %vm260_vm1, %v5355_v48, 0.0 }
0x11b9   :  { %v3828_v27 = vpack.c.bf16 %v3820_v21, %v3820_v21 }
0x11ba   :  { %v3779_v8 = vmul.f32 1.442695, %v3767_v49 }
0x11bb   :  { %4953 = vmatmul.msk.bf16.vlgmr.msra.gmra.mxu2 %vm260_vm1, %v3828_v27  ;;  %v4905_v27 = vld [vmem:[%s7293_s21 + $0x8] sm:$0xff] }
0x11bc   :  { %5356 = vpow2.f32 %v3779_v8 }
0x11bd   :  { %5358 = vrcp.f32 %v7032_v23 }
0x11be   :  { %v3888_v53 = vpop.f32.mrf.mxu3  ;;  %3809 = vadd.xlane.f32.xlu2 %v3808_v34 }
0x11c2   :  { %v5357_v37 = vpop.eup %5356 }
0x11c3   :  { %v3799_v5 = vsel %vm260_vm1, %v5357_v37, 0.0  ;;  %v5359_v44 = vpop.eup %5358 }
0x11c4   :  { %3800 = vadd.xlane.f32.xlu0 %v3799_v5  ;;  %v3824_v51 = vmul.f32 %v5359_v44, %v7012_v50 }
0x11c6   :  { %v3890_v41 = vpop.f32.mrf.mxu3  ;;  %v3832_v24 = vpack.c.bf16 %v3824_v51, %v3824_v51 }
0x11ca   :  { %v3912_v63 = vpop.permute.xlu0 %3911 }
0x11cb   :  { %3924 = vmatpush.bf16.msrb.mxu1 %v3912_v63 }
0x11cf   :  { %4002 = vmatpush.bf16.msra.mxu1 %v3993_v61 }
0x11d8   :  { %3968 = vrot.lane.b32.xlu0 %v6972_v3, %s5407_s7  ;;  %v4910_v3 = vld [vmem:[%s7337_s10 + $0x10] sm:$0xf] }
0x11d9   :  { %v4013_v60 = vsel %vm669_vm3, %v4910_v3, 0 }
0x11f0   :  { %v3798_v14 = vpop.xlane.xlu2 %3797 }
0x11f1   :  { %5360 = vrcp.f32 %v3798_v14 }
0x11f7   :  { %v5361_v46 = vpop.eup %5360 }
0x11f8   :  { %v3822_v22 = vmul.f32 %v5361_v46, %v5351_v40  ;;  %v3931_v38 = vpop.permute.xlu2 %3930 }
0x11f9   :  { %3943 = vmatpush.bf16.msrb.mxu2 %v3931_v38 }
0x11fa   :  { %v3830_v1 = vpack.c.bf16 %v3822_v22, %v3822_v22 }
0x11fc   :  { %4955 = vmatmul.msk.bf16.vlgmr.msra.gmra.mxu0 %vm260_vm1, %v3830_v1  ;;  %4957 = vmatmul.msk.bf16.vlgmr.msrb.gmra.mxu2 %vm260_vm1, %v3832_v24  ;;  %v5127_v24 = vld [vmem:[%s7326_s30 + $0x17] ss:$0 sm:$0xff] }
0x11fd   :  { %4022 = vmatpush.bf16.msra.mxu2 %v4013_v60 }
0x1204   :  { %v3964_v55 = vpop.f32.mrf.mxu3 }
0x120c   :  { %v3966_v12 = vpop.f32.mrf.mxu3 }
0x120d   :  { %v3390_v12 = vadd.f32 %v5127_v24, %v7026_v62 }
0x1231   :  { %v3810_v15 = vpop.xlane.xlu2 %3809 }
0x1237   :  { %v3801_v50 = vpop.xlane.xlu0 %3800 }
0x1238   :  { %5362 = vrcp.f32 %v3801_v50 }
0x1239   :  { %5364 = vrcp.f32 %v3810_v15  ;;  %v3394_v15 = vadd.f32 %v3390_v12, %v6941_v54  ;;  %v5078_v54 = vld [vmem:[%s7294_s18 + $0x18] sm:$0xff] }
0x123e   :  { %v5363_v52 = vpop.eup %5362  ;;  %v3869_v4 = vpop.f32.mrf.mxu2 }
0x123f   :  { %v3823_v23 = vmul.f32 %v5363_v52, %v5357_v37  ;;  %v3987_v32 = vpack.c.bf16 %v3869_v4, %v7037_v58  ;;  %v5365_v13 = vpop.eup %5364 }
0x1240   :  { %v3826_v18 = vmul.f32 %v5365_v13, %v5355_v48 }
0x1241   :  { %v3831_v25 = vpack.c.bf16 %v3823_v23, %v3823_v23  ;;  %4961 = vmatmul.msk.bf16.vlgmr.msra.gmra.mxu2 %vm464_vm2, %v3987_v32  ;;  %v3392_v23 = vadd.f32 %v5127_v24, %v7028_v30  ;;  %v3396_v32 = vsel %vm152_vm0, %v3394_v15, 0.0 }
0x1242   :  { %v3834_v47 = vpack.c.bf16 %v3826_v18, %v3826_v18 }
0x1243   :  { %4956 = vmatmul.msk.bf16.vlgmr.msrb.gmra.mxu1 %vm260_vm1, %v3831_v25  ;;  %v7099_v62 = vadd.f32 %v3392_v23, %v6943_v16 }
0x1244   :  { %4153 = vmatpush.bf16.msrb.mxu1 %v5078_v54 }
0x1245   :  { %v3399_v13 = vsel %vm152_vm0, %v7099_v62, 0.0 }
0x1246   :  { %v3871_v57 = vpop.f32.mrf.mxu2 }
0x124a   :  { %v3969_v31 = vpop.permute.xlu0 %3968 }
0x124b   :  { %3981 = vmatpush.bf16.msrb.mxu0 %v3969_v31  ;;  %v5077_v31 = vld [vmem:[%s7294_s18 + $0x10] sm:$0xff] }
0x124c   :  { %4154 = vmatpush.bf16.msrb.mxu1 %v5077_v31 }
0x124e   :  { %4959 = vmatmul.msk.bf16.vlgmr.msrb.gmra.mxu0 %vm260_vm1, %v3834_v47 }
0x124f   :  { %4066 = vmatpush.bf16.msra.mxu0 %v4057_v7 }
0x1279   :  { %v3907_v29 = vpop.f32.mrf.mxu0 }
0x127a   :  { %v3988_v0 = vpack.c.bf16 %v3907_v29, %v3888_v53 }
0x127c   :  { %4960 = vmatmul.msk.bf16.vlgmr.msra.gmra.mxu1 %vm464_vm2, %v3988_v0 }
0x127f   :  { %v3945_v17 = vpop.f32.mrf.mxu2 }
0x1281   :  { %v3909_v9 = vpop.f32.mrf.mxu0 }
0x1287   :  { %v3947_v58 = vpop.f32.mrf.mxu2 }
0x12c0   :  { %v3926_v59 = vpop.f32.mrf.mxu1 }
0x12c1   :  { %v4029_v45 = vpack.c.bf16 %v3945_v17, %v3926_v59 }
0x12c3   :  { %4962 = vmatmul.msk.bf16.vlgmr.msra.gmra.mxu3 %vm464_vm2, %v4029_v45 }
0x12c4   :  { %v4024_v36 = vpop.f32.mrf.mxu2 }
0x12c8   :  { %v3928_v6 = vpop.f32.mrf.mxu1 }
0x12cb   :  { %v3983_v40 = vpop.f32.mrf.mxu0 }
0x12cc   :  { %v4052_v26 = vpack.c.bf16 %v3983_v40, %v3964_v55  ;;  %v4026_v8 = vpop.f32.mrf.mxu2 }
0x12ce   :  { %4963 = vmatmul.msk.bf16.vlgmr.msra.gmra.mxu0 %vm464_vm2, %v4052_v26  ;;  %v3487_v26 = vld [vmem:[%s7326_s30 + $0x1c] sm:$0x3] }
0x12d3   :  { %v3985_v33 = vpop.f32.mrf.mxu0 }
0x12f9   :  { %v4004_v2 = vpop.f32.mrf.mxu1 }
0x12fa   :  { %v4025_v19 = vadd.f32 %v4024_v36, %v4004_v2 }
0x1301   :  { %v4006_v49 = vpop.f32.mrf.mxu1 }
0x1302   :  { %v4027_v53 = vadd.f32 %v4026_v8, %v4006_v49 }
0x1346   :  { %v4045_v11 = vpop.f32.mrf.mxu3 }
0x1347   :  { %v4050_v20 = vadd.f32 %v4045_v11, %v4025_v19  ;;  %v4124_v11 = vperm.slane %v3487_v26, 0 }
0x134b   :  { %v4068_v21 = vpop.f32.mrf.mxu0 }
0x134c   :  { %v4073_v42 = vadd.f32 %v4068_v21, %v4050_v20  ;;  %v4127_v21 = vperm.slane %v3487_v26, 1  ;;  %v2651_v26 = vld [vmem:[%s7326_s30 + $0x18] sm:$0x3] }
0x134e   :  { %v4076_v48 = vadd.f32 %v5128_v28, %v4073_v42  ;;  %v4047_v34 = vpop.f32.mrf.mxu3 }
0x134f   :  { %v4051_v5 = vadd.f32 %v4047_v34, %v4027_v53  ;;  %v5086_v53 = vld [vmem:[%s7295_s19 + $0x78] sm:$0xff] }
0x1350   :  { %v4078_v37 = vadd.f32 %v4905_v27, %v4076_v48  ;;  %4213 = vmatpush.bf16.msrb.mxu2 %v5086_v53 }
0x1352   :  { %v4080_v41 = vsel %vm152_vm0, %v4078_v37, 0.0 }
0x1353   :  { %v4070_v63 = vpop.f32.mrf.mxu0  ;;  %4081 = vadd.xlane.f32.xlu0 %v4080_v41  ;;  %v5083_v41 = vld [vmem:[%s7295_s19 + $0x60] sm:$0xff] }
0x1354   :  { %v4074_v14 = vadd.f32 %v4070_v63, %v4051_v5  ;;  %v5084_v5 = vld [vmem:[%s7295_s19 + $0x68] sm:$0xff]  ;;  %v5082_v63 = vld [vmem:[%s7295_s19 + $0x58] sm:$0xff] }
0x1356   :  { %v4077_v44 = vadd.f32 %v5128_v28, %v4074_v14  ;;  %v5081_v14 = vld [vmem:[%s7295_s19 + $0x50] sm:$0xff] }
0x1358   :  { %v4079_v51 = vadd.f32 %v4905_v27, %v4077_v44  ;;  %v5080_v44 = vld [vmem:[%s7295_s19 + $0x48] sm:$0xff] }
0x135a   :  { %v4083_v46 = vsel %vm152_vm0, %v4079_v51, 0.0 }
0x135b   :  { %4084 = vadd.xlane.f32.xlu2 %v4083_v46 }
0x13c6   :  { %v4082_v22 = vpop.xlane.xlu0 %4081 }
0x13c7   :  { %v4086_v38 = vmul.f32 %v4082_v22, %v5930_v10  ;;  %v5129_v22 = vld [vmem:[%s7326_s30 + $0x1e] ss:$0 sm:$0xff] }
0x13c9   :  { %v4088_v1 = vsub.f32 %v4078_v37, %v4086_v38  ;;  %v5085_v37 = vld [vmem:[%s7295_s19 + $0x70] sm:$0xff] }
0x13ca   :  { %4214 = vmatpush.bf16.msrb.mxu2 %v5085_v37  ;;  %v5087_v37 = vld [vmem:[%s7296_s22] sm:$0xff] }
0x13cb   :  { %v4090_v55 = vmul.f32 %v4088_v1, %v4088_v1 }
0x13cd   :  { %v4092_v3 = vsel %vm152_vm0, %v4090_v55, 0.0 }
0x13ce   :  { %4093 = vadd.xlane.f32.xlu2 %v4092_v3  ;;  %v4085_v60 = vpop.xlane.xlu2 %4084  ;;  %4215 = vmatpush.bf16.msrb.mxu2 %v5084_v5 }
0x13cf   :  { %v4087_v50 = vmul.f32 %v4085_v60, %v5930_v10  ;;  %v5130_v60 = vld [vmem:[%s7326_s30 + $0x1f] ss:$0 sm:$0xff] }
0x13d1   :  { %v4089_v52 = vsub.f32 %v4079_v51, %v4087_v50  ;;  %v5079_v51 = vld [vmem:[%s7295_s19 + $0x40] sm:$0xff] }
0x13d2   :  { %4216 = vmatpush.bf16.msrb.mxu2 %v5083_v41 }
0x13d3   :  { %v4091_v4 = vmul.f32 %v4089_v52, %v4089_v52 }
0x13d5   :  { %v4095_v25 = vsel %vm152_vm0, %v4091_v4, 0.0 }
0x13d6   :  { %3397 = vadd.xlane.f32.xlu2 %v3396_v32  ;;  %4096 = vadd.xlane.f32.xlu1 %v4095_v25 }
0x13d7   :  { %4217 = vmatpush.bf16.msrb.mxu2 %v5082_v63 }
0x13db   :  { %4218 = vmatpush.bf16.msrb.mxu2 %v5081_v14 }
0x13de   :  { %3400 = vadd.xlane.f32.xlu2 %v3399_v13 }
0x13df   :  { %4219 = vmatpush.bf16.msrb.mxu2 %v5080_v44 }
0x13e3   :  { %4220 = vmatpush.bf16.msrb.mxu2 %v5079_v51 }
0x1441   :  { %v4094_v57 = vpop.xlane.xlu2 %4093 }
0x1442   :  { %v4098_v30 = vmul.f32 %v4094_v57, %v5930_v10 }
0x1444   :  { %v4100_v18 = vadd.f32 1e-05, %v4098_v30 }
0x1446   :  { %5366 = vrsqrt.f32 %v4100_v18  ;;  %vm4108_vm2 = vweird.f32 %v4100_v18 }
0x1449   :  { %v4097_v16 = vpop.xlane.xlu1 %4096  ;;  %v3398_v47 = vpop.xlane.xlu2 %3397 }
0x144a   :  { %v4099_v39 = vmul.f32 %v4097_v16, %v5930_v10  ;;  %v3402_v61 = vmul.f32 %v3398_v47, %v5930_v10 }
0x144c   :  { %v5367_v29 = vpop.eup %5366  ;;  %v4101_v0 = vadd.f32 1e-05, %v4099_v39  ;;  %v7112_v17 = vsub.f32 %v3394_v15, %v3402_v61 }
0x144d   :  { %v4103_v9 = vmul.f32 %v5367_v29, %v4100_v18  ;;  %vm4109_vm1 = vweird.f32 %v5367_v29 }
0x144e   :  { %5368 = vrsqrt.f32 %v4101_v0  ;;  %v3406_v58 = vmul.f32 %v7112_v17, %v7112_v17  ;;  %vm4110_vm3 = vmor %vm4108_vm2, %vm4109_vm1  ;;  %vm4118_vm12 = vweird.f32 %v4101_v0 }
0x144f   :  { %v4104_v35 = vmul.f32 %v5367_v29, %v4103_v9 }
0x1450   :  { %v3408_v56 = vsel %vm152_vm0, %v3406_v58, 0.0 }
0x1451   :  { %v4105_v43 = vmul.f32 0.5, %v4104_v35  ;;  %3409 = vadd.xlane.f32.xlu0 %v3408_v56  ;;  %v3401_v23 = vpop.xlane.xlu2 %3400 }
0x1452   :  { %v3403_v25 = vmul.f32 %v3401_v23, %v5930_v10 }
0x1453   :  { %v4106_v7 = vsub.f32 1.5, %v4105_v43 }
0x1454   :  { %v5369_v59 = vpop.eup %5368  ;;  %v7154_v57 = vsub.f32 %v7099_v62, %v3403_v25 }
0x1455   :  { %v4107_v45 = vmul.f32 %v5367_v29, %v4106_v7  ;;  %v4113_v6 = vmul.f32 %v5369_v59, %v4101_v0  ;;  %vm4119_vm11 = vweird.f32 %v5369_v59 }
0x1456   :  { %vm4120_vm13 = vmor %vm4118_vm12, %vm4119_vm11  ;;  %v3407_v18 = vmul.f32 %v7154_v57, %v7154_v57 }
0x1457   :  { %v4114_v40 = vmul.f32 %v5369_v59, %v4113_v6  ;;  %v4111_v33 = vsel %vm4110_vm3, %v5367_v29, %v4107_v45 }
0x1458   :  { %v4122_v19 = vmul.f32 %v4111_v33, %v4088_v1  ;;  %v3411_v31 = vsel %vm152_vm0, %v3407_v18, 0.0 }
0x1459   :  { %v4115_v2 = vmul.f32 0.5, %v4114_v40 }
0x145a   :  { %v4125_v42 = vmul.f32 %v4124_v11, %v4122_v19 }
0x145b   :  { %v4116_v36 = vsub.f32 1.5, %v4115_v2 }
0x145c   :  { %v4128_v48 = vadd.f32 %v4127_v21, %v4125_v42 }
0x145d   :  { %v4117_v20 = vmul.f32 %v5369_v59, %v4116_v36  ;;  %v3440_v36 = vperm.slane %v2651_v26, 0 }
0x145f   :  { %v4121_v28 = vsel %vm4120_vm13, %v5369_v59, %v4117_v20  ;;  %vm4358_vm13 = vcmask 1041408  }
0x1460   :  { %v4123_v49 = vmul.f32 %v4121_v28, %v4089_v52 }
0x1462   :  { %v4126_v27 = vmul.f32 %v4124_v11, %v4123_v49 }
0x1464   :  { %v4129_v8 = vadd.f32 %v4127_v21, %v4126_v27  ;;  %v3443_v21 = vperm.slane %v2651_v26, 1 }
0x1466   :  { %v4130_v34 = vpack.c.bf16 %v4129_v8, %v4128_v48 }
0x1468   :  { %4972 = vmatmul.msk.bf16.vlgmr.msrb.gmra.mxu1 %vm152_vm0, %v4130_v34 }
0x14c4   :  { %v3410_v16 = vpop.xlane.xlu0 %3409 }
0x14c5   :  { %v3414_v47 = vmul.f32 %v3410_v16, %v5930_v10 }
0x14c7   :  { %v3416_v39 = vadd.f32 1e-05, %v3414_v47 }
0x14c9   :  { %5370 = vrsqrt.f32 %v3416_v39  ;;  %vm3424_vm15 = vweird.f32 %v3416_v39 }
0x14cf   :  { %v5371_v61 = vpop.eup %5370 }
0x14d0   :  { %v3419_v29 = vmul.f32 %v5371_v61, %v3416_v39  ;;  %vm3425_vm14 = vweird.f32 %v5371_v61 }
0x14d1   :  { %vm3426_vm4 = vmor %vm3424_vm15, %vm3425_vm14 }
0x14d2   :  { %v3420_v0 = vmul.f32 %v5371_v61, %v3419_v29 }
0x14d4   :  { %v3421_v9 = vmul.f32 0.5, %v3420_v0 }
0x14d6   :  { %v3422_v56 = vsub.f32 1.5, %v3421_v9 }
0x14d8   :  { %v3423_v59 = vmul.f32 %v5371_v61, %v3422_v56 }
0x14da   :  { %v3427_v33 = vsel %vm3426_vm4, %v5371_v61, %v3423_v59 }
0x14db   :  { %v3438_v11 = vmul.f32 %v3427_v33, %v7112_v17 }
0x14dd   :  { %v3441_v42 = vmul.f32 %v3440_v36, %v3438_v11  ;;  %v5090_v11 = vld [vmem:[%s7296_s22 + $0x18] sm:$0xff] }
0x14de   :  { %4427 = vmatpush.bf16.msrb.mxu0 %v5090_v11 }
0x14df   :  { %v7178_v27 = vadd.f32 %v3443_v21, %v3441_v42 }
0x14e1   :  { %v4286_v17 = vsel %vm152_vm0, %v7178_v27, 0.0 }
0x14e2   :  { %v4287_v5 = vrot.slane %v4286_v17, 4 }
0x14e4   :  { %v4288_v44 = vadd.f32 %v4287_v5, %v4286_v17 }
0x14e5   :  { %v4156_v46 = vpop.f32.mrf.mxu1 }
0x14e6   :  { %v4157_v38 = vadd.f32 %v5129_v22, %v4156_v46 }
0x14e8   :  { %v4161_v55 = vmax.f32 %v4157_v38, 0.0  ;;  %v4289_v38 = vrot.slane %v4288_v44, 2 }
0x14ed   :  { %v4158_v24 = vpop.f32.mrf.mxu1 }
0x14ee   :  { %v4159_v1 = vadd.f32 %v5129_v22, %v4158_v24 }
0x14f0   :  { %v4162_v12 = vmax.f32 %v4159_v1, 0.0 }
0x14f2   :  { %v4163_v3 = vpack.c.bf16 %v4162_v12, %v4161_v55 }
0x14f4   :  { %4221 = vmatmul.bf16.vlgmr.msrb.gmra.mxu2 %v4163_v3  ;;  %v4290_v3 = vadd.f32 %v4289_v38, %v4288_v44 }
0x1577   :  { %v4222_v50 = vpop.f32.mrf.mxu2 }
0x1578   :  { %v4223_v15 = vadd.f32 %v5130_v60, %v4222_v50 }
0x157a   :  { %v4227_v52 = vadd.f32 %v4223_v15, %v4128_v48  ;;  %v5414_v48 = vmov 8.0  }
0x157c   :  { %v4229_v4 = vsel %vm152_vm0, %v4227_v52, 0.0 }
0x157d   :  { %4230 = vadd.xlane.f32.xlu2 %v4229_v4 }
0x157f   :  { %v4224_v32 = vpop.f32.mrf.mxu2 }
0x1580   :  { %v4225_v13 = vadd.f32 %v5130_v60, %v4224_v32 }
0x1582   :  { %v4228_v54 = vadd.f32 %v4225_v13, %v4129_v8  ;;  %v5088_v8 = vld [vmem:[%s7296_s22 + $0x8] sm:$0xff] }
0x1583   :  { %4340 = vmatpush.bf16.msrb.mxu3 %v5088_v8 }
0x1584   :  { %v4232_v30 = vsel %vm152_vm0, %v4228_v54, 0.0 }
0x1585   :  { %4233 = vadd.xlane.f32.xlu2 %v4232_v30 }
0x1587   :  { %4341 = vmatpush.bf16.msrb.mxu3 %v5087_v37 }
0x158d   :  { %3412 = vadd.xlane.f32.xlu2 %v3411_v31 }
0x15f0   :  { %v4231_v62 = vpop.xlane.xlu2 %4230 }
0x15f1   :  { %v4235_v58 = vmul.f32 %v4231_v62, %v5930_v10 }
0x15f3   :  { %v7162_v35 = vsub.f32 %v4227_v52, %v4235_v58  ;;  %v4291_v52 = vrot.slane %v4290_v3, 1 }
0x15f5   :  { %v4239_v43 = vmul.f32 %v7162_v35, %v7162_v35  ;;  %v4292_v25 = vadd.f32 %v4291_v52, %v4290_v3 }
0x15f7   :  { %v4241_v7 = vsel %vm152_vm0, %v4239_v43, 0.0 }
0x15f8   :  { %4242 = vadd.xlane.f32.xlu0 %v4241_v7  ;;  %v4234_v45 = vpop.xlane.xlu2 %4233 }
0x15f9   :  { %v4236_v6 = vmul.f32 %v4234_v45, %v5930_v10 }
0x15fb   :  { %v7168_v40 = vsub.f32 %v4228_v54, %v4236_v6 }
0x15fd   :  { %v4240_v2 = vmul.f32 %v7168_v40, %v7168_v40 }
0x15ff   :  { %v4244_v19 = vsel %vm152_vm0, %v4240_v2, 0.0  ;;  %v3490_v2 = vld [vmem:[%s7326_s30 + $0x20] sm:$0x3] }
0x1600   :  { %4245 = vadd.xlane.f32.xlu1 %v4244_v19  ;;  %v3413_v20 = vpop.xlane.xlu2 %3412  ;;  %v4273_v42 = vperm.slane %v3490_v2, 0  ;;  %v4276_v8 = vperm.slane %v3490_v2, 1 }
0x1601   :  { %v3415_v28 = vmul.f32 %v3413_v20, %v5930_v10 }
0x1603   :  { %v3417_v49 = vadd.f32 1e-05, %v3415_v28 }
0x1605   :  { %5372 = vrsqrt.f32 %v3417_v49  ;;  %vm3434_vm6 = vweird.f32 %v3417_v49 }
0x1606   :  { %5374 = vrcp.f32 %v5414_v48 }
0x160b   :  { %v5373_v34 = vpop.eup %5372 }
0x160c   :  { %v3429_v53 = vmul.f32 %v5373_v34, %v3417_v49  ;;  %v5375_v63 = vpop.eup %5374  ;;  %vm3435_vm5 = vweird.f32 %v5373_v34 }
0x160d   :  { %v4301_v46 = vmul.f32 8.0, %v5375_v63  ;;  %vm3436_vm7 = vmor %vm3434_vm6, %vm3435_vm5  ;;  %vm4305_vm8 = vweird.f32 %v5375_v63 }
0x160e   :  { %v3430_v41 = vmul.f32 %v5373_v34, %v3429_v53 }
0x160f   :  { %v4302_v1 = vsub.f32 1.0, %v4301_v46 }
0x1610   :  { %v3431_v14 = vmul.f32 0.5, %v3430_v41 }
0x1611   :  { %v4303_v60 = vmul.f32 %v5375_v63, %v4302_v1 }
0x1612   :  { %v3432_v51 = vsub.f32 1.5, %v3431_v14 }
0x1613   :  { %v4304_v23 = vadd.f32 %v5375_v63, %v4303_v60 }
0x1614   :  { %v3433_v22 = vmul.f32 %v5373_v34, %v3432_v51 }
0x1615   :  { %v7193_v54 = vsel %vm4305_vm8, %v5375_v63, %v4304_v23  ;;  %vm4534_vm8 = vcmask 1047556  }
0x1616   :  { %v3437_v24 = vsel %vm3436_vm7, %v5373_v34, %v3433_v22 }
0x1617   :  { %v3439_v55 = vmul.f32 %v3437_v24, %v7154_v57  ;;  %v4307_v57 = vmul.f32 %v7193_v54, %v4292_v25 }
0x1619   :  { %v3442_v12 = vmul.f32 %v3440_v36, %v3439_v55  ;;  %v4309_v47 = vpack.c.bf16 %v4307_v57, %v4307_v57 }
0x161b   :  { %v7189_v50 = vadd.f32 %v3443_v21, %v3442_v12  ;;  %v4314_v61 = vunpack.c.l.b16 %v4309_v47  ;;  %v5089_v21 = vld [vmem:[%s7296_s22 + $0x10] sm:$0xff] }
0x161c   :  { %4428 = vmatpush.bf16.msrb.mxu0 %v5089_v21 }
0x161d   :  { %v4293_v15 = vsel %vm152_vm0, %v7189_v50, 0.0 }
0x161e   :  { %v4294_v4 = vrot.slane %v4293_v15, 4 }
0x1620   :  { %v4295_v32 = vadd.f32 %v4294_v4, %v4293_v15 }
0x1622   :  { %v4296_v13 = vrot.slane %v4295_v32, 2 }
0x1624   :  { %v4297_v30 = vadd.f32 %v4296_v13, %v4295_v32 }
0x1626   :  { %v4298_v18 = vrot.slane %v4297_v30, 1 }
0x1628   :  { %v4299_v31 = vadd.f32 %v4298_v18, %v4297_v30 }
0x162a   :  { %v4308_v16 = vmul.f32 %v7193_v54, %v4299_v31 }
0x162c   :  { %v4310_v39 = vpack.c.bf16 %v4308_v16, %v4308_v16  ;;  %v5131_v16 = vld [vmem:[%s7326_s30 + $0x22] ss:$0 sm:$0xff] }
0x162e   :  { %v4315_v29 = vunpack.c.l.b16 %v4310_v39 }
0x1630   :  { %v4317_v0 = vsel %vm4316_vm9, %v4315_v29, %v4314_v61 }
0x1631   :  { %v4318_v9 = vpack.c.b16 %v4317_v0, %v4317_v0 }
0x1633   :  { %5013 = vmatmul.msk.bf16.vlgmr.msrb.gmra.mxu3 %vm152_vm0, %v4318_v9 }
0x166b   :  { %v4243_v62 = vpop.xlane.xlu0 %4242 }
0x166c   :  { %v4247_v58 = vmul.f32 %v4243_v62, %v5930_v10 }
0x166e   :  { %v4249_v56 = vadd.f32 1e-05, %v4247_v58 }
0x1670   :  { %5376 = vrsqrt.f32 %v4249_v56  ;;  %vm4257_vm1 = vweird.f32 %v4249_v56 }
0x1673   :  { %v4246_v43 = vpop.xlane.xlu1 %4245 }
0x1674   :  { %v4248_v7 = vmul.f32 %v4246_v43, %v5930_v10 }
0x1676   :  { %v5377_v59 = vpop.eup %5376  ;;  %v4250_v45 = vadd.f32 1e-05, %v4248_v7  ;;  %v5132_v7 = vld [vmem:[%s7326_s30 + $0x23] ss:$0 sm:$0xff] }
0x1677   :  { %v4252_v6 = vmul.f32 %v5377_v59, %v4249_v56  ;;  %vm4258_vm10 = vweird.f32 %v5377_v59 }
0x1678   :  { %5378 = vrsqrt.f32 %v4250_v45  ;;  %vm4259_vm2 = vmor %vm4257_vm1, %vm4258_vm10  ;;  %vm4267_vm11 = vweird.f32 %v4250_v45  ;;  %vm4613_vm10 = vcmask 785408  }
0x1679   :  { %v4253_v26 = vmul.f32 %v5377_v59, %v4252_v6 }
0x167b   :  { %v4254_v33 = vmul.f32 0.5, %v4253_v26  ;;  %v5133_v26 = vld [vmem:[%s7326_s30 + $0x24] ss:$0 sm:$0xff] }
0x167d   :  { %v4255_v36 = vsub.f32 1.5, %v4254_v33 }
0x167e   :  { %v5379_v19 = vpop.eup %5378 }
0x167f   :  { %v4256_v20 = vmul.f32 %v5377_v59, %v4255_v36  ;;  %v4262_v28 = vmul.f32 %v5379_v19, %v4250_v45  ;;  %vm4268_vm3 = vweird.f32 %v5379_v19 }
0x1680   :  { %vm4269_vm12 = vmor %vm4267_vm11, %vm4268_vm3 }
0x1681   :  { %v4260_v49 = vsel %vm4259_vm2, %v5377_v59, %v4256_v20  ;;  %v4263_v48 = vmul.f32 %v5379_v19, %v4262_v28 }
0x1682   :  { %v4271_v34 = vmul.f32 %v4260_v49, %v7162_v35 }
0x1683   :  { %v4264_v17 = vmul.f32 0.5, %v4263_v48 }
0x1684   :  { %v4274_v53 = vmul.f32 %v4273_v42, %v4271_v34 }
0x1685   :  { %v4265_v37 = vsub.f32 1.5, %v4264_v17 }
0x1686   :  { %v7211_v5 = vadd.f32 %v4276_v8, %v4274_v53 }
0x1687   :  { %v4266_v41 = vmul.f32 %v5379_v19, %v4265_v37  ;;  %v5135_v37 = vld [vmem:[%s7326_s30 + $0x26] ss:$0 sm:$0xff] }
0x1688   :  { %v4381_v63 = vsel %vm152_vm0, %v7211_v5, 0.0 }
0x1689   :  { %v4382_v14 = vrot.slane %v4381_v63, 4  ;;  %v4270_v44 = vsel %vm4269_vm12, %v5379_v19, %v4266_v41 }
0x168a   :  { %v4272_v51 = vmul.f32 %v4270_v44, %v7168_v40 }
0x168b   :  { %v4383_v46 = vadd.f32 %v4382_v14, %v4381_v63 }
0x168c   :  { %v4275_v22 = vmul.f32 %v4273_v42, %v4272_v51 }
0x168d   :  { %v4384_v35 = vrot.slane %v4383_v46, 2 }
0x168e   :  { %v7216_v38 = vadd.f32 %v4276_v8, %v4275_v22  ;;  %v5134_v8 = vld [vmem:[%s7326_s30 + $0x25] ss:$0 sm:$0xff]  ;;  %s5418_s30 = smov 32  }
0x168f   :  { %v4385_v24 = vadd.f32 %v4384_v35, %v4383_v46 }
0x1690   :  { %v4388_v1 = vsel %vm152_vm0, %v7216_v38, 0.0 }
0x1691   :  { %v4386_v55 = vrot.slane %v4385_v24, 1  ;;  %v4389_v12 = vrot.slane %v4388_v1, 4 }
0x1693   :  { %v4390_v3 = vadd.f32 %v4389_v12, %v4388_v1  ;;  %v4387_v60 = vadd.f32 %v4386_v55, %v4385_v24 }
0x1695   :  { %v4391_v15 = vrot.slane %v4390_v3, 2  ;;  %v4395_v4 = vmul.f32 %v4387_v60, %v7193_v54 }
0x1697   :  { %v4392_v52 = vadd.f32 %v4391_v15, %v4390_v3  ;;  %v4397_v25 = vpack.c.bf16 %v4395_v4, %v4395_v4 }
0x1699   :  { %v4393_v23 = vrot.slane %v4392_v52, 1  ;;  %v4402_v30 = vunpack.c.l.b16 %v4397_v25 }
0x169b   :  { %v4394_v32 = vadd.f32 %v4393_v23, %v4392_v52  ;;  %v5415_v52 = vmov 1  }
0x169c   :  { %5107 = vset.pattern.permute.xlu2 %v5415_v52 }
0x169d   :  { %v4396_v40 = vmul.f32 %v4394_v32, %v7193_v54 }
0x169f   :  { %v4398_v13 = vpack.c.bf16 %v4396_v40, %v4396_v40 }
0x16a1   :  { %v4403_v57 = vunpack.c.l.b16 %v4398_v13 }
0x16a3   :  { %v4404_v18 = vsel %vm4316_vm9, %v4403_v57, %v4402_v30  ;;  %vm4611_vm9 = vcmask 523264  }
0x16a4   :  { %v4405_v31 = vpack.c.b16 %v4404_v18, %v4404_v18 }
0x16a6   :  { %5026 = vmatmul.msk.bf16.vlgmr.msrb.gmra.mxu0 %vm152_vm0, %v4405_v31 }
0x16b6   :  { %v4343_v47 = vpop.f32.mrf.mxu3 }
0x16b7   :  { %v4344_v39 = vadd.f32 %v5131_v16, %v4343_v47 }
0x16b9   :  { %v4348_v61 = vmul.f32 0.044715, %v4344_v39  ;;  %v4347_v56 = vmul.f32 0.5, %v4344_v39 }
0x16bb   :  { %v4349_v29 = vmul.f32 %v4348_v61, %v4344_v39 }
0x16bd   :  { %v4350_v0 = vmul.f32 %v4349_v29, %v4344_v39 }
0x16be   :  { %v4345_v9 = vpop.f32.mrf.mxu3 }
0x16bf   :  { %v4351_v54 = vadd.f32 %v4350_v0, %v4344_v39 }
0x16c1   :  { %v4352_v62 = vmul.f32 0.7978846, %v4351_v54 }
0x16c3   :  { %5380 = vtanh.f32 %v4352_v62 }
0x16c9   :  { %v5381_v58 = vpop.eup %5380 }
0x16ca   :  { %v4354_v43 = vadd.f32 1.0, %v5381_v58 }
0x16cc   :  { %v4355_v59 = vmul.f32 %v4354_v43, %v4347_v56 }
0x16ce   :  { %v4357_v45 = vmul.f32 %v5132_v7, %v4355_v59 }
0x16d0   :  { %v4359_v6 = vsel %vm4358_vm13, %v4357_v45, 0.0 }
0x16d1   :  { %4360 = vadd.xlane.f32.xlu2 %v4359_v6 }
0x1723   :  { %v4430_v33 = vpop.f32.mrf.mxu0 }
0x1724   :  { %v4431_v2 = vadd.f32 %v5133_v26, %v4430_v33 }
0x1726   :  { %v4435_v36 = vmul.f32 0.044715, %v4431_v2  ;;  %v4434_v49 = vmul.f32 0.5, %v4431_v2 }
0x1728   :  { %v4436_v11 = vmul.f32 %v4435_v36, %v4431_v2 }
0x172a   :  { %v4437_v19 = vmul.f32 %v4436_v11, %v4431_v2 }
0x172b   :  { %v4432_v20 = vpop.f32.mrf.mxu0 }
0x172c   :  { %v4438_v28 = vadd.f32 %v4437_v19, %v4431_v2 }
0x172e   :  { %v4439_v21 = vmul.f32 0.7978846, %v4438_v28 }
0x1730   :  { %5382 = vtanh.f32 %v4439_v21 }
0x1736   :  { %v5383_v42 = vpop.eup %5382 }
0x1737   :  { %v4441_v48 = vadd.f32 1.0, %v5383_v42 }
0x1739   :  { %v4442_v34 = vmul.f32 %v4441_v48, %v4434_v49 }
0x173b   :  { %v4444_v17 = vmul.f32 %v5134_v8, %v4442_v34 }
0x173d   :  { %v4445_v53 = vsel %vm4358_vm13, %v4444_v17, 0.0 }
0x173e   :  { %4446 = vadd.xlane.f32.xlu0 %v4445_v53 }
0x1744   :  { %v4361_v41 = vpop.xlane.xlu2 %4360 }
0x1745   :  { %v4363_v63 = vadd.f32 %v5135_v37, %v4361_v41 }
0x1747   :  { %5384 = vtanh.f32 %v4363_v63 }
0x174d   :  { %v5385_v14 = vpop.eup %5384 }
0x174e   :  { %v4366_v44 = vmul.f32 0.044715, %v5385_v14  ;;  %v4365_v1 = vmul.f32 0.5, %v5385_v14 }
0x1750   :  { %v4367_v51 = vmul.f32 %v5385_v14, %v4366_v44 }
0x1752   :  { %v4368_v46 = vmul.f32 %v5385_v14, %v4367_v51  ;;  %v5416_v51 = vmov 1983009808  }
0x1754   :  { %v4369_v22 = vadd.f32 %v5385_v14, %v4368_v46  ;;  %v4537_v46 = vunpack.c.l.s4 %v5416_v51 }
0x1756   :  { %v4370_v35 = vmul.f32 0.7978846, %v4369_v22 }
0x1758   :  { %5386 = vtanh.f32 %v4370_v35 }
0x175e   :  { %v5387_v24 = vpop.eup %5386 }
0x175f   :  { %v4372_v55 = vadd.f32 1.0, %v5387_v24 }
0x1761   :  { %v4373_v12 = vmul.f32 %v4372_v55, %v4365_v1  ;;  %v4538_v1 = vunpack.c.0.s8 %v4537_v46 }
0x1763   :  { %v4461_v3 = vperm.slane %v4373_v12, 0  ;;  %v4460_v60 = vrot.slane %v4373_v12, 1 }
0x1765   :  { %4464 = vperm.xlu0 %5105, %v4461_v3   ;;  %v4462_v15 = vperm.slane %v4460_v60, 0  ;;  %v5417_v3 = vmov 1934713408  }
0x1766   :  { %v4559_v60 = vunpack.c.l.s4 %v5417_v3 }
0x1767   :  { %4468 = vperm.xlu1 %5106, %v4462_v15  }
0x176d   :  { %5108 = vset.pattern.permute.xlu0 %v5415_v52 }
0x17b1   :  { %v4447_v4 = vpop.xlane.xlu0 %4446 }
0x17b2   :  { %v4448_v23 = vadd.f32 %v5135_v37, %v4447_v4 }
0x17b4   :  { %5388 = vtanh.f32 %v4448_v23 }
0x17ba   :  { %v5389_v32 = vpop.eup %5388 }
0x17bb   :  { %v4451_v40 = vmul.f32 0.044715, %v5389_v32  ;;  %v4450_v31 = vmul.f32 0.5, %v5389_v32 }
0x17bd   :  { %v4452_v25 = vmul.f32 %v5389_v32, %v4451_v40 }
0x17bf   :  { %v4453_v13 = vmul.f32 %v5389_v32, %v4452_v25 }
0x17c1   :  { %v4454_v30 = vadd.f32 %v5389_v32, %v4453_v13  ;;  %v4560_v32 = vunpack.c.0.s8 %v4559_v60 }
0x17c3   :  { %v4455_v57 = vmul.f32 0.7978846, %v4454_v30 }
0x17c5   :  { %5390 = vtanh.f32 %v4455_v57 }
0x17cb   :  { %v5391_v18 = vpop.eup %5390 }
0x17cc   :  { %v4457_v16 = vadd.f32 1.0, %v5391_v18 }
0x17ce   :  { %v4458_v47 = vmul.f32 %v4457_v16, %v4450_v31 }
0x17d0   :  { %v4475_v39 = vperm.slane %v4458_v47, 0  ;;  %v4474_v61 = vrot.slane %v4458_v47, 1 }
0x17d2   :  { %4478 = vperm.xlu0 %5108, %v4475_v39   ;;  %v4476_v29 = vperm.slane %v4474_v61, 0 }
0x17d4   :  { %4482 = vperm.xlu2 %5107, %v4476_v29  }
0x17d7   :  { %v4465_v43 = vpop.permute.xlu0 %4464 }
0x17d8   :  { %v4471_v59 = vmul.f32 %v4465_v43, %v7178_v27 }
0x17d9   :  { %v4469_v0 = vpop.permute.xlu1 %4468 }
0x17da   :  { %v4472_v54 = vmul.f32 %v4469_v0, %v7189_v50 }
0x182e   :  { %v4483_v9 = vpop.permute.xlu2 %4482 }
0x182f   :  { %v4486_v62 = vmul.f32 %v4483_v9, %v7216_v38 }
0x1831   :  { %v4488_v58 = vadd.f32 %v4486_v62, %v4472_v54 }
0x1833   :  { %v4492_v56 = vsel %vm152_vm0, %v4488_v58, 0.0 }
0x1834   :  { %4493 = vadd.xlane.f32.xlu1 %v4492_v56 }
0x1844   :  { %v4479_v7 = vpop.permute.xlu0 %4478 }
0x1845   :  { %v4485_v45 = vmul.f32 %v4479_v7, %v7211_v5 }
0x1847   :  { %v4487_v6 = vadd.f32 %v4485_v45, %v4471_v59 }
0x1849   :  { %v4489_v26 = vsel %vm152_vm0, %v4487_v6, 0.0 }
0x184a   :  { %4490 = vadd.xlane.f32.xlu2 %v4489_v26 }
0x18a7   :  { %v4494_v33 = vpop.xlane.xlu1 %4493 }
0x18a8   :  { %v4496_v2 = vmul.f32 %v4494_v33, %v5930_v10 }
0x18aa   :  { %v4498_v50 = vsub.f32 %v4488_v58, %v4496_v2 }
0x18ac   :  { %v4500_v36 = vmul.f32 %v4498_v50, %v4498_v50 }
0x18ae   :  { %v4504_v38 = vsel %vm152_vm0, %v4500_v36, 0.0 }
0x18af   :  { %4505 = vadd.xlane.f32.xlu0 %v4504_v38 }
0x18bd   :  { %v4491_v11 = vpop.xlane.xlu2 %4490 }
0x18be   :  { %v4495_v19 = vmul.f32 %v4491_v11, %v5930_v10 }
0x18c0   :  { %v4497_v20 = vsub.f32 %v4487_v6, %v4495_v19 }
0x18c2   :  { %v4499_v28 = vmul.f32 %v4497_v20, %v4497_v20 }
0x18c4   :  { %v4501_v27 = vsel %vm152_vm0, %v4499_v28, 0.0 }
0x18c5   :  { %4502 = vadd.xlane.f32.xlu2 %v4501_v27 }
0x1922   :  { %v4506_v5 = vpop.xlane.xlu0 %4505 }
0x1923   :  { %v4508_v21 = vmul.f32 %v4506_v5, %v5930_v10 }
0x1925   :  { %v4510_v42 = vadd.f32 1e-05, %v4508_v21 }
0x1927   :  { %5392 = vrsqrt.f32 %v4510_v42  ;;  %vm4527_vm15 = vweird.f32 %v4510_v42 }
0x192d   :  { %v5393_v49 = vpop.eup %5392 }
0x192e   :  { %v4522_v48 = vmul.f32 %v5393_v49, %v4510_v42  ;;  %vm4528_vm14 = vweird.f32 %v5393_v49 }
0x192f   :  { %vm4529_vm4 = vmor %vm4527_vm15, %vm4528_vm14 }
0x1930   :  { %v4523_v8 = vmul.f32 %v5393_v49, %v4522_v48 }
0x1932   :  { %v4524_v53 = vmul.f32 0.5, %v4523_v8 }
0x1934   :  { %v4525_v41 = vsub.f32 1.5, %v4524_v53 }
0x1936   :  { %v4526_v63 = vmul.f32 %v5393_v49, %v4525_v41 }
0x1938   :  { %v4503_v34 = vpop.xlane.xlu2 %4502  ;;  %v4530_v22 = vsel %vm4529_vm4, %v5393_v49, %v4526_v63 }
0x1939   :  { %v4507_v17 = vmul.f32 %v4503_v34, %v5930_v10  ;;  %v4532_v55 = vmul.f32 %v4530_v22, %v4498_v50 }
0x193b   :  { %v4509_v37 = vadd.f32 1e-05, %v4507_v17  ;;  %v4544_v15 = vrot.slane %v4532_v55, 4  ;;  %v4549_v52 = vperm.slane %v4532_v55, %v4538_v1 }
0x193d   :  { %5394 = vrsqrt.f32 %v4509_v37  ;;  %vm4517_vm6 = vweird.f32 %v4509_v37  ;;  %v4545_v40 = vsel %vm4534_vm8, 0.0, %v4544_v15  ;;  %v4554_v30 = vrot.slane %v4549_v52, 4 }
0x193e   :  { %v4553_v47 = vperm.slane %v4545_v40, %v4538_v1 }
0x1940   :  { %v4566_v9 = vrot.slane %v4553_v47, 4 }
0x1943   :  { %v5395_v14 = vpop.eup %5394 }
0x1944   :  { %v4512_v44 = vmul.f32 %v5395_v14, %v4509_v37  ;;  %vm4518_vm5 = vweird.f32 %v5395_v14 }
0x1945   :  { %vm4519_vm7 = vmor %vm4517_vm6, %vm4518_vm5 }
0x1946   :  { %v4513_v35 = vmul.f32 %v5395_v14, %v4512_v44 }
0x1948   :  { %v4514_v24 = vmul.f32 0.5, %v4513_v35 }
0x194a   :  { %v4515_v12 = vsub.f32 1.5, %v4514_v24 }
0x194c   :  { %v4516_v10 = vmul.f32 %v5395_v14, %v4515_v12 }
0x194e   :  { %v4520_v4 = vsel %vm4519_vm7, %v5395_v14, %v4516_v10 }
0x194f   :  { %v4531_v23 = vmul.f32 %v4520_v4, %v4497_v20 }
0x1951   :  { %v4533_v25 = vrot.slane %v4531_v23, 4  ;;  %v4539_v13 = vperm.slane %v4531_v23, %v4538_v1 }
0x1953   :  { %v4535_v57 = vsel %vm4534_vm8, 0.0, %v4533_v25  ;;  %v4555_v18 = vsel %vm4534_vm8, %v4554_v30, %v4539_v13  ;;  %v4556_v62 = vrot.slane %v4539_v13, 4 }
0x1954   :  { %v4543_v31 = vperm.slane %v4535_v57, %v4538_v1  ;;  %v4561_v16 = vperm.slane %v4555_v18, %v4560_v32 }
0x1955   :  { %v4557_v59 = vsel %vm4534_vm8, %v4549_v52, %v4556_v62 }
0x1956   :  { %v4578_v39 = vrot.slane %v4561_v16, 4  ;;  %v4568_v61 = vrot.slane %v4543_v31, 4  ;;  %v4567_v58 = vsel %vm4534_vm8, %v4566_v9, %v4543_v31  ;;  %v4565_v45 = vperm.slane %v4557_v59, %v4560_v32 }
0x1957   :  { %v4573_v7 = vperm.slane %v4567_v58, %v4560_v32 }
0x1958   :  { %v4579_v29 = vsel %vm4534_vm8, 0.0, %v4578_v39  ;;  %v4569_v0 = vsel %vm4534_vm8, %v4553_v47, %v4568_v61  ;;  %v4580_v33 = vrot.slane %v4565_v45, 4 }
0x1959   :  { %4587 = vrot.lane.b32.xlu0 %v4579_v29, %s5418_s30  ;;  %v4577_v54 = vperm.slane %v4569_v0, %v4560_v32  ;;  %v4582_v6 = vrot.slane %v4573_v7, 4 }
0x195a   :  { %v4581_v2 = vsel %vm4534_vm8, 0.0, %v4580_v33 }
0x195b   :  { %4603 = vrot.lane.b32.xlu2 %v4577_v54, %s7332_s1  ;;  %v4584_v56 = vrot.slane %v4577_v54, 4  ;;  %v4583_v26 = vsel %vm4534_vm8, 0.0, %v4582_v6 }
0x195d   :  { %v4585_v43 = vsel %vm4534_vm8, 0.0, %v4584_v56 }
0x195e   :  { %4607 = vrot.lane.b32.xlu1 %v4585_v43, %s5407_s7 }
0x1963   :  { %4591 = vrot.lane.b32.xlu2 %v4565_v45, %s7332_s1 }
0x1966   :  { %4599 = vrot.lane.b32.xlu1 %v4583_v26, %s5418_s30 }
0x196e   :  { %4595 = vrot.lane.b32.xlu1 %v4581_v2, %s5407_s7 }
0x19b5   :  { %v4604_v36 = vpop.permute.xlu2 %4603 }
0x19bd   :  { %v4592_v5 = vpop.permute.xlu2 %4591 }
0x19cb   :  { %v4588_v19 = vpop.permute.xlu0 %4587 }
0x19cc   :  { %v4610_v28 = vsel %vm152_vm0, %v4561_v16, %v4588_v19 }
0x19cd   :  { %v4612_v21 = vsel %vm4611_vm9, %v4610_v28, %v4592_v5 }
0x19d0   :  { %v4608_v50 = vpop.permute.xlu1 %4607 }
0x19d8   :  { %v4600_v38 = vpop.permute.xlu1 %4599 }
0x19d9   :  { %v4615_v11 = vsel %vm152_vm0, %v4573_v7, %v4600_v38 }
0x19da   :  { %v4616_v20 = vsel %vm4611_vm9, %v4615_v11, %v4604_v36 }
0x19db   :  { %v4617_v27 = vsel %vm4613_vm10, %v4616_v20, %v4608_v50 }
0x19dc   :  { %v4620_v42 = vrot.slane %v4617_v27, 6 }
0x19e0   :  { %v4596_v49 = vpop.permute.xlu1 %4595 }
0x19e1   :  { %v4614_v48 = vsel %vm4613_vm10, %v4612_v21, %v4596_v49 }
0x19e2   :  { %v4621_v8 = vsel %vm4358_vm13, %v4614_v48, %v4620_v42 }
0x19e3   :  { %4623 = vst [vmem:[%s7297_s24] sm:$0xf] %v4621_v8 }

</bundles_post_ra>
